<compile_context>
chip_gen: v6e
topology: v6e:2x2x1
jax: 0.10.0
libtpu: 0.0.40
codegen_flags: <defaults>
</compile_context>

<pallas_src>
import functools

import jax
import jax.numpy as jnp
from jax.experimental import pallas as pl
from jax.experimental.pallas import tpu as pltpu

# 48 MiB scoped-VMEM ceiling: comfortably above the actual ~10-16 MiB per-step
# footprint, and below v7x's 64 MiB physical VMEM (v5e/v6e have 128 MiB).
_VMEM_LIMIT = 48 * 1024 * 1024
_LANE = 128
_POINT_TILE_TARGET = 1024  # points per grid step (review: raise from 512)


# ----------------------------------------------------------------------------
# Kernels
# ----------------------------------------------------------------------------
def _mlp2_point_kernel(x_ref, w1_ref, b1_ref, w2_ref, b2_ref, o_ref):
    """Per-point 2-layer MLP; first-layer weight is per-batch (bmm folded in).

    The first matmul runs in whatever dtype the weight was supplied in
    (f32 for the raw-xyz K=3 layer, bf16 elsewhere)."""
    w1 = w1_ref[...]
    h = jnp.dot(x_ref[...].astype(w1.dtype), w1,
                preferred_element_type=jnp.float32) + b1_ref[...]
    h = jnp.maximum(h, 0.0).astype(jnp.bfloat16)
    h = jnp.dot(h, w2_ref[...], preferred_element_type=jnp.float32) + b2_ref[...]
    h = jnp.maximum(h, 0.0)                                   # f32 elementwise
    o_ref[...] = h.astype(o_ref.dtype)                        # (TN, 128) lane-dense


def _mlp3_pool_head_kernel(x_ref, w1_ref, b1_ref, w2_ref, b2_ref, w3_ref, b3_ref,
                           w4_ref, b4_ref, w5_ref, b5_ref, w6_ref, b6_ref,
                           o_ref, pool_ref):
    """Per-point 3-layer MLP + running global max over points; on the final
    point-tile step, the pooled (1, 1024) feature is pushed through the fused
    3-layer dense head (relu, relu, linear) and written lane-dense."""
    n = pl.program_id(1)

    @pl.when(n == 0)
    def _init():
        pool_ref[...] = jnp.full_like(pool_ref, -jnp.inf)

    w1 = w1_ref[...]
    h = jnp.dot(x_ref[...].astype(w1.dtype), w1,
                preferred_element_type=jnp.float32) + b1_ref[...]
    h = jnp.maximum(h, 0.0).astype(jnp.bfloat16)
    h = jnp.dot(h, w2_ref[...], preferred_element_type=jnp.float32) + b2_ref[...]
    h = jnp.maximum(h, 0.0).astype(jnp.bfloat16)
    h = jnp.dot(h, w3_ref[...], preferred_element_type=jnp.float32) + b3_ref[...]
    h = jnp.maximum(h, 0.0)                                   # (TN, 1024) f32
    pool_ref[...] = jnp.maximum(pool_ref[...], jnp.max(h, axis=0, keepdims=True))

    @pl.when(n == pl.num_programs(1) - 1)
    def _head():
        g = pool_ref[...].astype(jnp.bfloat16)                # (1, 1024)
        g = jnp.dot(g, w4_ref[...], preferred_element_type=jnp.float32) + b4_ref[...]
        g = jnp.maximum(g, 0.0).astype(jnp.bfloat16)
        g = jnp.dot(g, w5_ref[...], preferred_element_type=jnp.float32) + b5_ref[...]
        g = jnp.maximum(g, 0.0).astype(jnp.bfloat16)
        g = jnp.dot(g, w6_ref[...], preferred_element_type=jnp.float32) + b6_ref[...]
        o_ref[...] = g                                        # (1, C6) no relu


# ----------------------------------------------------------------------------
# Wrappers (tiling / BlockSpecs)
# ----------------------------------------------------------------------------
def _point_tiling(N, target=_POINT_TILE_TARGET):
    """Return (tile, padded_N). Tile is 16-aligned (bf16 sublane packing); the
    caller pads the point axis to `padded_N` by replicating a real point, which
    is exact for both the per-point MLP and the global max pool."""
    if N <= target:
        tn = max(16, -(-N // 16) * 16)
        return tn, tn
    return target, -(-N // target) * target


def point_mlp2(x, w1_eff, b1, w2, b2, tn):
    """x:(B,N,Cin), w1_eff:(B,Cin,C1) -> (B, N, C2) bf16 (C2 lane-dense)."""
    B, N, Cin = x.shape
    C1 = w1_eff.shape[2]
    C2 = w2.shape[1]
    return pl.pallas_call(
        _mlp2_point_kernel,
        out_shape=jax.ShapeDtypeStruct((B, N, C2), jnp.bfloat16),
        grid=(B, N // tn),
        in_specs=[
            pl.BlockSpec((None, tn, Cin), lambda b, n: (b, n, 0)),
            pl.BlockSpec((None, Cin, C1), lambda b, n: (b, 0, 0)),
            pl.BlockSpec((1, C1), lambda b, n: (0, 0)),
            pl.BlockSpec((C1, C2), lambda b, n: (0, 0)),
            pl.BlockSpec((1, C2), lambda b, n: (0, 0)),
        ],
        out_specs=pl.BlockSpec((None, tn, C2), lambda b, n: (b, n, 0)),
        compiler_params=pltpu.CompilerParams(
            dimension_semantics=("parallel", "parallel"),
            vmem_limit_bytes=_VMEM_LIMIT),
    )(x, w1_eff, b1, w2, b2)


def point_mlp3_pool_head(x, w1, b1, w2, b2, w3, b3, w4, b4, w5, b5, w6, b6, tn):
    """x:(B,N,Cin) -> (B, C6) f32.

    Per-point 3-layer MLP, global max pool over points, fused 3-layer head.
    `w1` may be per-batch (B,Cin,C1) (bmm folded) or shared (Cin,C1) — the
    shared case stays VMEM-resident via a constant index_map (no broadcast)."""
    B, N, Cin = x.shape
    per_batch_w1 = (w1.ndim == 3)
    C1 = w1.shape[-1]
    C2, C3 = w2.shape[1], w3.shape[1]
    C4, C5, C6 = w4.shape[1], w5.shape[1], w6.shape[1]

    if per_batch_w1:
        w1_spec = pl.BlockSpec((None, Cin, C1), lambda b, n: (b, 0, 0))
    else:
        w1_spec = pl.BlockSpec((Cin, C1), lambda b, n: (0, 0))

    out = pl.pallas_call(
        _mlp3_pool_head_kernel,
        out_shape=jax.ShapeDtypeStruct((B, 1, C6), jnp.float32),
        grid=(B, N // tn),
        in_specs=[
            pl.BlockSpec((None, tn, Cin), lambda b, n: (b, n, 0)),
            w1_spec,
            pl.BlockSpec((1, C1), lambda b, n: (0, 0)),
            pl.BlockSpec((C1, C2), lambda b, n: (0, 0)),
            pl.BlockSpec((1, C2), lambda b, n: (0, 0)),
            pl.BlockSpec((C2, C3), lambda b, n: (0, 0)),
            pl.BlockSpec((1, C3), lambda b, n: (0, 0)),
            pl.BlockSpec((C3, C4), lambda b, n: (0, 0)),
            pl.BlockSpec((1, C4), lambda b, n: (0, 0)),
            pl.BlockSpec((C4, C5), lambda b, n: (0, 0)),
            pl.BlockSpec((1, C5), lambda b, n: (0, 0)),
            pl.BlockSpec((C5, C6), lambda b, n: (0, 0)),
            pl.BlockSpec((1, C6), lambda b, n: (0, 0)),
        ],
        out_specs=pl.BlockSpec((None, 1, C6), lambda b, n: (b, 0, 0)),
        scratch_shapes=[pltpu.VMEM((1, C3), jnp.float32)],
        compiler_params=pltpu.CompilerParams(
            dimension_semantics=("parallel", "arbitrary"),
            vmem_limit_bytes=_VMEM_LIMIT),
    )(x, w1, b1, w2, b2, w3, b3, w4, b4, w5, b5, w6, b6)
    return out.reshape(B, C6)


# ----------------------------------------------------------------------------
# Deterministic parameters (synthetic weights, BN folded in eval mode)
# ----------------------------------------------------------------------------
def init_block(key, cin, cout, bn=True, eps=1e-5, w_dtype=jnp.bfloat16):
    kw, kb, kg, kbe, km, kv = jax.random.split(key, 6)
    w = jax.random.normal(kw, (cout, cin), jnp.float32) / jnp.sqrt(float(cin))
    b = 0.1 * jax.random.normal(kb, (cout,), jnp.float32)
    if bn:
        gamma = 1.0 + 0.1 * jax.random.normal(kg, (cout,), jnp.float32)
        beta = 0.1 * jax.random.normal(kbe, (cout,), jnp.float32)
        mean = 0.1 * jax.random.normal(km, (cout,), jnp.float32)
        var = 1.0 + 0.1 * jax.random.uniform(kv, (cout,), jnp.float32)
        scale = gamma / jnp.sqrt(var + eps)
        bias = (b - mean) * scale + beta
    else:
        scale = jnp.ones((cout,), jnp.float32)
        bias = b
    w_t = w.T * scale[None, :]                      # BN scale folded into weights
    return dict(w_t=w_t.astype(w_dtype),
                bias=bias.reshape(1, cout).astype(jnp.float32))


def _pad_out(blk, multiple=_LANE):
    """Zero-pad output channels up to a multiple of 128 (lane-dense stores).
    Padded channels stay exactly 0 after bias+ReLU (bias padded with 0)."""
    w, b = blk["w_t"], blk["bias"]
    cout = w.shape[1]
    pad_to = -(-cout // multiple) * multiple
    if pad_to == cout:
        return blk
    w_p = jnp.zeros((w.shape[0], pad_to), w.dtype).at[:, :cout].set(w)
    b_p = jnp.zeros((1, pad_to), b.dtype).at[:, :cout].set(b)
    return dict(w_t=w_p, bias=b_p)


def _pad_in(blk, width):
    """Zero-pad input channels to `width` (consume zero-padded activations)."""
    w = blk["w_t"]
    cin = w.shape[0]
    if cin >= width:
        return blk
    w_p = jnp.zeros((width, w.shape[1]), w.dtype).at[:cin, :].set(w)
    return dict(w_t=w_p, bias=blk["bias"])


def init_transform(key, d, cin_pad=None, w1_dtype=jnp.bfloat16):
    ks = jax.random.split(key, 6)
    b1 = init_block(ks[0], d, 64, w_dtype=w1_dtype)
    if cin_pad is not None:
        b1 = _pad_in(b1, cin_pad)
    return dict(
        b1=b1,
        b2=init_block(ks[1], 64, 128),
        b3=init_block(ks[2], 128, 1024),
        b4=init_block(ks[3], 1024, 512),
        b5=init_block(ks[4], 512, 256),
        b6=_pad_out(init_block(ks[5], 256, d * d, bn=False)),
    )


def init_model(key, n_classes):
    ks = jax.random.split(key, 10)
    return dict(
        # Input T-Net: raw xyz first layer kept in f32 for precision.
        t1=init_transform(ks[0], 3, w1_dtype=jnp.float32),
        b1=init_block(ks[1], 3, 64, w_dtype=jnp.float32),   # composed with t1 at runtime
        b2=_pad_out(init_block(ks[2], 64, 64)),             # feat lane-dense 64 -> 128
        # Feature T-Net consumes the 128-wide (zero-padded) feat.
        t2=init_transform(ks[3], 64, cin_pad=_LANE),
        b3=init_block(ks[4], 64, 64, w_dtype=jnp.float32),  # composed with t2 at runtime
        b4=init_block(ks[5], 64, 128),
        b5=init_block(ks[6], 128, 1024),
        b6=init_block(ks[7], 1024, 512),
        b7=init_block(ks[8], 512, 256),
        b8=_pad_out(init_block(ks[9], 256, n_classes, bn=False)),
    )


# ----------------------------------------------------------------------------
# Forward passes
# ----------------------------------------------------------------------------
def transform_forward(tp, x, d, tn):
    """transformationNet: x (B, N, Cin) -> (B, d, d)."""
    B = x.shape[0]
    g = point_mlp3_pool_head(
        x,
        tp["b1"]["w_t"], tp["b1"]["bias"],       # shared 2-D w1 (no broadcast)
        tp["b2"]["w_t"], tp["b2"]["bias"],
        tp["b3"]["w_t"], tp["b3"]["bias"],
        tp["b4"]["w_t"], tp["b4"]["bias"],
        tp["b5"]["w_t"], tp["b5"]["bias"],
        tp["b6"]["w_t"], tp["b6"]["bias"],
        tn)                                      # (B, >= d*d)
    g = g[:, : d * d] + jnp.eye(d, dtype=jnp.float32).reshape(1, d * d)
    return g.reshape(B, d, d)


def pointnet_forward(p, x, n_classes):
    """x (B, N, 3) -> (logits (B, n_classes), transforms_2 (B, 64, 64))."""
    B, N, _ = x.shape
    x = x.astype(jnp.float32)

    # Point-axis tiling: pad N with replicated real points so every kernel runs
    # on full tiles (exact: duplicates don't change per-point MLPs or the max).
    tn, n_pad = _point_tiling(N)
    if n_pad != N:
        pad = jnp.broadcast_to(x[:, :1, :], (B, n_pad - N, 3))
        x = jnp.concatenate([x, pad], axis=1)

    # ---- input T-Net on raw 3-D points (pool + head fused) ----
    t1 = transform_forward(p["t1"], x, 3, tn)                          # (B, 3, 3)

    # ---- bmm(x, t1) folded into block1's per-batch weight; blocks 1-2 fused ----
    w1_eff = jnp.einsum("bde,ef->bdf", t1, p["b1"]["w_t"])             # (B,3,64) f32
    feat = point_mlp2(x, w1_eff, p["b1"]["bias"],
                      p["b2"]["w_t"], p["b2"]["bias"], tn)             # (B,Np,128) bf16

    # ---- feature T-Net (shared first-layer weight, input-padded to 128) ----
    t2 = transform_forward(p["t2"], feat, 64, tn)                      # (B, 64, 64)

    # ---- bmm(feat, t2) folded into block3; blocks 3-5 + pool + head fused ----
    w3_eff = jnp.einsum("bde,ef->bdf", t2, p["b3"]["w_t"])             # (B,64,64) f32
    pad_rows = feat.shape[2] - w3_eff.shape[1]                         # zero rows for
    w3_eff = jnp.pad(w3_eff, ((0, 0), (0, pad_rows), (0, 0)))          # padded feat chans
    w3_eff = w3_eff.astype(jnp.bfloat16)                               # (B,128,64)
    logits = point_mlp3_pool_head(
        feat, w3_eff, p["b3"]["bias"],
        p["b4"]["w_t"], p["b4"]["bias"],
        p["b5"]["w_t"], p["b5"]["bias"],
        p["b6"]["w_t"], p["b6"]["bias"],
        p["b7"]["w_t"], p["b7"]["bias"],
        p["b8"]["w_t"], p["b8"]["bias"],
        tn)                                                            # (B, 128) padded
    # Dropout(0.7) is identity in inference mode.
    return logits[:, :n_classes], t2


if __name__ == "__main__":
    B, N_PTS, N_CLASSES = 2, 16, 10
    key = jax.random.PRNGKey(0)
    k_param, k_x = jax.random.split(key)

    params = init_model(k_param, N_CLASSES)
    x = jax.random.normal(k_x, (B, N_PTS, 3), jnp.float32)

    fwd = jax.jit(functools.partial(pointnet_forward, n_classes=N_CLASSES))
    logits, transforms_2 = fwd(params, x)
    jax.block_until_ready((logits, transforms_2))

    assert logits.shape == (B, N_CLASSES)
    assert transforms_2.shape == (B, 64, 64)
    print("KERNEL_OK")
</pallas_src>

<mosaic_0001>
module attributes {stable_mosaic.version = 11 : i64} {
  func.func @_mlp3_pool_head_kernel(%arg0: i32, %arg1: i32, %arg2: memref<1x16x3xf32, #tpu.memory_space<vmem>>, %arg3: memref<3x64xf32, #tpu.memory_space<vmem>>, %arg4: memref<1x64xf32, #tpu.memory_space<vmem>>, %arg5: memref<64x128xbf16, #tpu.memory_space<vmem>>, %arg6: memref<1x128xf32, #tpu.memory_space<vmem>>, %arg7: memref<128x1024xbf16, #tpu.memory_space<vmem>>, %arg8: memref<1x1024xf32, #tpu.memory_space<vmem>>, %arg9: memref<1024x512xbf16, #tpu.memory_space<vmem>>, %arg10: memref<1x512xf32, #tpu.memory_space<vmem>>, %arg11: memref<512x256xbf16, #tpu.memory_space<vmem>>, %arg12: memref<1x256xf32, #tpu.memory_space<vmem>>, %arg13: memref<256x128xbf16, #tpu.memory_space<vmem>>, %arg14: memref<1x128xf32, #tpu.memory_space<vmem>>, %arg15: memref<1x1x128xf32, #tpu.memory_space<vmem>>, %arg16: memref<1x1024xf32, #tpu.memory_space<vmem>>) attributes {dimension_semantics = [#tpu.dimension_semantics<parallel>, #tpu.dimension_semantics<arbitrary>], iteration_bounds = array<i64: 2, 1>, scalar_prefetch = 0 : i64, scratch_operands = 1 : i64, tpu.core_type = #tpu.core_type<tc>, window_params = [{transform_indices = @transform_0, window_bounds = array<i64: 1, 16, 3>}, {pipeline_mode = #tpu.pipeline_mode<synchronous>, transform_indices = @transform_1, window_bounds = array<i64: 3, 64>}, {pipeline_mode = #tpu.pipeline_mode<synchronous>, transform_indices = @transform_2, window_bounds = array<i64: 1, 64>}, {pipeline_mode = #tpu.pipeline_mode<synchronous>, transform_indices = @transform_3, window_bounds = array<i64: 64, 128>}, {pipeline_mode = #tpu.pipeline_mode<synchronous>, transform_indices = @transform_4, window_bounds = array<i64: 1, 128>}, {pipeline_mode = #tpu.pipeline_mode<synchronous>, transform_indices = @transform_5, window_bounds = array<i64: 128, 1024>}, {pipeline_mode = #tpu.pipeline_mode<synchronous>, transform_indices = @transform_6, window_bounds = array<i64: 1, 1024>}, {pipeline_mode = #tpu.pipeline_mode<synchronous>, transform_indices = @transform_7, window_bounds = array<i64: 1024, 512>}, {pipeline_mode = #tpu.pipeline_mode<synchronous>, transform_indices = @transform_8, window_bounds = array<i64: 1, 512>}, {pipeline_mode = #tpu.pipeline_mode<synchronous>, transform_indices = @transform_9, window_bounds = array<i64: 512, 256>}, {pipeline_mode = #tpu.pipeline_mode<synchronous>, transform_indices = @transform_10, window_bounds = array<i64: 1, 256>}, {pipeline_mode = #tpu.pipeline_mode<synchronous>, transform_indices = @transform_11, window_bounds = array<i64: 256, 128>}, {pipeline_mode = #tpu.pipeline_mode<synchronous>, transform_indices = @transform_12, window_bounds = array<i64: 1, 128>}, {transform_indices = @transform_13, window_bounds = array<i64: 1, 1, 128>}]} {
    %c0_i32 = arith.constant 0 : i32
    %0 = arith.cmpi eq, %arg1, %c0_i32 : i32
    %1 = arith.extui %0 : i1 to i32
    %c0_i32_0 = arith.constant 0 : i32
    %2 = arith.cmpi ne, %1, %c0_i32_0 : i32
    scf.if %2 {
      %cst_27 = arith.constant 0xFF800000 : f32
      %36 = vector.broadcast %cst_27 : f32 to vector<1x1024xf32>
      %c0_28 = arith.constant 0 : index
      %c0_29 = arith.constant 0 : index
      %37 = vector.load %arg16[%c0_28, %c0_29] : memref<1x1024xf32, #tpu.memory_space<vmem>>, vector<1x1024xf32>
      tpu.vector_store %arg16[%c0_28, %c0_29], %36 {strides = array<i32>} : memref<1x1024xf32, #tpu.memory_space<vmem>>, vector<1x1024xf32>,
    } else {
    }
    %c0 = arith.constant 0 : index
    %c0_1 = arith.constant 0 : index
    %3 = vector.load %arg3[%c0, %c0_1] : memref<3x64xf32, #tpu.memory_space<vmem>>, vector<3x64xf32>
    %c0_2 = arith.constant 0 : index
    %c0_3 = arith.constant 0 : index
    %c0_4 = arith.constant 0 : index
    %4 = vector.load %arg2[%c0_2, %c0_3, %c0_4] : memref<1x16x3xf32, #tpu.memory_space<vmem>>, vector<1x16x3xf32>
    %5 = vector.shape_cast %4 : vector<1x16x3xf32> to vector<16x3xf32>
    %cst = arith.constant dense<0.000000e+00> : vector<16x64xf32>
    %6 = tpu.matmul %5, %3, %cst {dimension_numbers = #tpu.dot_dimension_numbers<[1], [0], [0], [1], [0, 0, 1, 1], [], []>} : vector<16x3xf32>, vector<3x64xf32>, vector<16x64xf32> -> vector<16x64xf32>
    %c0_5 = arith.constant 0 : index
    %c0_6 = arith.constant 0 : index
    %7 = vector.load %arg4[%c0_5, %c0_6] : memref<1x64xf32, #tpu.memory_space<vmem>>, vector<1x64xf32>
    %8 = vector.broadcast %7 : vector<1x64xf32> to vector<16x64xf32>
    %9 = arith.addf %6, %8 : vector<16x64xf32>
    %cst_7 = arith.constant 0.000000e+00 : f32
    %10 = vector.broadcast %cst_7 : f32 to vector<16x64xf32>
    %11 = arith.maximumf %9, %10 : vector<16x64xf32>
    %12 = arith.truncf %11 : vector<16x64xf32> to vector<16x64xbf16>
    %c0_8 = arith.constant 0 : index
    %c0_9 = arith.constant 0 : index
    %13 = vector.load %arg5[%c0_8, %c0_9] : memref<64x128xbf16, #tpu.memory_space<vmem>>, vector<64x128xbf16>
    %cst_10 = arith.constant dense<0.000000e+00> : vector<16x128xf32>
    %14 = tpu.matmul %12, %13, %cst_10 {dimension_numbers = #tpu.dot_dimension_numbers<[1], [0], [0], [1], [0, 0, 1, 1], [], []>} : vector<16x64xbf16>, vector<64x128xbf16>, vector<16x128xf32> -> vector<16x128xf32>
    %c0_11 = arith.constant 0 : index
    %c0_12 = arith.constant 0 : index
    %15 = vector.load %arg6[%c0_11, %c0_12] : memref<1x128xf32, #tpu.memory_space<vmem>>, vector<1x128xf32>
    %16 = vector.broadcast %15 : vector<1x128xf32> to vector<16x128xf32>
    %17 = arith.addf %14, %16 : vector<16x128xf32>
    %cst_13 = arith.constant 0.000000e+00 : f32
    %18 = vector.broadcast %cst_13 : f32 to vector<16x128xf32>
    %19 = arith.maximumf %17, %18 : vector<16x128xf32>
    %20 = arith.truncf %19 : vector<16x128xf32> to vector<16x128xbf16>
    %c0_14 = arith.constant 0 : index
    %c0_15 = arith.constant 0 : index
    %21 = vector.load %arg7[%c0_14, %c0_15] : memref<128x1024xbf16, #tpu.memory_space<vmem>>, vector<128x1024xbf16>
    %cst_16 = arith.constant dense<0.000000e+00> : vector<16x1024xf32>
    %22 = tpu.matmul %20, %21, %cst_16 {dimension_numbers = #tpu.dot_dimension_numbers<[1], [0], [0], [1], [0, 0, 1, 1], [], []>} : vector<16x128xbf16>, vector<128x1024xbf16>, vector<16x1024xf32> -> vector<16x1024xf32>
    %c0_17 = arith.constant 0 : index
    %c0_18 = arith.constant 0 : index
    %23 = vector.load %arg8[%c0_17, %c0_18] : memref<1x1024xf32, #tpu.memory_space<vmem>>, vector<1x1024xf32>
    %24 = vector.broadcast %23 : vector<1x1024xf32> to vector<16x1024xf32>
    %25 = arith.addf %22, %24 : vector<16x1024xf32>
    %cst_19 = arith.constant 0.000000e+00 : f32
    %26 = vector.broadcast %cst_19 : f32 to vector<16x1024xf32>
    %27 = arith.maximumf %25, %26 : vector<16x1024xf32>
    %c0_20 = arith.constant 0 : index
    %c0_21 = arith.constant 0 : index
    %28 = vector.load %arg16[%c0_20, %c0_21] : memref<1x1024xf32, #tpu.memory_space<vmem>>, vector<1x1024xf32>
    %cst_22 = arith.constant dense<0xFF800000> : vector<1024xf32>
    %29 = vector.multi_reduction <maximumf>, %27, %cst_22 [0] : vector<16x1024xf32> to vector<1024xf32>
    %30 = vector.shape_cast %29 : vector<1024xf32> to vector<1x1024xf32>
    %31 = arith.maximumf %28, %30 : vector<1x1024xf32>
    %c0_23 = arith.constant 0 : index
    %c0_24 = arith.constant 0 : index
    %32 = vector.load %arg16[%c0_23, %c0_24] : memref<1x1024xf32, #tpu.memory_space<vmem>>, vector<1x1024xf32>
    tpu.vector_store %arg16[%c0_23, %c0_24], %31 {strides = array<i32>} : memref<1x1024xf32, #tpu.memory_space<vmem>>, vector<1x1024xf32>,
    %c0_i32_25 = arith.constant 0 : i32
    %33 = arith.cmpi eq, %arg1, %c0_i32_25 : i32
    %34 = arith.extui %33 : i1 to i32
    %c0_i32_26 = arith.constant 0 : i32
    %35 = arith.cmpi ne, %34, %c0_i32_26 : i32
    scf.if %35 {
      %c0_27 = arith.constant 0 : index
      %c0_28 = arith.constant 0 : index
      %36 = vector.load %arg16[%c0_27, %c0_28] : memref<1x1024xf32, #tpu.memory_space<vmem>>, vector<1x1024xf32>
      %37 = arith.truncf %36 : vector<1x1024xf32> to vector<1x1024xbf16>
      %c0_29 = arith.constant 0 : index
      %c0_30 = arith.constant 0 : index
      %38 = vector.load %arg9[%c0_29, %c0_30] : memref<1024x512xbf16, #tpu.memory_space<vmem>>, vector<1024x512xbf16>
      %cst_31 = arith.constant dense<0.000000e+00> : vector<1x512xf32>
      %39 = tpu.matmul %37, %38, %cst_31 {dimension_numbers = #tpu.dot_dimension_numbers<[1], [0], [0], [1], [0, 0, 1, 1], [], []>} : vector<1x1024xbf16>, vector<1024x512xbf16>, vector<1x512xf32> -> vector<1x512xf32>
      %c0_32 = arith.constant 0 : index
      %c0_33 = arith.constant 0 : index
      %40 = vector.load %arg10[%c0_32, %c0_33] : memref<1x512xf32, #tpu.memory_space<vmem>>, vector<1x512xf32>
      %41 = arith.addf %39, %40 : vector<1x512xf32>
      %cst_34 = arith.constant 0.000000e+00 : f32
      %42 = vector.broadcast %cst_34 : f32 to vector<1x512xf32>
      %43 = arith.maximumf %41, %42 : vector<1x512xf32>
      %44 = arith.truncf %43 : vector<1x512xf32> to vector<1x512xbf16>
      %c0_35 = arith.constant 0 : index
      %c0_36 = arith.constant 0 : index
      %45 = vector.load %arg11[%c0_35, %c0_36] : memref<512x256xbf16, #tpu.memory_space<vmem>>, vector<512x256xbf16>
      %cst_37 = arith.constant dense<0.000000e+00> : vector<1x256xf32>
      %46 = tpu.matmul %44, %45, %cst_37 {dimension_numbers = #tpu.dot_dimension_numbers<[1], [0], [0], [1], [0, 0, 1, 1], [], []>} : vector<1x512xbf16>, vector<512x256xbf16>, vector<1x256xf32> -> vector<1x256xf32>
      %c0_38 = arith.constant 0 : index
      %c0_39 = arith.constant 0 : index
      %47 = vector.load %arg12[%c0_38, %c0_39] : memref<1x256xf32, #tpu.memory_space<vmem>>, vector<1x256xf32>
      %48 = arith.addf %46, %47 : vector<1x256xf32>
      %cst_40 = arith.constant 0.000000e+00 : f32
      %49 = vector.broadcast %cst_40 : f32 to vector<1x256xf32>
      %50 = arith.maximumf %48, %49 : vector<1x256xf32>
      %51 = arith.truncf %50 : vector<1x256xf32> to vector<1x256xbf16>
      %c0_41 = arith.constant 0 : index
      %c0_42 = arith.constant 0 : index
      %52 = vector.load %arg13[%c0_41, %c0_42] : memref<256x128xbf16, #tpu.memory_space<vmem>>, vector<256x128xbf16>
      %cst_43 = arith.constant dense<0.000000e+00> : vector<1x128xf32>
      %53 = tpu.matmul %51, %52, %cst_43 {dimension_numbers = #tpu.dot_dimension_numbers<[1], [0], [0], [1], [0, 0, 1, 1], [], []>} : vector<1x256xbf16>, vector<256x128xbf16>, vector<1x128xf32> -> vector<1x128xf32>
      %c0_44 = arith.constant 0 : index
      %c0_45 = arith.constant 0 : index
      %54 = vector.load %arg14[%c0_44, %c0_45] : memref<1x128xf32, #tpu.memory_space<vmem>>, vector<1x128xf32>
      %55 = arith.addf %53, %54 : vector<1x128xf32>
      %c0_46 = arith.constant 0 : index
      %c0_47 = arith.constant 0 : index
      %c0_48 = arith.constant 0 : index
      %56 = vector.load %arg15[%c0_46, %c0_47, %c0_48] : memref<1x1x128xf32, #tpu.memory_space<vmem>>, vector<1x1x128xf32>
      %57 = vector.shape_cast %56 : vector<1x1x128xf32> to vector<1x128xf32>
      %58 = vector.shape_cast %55 : vector<1x128xf32> to vector<1x1x128xf32>
      tpu.vector_store %arg15[%c0_46, %c0_47, %c0_48], %58 {strides = array<i32>} : memref<1x1x128xf32, #tpu.memory_space<vmem>>, vector<1x1x128xf32>,
    } else {
    }
    return
  }
  func.func @transform_0(%arg0: i32, %arg1: i32) -> (i32, i32, i32) {
    %c0_i32 = arith.constant 0 : i32
    %c0_i32_0 = arith.constant 0 : i32
    return %arg0, %arg1, %c0_i32 : i32, i32, i32
  }
  func.func @transform_1(%arg0: i32, %arg1: i32) -> (i32, i32) {
    %c0_i32 = arith.constant 0 : i32
    %c0_i32_0 = arith.constant 0 : i32
    %c0_i32_1 = arith.constant 0 : i32
    return %c0_i32, %c0_i32_0 : i32, i32
  }
  func.func @transform_2(%arg0: i32, %arg1: i32) -> (i32, i32) {
    %c0_i32 = arith.constant 0 : i32
    %c0_i32_0 = arith.constant 0 : i32
    %c0_i32_1 = arith.constant 0 : i32
    return %c0_i32, %c0_i32_0 : i32, i32
  }
  func.func @transform_3(%arg0: i32, %arg1: i32) -> (i32, i32) {
    %c0_i32 = arith.constant 0 : i32
    %c0_i32_0 = arith.constant 0 : i32
    %c0_i32_1 = arith.constant 0 : i32
    return %c0_i32, %c0_i32_0 : i32, i32
  }
  func.func @transform_4(%arg0: i32, %arg1: i32) -> (i32, i32) {
    %c0_i32 = arith.constant 0 : i32
    %c0_i32_0 = arith.constant 0 : i32
    %c0_i32_1 = arith.constant 0 : i32
    return %c0_i32, %c0_i32_0 : i32, i32
  }
  func.func @transform_5(%arg0: i32, %arg1: i32) -> (i32, i32) {
    %c0_i32 = arith.constant 0 : i32
    %c0_i32_0 = arith.constant 0 : i32
    %c0_i32_1 = arith.constant 0 : i32
    return %c0_i32, %c0_i32_0 : i32, i32
  }
  func.func @transform_6(%arg0: i32, %arg1: i32) -> (i32, i32) {
    %c0_i32 = arith.constant 0 : i32
    %c0_i32_0 = arith.constant 0 : i32
    %c0_i32_1 = arith.constant 0 : i32
    return %c0_i32, %c0_i32_0 : i32, i32
  }
  func.func @transform_7(%arg0: i32, %arg1: i32) -> (i32, i32) {
    %c0_i32 = arith.constant 0 : i32
    %c0_i32_0 = arith.constant 0 : i32
    %c0_i32_1 = arith.constant 0 : i32
    return %c0_i32, %c0_i32_0 : i32, i32
  }
  func.func @transform_8(%arg0: i32, %arg1: i32) -> (i32, i32) {
    %c0_i32 = arith.constant 0 : i32
    %c0_i32_0 = arith.constant 0 : i32
    %c0_i32_1 = arith.constant 0 : i32
    return %c0_i32, %c0_i32_0 : i32, i32
  }
  func.func @transform_9(%arg0: i32, %arg1: i32) -> (i32, i32) {
    %c0_i32 = arith.constant 0 : i32
    %c0_i32_0 = arith.constant 0 : i32
    %c0_i32_1 = arith.constant 0 : i32
    return %c0_i32, %c0_i32_0 : i32, i32
  }
  func.func @transform_10(%arg0: i32, %arg1: i32) -> (i32, i32) {
    %c0_i32 = arith.constant 0 : i32
    %c0_i32_0 = arith.constant 0 : i32
    %c0_i32_1 = arith.constant 0 : i32
    return %c0_i32, %c0_i32_0 : i32, i32
  }
  func.func @transform_11(%arg0: i32, %arg1: i32) -> (i32, i32) {
    %c0_i32 = arith.constant 0 : i32
    %c0_i32_0 = arith.constant 0 : i32
    %c0_i32_1 = arith.constant 0 : i32
    return %c0_i32, %c0_i32_0 : i32, i32
  }
  func.func @transform_12(%arg0: i32, %arg1: i32) -> (i32, i32) {
    %c0_i32 = arith.constant 0 : i32
    %c0_i32_0 = arith.constant 0 : i32
    %c0_i32_1 = arith.constant 0 : i32
    return %c0_i32, %c0_i32_0 : i32, i32
  }
  func.func @transform_13(%arg0: i32, %arg1: i32) -> (i32, i32, i32) {
    %c0_i32 = arith.constant 0 : i32
    %c0_i32_0 = arith.constant 0 : i32
    %c0_i32_1 = arith.constant 0 : i32
    return %arg0, %c0_i32, %c0_i32_0 : i32, i32, i32
  }
}

module attributes {stable_mosaic.version = 11 : i64} {
  func.func @_mlp2_point_kernel(%arg0: i32, %arg1: i32, %arg2: memref<1x16x3xf32, #tpu.memory_space<vmem>>, %arg3: memref<1x3x64xf32, #tpu.memory_space<vmem>>, %arg4: memref<1x64xf32, #tpu.memory_space<vmem>>, %arg5: memref<64x128xbf16, #tpu.memory_space<vmem>>, %arg6: memref<1x128xf32, #tpu.memory_space<vmem>>, %arg7: memref<1x16x128xbf16, #tpu.memory_space<vmem>>) attributes {dimension_semantics = [#tpu.dimension_semantics<parallel>, #tpu.dimension_semantics<parallel>], iteration_bounds = array<i64: 2, 1>, scalar_prefetch = 0 : i64, scratch_operands = 0 : i64, tpu.core_type = #tpu.core_type<tc>, window_params = [{transform_indices = @transform_0, window_bounds = array<i64: 1, 16, 3>}, {transform_indices = @transform_1, window_bounds = array<i64: 1, 3, 64>}, {pipeline_mode = #tpu.pipeline_mode<synchronous>, transform_indices = @transform_2, window_bounds = array<i64: 1, 64>}, {pipeline_mode = #tpu.pipeline_mode<synchronous>, transform_indices = @transform_3, window_bounds = array<i64: 64, 128>}, {pipeline_mode = #tpu.pipeline_mode<synchronous>, transform_indices = @transform_4, window_bounds = array<i64: 1, 128>}, {transform_indices = @transform_5, window_bounds = array<i64: 1, 16, 128>}]} {
    %c0 = arith.constant 0 : index
    %c0_0 = arith.constant 0 : index
    %c0_1 = arith.constant 0 : index
    %0 = vector.load %arg3[%c0, %c0_0, %c0_1] : memref<1x3x64xf32, #tpu.memory_space<vmem>>, vector<1x3x64xf32>
    %1 = vector.shape_cast %0 : vector<1x3x64xf32> to vector<3x64xf32>
    %c0_2 = arith.constant 0 : index
    %c0_3 = arith.constant 0 : index
    %c0_4 = arith.constant 0 : index
    %2 = vector.load %arg2[%c0_2, %c0_3, %c0_4] : memref<1x16x3xf32, #tpu.memory_space<vmem>>, vector<1x16x3xf32>
    %3 = vector.shape_cast %2 : vector<1x16x3xf32> to vector<16x3xf32>
    %cst = arith.constant dense<0.000000e+00> : vector<16x64xf32>
    %4 = tpu.matmul %3, %1, %cst {dimension_numbers = #tpu.dot_dimension_numbers<[1], [0], [0], [1], [0, 0, 1, 1], [], []>} : vector<16x3xf32>, vector<3x64xf32>, vector<16x64xf32> -> vector<16x64xf32>
    %c0_5 = arith.constant 0 : index
    %c0_6 = arith.constant 0 : index
    %5 = vector.load %arg4[%c0_5, %c0_6] : memref<1x64xf32, #tpu.memory_space<vmem>>, vector<1x64xf32>
    %6 = vector.broadcast %5 : vector<1x64xf32> to vector<16x64xf32>
    %7 = arith.addf %4, %6 : vector<16x64xf32>
    %cst_7 = arith.constant 0.000000e+00 : f32
    %8 = vector.broadcast %cst_7 : f32 to vector<16x64xf32>
    %9 = arith.maximumf %7, %8 : vector<16x64xf32>
    %10 = arith.truncf %9 : vector<16x64xf32> to vector<16x64xbf16>
    %c0_8 = arith.constant 0 : index
    %c0_9 = arith.constant 0 : index
    %11 = vector.load %arg5[%c0_8, %c0_9] : memref<64x128xbf16, #tpu.memory_space<vmem>>, vector<64x128xbf16>
    %cst_10 = arith.constant dense<0.000000e+00> : vector<16x128xf32>
    %12 = tpu.matmul %10, %11, %cst_10 {dimension_numbers = #tpu.dot_dimension_numbers<[1], [0], [0], [1], [0, 0, 1, 1], [], []>} : vector<16x64xbf16>, vector<64x128xbf16>, vector<16x128xf32> -> vector<16x128xf32>
    %c0_11 = arith.constant 0 : index
    %c0_12 = arith.constant 0 : index
    %13 = vector.load %arg6[%c0_11, %c0_12] : memref<1x128xf32, #tpu.memory_space<vmem>>, vector<1x128xf32>
    %14 = vector.broadcast %13 : vector<1x128xf32> to vector<16x128xf32>
    %15 = arith.addf %12, %14 : vector<16x128xf32>
    %cst_13 = arith.constant 0.000000e+00 : f32
    %16 = vector.broadcast %cst_13 : f32 to vector<16x128xf32>
    %17 = arith.maximumf %15, %16 : vector<16x128xf32>
    %18 = arith.truncf %17 : vector<16x128xf32> to vector<16x128xbf16>
    %c0_14 = arith.constant 0 : index
    %c0_15 = arith.constant 0 : index
    %c0_16 = arith.constant 0 : index
    %19 = vector.load %arg7[%c0_14, %c0_15, %c0_16] : memref<1x16x128xbf16, #tpu.memory_space<vmem>>, vector<1x16x128xbf16>
    %20 = vector.shape_cast %19 : vector<1x16x128xbf16> to vector<16x128xbf16>
    %21 = vector.shape_cast %18 : vector<16x128xbf16> to vector<1x16x128xbf16>
    tpu.vector_store %arg7[%c0_14, %c0_15, %c0_16], %21 {strides = array<i32>} : memref<1x16x128xbf16, #tpu.memory_space<vmem>>, vector<1x16x128xbf16>,
    return
  }
  func.func @transform_0(%arg0: i32, %arg1: i32) -> (i32, i32, i32) {
    %c0_i32 = arith.constant 0 : i32
    %c0_i32_0 = arith.constant 0 : i32
    return %arg0, %arg1, %c0_i32 : i32, i32, i32
  }
  func.func @transform_1(%arg0: i32, %arg1: i32) -> (i32, i32, i32) {
    %c0_i32 = arith.constant 0 : i32
    %c0_i32_0 = arith.constant 0 : i32
    %c0_i32_1 = arith.constant 0 : i32
    return %arg0, %c0_i32, %c0_i32_0 : i32, i32, i32
  }
  func.func @transform_2(%arg0: i32, %arg1: i32) -> (i32, i32) {
    %c0_i32 = arith.constant 0 : i32
    %c0_i32_0 = arith.constant 0 : i32
    %c0_i32_1 = arith.constant 0 : i32
    return %c0_i32, %c0_i32_0 : i32, i32
  }
  func.func @transform_3(%arg0: i32, %arg1: i32) -> (i32, i32) {
    %c0_i32 = arith.constant 0 : i32
    %c0_i32_0 = arith.constant 0 : i32
    %c0_i32_1 = arith.constant 0 : i32
    return %c0_i32, %c0_i32_0 : i32, i32
  }
  func.func @transform_4(%arg0: i32, %arg1: i32) -> (i32, i32) {
    %c0_i32 = arith.constant 0 : i32
    %c0_i32_0 = arith.constant 0 : i32
    %c0_i32_1 = arith.constant 0 : i32
    return %c0_i32, %c0_i32_0 : i32, i32
  }
  func.func @transform_5(%arg0: i32, %arg1: i32) -> (i32, i32, i32) {
    %c0_i32 = arith.constant 0 : i32
    %c0_i32_0 = arith.constant 0 : i32
    return %arg0, %arg1, %c0_i32 : i32, i32, i32
  }
}

module attributes {stable_mosaic.version = 11 : i64} {
  func.func @_mlp3_pool_head_kernel(%arg0: i32, %arg1: i32, %arg2: memref<1x16x128xbf16, #tpu.memory_space<vmem>>, %arg3: memref<128x64xbf16, #tpu.memory_space<vmem>>, %arg4: memref<1x64xf32, #tpu.memory_space<vmem>>, %arg5: memref<64x128xbf16, #tpu.memory_space<vmem>>, %arg6: memref<1x128xf32, #tpu.memory_space<vmem>>, %arg7: memref<128x1024xbf16, #tpu.memory_space<vmem>>, %arg8: memref<1x1024xf32, #tpu.memory_space<vmem>>, %arg9: memref<1024x512xbf16, #tpu.memory_space<vmem>>, %arg10: memref<1x512xf32, #tpu.memory_space<vmem>>, %arg11: memref<512x256xbf16, #tpu.memory_space<vmem>>, %arg12: memref<1x256xf32, #tpu.memory_space<vmem>>, %arg13: memref<256x4096xbf16, #tpu.memory_space<vmem>>, %arg14: memref<1x4096xf32, #tpu.memory_space<vmem>>, %arg15: memref<1x1x4096xf32, #tpu.memory_space<vmem>>, %arg16: memref<1x1024xf32, #tpu.memory_space<vmem>>) attributes {dimension_semantics = [#tpu.dimension_semantics<parallel>, #tpu.dimension_semantics<arbitrary>], iteration_bounds = array<i64: 2, 1>, scalar_prefetch = 0 : i64, scratch_operands = 1 : i64, tpu.core_type = #tpu.core_type<tc>, window_params = [{transform_indices = @transform_0, window_bounds = array<i64: 1, 16, 128>}, {pipeline_mode = #tpu.pipeline_mode<synchronous>, transform_indices = @transform_1, window_bounds = array<i64: 128, 64>}, {pipeline_mode = #tpu.pipeline_mode<synchronous>, transform_indices = @transform_2, window_bounds = array<i64: 1, 64>}, {pipeline_mode = #tpu.pipeline_mode<synchronous>, transform_indices = @transform_3, window_bounds = array<i64: 64, 128>}, {pipeline_mode = #tpu.pipeline_mode<synchronous>, transform_indices = @transform_4, window_bounds = array<i64: 1, 128>}, {pipeline_mode = #tpu.pipeline_mode<synchronous>, transform_indices = @transform_5, window_bounds = array<i64: 128, 1024>}, {pipeline_mode = #tpu.pipeline_mode<synchronous>, transform_indices = @transform_6, window_bounds = array<i64: 1, 1024>}, {pipeline_mode = #tpu.pipeline_mode<synchronous>, transform_indices = @transform_7, window_bounds = array<i64: 1024, 512>}, {pipeline_mode = #tpu.pipeline_mode<synchronous>, transform_indices = @transform_8, window_bounds = array<i64: 1, 512>}, {pipeline_mode = #tpu.pipeline_mode<synchronous>, transform_indices = @transform_9, window_bounds = array<i64: 512, 256>}, {pipeline_mode = #tpu.pipeline_mode<synchronous>, transform_indices = @transform_10, window_bounds = array<i64: 1, 256>}, {pipeline_mode = #tpu.pipeline_mode<synchronous>, transform_indices = @transform_11, window_bounds = array<i64: 256, 4096>}, {pipeline_mode = #tpu.pipeline_mode<synchronous>, transform_indices = @transform_12, window_bounds = array<i64: 1, 4096>}, {transform_indices = @transform_13, window_bounds = array<i64: 1, 1, 4096>}]} {
    %c0_i32 = arith.constant 0 : i32
    %0 = arith.cmpi eq, %arg1, %c0_i32 : i32
    %1 = arith.extui %0 : i1 to i32
    %c0_i32_0 = arith.constant 0 : i32
    %2 = arith.cmpi ne, %1, %c0_i32_0 : i32
    scf.if %2 {
      %cst_27 = arith.constant 0xFF800000 : f32
      %36 = vector.broadcast %cst_27 : f32 to vector<1x1024xf32>
      %c0_28 = arith.constant 0 : index
      %c0_29 = arith.constant 0 : index
      %37 = vector.load %arg16[%c0_28, %c0_29] : memref<1x1024xf32, #tpu.memory_space<vmem>>, vector<1x1024xf32>
      tpu.vector_store %arg16[%c0_28, %c0_29], %36 {strides = array<i32>} : memref<1x1024xf32, #tpu.memory_space<vmem>>, vector<1x1024xf32>,
    } else {
    }
    %c0 = arith.constant 0 : index
    %c0_1 = arith.constant 0 : index
    %3 = vector.load %arg3[%c0, %c0_1] : memref<128x64xbf16, #tpu.memory_space<vmem>>, vector<128x64xbf16>
    %c0_2 = arith.constant 0 : index
    %c0_3 = arith.constant 0 : index
    %c0_4 = arith.constant 0 : index
    %4 = vector.load %arg2[%c0_2, %c0_3, %c0_4] : memref<1x16x128xbf16, #tpu.memory_space<vmem>>, vector<1x16x128xbf16>
    %5 = vector.shape_cast %4 : vector<1x16x128xbf16> to vector<16x128xbf16>
    %cst = arith.constant dense<0.000000e+00> : vector<16x64xf32>
    %6 = tpu.matmul %5, %3, %cst {dimension_numbers = #tpu.dot_dimension_numbers<[1], [0], [0], [1], [0, 0, 1, 1], [], []>} : vector<16x128xbf16>, vector<128x64xbf16>, vector<16x64xf32> -> vector<16x64xf32>
    %c0_5 = arith.constant 0 : index
    %c0_6 = arith.constant 0 : index
    %7 = vector.load %arg4[%c0_5, %c0_6] : memref<1x64xf32, #tpu.memory_space<vmem>>, vector<1x64xf32>
    %8 = vector.broadcast %7 : vector<1x64xf32> to vector<16x64xf32>
    %9 = arith.addf %6, %8 : vector<16x64xf32>
    %cst_7 = arith.constant 0.000000e+00 : f32
    %10 = vector.broadcast %cst_7 : f32 to vector<16x64xf32>
    %11 = arith.maximumf %9, %10 : vector<16x64xf32>
    %12 = arith.truncf %11 : vector<16x64xf32> to vector<16x64xbf16>
    %c0_8 = arith.constant 0 : index
    %c0_9 = arith.constant 0 : index
    %13 = vector.load %arg5[%c0_8, %c0_9] : memref<64x128xbf16, #tpu.memory_space<vmem>>, vector<64x128xbf16>
    %cst_10 = arith.constant dense<0.000000e+00> : vector<16x128xf32>
    %14 = tpu.matmul %12, %13, %cst_10 {dimension_numbers = #tpu.dot_dimension_numbers<[1], [0], [0], [1], [0, 0, 1, 1], [], []>} : vector<16x64xbf16>, vector<64x128xbf16>, vector<16x128xf32> -> vector<16x128xf32>
    %c0_11 = arith.constant 0 : index
    %c0_12 = arith.constant 0 : index
    %15 = vector.load %arg6[%c0_11, %c0_12] : memref<1x128xf32, #tpu.memory_space<vmem>>, vector<1x128xf32>
    %16 = vector.broadcast %15 : vector<1x128xf32> to vector<16x128xf32>
    %17 = arith.addf %14, %16 : vector<16x128xf32>
    %cst_13 = arith.constant 0.000000e+00 : f32
    %18 = vector.broadcast %cst_13 : f32 to vector<16x128xf32>
    %19 = arith.maximumf %17, %18 : vector<16x128xf32>
    %20 = arith.truncf %19 : vector<16x128xf32> to vector<16x128xbf16>
    %c0_14 = arith.constant 0 : index
    %c0_15 = arith.constant 0 : index
    %21 = vector.load %arg7[%c0_14, %c0_15] : memref<128x1024xbf16, #tpu.memory_space<vmem>>, vector<128x1024xbf16>
    %cst_16 = arith.constant dense<0.000000e+00> : vector<16x1024xf32>
    %22 = tpu.matmul %20, %21, %cst_16 {dimension_numbers = #tpu.dot_dimension_numbers<[1], [0], [0], [1], [0, 0, 1, 1], [], []>} : vector<16x128xbf16>, vector<128x1024xbf16>, vector<16x1024xf32> -> vector<16x1024xf32>
    %c0_17 = arith.constant 0 : index
    %c0_18 = arith.constant 0 : index
    %23 = vector.load %arg8[%c0_17, %c0_18] : memref<1x1024xf32, #tpu.memory_space<vmem>>, vector<1x1024xf32>
    %24 = vector.broadcast %23 : vector<1x1024xf32> to vector<16x1024xf32>
    %25 = arith.addf %22, %24 : vector<16x1024xf32>
    %cst_19 = arith.constant 0.000000e+00 : f32
    %26 = vector.broadcast %cst_19 : f32 to vector<16x1024xf32>
    %27 = arith.maximumf %25, %26 : vector<16x1024xf32>
    %c0_20 = arith.constant 0 : index
    %c0_21 = arith.constant 0 : index
    %28 = vector.load %arg16[%c0_20, %c0_21] : memref<1x1024xf32, #tpu.memory_space<vmem>>, vector<1x1024xf32>
    %cst_22 = arith.constant dense<0xFF800000> : vector<1024xf32>
    %29 = vector.multi_reduction <maximumf>, %27, %cst_22 [0] : vector<16x1024xf32> to vector<1024xf32>
    %30 = vector.shape_cast %29 : vector<1024xf32> to vector<1x1024xf32>
    %31 = arith.maximumf %28, %30 : vector<1x1024xf32>
    %c0_23 = arith.constant 0 : index
    %c0_24 = arith.constant 0 : index
    %32 = vector.load %arg16[%c0_23, %c0_24] : memref<1x1024xf32, #tpu.memory_space<vmem>>, vector<1x1024xf32>
    tpu.vector_store %arg16[%c0_23, %c0_24], %31 {strides = array<i32>} : memref<1x1024xf32, #tpu.memory_space<vmem>>, vector<1x1024xf32>,
    %c0_i32_25 = arith.constant 0 : i32
    %33 = arith.cmpi eq, %arg1, %c0_i32_25 : i32
    %34 = arith.extui %33 : i1 to i32
    %c0_i32_26 = arith.constant 0 : i32
    %35 = arith.cmpi ne, %34, %c0_i32_26 : i32
    scf.if %35 {
      %c0_27 = arith.constant 0 : index
      %c0_28 = arith.constant 0 : index
      %36 = vector.load %arg16[%c0_27, %c0_28] : memref<1x1024xf32, #tpu.memory_space<vmem>>, vector<1x1024xf32>
      %37 = arith.truncf %36 : vector<1x1024xf32> to vector<1x1024xbf16>
      %c0_29 = arith.constant 0 : index
      %c0_30 = arith.constant 0 : index
      %38 = vector.load %arg9[%c0_29, %c0_30] : memref<1024x512xbf16, #tpu.memory_space<vmem>>, vector<1024x512xbf16>
      %cst_31 = arith.constant dense<0.000000e+00> : vector<1x512xf32>
      %39 = tpu.matmul %37, %38, %cst_31 {dimension_numbers = #tpu.dot_dimension_numbers<[1], [0], [0], [1], [0, 0, 1, 1], [], []>} : vector<1x1024xbf16>, vector<1024x512xbf16>, vector<1x512xf32> -> vector<1x512xf32>
      %c0_32 = arith.constant 0 : index
      %c0_33 = arith.constant 0 : index
      %40 = vector.load %arg10[%c0_32, %c0_33] : memref<1x512xf32, #tpu.memory_space<vmem>>, vector<1x512xf32>
      %41 = arith.addf %39, %40 : vector<1x512xf32>
      %cst_34 = arith.constant 0.000000e+00 : f32
      %42 = vector.broadcast %cst_34 : f32 to vector<1x512xf32>
      %43 = arith.maximumf %41, %42 : vector<1x512xf32>
      %44 = arith.truncf %43 : vector<1x512xf32> to vector<1x512xbf16>
      %c0_35 = arith.constant 0 : index
      %c0_36 = arith.constant 0 : index
      %45 = vector.load %arg11[%c0_35, %c0_36] : memref<512x256xbf16, #tpu.memory_space<vmem>>, vector<512x256xbf16>
      %cst_37 = arith.constant dense<0.000000e+00> : vector<1x256xf32>
      %46 = tpu.matmul %44, %45, %cst_37 {dimension_numbers = #tpu.dot_dimension_numbers<[1], [0], [0], [1], [0, 0, 1, 1], [], []>} : vector<1x512xbf16>, vector<512x256xbf16>, vector<1x256xf32> -> vector<1x256xf32>
      %c0_38 = arith.constant 0 : index
      %c0_39 = arith.constant 0 : index
      %47 = vector.load %arg12[%c0_38, %c0_39] : memref<1x256xf32, #tpu.memory_space<vmem>>, vector<1x256xf32>
      %48 = arith.addf %46, %47 : vector<1x256xf32>
      %cst_40 = arith.constant 0.000000e+00 : f32
      %49 = vector.broadcast %cst_40 : f32 to vector<1x256xf32>
      %50 = arith.maximumf %48, %49 : vector<1x256xf32>
      %51 = arith.truncf %50 : vector<1x256xf32> to vector<1x256xbf16>
      %c0_41 = arith.constant 0 : index
      %c0_42 = arith.constant 0 : index
      %52 = vector.load %arg13[%c0_41, %c0_42] : memref<256x4096xbf16, #tpu.memory_space<vmem>>, vector<256x4096xbf16>
      %cst_43 = arith.constant dense<0.000000e+00> : vector<1x4096xf32>
      %53 = tpu.matmul %51, %52, %cst_43 {dimension_numbers = #tpu.dot_dimension_numbers<[1], [0], [0], [1], [0, 0, 1, 1], [], []>} : vector<1x256xbf16>, vector<256x4096xbf16>, vector<1x4096xf32> -> vector<1x4096xf32>
      %c0_44 = arith.constant 0 : index
      %c0_45 = arith.constant 0 : index
      %54 = vector.load %arg14[%c0_44, %c0_45] : memref<1x4096xf32, #tpu.memory_space<vmem>>, vector<1x4096xf32>
      %55 = arith.addf %53, %54 : vector<1x4096xf32>
      %c0_46 = arith.constant 0 : index
      %c0_47 = arith.constant 0 : index
      %c0_48 = arith.constant 0 : index
      %56 = vector.load %arg15[%c0_46, %c0_47, %c0_48] : memref<1x1x4096xf32, #tpu.memory_space<vmem>>, vector<1x1x4096xf32>
      %57 = vector.shape_cast %56 : vector<1x1x4096xf32> to vector<1x4096xf32>
      %58 = vector.shape_cast %55 : vector<1x4096xf32> to vector<1x1x4096xf32>
      tpu.vector_store %arg15[%c0_46, %c0_47, %c0_48], %58 {strides = array<i32>} : memref<1x1x4096xf32, #tpu.memory_space<vmem>>, vector<1x1x4096xf32>,
    } else {
    }
    return
  }
  func.func @transform_0(%arg0: i32, %arg1: i32) -> (i32, i32, i32) {
    %c0_i32 = arith.constant 0 : i32
    %c0_i32_0 = arith.constant 0 : i32
    return %arg0, %arg1, %c0_i32 : i32, i32, i32
  }
  func.func @transform_1(%arg0: i32, %arg1: i32) -> (i32, i32) {
    %c0_i32 = arith.constant 0 : i32
    %c0_i32_0 = arith.constant 0 : i32
    %c0_i32_1 = arith.constant 0 : i32
    return %c0_i32, %c0_i32_0 : i32, i32
  }
  func.func @transform_2(%arg0: i32, %arg1: i32) -> (i32, i32) {
    %c0_i32 = arith.constant 0 : i32
    %c0_i32_0 = arith.constant 0 : i32
    %c0_i32_1 = arith.constant 0 : i32
    return %c0_i32, %c0_i32_0 : i32, i32
  }
  func.func @transform_3(%arg0: i32, %arg1: i32) -> (i32, i32) {
    %c0_i32 = arith.constant 0 : i32
    %c0_i32_0 = arith.constant 0 : i32
    %c0_i32_1 = arith.constant 0 : i32
    return %c0_i32, %c0_i32_0 : i32, i32
  }
  func.func @transform_4(%arg0: i32, %arg1: i32) -> (i32, i32) {
    %c0_i32 = arith.constant 0 : i32
    %c0_i32_0 = arith.constant 0 : i32
    %c0_i32_1 = arith.constant 0 : i32
    return %c0_i32, %c0_i32_0 : i32, i32
  }
  func.func @transform_5(%arg0: i32, %arg1: i32) -> (i32, i32) {
    %c0_i32 = arith.constant 0 : i32
    %c0_i32_0 = arith.constant 0 : i32
    %c0_i32_1 = arith.constant 0 : i32
    return %c0_i32, %c0_i32_0 : i32, i32
  }
  func.func @transform_6(%arg0: i32, %arg1: i32) -> (i32, i32) {
    %c0_i32 = arith.constant 0 : i32
    %c0_i32_0 = arith.constant 0 : i32
    %c0_i32_1 = arith.constant 0 : i32
    return %c0_i32, %c0_i32_0 : i32, i32
  }
  func.func @transform_7(%arg0: i32, %arg1: i32) -> (i32, i32) {
    %c0_i32 = arith.constant 0 : i32
    %c0_i32_0 = arith.constant 0 : i32
    %c0_i32_1 = arith.constant 0 : i32
    return %c0_i32, %c0_i32_0 : i32, i32
  }
  func.func @transform_8(%arg0: i32, %arg1: i32) -> (i32, i32) {
    %c0_i32 = arith.constant 0 : i32
    %c0_i32_0 = arith.constant 0 : i32
    %c0_i32_1 = arith.constant 0 : i32
    return %c0_i32, %c0_i32_0 : i32, i32
  }
  func.func @transform_9(%arg0: i32, %arg1: i32) -> (i32, i32) {
    %c0_i32 = arith.constant 0 : i32
    %c0_i32_0 = arith.constant 0 : i32
    %c0_i32_1 = arith.constant 0 : i32
    return %c0_i32, %c0_i32_0 : i32, i32
  }
  func.func @transform_10(%arg0: i32, %arg1: i32) -> (i32, i32) {
    %c0_i32 = arith.constant 0 : i32
    %c0_i32_0 = arith.constant 0 : i32
    %c0_i32_1 = arith.constant 0 : i32
    return %c0_i32, %c0_i32_0 : i32, i32
  }
  func.func @transform_11(%arg0: i32, %arg1: i32) -> (i32, i32) {
    %c0_i32 = arith.constant 0 : i32
    %c0_i32_0 = arith.constant 0 : i32
    %c0_i32_1 = arith.constant 0 : i32
    return %c0_i32, %c0_i32_0 : i32, i32
  }
  func.func @transform_12(%arg0: i32, %arg1: i32) -> (i32, i32) {
    %c0_i32 = arith.constant 0 : i32
    %c0_i32_0 = arith.constant 0 : i32
    %c0_i32_1 = arith.constant 0 : i32
    return %c0_i32, %c0_i32_0 : i32, i32
  }
  func.func @transform_13(%arg0: i32, %arg1: i32) -> (i32, i32, i32) {
    %c0_i32 = arith.constant 0 : i32
    %c0_i32_0 = arith.constant 0 : i32
    %c0_i32_1 = arith.constant 0 : i32
    return %arg0, %c0_i32, %c0_i32_0 : i32, i32, i32
  }
}

module attributes {stable_mosaic.version = 11 : i64} {
  func.func @_mlp3_pool_head_kernel(%arg0: i32, %arg1: i32, %arg2: memref<1x16x128xbf16, #tpu.memory_space<vmem>>, %arg3: memref<1x128x64xbf16, #tpu.memory_space<vmem>>, %arg4: memref<1x64xf32, #tpu.memory_space<vmem>>, %arg5: memref<64x128xbf16, #tpu.memory_space<vmem>>, %arg6: memref<1x128xf32, #tpu.memory_space<vmem>>, %arg7: memref<128x1024xbf16, #tpu.memory_space<vmem>>, %arg8: memref<1x1024xf32, #tpu.memory_space<vmem>>, %arg9: memref<1024x512xbf16, #tpu.memory_space<vmem>>, %arg10: memref<1x512xf32, #tpu.memory_space<vmem>>, %arg11: memref<512x256xbf16, #tpu.memory_space<vmem>>, %arg12: memref<1x256xf32, #tpu.memory_space<vmem>>, %arg13: memref<256x128xbf16, #tpu.memory_space<vmem>>, %arg14: memref<1x128xf32, #tpu.memory_space<vmem>>, %arg15: memref<1x1x128xf32, #tpu.memory_space<vmem>>, %arg16: memref<1x1024xf32, #tpu.memory_space<vmem>>) attributes {dimension_semantics = [#tpu.dimension_semantics<parallel>, #tpu.dimension_semantics<arbitrary>], iteration_bounds = array<i64: 2, 1>, scalar_prefetch = 0 : i64, scratch_operands = 1 : i64, tpu.core_type = #tpu.core_type<tc>, window_params = [{transform_indices = @transform_0, window_bounds = array<i64: 1, 16, 128>}, {transform_indices = @transform_1, window_bounds = array<i64: 1, 128, 64>}, {pipeline_mode = #tpu.pipeline_mode<synchronous>, transform_indices = @transform_2, window_bounds = array<i64: 1, 64>}, {pipeline_mode = #tpu.pipeline_mode<synchronous>, transform_indices = @transform_3, window_bounds = array<i64: 64, 128>}, {pipeline_mode = #tpu.pipeline_mode<synchronous>, transform_indices = @transform_4, window_bounds = array<i64: 1, 128>}, {pipeline_mode = #tpu.pipeline_mode<synchronous>, transform_indices = @transform_5, window_bounds = array<i64: 128, 1024>}, {pipeline_mode = #tpu.pipeline_mode<synchronous>, transform_indices = @transform_6, window_bounds = array<i64: 1, 1024>}, {pipeline_mode = #tpu.pipeline_mode<synchronous>, transform_indices = @transform_7, window_bounds = array<i64: 1024, 512>}, {pipeline_mode = #tpu.pipeline_mode<synchronous>, transform_indices = @transform_8, window_bounds = array<i64: 1, 512>}, {pipeline_mode = #tpu.pipeline_mode<synchronous>, transform_indices = @transform_9, window_bounds = array<i64: 512, 256>}, {pipeline_mode = #tpu.pipeline_mode<synchronous>, transform_indices = @transform_10, window_bounds = array<i64: 1, 256>}, {pipeline_mode = #tpu.pipeline_mode<synchronous>, transform_indices = @transform_11, window_bounds = array<i64: 256, 128>}, {pipeline_mode = #tpu.pipeline_mode<synchronous>, transform_indices = @transform_12, window_bounds = array<i64: 1, 128>}, {transform_indices = @transform_13, window_bounds = array<i64: 1, 1, 128>}]} {
    %c0_i32 = arith.constant 0 : i32
    %0 = arith.cmpi eq, %arg1, %c0_i32 : i32
    %1 = arith.extui %0 : i1 to i32
    %c0_i32_0 = arith.constant 0 : i32
    %2 = arith.cmpi ne, %1, %c0_i32_0 : i32
    scf.if %2 {
      %cst_28 = arith.constant 0xFF800000 : f32
      %37 = vector.broadcast %cst_28 : f32 to vector<1x1024xf32>
      %c0_29 = arith.constant 0 : index
      %c0_30 = arith.constant 0 : index
      %38 = vector.load %arg16[%c0_29, %c0_30] : memref<1x1024xf32, #tpu.memory_space<vmem>>, vector<1x1024xf32>
      tpu.vector_store %arg16[%c0_29, %c0_30], %37 {strides = array<i32>} : memref<1x1024xf32, #tpu.memory_space<vmem>>, vector<1x1024xf32>,
    } else {
    }
    %c0 = arith.constant 0 : index
    %c0_1 = arith.constant 0 : index
    %c0_2 = arith.constant 0 : index
    %3 = vector.load %arg3[%c0, %c0_1, %c0_2] : memref<1x128x64xbf16, #tpu.memory_space<vmem>>, vector<1x128x64xbf16>
    %4 = vector.shape_cast %3 : vector<1x128x64xbf16> to vector<128x64xbf16>
    %c0_3 = arith.constant 0 : index
    %c0_4 = arith.constant 0 : index
    %c0_5 = arith.constant 0 : index
    %5 = vector.load %arg2[%c0_3, %c0_4, %c0_5] : memref<1x16x128xbf16, #tpu.memory_space<vmem>>, vector<1x16x128xbf16>
    %6 = vector.shape_cast %5 : vector<1x16x128xbf16> to vector<16x128xbf16>
    %cst = arith.constant dense<0.000000e+00> : vector<16x64xf32>
    %7 = tpu.matmul %6, %4, %cst {dimension_numbers = #tpu.dot_dimension_numbers<[1], [0], [0], [1], [0, 0, 1, 1], [], []>} : vector<16x128xbf16>, vector<128x64xbf16>, vector<16x64xf32> -> vector<16x64xf32>
    %c0_6 = arith.constant 0 : index
    %c0_7 = arith.constant 0 : index
    %8 = vector.load %arg4[%c0_6, %c0_7] : memref<1x64xf32, #tpu.memory_space<vmem>>, vector<1x64xf32>
    %9 = vector.broadcast %8 : vector<1x64xf32> to vector<16x64xf32>
    %10 = arith.addf %7, %9 : vector<16x64xf32>
    %cst_8 = arith.constant 0.000000e+00 : f32
    %11 = vector.broadcast %cst_8 : f32 to vector<16x64xf32>
    %12 = arith.maximumf %10, %11 : vector<16x64xf32>
    %13 = arith.truncf %12 : vector<16x64xf32> to vector<16x64xbf16>
    %c0_9 = arith.constant 0 : index
    %c0_10 = arith.constant 0 : index
    %14 = vector.load %arg5[%c0_9, %c0_10] : memref<64x128xbf16, #tpu.memory_space<vmem>>, vector<64x128xbf16>
    %cst_11 = arith.constant dense<0.000000e+00> : vector<16x128xf32>
    %15 = tpu.matmul %13, %14, %cst_11 {dimension_numbers = #tpu.dot_dimension_numbers<[1], [0], [0], [1], [0, 0, 1, 1], [], []>} : vector<16x64xbf16>, vector<64x128xbf16>, vector<16x128xf32> -> vector<16x128xf32>
    %c0_12 = arith.constant 0 : index
    %c0_13 = arith.constant 0 : index
    %16 = vector.load %arg6[%c0_12, %c0_13] : memref<1x128xf32, #tpu.memory_space<vmem>>, vector<1x128xf32>
    %17 = vector.broadcast %16 : vector<1x128xf32> to vector<16x128xf32>
    %18 = arith.addf %15, %17 : vector<16x128xf32>
    %cst_14 = arith.constant 0.000000e+00 : f32
    %19 = vector.broadcast %cst_14 : f32 to vector<16x128xf32>
    %20 = arith.maximumf %18, %19 : vector<16x128xf32>
    %21 = arith.truncf %20 : vector<16x128xf32> to vector<16x128xbf16>
    %c0_15 = arith.constant 0 : index
    %c0_16 = arith.constant 0 : index
    %22 = vector.load %arg7[%c0_15, %c0_16] : memref<128x1024xbf16, #tpu.memory_space<vmem>>, vector<128x1024xbf16>
    %cst_17 = arith.constant dense<0.000000e+00> : vector<16x1024xf32>
    %23 = tpu.matmul %21, %22, %cst_17 {dimension_numbers = #tpu.dot_dimension_numbers<[1], [0], [0], [1], [0, 0, 1, 1], [], []>} : vector<16x128xbf16>, vector<128x1024xbf16>, vector<16x1024xf32> -> vector<16x1024xf32>
    %c0_18 = arith.constant 0 : index
    %c0_19 = arith.constant 0 : index
    %24 = vector.load %arg8[%c0_18, %c0_19] : memref<1x1024xf32, #tpu.memory_space<vmem>>, vector<1x1024xf32>
    %25 = vector.broadcast %24 : vector<1x1024xf32> to vector<16x1024xf32>
    %26 = arith.addf %23, %25 : vector<16x1024xf32>
    %cst_20 = arith.constant 0.000000e+00 : f32
    %27 = vector.broadcast %cst_20 : f32 to vector<16x1024xf32>
    %28 = arith.maximumf %26, %27 : vector<16x1024xf32>
    %c0_21 = arith.constant 0 : index
    %c0_22 = arith.constant 0 : index
    %29 = vector.load %arg16[%c0_21, %c0_22] : memref<1x1024xf32, #tpu.memory_space<vmem>>, vector<1x1024xf32>
    %cst_23 = arith.constant dense<0xFF800000> : vector<1024xf32>
    %30 = vector.multi_reduction <maximumf>, %28, %cst_23 [0] : vector<16x1024xf32> to vector<1024xf32>
    %31 = vector.shape_cast %30 : vector<1024xf32> to vector<1x1024xf32>
    %32 = arith.maximumf %29, %31 : vector<1x1024xf32>
    %c0_24 = arith.constant 0 : index
    %c0_25 = arith.constant 0 : index
    %33 = vector.load %arg16[%c0_24, %c0_25] : memref<1x1024xf32, #tpu.memory_space<vmem>>, vector<1x1024xf32>
    tpu.vector_store %arg16[%c0_24, %c0_25], %32 {strides = array<i32>} : memref<1x1024xf32, #tpu.memory_space<vmem>>, vector<1x1024xf32>,
    %c0_i32_26 = arith.constant 0 : i32
    %34 = arith.cmpi eq, %arg1, %c0_i32_26 : i32
    %35 = arith.extui %34 : i1 to i32
    %c0_i32_27 = arith.constant 0 : i32
    %36 = arith.cmpi ne, %35, %c0_i32_27 : i32
    scf.if %36 {
      %c0_28 = arith.constant 0 : index
      %c0_29 = arith.constant 0 : index
      %37 = vector.load %arg16[%c0_28, %c0_29] : memref<1x1024xf32, #tpu.memory_space<vmem>>, vector<1x1024xf32>
      %38 = arith.truncf %37 : vector<1x1024xf32> to vector<1x1024xbf16>
      %c0_30 = arith.constant 0 : index
      %c0_31 = arith.constant 0 : index
      %39 = vector.load %arg9[%c0_30, %c0_31] : memref<1024x512xbf16, #tpu.memory_space<vmem>>, vector<1024x512xbf16>
      %cst_32 = arith.constant dense<0.000000e+00> : vector<1x512xf32>
      %40 = tpu.matmul %38, %39, %cst_32 {dimension_numbers = #tpu.dot_dimension_numbers<[1], [0], [0], [1], [0, 0, 1, 1], [], []>} : vector<1x1024xbf16>, vector<1024x512xbf16>, vector<1x512xf32> -> vector<1x512xf32>
      %c0_33 = arith.constant 0 : index
      %c0_34 = arith.constant 0 : index
      %41 = vector.load %arg10[%c0_33, %c0_34] : memref<1x512xf32, #tpu.memory_space<vmem>>, vector<1x512xf32>
      %42 = arith.addf %40, %41 : vector<1x512xf32>
      %cst_35 = arith.constant 0.000000e+00 : f32
      %43 = vector.broadcast %cst_35 : f32 to vector<1x512xf32>
      %44 = arith.maximumf %42, %43 : vector<1x512xf32>
      %45 = arith.truncf %44 : vector<1x512xf32> to vector<1x512xbf16>
      %c0_36 = arith.constant 0 : index
      %c0_37 = arith.constant 0 : index
      %46 = vector.load %arg11[%c0_36, %c0_37] : memref<512x256xbf16, #tpu.memory_space<vmem>>, vector<512x256xbf16>
      %cst_38 = arith.constant dense<0.000000e+00> : vector<1x256xf32>
      %47 = tpu.matmul %45, %46, %cst_38 {dimension_numbers = #tpu.dot_dimension_numbers<[1], [0], [0], [1], [0, 0, 1, 1], [], []>} : vector<1x512xbf16>, vector<512x256xbf16>, vector<1x256xf32> -> vector<1x256xf32>
      %c0_39 = arith.constant 0 : index
      %c0_40 = arith.constant 0 : index
      %48 = vector.load %arg12[%c0_39, %c0_40] : memref<1x256xf32, #tpu.memory_space<vmem>>, vector<1x256xf32>
      %49 = arith.addf %47, %48 : vector<1x256xf32>
      %cst_41 = arith.constant 0.000000e+00 : f32
      %50 = vector.broadcast %cst_41 : f32 to vector<1x256xf32>
      %51 = arith.maximumf %49, %50 : vector<1x256xf32>
      %52 = arith.truncf %51 : vector<1x256xf32> to vector<1x256xbf16>
      %c0_42 = arith.constant 0 : index
      %c0_43 = arith.constant 0 : index
      %53 = vector.load %arg13[%c0_42, %c0_43] : memref<256x128xbf16, #tpu.memory_space<vmem>>, vector<256x128xbf16>
      %cst_44 = arith.constant dense<0.000000e+00> : vector<1x128xf32>
      %54 = tpu.matmul %52, %53, %cst_44 {dimension_numbers = #tpu.dot_dimension_numbers<[1], [0], [0], [1], [0, 0, 1, 1], [], []>} : vector<1x256xbf16>, vector<256x128xbf16>, vector<1x128xf32> -> vector<1x128xf32>
      %c0_45 = arith.constant 0 : index
      %c0_46 = arith.constant 0 : index
      %55 = vector.load %arg14[%c0_45, %c0_46] : memref<1x128xf32, #tpu.memory_space<vmem>>, vector<1x128xf32>
      %56 = arith.addf %54, %55 : vector<1x128xf32>
      %c0_47 = arith.constant 0 : index
      %c0_48 = arith.constant 0 : index
      %c0_49 = arith.constant 0 : index
      %57 = vector.load %arg15[%c0_47, %c0_48, %c0_49] : memref<1x1x128xf32, #tpu.memory_space<vmem>>, vector<1x1x128xf32>
      %58 = vector.shape_cast %57 : vector<1x1x128xf32> to vector<1x128xf32>
      %59 = vector.shape_cast %56 : vector<1x128xf32> to vector<1x1x128xf32>
      tpu.vector_store %arg15[%c0_47, %c0_48, %c0_49], %59 {strides = array<i32>} : memref<1x1x128xf32, #tpu.memory_space<vmem>>, vector<1x1x128xf32>,
    } else {
    }
    return
  }
  func.func @transform_0(%arg0: i32, %arg1: i32) -> (i32, i32, i32) {
    %c0_i32 = arith.constant 0 : i32
    %c0_i32_0 = arith.constant 0 : i32
    return %arg0, %arg1, %c0_i32 : i32, i32, i32
  }
  func.func @transform_1(%arg0: i32, %arg1: i32) -> (i32, i32, i32) {
    %c0_i32 = arith.constant 0 : i32
    %c0_i32_0 = arith.constant 0 : i32
    %c0_i32_1 = arith.constant 0 : i32
    return %arg0, %c0_i32, %c0_i32_0 : i32, i32, i32
  }
  func.func @transform_2(%arg0: i32, %arg1: i32) -> (i32, i32) {
    %c0_i32 = arith.constant 0 : i32
    %c0_i32_0 = arith.constant 0 : i32
    %c0_i32_1 = arith.constant 0 : i32
    return %c0_i32, %c0_i32_0 : i32, i32
  }
  func.func @transform_3(%arg0: i32, %arg1: i32) -> (i32, i32) {
    %c0_i32 = arith.constant 0 : i32
    %c0_i32_0 = arith.constant 0 : i32
    %c0_i32_1 = arith.constant 0 : i32
    return %c0_i32, %c0_i32_0 : i32, i32
  }
  func.func @transform_4(%arg0: i32, %arg1: i32) -> (i32, i32) {
    %c0_i32 = arith.constant 0 : i32
    %c0_i32_0 = arith.constant 0 : i32
    %c0_i32_1 = arith.constant 0 : i32
    return %c0_i32, %c0_i32_0 : i32, i32
  }
  func.func @transform_5(%arg0: i32, %arg1: i32) -> (i32, i32) {
    %c0_i32 = arith.constant 0 : i32
    %c0_i32_0 = arith.constant 0 : i32
    %c0_i32_1 = arith.constant 0 : i32
    return %c0_i32, %c0_i32_0 : i32, i32
  }
  func.func @transform_6(%arg0: i32, %arg1: i32) -> (i32, i32) {
    %c0_i32 = arith.constant 0 : i32
    %c0_i32_0 = arith.constant 0 : i32
    %c0_i32_1 = arith.constant 0 : i32
    return %c0_i32, %c0_i32_0 : i32, i32
  }
  func.func @transform_7(%arg0: i32, %arg1: i32) -> (i32, i32) {
    %c0_i32 = arith.constant 0 : i32
    %c0_i32_0 = arith.constant 0 : i32
    %c0_i32_1 = arith.constant 0 : i32
    return %c0_i32, %c0_i32_0 : i32, i32
  }
  func.func @transform_8(%arg0: i32, %arg1: i32) -> (i32, i32) {
    %c0_i32 = arith.constant 0 : i32
    %c0_i32_0 = arith.constant 0 : i32
    %c0_i32_1 = arith.constant 0 : i32
    return %c0_i32, %c0_i32_0 : i32, i32
  }
  func.func @transform_9(%arg0: i32, %arg1: i32) -> (i32, i32) {
    %c0_i32 = arith.constant 0 : i32
    %c0_i32_0 = arith.constant 0 : i32
    %c0_i32_1 = arith.constant 0 : i32
    return %c0_i32, %c0_i32_0 : i32, i32
  }
  func.func @transform_10(%arg0: i32, %arg1: i32) -> (i32, i32) {
    %c0_i32 = arith.constant 0 : i32
    %c0_i32_0 = arith.constant 0 : i32
    %c0_i32_1 = arith.constant 0 : i32
    return %c0_i32, %c0_i32_0 : i32, i32
  }
  func.func @transform_11(%arg0: i32, %arg1: i32) -> (i32, i32) {
    %c0_i32 = arith.constant 0 : i32
    %c0_i32_0 = arith.constant 0 : i32
    %c0_i32_1 = arith.constant 0 : i32
    return %c0_i32, %c0_i32_0 : i32, i32
  }
  func.func @transform_12(%arg0: i32, %arg1: i32) -> (i32, i32) {
    %c0_i32 = arith.constant 0 : i32
    %c0_i32_0 = arith.constant 0 : i32
    %c0_i32_1 = arith.constant 0 : i32
    return %c0_i32, %c0_i32_0 : i32, i32
  }
  func.func @transform_13(%arg0: i32, %arg1: i32) -> (i32, i32, i32) {
    %c0_i32 = arith.constant 0 : i32
    %c0_i32_0 = arith.constant 0 : i32
    %c0_i32_1 = arith.constant 0 : i32
    return %arg0, %c0_i32, %c0_i32_0 : i32, i32, i32
  }
}

</mosaic_0001>

<bundles_post_ra>
// kernel: pointnet_forward.5
= control target key start
LH: loop header
LB: loop body
LE: loop exit
PB: predicated region body
PF: predicated region fallthrough
CT: control target
= control target key end

     0   :  { %10 = vsyncpa [#allocation3], 0  ;;  %s1025_s0 = inlined_call_operand.vmem [shape: f32[2,16,3], index: 0, kind: input, shape index: {}]   ;;  %s1026_s1 = inlined_call_operand.vmem [shape: f32[2,3,64], index: 1, kind: input, shape index: {}]   ;;  %s1027_s2 = inlined_call_operand.hbm [shape: f32[1,64], index: 2, kind: input, shape index: {}]   ;;  %s1028_s3 = inlined_call_operand.hbm [shape: bf16[64,128], index: 3, kind: input, shape index: {}]   ;;  %s1029_s4 = inlined_call_operand.hbm [shape: f32[1,128], index: 4, kind: input, shape index: {}]   ;;  %s1030_s5 = inlined_call_operand.vmem [shape: bf16[2,16,128], index: 5, kind: output, shape index: {}]  }
   0x1   :  { %11 = vsyncpa [#allocation5], 0  ;;  %s921_s18 = smov 0   ;;  %s923_s19 = smov 0  }
   0x2   :  { %s925_s20 = smov 0  }
   0x3 LB: > { %s884_s21 = smov [#allocation4]   ;;  %s647_s23 = sadd.s32 4294967295, %s882_s20   ;;  %s882_s20 = sphi %s925_s20, %s17_s20   ;;  %s878_s19 = sphi %s923_s19, %s1036_s19   ;;  %s874_s18 = sphi %s921_s18, %s1035_s18  }
   0x4   : > { %s202_s22 = sshll.u32 %s884_s21, 4  ;;  %p649_p0 = scmp.ge.s32.totalorder %s882_s20, 1  ;;  %s203_s22 = int_to_ptr.vmem [resolvable:$true] %s202_s22 }
   0x5   : > { %p179_p1 = scmp.lt.s32.totalorder %s882_s20, 3  ;;  %p939_p2 = scmp.eq.s32.totalorder %s647_s23, 0 }
   0x6   : > { %s29_s27 = sadd.s32 1, %s878_s19  ;;  %s885_s29 = smov [#allocation2]  }
   0x7   : > { %p943_p3 = pnand %p649_p0, %p179_p1  ;;  %p956_p6 = scmp.ge.s32.totalorder %s29_s27, 2 }
   0x8   : > { %s192_s30 = sshll.u32 %s885_s29, 4  ;;  %s785_s6 = scalar_lea.vmem %s203_s22, 512  ;;  %s193_s30 = int_to_ptr.vmem [resolvable:$true] %s192_s30 }
   0x9   : > { %p723_p4 = pneg %p943_p3  ;;  %p786_p8 = scmp.ne.s32.totalorder %s203_s22, %s785_s6 }
   0xa   : > { %p793_p11 = scmp.lt.s32.totalorder %s203_s22, %s203_s22  ;;  %p794_p12 = scmp.lt.s32.totalorder %s785_s6, %s785_s6 }
   0xb   : > { %p951_p5 = pnand %p939_p2, %p723_p4 }
   0xc   : > { %p795_p13 = por %p794_p12, %p793_p11 }
   0xd   : > { %p776_p7 = pneg %p951_p5 }
   0xf   : > { %p788_p9 = pnand %p786_p8, %p776_p7 }
  0x11   : > { %p789_p10 = pneg %p788_p9 }
  0x13   : > { %p796_p0 = pnand %p795_p13, %p789_p10 }
  0x15   : > { %799 = shalt.err (!%p796_p0)
}
  0x16   : > { %s886_s7 = smov 64   ;;  %s887_s8 = smov 4  }
  0x17   : > { %729 = dma.hbm_to_vmem [thread:$0]  (!%p951_p5), %s1028_s3, 512, %s203_s22, [#allocation5], %s886_s7, %s886_s7, %s887_s8  }
  0x18   : > { %s1038_s27 = smov (%p956_p6, %s29_s27), 0  ;;  %s811_s11 = scalar_lea.vmem %s193_s30, 16 }
  0x19   : > { %p812_p1 = scmp.ne.s32.totalorder %s193_s30, %s811_s11  ;;  %s818_s12 = scalar_lea.vmem %s193_s30, 32 }
  0x1a   : > { %p819_p9 = scmp.lt.s32.totalorder %s193_s30, %s193_s30  ;;  %p820_p10 = scmp.lt.s32.totalorder %s818_s12, %s811_s11 }
  0x1b   : > { %p814_p4 = pnand %p812_p1, %p776_p7 }
  0x1c   : > { %p821_p11 = por %p820_p10, %p819_p9 }
  0x1d   : > { %p815_p8 = pneg %p814_p4 }
  0x1f   : > { %p822_p12 = pnand %p821_p11, %p815_p8 }
  0x21   : > { %825 = shalt.err (!%p822_p12)
}
  0x22   : > { %726 = dma.hbm_to_vmem [thread:$0]  (!%p951_p5), %s1027_s2, 16, %s193_s30, [#allocation3]  }
  0x23   : > { %s888_s15 = smov [#allocation6]  }
  0x24   : > { %s216_s16 = sshll.u32 %s888_s15, 4  ;;  %s217_s16 = int_to_ptr.vmem [resolvable:$true] %s216_s16 }
  0x25   : > { %s837_s17 = scalar_lea.vmem %s217_s16, 16  ;;  %s844_s21 = scalar_lea.vmem %s217_s16, 32 }
  0x26   : > { %p838_p6 = scmp.ne.s32.totalorder %s217_s16, %s837_s17  ;;  %p845_p1 = scmp.lt.s32.totalorder %s217_s16, %s217_s16 }
  0x27   : > { %p846_p4 = scmp.lt.s32.totalorder %s844_s21, %s837_s17 }
  0x28   : > { %p840_p13 = pnand %p838_p6, %p776_p7 }
  0x29   : > { %p847_p8 = por %p846_p4, %p845_p1 }
  0x2a   : > { %p841_p0 = pneg %p840_p13 }
  0x2c   : > { %p848_p9 = pnand %p847_p8, %p841_p0 }
  0x2e   : > { %851 = shalt.err (!%p848_p9)
}
  0x2f   : > { %732 = dma.hbm_to_vmem [thread:$0]  (!%p951_p5), %s1029_s4, 16, %s217_s16, [#allocation5]  }
  0x30   : > { %249 = sbr.rel (%p943_p3) target bundleno = 469 (0x1d5), region = 40 }
  0x35   : > { %865 = dma.done.wait (%p939_p2), [#allocation3], 16  }
  0x36   : > { %867 = vsyncadd (%p939_p2), [#allocation3], 4294967280 }
  0x37   : > { %869 = dma.done.wait (%p939_p2), [#allocation5], 528  }
  0x38   : > { %871 = vsyncadd (%p939_p2), [#allocation5], 4294966768  ;;  %p298_p7 = scmp.lt.s32.totalorder %s874_s18, 1  ;;  %v889_v0 = vmov 0.0   ;;  %vm339_vm0 = vcmask 1042432   ;;  %vm332_vm1 = vcmask 23552  }
  0x39   : > { %699 = vmatprep.subr.bf16.mxu1 %v889_v0  ;;  %v770_v4 = vld [vmem:[#allocation4 + $0x18] sm:$0xff]   ;;  %v771_v5 = vld [vmem:[#allocation4 + $0x10] sm:$0xff]   ;;  %v772_v6 = vld [vmem:[#allocation4 + $0x8] sm:$0xff]   ;;  %vm890_vm2 = vmmov 0   ;;  %vm460_vm3 = vcmask 523264  }
  0x3a   : > { %s1040_s18 = smov (!%p298_p7, %s874_s18), 1  ;;  %700 = vmatpush3.bf16.msra.mxu1 %v770_v4  ;;  %v773_v7 = vld [vmem:[#allocation4] sm:$0xff]   ;;  %707 = vmatprep.mubr.msk.bf16.mxu1 %vm890_vm2, %v889_v0  ;;  %v663_v8 = vld [vmem:[#allocation2] ss:$0 sm:$0xff] }
  0x3b   : > { %s660_s25 = sshll.u32 %s1040_s18, 2  ;;  %s677_s26 = sshll.u32 %s1040_s18, 4  ;;  %701 = vmatprep.subr.bf16.mxu1 %v889_v0  ;;  %v667_v16 = vld [vmem:[#allocation6] ss:$0 sm:$0xff] }
  0x3c   : > { %s310_s30 = scalar_lea.vmem %s1026_s1, %s660_s25  ;;  %s305_s24 = scalar_lea.vmem %s1025_s0, %s677_s26 }
  0x3d   : > { %v322_v1 = vld [vmem:[%s310_s30] sm:$0x7]  ;;  %v324_v3 = vld [vmem:[%s305_s24 + $0x8] sm:$0xff]  ;;  %s678_s8 = sshll.u32 %s1040_s18, 3 }
  0x3e   : > { %v323_v2 = vld [vmem:[%s305_s24] sm:$0xff]  ;;  %694 = vmatprep.subr.msk.mxu0 %vm339_vm0, %v322_v1  ;;  %702 = vmatpush3.bf16.msra.mxu1 %v771_v5  ;;  %s319_s11 = scalar_lea.vmem %s1030_s5, %s678_s8 }
  0x3f   : > { %696 = vmatprep.mubr.msk.f32.mxu0 %vm332_vm1, %v323_v2  ;;  %695 = vmatpush3.msk.msra.mxu0 %vm339_vm0, %v322_v1 }
  0x40   : > { %697 = vmatmul.mubr.msk.f32.vlgmr.msra.gmra.mxu0 %vm332_vm1, %v324_v3  ;;  %703 = vmatprep.subr.bf16.mxu1 %v889_v0 }
  0x42   : > { %704 = vmatpush3.bf16.msra.mxu1 %v772_v6 }
  0x43   : > { %705 = vmatprep.subr.bf16.mxu1 %v889_v0 }
  0x46   : > { %706 = vmatpush3.bf16.msra.mxu1 %v773_v7 }
 0x100   : > { %v698_v9 = vpop.f32.mrf.mxu0 }
 0x101   : > { %v415_v10 = vadd.f32 %v698_v9, %v663_v8 }
 0x102   : > { %v409_v11 = vpop.f32.mrf.mxu0 }
 0x103   : > { %v410_v12 = vadd.f32 %v663_v8, %v409_v11  ;;  %v419_v13 = vmax.f32 %v415_v10, 0.0 }
 0x105   : > { %v418_v14 = vmax.f32 %v410_v12, 0.0 }
 0x107   : > { %v420_v15 = vpack.c.bf16 %v419_v13, %v418_v14 }
 0x109   : > { %708 = vmatmul.mubr.msk.bf16.vlgmr.msra.gmra.mxu1 %vm460_vm3, %v420_v15 }
 0x1c9   : > { %v498_v17 = vpop.f32.mrf.mxu1 }
 0x1ca   : > { %v499_v19 = vadd.f32 %v667_v16, %v498_v17 }
 0x1cb   : > { %v709_v18 = vpop.f32.mrf.mxu1 }
 0x1cc   : > { %v505_v23 = vmax.f32 %v499_v19, 0.0 }
 0x1cd   : > { %v501_v20 = vpop.f32.mrf.mxu1 }
 0x1ce   : > { %v502_v21 = vadd.f32 %v667_v16, %v501_v20 }
 0x1cf   : > { %v710_v22 = vpop.f32.mrf.mxu1 }
 0x1d0   : > { %v506_v24 = vmax.f32 %v502_v21, 0.0 }
 0x1d2   : > { %v684_v25 = vpack.c.bf16 %v506_v24, %v505_v23 }
 0x1d4   : > { %685 = vst [vmem:[%s319_s11] sm:$0xff] %v684_v25  }
 0x1d5 PF: > { %s17_s20 = sadd.s32 1, %s882_s20   ;;  %s1035_s18 = smov %s878_s19 }
 0x1d6   : > { %p14_p2 = scmp.ge.s32.totalorder %s17_s20, 4   ;;  %s1036_s19 = smov %s1038_s27 }
 0x1d8   :  { %16 = sbr.rel (!%p14_p2) target bundleno = 3 (0x3), region = 86 }
 0x1dd   :  { %547 = vsyncpa [#allocation3], 1 }
 0x1de   :  { %549 = vsyncpa [#allocation3 + $0x1], 1 }
 0x1df   :  { %550 = vsyncpa [#allocation5], 1 }

// kernel: pointnet_forward.4
= control target key start
LH: loop header
LB: loop body
LE: loop exit
PB: predicated region body
PF: predicated region fallthrough
CT: control target
= control target key end

     0   :  { %s6254_s0 = inlined_call_operand.vmem [shape: f32[2,16,3], index: 0, kind: input, shape index: {}]   ;;  %s6255_s1 = inlined_call_operand.hbm [shape: f32[3,64], index: 1, kind: input, shape index: {}]   ;;  %s6256_s2 = inlined_call_operand.hbm [shape: f32[1,64], index: 2, kind: input, shape index: {}]   ;;  %s6257_s3 = inlined_call_operand.hbm [shape: bf16[64,128], index: 3, kind: input, shape index: {}]   ;;  %s6258_s4 = inlined_call_operand.hbm [shape: f32[1,128], index: 4, kind: input, shape index: {}]   ;;  %s6259_s5 = inlined_call_operand.hbm [shape: bf16[128,1024], index: 5, kind: input, shape index: {}]   ;;  %s6260_s6 = inlined_call_operand.hbm [shape: f32[1,1024], index: 6, kind: input, shape index: {}]   ;;  %s6261_s7 = inlined_call_operand.hbm [shape: bf16[1024,512], index: 7, kind: input, shape index: {}]   ;;  %s6262_s8 = inlined_call_operand.hbm [shape: f32[1,512], index: 8, kind: input, shape index: {}]   ;;  %s6263_s9 = inlined_call_operand.hbm [shape: bf16[512,256], index: 9, kind: input, shape index: {}]   ;;  %s6264_s10 = inlined_call_operand.hbm [shape: f32[1,256], index: 10, kind: input, shape index: {}]   ;;  %s6265_s11 = inlined_call_operand.hbm [shape: bf16[256,128], index: 11, kind: input, shape index: {}]   ;;  %s6266_s12 = inlined_call_operand.hbm [shape: f32[1,128], index: 12, kind: input, shape index: {}]   ;;  %s6267_s13 = inlined_call_operand.vmem [shape: f32[2,1,128], index: 13, kind: output, shape index: {}]  }
   0x1   :  { %6270 = sst [smem:[#allocation29_spill]] %s6255_s1 }
   0x2   :  { %6271 = sst [smem:[#allocation30_spill]] %s6256_s2 }
   0x3   :  { %18 = vsyncpa [#allocation4], 0 }
   0x4   :  { %19 = vsyncpa [#allocation6], 0 }
   0x5   :  { %20 = vsyncpa [#allocation9], 0 }
   0x6   :  { %21 = vsyncpa [#allocation12], 0 }
   0x7   :  { %22 = vsyncpa [#allocation15], 0 }
   0x8   :  { %23 = vsyncpa [#allocation18], 0 }
   0x9   :  { %24 = vsyncpa [#allocation21], 0  ;;  %s5933_s25 = smov 0   ;;  %s5935_s26 = smov 0  }
   0xa   :  { %s5937_s27 = smov 0  }
   0xb LB: > { %s5839_s28 = smov [#allocation5]   ;;  %s4327_s30 = sadd.s32 4294967295, %s5837_s27   ;;  %s5837_s27 = sphi %s5937_s27, %s30_s27   ;;  %s5833_s26 = sphi %s5935_s26, %s6281_s26   ;;  %s5829_s25 = sphi %s5933_s25, %s6280_s25  }
   0xc   : > { %s377_s29 = sshll.u32 %s5839_s28, 4  ;;  %p4329_p0 = scmp.ge.s32.totalorder %s5837_s27, 1  ;;  %s378_s29 = int_to_ptr.vmem [resolvable:$true] %s377_s29 }
   0xd   : > { %p353_p1 = scmp.lt.s32.totalorder %s5837_s27, 3  ;;  %p5951_p2 = scmp.eq.s32.totalorder %s4327_s30, 0 }
   0xe   : > { %s5840_s16 = smov [#allocation8]   ;;  %s5841_s18 = smov [#allocation11]  }
   0xf   : > { %p5955_p3 = pnand %p4329_p0, %p353_p1  ;;  %s401_s17 = sshll.u32 %s5840_s16, 4  ;;  %s5961_s17 = int_to_ptr.vmem [resolvable:$true] %s401_s17 }
  0x10   : > { %s425_s19 = sshll.u32 %s5841_s18, 4  ;;  %s5842_s21 = smov [#allocation14]   ;;  %s5969_s19 = int_to_ptr.vmem [resolvable:$true] %s425_s19 }
  0x11   : > { %p4866_p4 = pneg %p5955_p3  ;;  %s449_s22 = sshll.u32 %s5842_s21, 4  ;;  %s5971_s22 = int_to_ptr.vmem [resolvable:$true] %s449_s22 }
  0x12   : > { %s5486_s24 = scalar_lea.vmem %s378_s29, 16  ;;  %s5493_s28 = scalar_lea.vmem %s378_s29, 32 }
  0x13   : > { %p5965_p5 = pnand %p5951_p2, %p4866_p4  ;;  %p5487_p7 = scmp.ne.s32.totalorder %s378_s29, %s5486_s24 }
  0x14   : > { %p5494_p10 = scmp.lt.s32.totalorder %s378_s29, %s378_s29  ;;  %p5495_p11 = scmp.lt.s32.totalorder %s5493_s28, %s5486_s24 }
  0x15   : > { %p5975_p6 = pneg %p5965_p5 }
  0x16   : > { %p5496_p12 = por %p5495_p11, %p5494_p10 }
  0x17   : > { %p5489_p8 = pnand %p5487_p7, %p5975_p6 }
  0x19   : > { %p5490_p9 = pneg %p5489_p8 }
  0x1b   : > { %p5497_p13 = pnand %p5496_p12, %p5490_p9 }
  0x1d   : > { %5500 = shalt.err (!%p5497_p13)
}
  0x1e   : > { %s6276_s2 = sld [smem:[#allocation30_spill]]  ;;  %s5512_s18 = scalar_lea.vmem %s5961_s17, 16 }
  0x1f   : > { %p5513_p0 = scmp.ne.s32.totalorder %s5961_s17, %s5512_s18  ;;  %s5519_s21 = scalar_lea.vmem %s5961_s17, 32 }
  0x20   : > { %p5520_p7 = scmp.lt.s32.totalorder %s5961_s17, %s5961_s17  ;;  %p5521_p8 = scmp.lt.s32.totalorder %s5519_s21, %s5512_s18 }
  0x21   : > { %p5515_p1 = pnand %p5513_p0, %p5975_p6 }
  0x22   : > { %p5522_p9 = por %p5521_p8, %p5520_p7 }
  0x23   : > { %p5516_p4 = pneg %p5515_p1 }
  0x24   : > { %4872 = dma.hbm_to_vmem [thread:$0]  (!%p5965_p5), %s6276_s2, 16, %s378_s29, [#allocation6]  }
  0x25   : > { %p5523_p10 = pnand %p5522_p9, %p5516_p4 }
  0x27   : > { %5526 = shalt.err (!%p5523_p10)
}
  0x28   : > { %4878 = dma.hbm_to_vmem [thread:$0]  (!%p5965_p5), %s6258_s4, 16, %s5961_s17, [#allocation9]  }
  0x29   : > { %s5538_s29 = scalar_lea.vmem %s5969_s19, 128  ;;  %p5546_p0 = scmp.lt.s32.totalorder %s5969_s19, %s5969_s19 }
  0x2a   : > { %p5539_p11 = scmp.ne.s32.totalorder %s5969_s19, %s5538_s29  ;;  %p5547_p1 = scmp.lt.s32.totalorder %s5538_s29, %s5538_s29 }
  0x2c   : > { %p5541_p12 = pnand %p5539_p11, %p5975_p6  ;;  %p5548_p4 = por %p5547_p1, %p5546_p0 }
  0x2e   : > { %p5542_p13 = pneg %p5541_p12 }
  0x30   : > { %p5549_p7 = pnand %p5548_p4, %p5542_p13 }
  0x32   : > { %5552 = shalt.err (!%p5549_p7)
}
  0x33   : > { %4884 = dma.hbm_to_vmem [thread:$0]  (!%p5965_p5), %s6260_s6, 128, %s5969_s19, [#allocation12]  }
  0x34   : > { %s5564_s17 = scalar_lea.vmem %s5971_s22, 64  ;;  %p5572_p11 = scmp.lt.s32.totalorder %s5971_s22, %s5971_s22 }
  0x35   : > { %p5565_p8 = scmp.ne.s32.totalorder %s5971_s22, %s5564_s17  ;;  %p5573_p12 = scmp.lt.s32.totalorder %s5564_s17, %s5564_s17 }
  0x37   : > { %p5567_p9 = pnand %p5565_p8, %p5975_p6  ;;  %p5574_p13 = por %p5573_p12, %p5572_p11 }
  0x39   : > { %p5568_p10 = pneg %p5567_p9 }
  0x3b   : > { %p5575_p0 = pnand %p5574_p13, %p5568_p10 }
  0x3d   : > { %5578 = shalt.err (!%p5575_p0)
}
  0x3e   : > { %4890 = dma.hbm_to_vmem [thread:$0]  (!%p5965_p5), %s6262_s8, 64, %s5971_s22, [#allocation15]  }
  0x3f   : > { %s5843_s19 = smov [#allocation17]  }
  0x40   : > { %s473_s24 = sshll.u32 %s5843_s19, 4  ;;  %s474_s24 = int_to_ptr.vmem [resolvable:$true] %s473_s24 }
  0x41   : > { %s5590_s28 = scalar_lea.vmem %s474_s24, 32  ;;  %p5598_p8 = scmp.lt.s32.totalorder %s474_s24, %s474_s24 }
  0x42   : > { %p5591_p1 = scmp.ne.s32.totalorder %s474_s24, %s5590_s28  ;;  %p5599_p9 = scmp.lt.s32.totalorder %s5590_s28, %s5590_s28 }
  0x44   : > { %p5593_p4 = pnand %p5591_p1, %p5975_p6  ;;  %p5600_p10 = por %p5599_p9, %p5598_p8 }
  0x46   : > { %p5594_p7 = pneg %p5593_p4 }
  0x48   : > { %p5601_p11 = pnand %p5600_p10, %p5594_p7 }
  0x4a   : > { %5604 = shalt.err (!%p5601_p11)
}
  0x4b   : > { %4896 = dma.hbm_to_vmem [thread:$0]  (!%p5965_p5), %s6264_s10, 32, %s474_s24, [#allocation18]  }
  0x4c   : > { %s42_s22 = sadd.s32 1, %s5833_s26  ;;  %s5844_s16 = smov [#allocation3]  }
  0x4d   : > { %p44_p12 = scmp.ge.s32.totalorder %s42_s22, 2  ;;  %s366_s17 = sshll.u32 %s5844_s16, 4  ;;  %s367_s17 = int_to_ptr.vmem [resolvable:$true] %s366_s17 }
  0x4e   : > { %s5616_s18 = scalar_lea.vmem %s367_s17, 64  ;;  %p5624_p4 = scmp.lt.s32.totalorder %s367_s17, %s367_s17 }
  0x4f   : > { %s6283_s22 = smov (%p44_p12, %s42_s22), 0  ;;  %p5617_p13 = scmp.ne.s32.totalorder %s367_s17, %s5616_s18 }
  0x50   : > { %p5625_p7 = scmp.lt.s32.totalorder %s5616_s18, %s5616_s18 }
  0x51   : > { %p5619_p0 = pnand %p5617_p13, %p5975_p6 }
  0x52   : > { %p5626_p8 = por %p5625_p7, %p5624_p4 }
  0x53   : > { %p5620_p1 = pneg %p5619_p0 }
  0x55   : > { %p5627_p9 = pnand %p5626_p8, %p5620_p1 }
  0x57   : > { %5630 = shalt.err (!%p5627_p9)
}
  0x58   : > { %s6277_s1 = sld [smem:[#allocation29_spill]]  ;;  %s5845_s24 = smov [#allocation7]  }
  0x59   : > { %s387_s28 = sshll.u32 %s5845_s24, 4  ;;  %s388_s28 = int_to_ptr.vmem [resolvable:$true] %s387_s28 }
  0x5a   : > { %s5642_s29 = scalar_lea.vmem %s388_s28, 512  ;;  %p5650_p13 = scmp.lt.s32.totalorder %s388_s28, %s388_s28 }
  0x5b   : > { %p5643_p10 = scmp.ne.s32.totalorder %s388_s28, %s5642_s29  ;;  %p5651_p0 = scmp.lt.s32.totalorder %s5642_s29, %s5642_s29 }
  0x5d   : > { %p5645_p11 = pnand %p5643_p10, %p5975_p6  ;;  %p5652_p4 = por %p5651_p0, %p5650_p13 }
  0x5e   : > { %4869 = dma.hbm_to_vmem [thread:$0]  (!%p5965_p5), %s6277_s1, 64, %s367_s17, [#allocation4]  }
  0x5f   : > { %p5646_p12 = pneg %p5645_p11 }
  0x61   : > { %p5653_p1 = pnand %p5652_p4, %p5646_p12 }
  0x63   : > { %5656 = shalt.err (!%p5653_p1)
}
  0x64   : > { %s6268_s30 = smov 64   ;;  %s6269_s16 = smov 4  }
  0x65   : > { %4875 = dma.hbm_to_vmem [thread:$0]  (!%p5965_p5), %s6257_s3, 512, %s388_s28, [#allocation6], %s6268_s30, %s6268_s30, %s6269_s16  }
  0x66   : > { %s5848_s21 = smov [#allocation10]  }
  0x67   : > { %s411_s19 = sshll.u32 %s5848_s21, 4  ;;  %s412_s19 = int_to_ptr.vmem [resolvable:$true] %s411_s19 }
  0x68   : > { %s5668_s24 = scalar_lea.vmem %s412_s19, 8192  ;;  %p5676_p10 = scmp.lt.s32.totalorder %s412_s19, %s412_s19 }
  0x69   : > { %p5669_p7 = scmp.ne.s32.totalorder %s412_s19, %s5668_s24  ;;  %p5677_p11 = scmp.lt.s32.totalorder %s5668_s24, %s5668_s24 }
  0x6b   : > { %p5671_p8 = pnand %p5669_p7, %p5975_p6  ;;  %p5678_p12 = por %p5677_p11, %p5676_p10 }
  0x6d   : > { %p5672_p9 = pneg %p5671_p8 }
  0x6f   : > { %p5679_p13 = pnand %p5678_p12, %p5672_p9 }
  0x71   : > { %5682 = shalt.err (!%p5679_p13)
}
  0x72   : > { %s5849_s29 = smov 512   ;;  %s5850_s1 = smov 32  }
  0x73   : > { %4881 = dma.hbm_to_vmem [thread:$0]  (!%p5965_p5), %s6259_s5, 8192, %s412_s19, [#allocation9], %s5849_s29, %s5849_s29, %s5850_s1  }
  0x74   : > { %s5851_s18 = smov [#allocation13]  }
  0x75   : > { %s435_s21 = sshll.u32 %s5851_s18, 4  ;;  %s436_s21 = int_to_ptr.vmem [resolvable:$true] %s435_s21 }
  0x76   : > { %s5694_s30 = scalar_lea.vmem %s436_s21, 32768  ;;  %p5702_p7 = scmp.lt.s32.totalorder %s436_s21, %s436_s21 }
  0x77   : > { %p5695_p0 = scmp.ne.s32.totalorder %s436_s21, %s5694_s30  ;;  %p5703_p8 = scmp.lt.s32.totalorder %s5694_s30, %s5694_s30 }
  0x79   : > { %p5697_p4 = pnand %p5695_p0, %p5975_p6  ;;  %p5704_p9 = por %p5703_p8, %p5702_p7 }
  0x7b   : > { %p5698_p1 = pneg %p5697_p4 }
  0x7d   : > { %p5705_p10 = pnand %p5704_p9, %p5698_p1 }
  0x7f   : > { %5708 = shalt.err (!%p5705_p10)
}
  0x80   : > { %s5852_s24 = smov 256   ;;  %s5853_s16 = smov 16  }
  0x81   : > { %4887 = dma.hbm_to_vmem [thread:$0]  (!%p5965_p5), %s6261_s7, 32768, %s436_s21, [#allocation12], %s5852_s24, %s5852_s24, %s5853_s16  }
  0x82   : > { %s5854_s19 = smov [#allocation16]  }
  0x83   : > { %s459_s29 = sshll.u32 %s5854_s19, 4  ;;  %s460_s29 = int_to_ptr.vmem [resolvable:$true] %s459_s29 }
  0x84   : > { %s5720_s28 = scalar_lea.vmem %s460_s29, 8192  ;;  %p5728_p0 = scmp.lt.s32.totalorder %s460_s29, %s460_s29 }
  0x85   : > { %p5721_p11 = scmp.ne.s32.totalorder %s460_s29, %s5720_s28  ;;  %p5729_p4 = scmp.lt.s32.totalorder %s5720_s28, %s5720_s28 }
  0x87   : > { %p5723_p12 = pnand %p5721_p11, %p5975_p6  ;;  %p5730_p1 = por %p5729_p4, %p5728_p0 }
  0x89   : > { %p5724_p13 = pneg %p5723_p12 }
  0x8b   : > { %p5731_p7 = pnand %p5730_p1, %p5724_p13 }
  0x8d   : > { %5734 = shalt.err (!%p5731_p7)
}
  0x8e   : > { %s5855_s30 = smov 128   ;;  %s5856_s18 = smov 8  }
  0x8f   : > { %4893 = dma.hbm_to_vmem [thread:$0]  (!%p5965_p5), %s6263_s9, 8192, %s460_s29, [#allocation15], %s5855_s30, %s5855_s30, %s5856_s18  }
  0x90   : > { %s5857_s21 = smov [#allocation19]   ;;  %s5858_s1 = smov [#allocation20]  }
  0x91   : > { %s483_s24 = sshll.u32 %s5857_s21, 4  ;;  %s497_s19 = sshll.u32 %s5858_s1, 4  ;;  %s484_s24 = int_to_ptr.vmem [resolvable:$true] %s483_s24  ;;  %s498_s19 = int_to_ptr.vmem [resolvable:$true] %s497_s19 }
  0x92   : > { %s5746_s2 = scalar_lea.vmem %s484_s24, 2048  ;;  %p5754_p11 = scmp.lt.s32.totalorder %s484_s24, %s484_s24 }
  0x93   : > { %p5747_p8 = scmp.ne.s32.totalorder %s484_s24, %s5746_s2  ;;  %p5755_p12 = scmp.lt.s32.totalorder %s5746_s2, %s5746_s2 }
  0x95   : > { %p5749_p9 = pnand %p5747_p8, %p5975_p6  ;;  %p5756_p13 = por %p5755_p12, %p5754_p11 }
  0x97   : > { %p5750_p10 = pneg %p5749_p9 }
  0x99   : > { %p5757_p0 = pnand %p5756_p13, %p5750_p10 }
  0x9b   : > { %5760 = shalt.err (!%p5757_p0)
}
  0x9c   : > { %s6278_s28 = smov 4   ;;  %s6279_s17 = smov 64  }
  0x9d   : > { %4899 = dma.hbm_to_vmem [thread:$0]  (!%p5965_p5), %s6265_s11, 2048, %s484_s24, [#allocation18], %s6279_s17, %s6279_s17, %s6278_s28  }
  0x9e   : > { %s5772_s18 = scalar_lea.vmem %s498_s19, 16  ;;  %s5779_s2 = scalar_lea.vmem %s498_s19, 32 }
  0x9f   : > { %p5773_p4 = scmp.ne.s32.totalorder %s498_s19, %s5772_s18  ;;  %p5780_p8 = scmp.lt.s32.totalorder %s498_s19, %s498_s19 }
  0xa0   : > { %p5781_p9 = scmp.lt.s32.totalorder %s5779_s2, %s5772_s18 }
  0xa1   : > { %p5775_p1 = pnand %p5773_p4, %p5975_p6 }
  0xa2   : > { %p5782_p10 = por %p5781_p9, %p5780_p8 }
  0xa3   : > { %p5776_p7 = pneg %p5775_p1 }
  0xa5   : > { %p5783_p11 = pnand %p5782_p10, %p5776_p7 }
  0xa7   : > { %5786 = shalt.err (!%p5783_p11)
}
  0xa8   : > { %4902 = dma.hbm_to_vmem [thread:$0]  (!%p5965_p5), %s6266_s12, 16, %s498_s19, [#allocation21]  }
  0xa9   : > { %523 = sbr.rel (%p5955_p3) target bundleno = 1660 (0x67c), region = 72 }
  0xae   : > { %5800 = dma.done.wait (%p5951_p2), [#allocation4], 64  }
  0xaf   : > { %5802 = vsyncadd (%p5951_p2), [#allocation4], 4294967232 }
  0xb0   : > { %5804 = dma.done.wait (%p5951_p2), [#allocation6], 528  }
  0xb1   : > { %5806 = vsyncadd (%p5951_p2), [#allocation6], 4294966768 }
  0xb2   : > { %5808 = dma.done.wait (%p5951_p2), [#allocation9], 8208  }
  0xb3   : > { %5810 = vsyncadd (%p5951_p2), [#allocation9], 4294959088 }
  0xb4   : > { %5812 = dma.done.wait (%p5951_p2), [#allocation12], 32896  }
  0xb5   : > { %5814 = vsyncadd (%p5951_p2), [#allocation12], 4294934400 }
  0xb6   : > { %5816 = dma.done.wait (%p5951_p2), [#allocation15], 8256  }
  0xb7   : > { %5818 = vsyncadd (%p5951_p2), [#allocation15], 4294959040 }
  0xb8   : > { %5820 = dma.done.wait (%p5951_p2), [#allocation18], 2080  }
  0xb9   : > { %5822 = vsyncadd (%p5951_p2), [#allocation18], 4294965216 }
  0xba   : > { %5824 = dma.done.wait (%p5951_p2), [#allocation21], 16  }
  0xbb   : > { %5826 = vsyncadd (%p5951_p2), [#allocation21], 4294967280  ;;  %p614_p3 = scmp.lt.s32.totalorder %s5829_s25, 1  ;;  %vm649_vm0 = vcmask 1042432   ;;  %vm642_vm1 = vcmask 23552   ;;  %v4975_v3 = vld [vmem:[#allocation7 + $0x18] sm:$0xff]  }
  0xbc   : > { %v632_v0 = vld [vmem:[#allocation3] sm:$0x7]  ;;  %v4976_v4 = vld [vmem:[#allocation7 + $0x10] sm:$0xff]   ;;  %v5859_v5 = vmov 0.0   ;;  %v4977_v6 = vld [vmem:[#allocation7 + $0x8] sm:$0xff]   ;;  %vm5860_vm2 = vmmov 0  }
  0xbd   : > { %s6285_s25 = smov (!%p614_p3, %s5829_s25), 1  ;;  %4801 = vmatprep.subr.msk.mxu1 %vm649_vm0, %v632_v0  ;;  %v4978_v7 = vld [vmem:[#allocation7] sm:$0xff]   ;;  %v875_v10 = vld [vmem:[#allocation10 + $0x1c8] sm:$0xff]  ;;  %v4358_v36 = vld [vmem:[#allocation5] ss:$0 sm:$0xff]  ;;  %vm770_vm3 = vcmask 523264  }
  0xbe   : > { %s4770_s15 = sshll.u32 %s6285_s25, 4  ;;  %4802 = vmatpush3.msk.msra.mxu1 %vm649_vm0, %v632_v0  ;;  %v874_v8 = vld [vmem:[#allocation10 + $0x1c0] sm:$0xff]  ;;  %v879_v12 = vld [vmem:[#allocation10 + $0x1e8] sm:$0xff]  ;;  %s625_s19 = scalar_lea.vmem %s6267_s13, %s6285_s25 }
  0xbf   : > { %s621_s24 = scalar_lea.vmem %s6254_s0, %s4770_s15  ;;  %4806 = vmatprep.subr.bf16.mxu1 %v5859_v5  ;;  %v878_v9 = vld [vmem:[#allocation10 + $0x1e0] sm:$0xff]  ;;  %v4426_v16 = vcombine.low %v875_v10, %v879_v12  ;;  %v4427_v17 = vcombine.high %v875_v10, %v879_v12  ;;  %v867_v41 = vld [vmem:[#allocation10 + $0x188] sm:$0xff] }
  0xc0   : > { %v633_v1 = vld [vmem:[%s621_s24] sm:$0xff]  ;;  %v634_v2 = vld [vmem:[%s621_s24 + $0x8] sm:$0xff]  ;;  %v4425_v11 = vcombine.high %v874_v8, %v878_v9  ;;  %v4424_v13 = vcombine.low %v874_v8, %v878_v9  ;;  %v871_v42 = vld [vmem:[#allocation10 + $0x1a8] sm:$0xff] }
  0xc1   : > { %4803 = vmatprep.mubr.msk.f32.mxu1 %vm642_vm1, %v633_v1  ;;  %v866_v14 = vld [vmem:[#allocation10 + $0x180] sm:$0xff]  ;;  %v4419_v46 = vcombine.high %v867_v41, %v871_v42  ;;  %v859_v47 = vld [vmem:[#allocation10 + $0x148] sm:$0xff]  ;;  %v4418_v49 = vcombine.low %v867_v41, %v871_v42  ;;  %v860_v41 = vld [vmem:[#allocation10 + $0x150] sm:$0xff] }
  0xc2   : > { %4804 = vmatmul.mubr.msk.f32.vlgmr.msra.gmra.mxu1 %vm642_vm1, %v634_v2  ;;  %v870_v15 = vld [vmem:[#allocation10 + $0x1a0] sm:$0xff]  ;;  %1244 = vmatprep.subr.bf16.mxu0 %v4425_v11  ;;  %v863_v48 = vld [vmem:[#allocation10 + $0x168] sm:$0xff]  ;;  %v864_v42 = vld [vmem:[#allocation10 + $0x170] sm:$0xff] }
  0xc3   : > { %4807 = vmatpush3.bf16.msra.mxu1 %v4975_v3  ;;  %4814 = vmatprep.mubr.msk.bf16.mxu1 %vm5860_vm2, %v5859_v5  ;;  %v4417_v18 = vcombine.high %v866_v14, %v870_v15  ;;  %v4416_v19 = vcombine.low %v866_v14, %v870_v15  ;;  %v858_v20 = vld [vmem:[#allocation10 + $0x140] sm:$0xff]  ;;  %v4411_v50 = vcombine.high %v859_v47, %v863_v48  ;;  %v851_v51 = vld [vmem:[#allocation10 + $0x108] sm:$0xff] }
  0xc4   : > { %4808 = vmatprep.subr.bf16.mxu1 %v5859_v5  ;;  %1245 = vmatpush1.bf16.msra.mxu0 %v4424_v13  ;;  %v862_v21 = vld [vmem:[#allocation10 + $0x160] sm:$0xff]  ;;  %v855_v52 = vld [vmem:[#allocation10 + $0x128] sm:$0xff]  ;;  %v4410_v53 = vcombine.low %v859_v47, %v863_v48  ;;  %v4413_v47 = vcombine.high %v860_v41, %v864_v42 }
  0xc5   : > { %1246 = vmatprep.subr.bf16.mxu0 %v4417_v18  ;;  %v4409_v22 = vcombine.high %v858_v20, %v862_v21  ;;  %v4408_v23 = vcombine.low %v858_v20, %v862_v21  ;;  %v850_v24 = vld [vmem:[#allocation10 + $0x100] sm:$0xff]  ;;  %v4403_v54 = vcombine.high %v851_v51, %v855_v52  ;;  %v843_v55 = vld [vmem:[#allocation10 + $0xc8] sm:$0xff]  ;;  %v4402_v57 = vcombine.low %v851_v51, %v855_v52  ;;  %v877_v18 = vld [vmem:[#allocation10 + $0x1d8] sm:$0xff] }
  0xc6   : > { %v854_v25 = vld [vmem:[#allocation10 + $0x120] sm:$0xff]  ;;  %v847_v56 = vld [vmem:[#allocation10 + $0xe8] sm:$0xff]  ;;  %v881_v20 = vld [vmem:[#allocation10 + $0x1f8] sm:$0xff] }
  0xc7   : > { %4809 = vmatpush3.bf16.msra.mxu1 %v4976_v4  ;;  %v4401_v26 = vcombine.high %v850_v24, %v854_v25  ;;  %v4400_v27 = vcombine.low %v850_v24, %v854_v25  ;;  %v842_v28 = vld [vmem:[#allocation10 + $0xc0] sm:$0xff]  ;;  %v4395_v58 = vcombine.high %v843_v55, %v847_v56  ;;  %v835_v59 = vld [vmem:[#allocation10 + $0x88] sm:$0xff]  ;;  %v4394_v61 = vcombine.low %v843_v55, %v847_v56  ;;  %v4362_v25 = vld [vmem:[#allocation8] ss:$0 sm:$0xff] }
  0xc8   : > { %4810 = vmatprep.subr.bf16.mxu1 %v5859_v5  ;;  %1247 = vmatpush1.bf16.msra.mxu0 %v4416_v19  ;;  %v846_v29 = vld [vmem:[#allocation10 + $0xe0] sm:$0xff]  ;;  %v839_v60 = vld [vmem:[#allocation10 + $0xa8] sm:$0xff]  ;;  %v5861_v24 = vmov 0   ;;  %v853_v51 = vld [vmem:[#allocation10 + $0x118] sm:$0xff] }
  0xc9   : > { %1248 = vmatprep.subr.bf16.mxu0 %v4409_v22  ;;  %v4393_v30 = vcombine.high %v842_v28, %v846_v29  ;;  %v4392_v31 = vcombine.low %v842_v28, %v846_v29  ;;  %v834_v32 = vld [vmem:[#allocation10 + $0x80] sm:$0xff]  ;;  %v4387_v62 = vcombine.high %v835_v59, %v839_v60  ;;  %v4386_v63 = vcombine.low %v835_v59, %v839_v60  ;;  %v827_v2 = vld [vmem:[#allocation10 + $0x48] sm:$0xff]  ;;  %v857_v52 = vld [vmem:[#allocation10 + $0x138] sm:$0xff] }
  0xca   : > { %v838_v33 = vld [vmem:[#allocation10 + $0xa0] sm:$0xff]  ;;  %v831_v4 = vld [vmem:[#allocation10 + $0x68] sm:$0xff]  ;;  %v4430_v22 = vcombine.low %v877_v18, %v881_v20  ;;  %1276 = vmatprep.mubr.bf16.mxu0 %v5861_v24  ;;  %v4407_v56 = vcombine.high %v853_v51, %v857_v52  ;;  %v845_v59 = vld [vmem:[#allocation10 + $0xd8] sm:$0xff] }
  0xcb   : > { %4811 = vmatpush3.bf16.msra.mxu1 %v4977_v6  ;;  %v4385_v34 = vcombine.high %v834_v32, %v838_v33  ;;  %v4384_v35 = vcombine.low %v834_v32, %v838_v33  ;;  %v826_v0 = vld [vmem:[#allocation10 + $0x40] sm:$0xff]  ;;  %v4379_v6 = vcombine.high %v827_v2, %v831_v4  ;;  %v819_v10 = vld [vmem:[#allocation10 + $0x8] sm:$0xff]  ;;  %v872_v33 = vld [vmem:[#allocation10 + $0x1b0] sm:$0xff] }
  0xcc   : > { %4812 = vmatprep.subr.bf16.mxu1 %v5859_v5  ;;  %1249 = vmatpush1.bf16.msra.mxu0 %v4408_v23  ;;  %v830_v1 = vld [vmem:[#allocation10 + $0x60] sm:$0xff]  ;;  %v4378_v5 = vcombine.low %v827_v2, %v831_v4  ;;  %v823_v12 = vld [vmem:[#allocation10 + $0x28] sm:$0xff]  ;;  %v4431_v23 = vcombine.high %v877_v18, %v881_v20  ;;  %v849_v60 = vld [vmem:[#allocation10 + $0xf8] sm:$0xff] }
  0xcd   : > { %1250 = vmatprep.subr.bf16.mxu0 %v4401_v26  ;;  %v4377_v3 = vcombine.high %v826_v0, %v830_v1  ;;  %v818_v8 = vld [vmem:[#allocation10] sm:$0xff]  ;;  %v4370_v13 = vcombine.low %v819_v10, %v823_v12  ;;  %v4371_v14 = vcombine.high %v819_v10, %v823_v12  ;;  %v840_v2 = vld [vmem:[#allocation10 + $0xb0] sm:$0xff]  ;;  %v841_v4 = vld [vmem:[#allocation10 + $0xb8] sm:$0xff] }
  0xce   : > { %v822_v9 = vld [vmem:[#allocation10 + $0x20] sm:$0xff]  ;;  %v832_v10 = vld [vmem:[#allocation10 + $0x70] sm:$0xff]  ;;  %v833_v12 = vld [vmem:[#allocation10 + $0x78] sm:$0xff] }
  0xcf   : > { %4813 = vmatpush3.bf16.msra.mxu1 %v4978_v7  ;;  %v4376_v7 = vcombine.low %v826_v0, %v830_v1  ;;  %v4369_v11 = vcombine.high %v818_v8, %v822_v9  ;;  %v4368_v15 = vcombine.low %v818_v8, %v822_v9  ;;  %v4399_v0 = vcombine.high %v845_v59, %v849_v60  ;;  %v836_v1 = vld [vmem:[#allocation10 + $0x90] sm:$0xff]  ;;  %v825_v20 = vld [vmem:[#allocation10 + $0x38] sm:$0xff] }
  0xd0   : > { %1287 = vmatprep.subr.bf16.mxu1 %v4427_v17  ;;  %1251 = vmatpush1.bf16.msra.mxu0 %v4400_v27  ;;  %v880_v17 = vld [vmem:[#allocation10 + $0x1f0] sm:$0xff] }
  0xd1   : > { %1252 = vmatprep.subr.bf16.mxu0 %v4393_v30  ;;  %v828_v9 = vld [vmem:[#allocation10 + $0x50] sm:$0xff] }
  0xd2   : > { %v824_v18 = vld [vmem:[#allocation10 + $0x30] sm:$0xff] }
  0xd4   : > { %1253 = vmatpush1.bf16.msra.mxu0 %v4392_v31  ;;  %v868_v31 = vld [vmem:[#allocation10 + $0x190] sm:$0xff] }
  0xd5   : > { %1254 = vmatprep.subr.bf16.mxu0 %v4385_v34  ;;  %v869_v34 = vld [vmem:[#allocation10 + $0x198] sm:$0xff] }
  0xd8   : > { %1255 = vmatpush1.bf16.msra.mxu0 %v4384_v35  ;;  %v873_v35 = vld [vmem:[#allocation10 + $0x1b8] sm:$0xff] }
  0xd9   : > { %1256 = vmatprep.subr.bf16.mxu0 %v4377_v3  ;;  %v837_v3 = vld [vmem:[#allocation10 + $0x98] sm:$0xff] }
  0xda   : > { %v4391_v8 = vcombine.high %v837_v3, %v841_v4 }
  0xdc   : > { %1257 = vmatpush1.bf16.msra.mxu0 %v4376_v7  ;;  %v4389_v7 = vcombine.high %v836_v1, %v840_v2 }
  0xdd   : > { %1258 = vmatprep.subr.bf16.mxu0 %v4369_v11  ;;  %v829_v11 = vld [vmem:[#allocation10 + $0x58] sm:$0xff] }
  0xe0   : > { %1259 = vmatpush1.bf16.msra.mxu0 %v4368_v15  ;;  %v4381_v15 = vcombine.high %v828_v9, %v832_v10 }
 0x182   : > { %v4805_v37 = vpop.f32.mrf.mxu1 }
 0x183   : > { %v725_v38 = vadd.f32 %v4805_v37, %v4358_v36 }
 0x184   : > { %v719_v39 = vpop.f32.mrf.mxu1 }
 0x185   : > { %v720_v40 = vadd.f32 %v4358_v36, %v719_v39  ;;  %v729_v43 = vmax.f32 %v725_v38, 0.0  ;;  %v4421_v39 = vcombine.high %v868_v31, %v872_v33 }
 0x187   : > { %v728_v44 = vmax.f32 %v720_v40, 0.0  ;;  %v4423_v40 = vcombine.high %v869_v34, %v873_v35 }
 0x189   : > { %v730_v45 = vpack.c.bf16 %v729_v43, %v728_v44  ;;  %v861_v43 = vld [vmem:[#allocation10 + $0x158] sm:$0xff] }
 0x18a   : > { %v865_v44 = vld [vmem:[#allocation10 + $0x178] sm:$0xff] }
 0x18b   : > { %4815 = vmatmul.mubr.msk.bf16.vlgmr.msra.gmra.mxu1 %vm770_vm3, %v730_v45  ;;  %v4420_v45 = vcombine.low %v868_v31, %v872_v33  ;;  %v4415_v48 = vcombine.high %v861_v43, %v865_v44  ;;  %v4987_v31 = vld [vmem:[#allocation13 + $0xc4] ss:$16 sps:$4 sm:$0xff]   ;;  %v4985_v33 = vld [vmem:[#allocation13 + $0xc0] ss:$16 sps:$4 sm:$0xff]  }
 0x18c   : > { %1288 = vmatpush1.bf16.msra.mxu1 %v4426_v16  ;;  %v876_v16 = vld [vmem:[#allocation10 + $0x1d0] sm:$0xff]  ;;  %1319 = vmatprep.mubr.bf16.mxu1 %v5861_v24 }
 0x18d   : > { %1289 = vmatprep.subr.bf16.mxu1 %v4419_v46  ;;  %v4429_v19 = vcombine.high %v876_v16, %v880_v17  ;;  %v4428_v21 = vcombine.low %v876_v16, %v880_v17  ;;  %v4422_v46 = vcombine.low %v869_v34, %v873_v35  ;;  %v4383_v16 = vcombine.high %v829_v11, %v833_v12  ;;  %v820_v17 = vld [vmem:[#allocation10 + $0x10] sm:$0xff]  ;;  %v4988_v34 = vld [vmem:[#allocation13 + $0x2c0] ss:$16 sps:$4 sm:$0xff]   ;;  %v4993_v35 = vld [vmem:[#allocation13 + $0xa4] ss:$16 sps:$4 sm:$0xff]  }
 0x18f   : > { %1330 = vmatprep.subr.bf16.mxu0 %v4429_v19  ;;  %v821_v19 = vld [vmem:[#allocation10 + $0x18] sm:$0xff] }
 0x190   : > { %1290 = vmatpush1.bf16.msra.mxu1 %v4418_v49  ;;  %v852_v49 = vld [vmem:[#allocation10 + $0x110] sm:$0xff] }
 0x191   : > { %1291 = vmatprep.subr.bf16.mxu1 %v4411_v50  ;;  %v856_v50 = vld [vmem:[#allocation10 + $0x130] sm:$0xff] }
 0x192   : > { %v4405_v55 = vcombine.high %v852_v49, %v856_v50 }
 0x194   : > { %1292 = vmatpush1.bf16.msra.mxu1 %v4410_v53  ;;  %v4412_v53 = vcombine.low %v860_v41, %v864_v42  ;;  %v4997_v41 = vld [vmem:[#allocation13 + $0x80] ss:$16 sps:$4 sm:$0xff]  }
 0x195   : > { %1293 = vmatprep.subr.bf16.mxu1 %v4403_v54  ;;  %v4414_v54 = vcombine.low %v861_v43, %v865_v44  ;;  %v5000_v42 = vld [vmem:[#allocation13 + $0x280] ss:$16 sps:$4 sm:$0xff]   ;;  %v5005_v43 = vld [vmem:[#allocation13 + $0x64] ss:$16 sps:$4 sm:$0xff]  }
 0x196   : > { %v5008_v44 = vld [vmem:[#allocation13 + $0x264] ss:$16 sps:$4 sm:$0xff]  }
 0x198   : > { %1294 = vmatpush1.bf16.msra.mxu1 %v4402_v57  ;;  %v844_v57 = vld [vmem:[#allocation10 + $0xd0] sm:$0xff] }
 0x199   : > { %1295 = vmatprep.subr.bf16.mxu1 %v4395_v58  ;;  %v848_v58 = vld [vmem:[#allocation10 + $0xf0] sm:$0xff] }
 0x19c   : > { %1296 = vmatpush1.bf16.msra.mxu1 %v4394_v61  ;;  %v4404_v61 = vcombine.low %v852_v49, %v856_v50  ;;  %v5009_v49 = vld [vmem:[#allocation13 + $0x40] ss:$16 sps:$4 sm:$0xff]  }
 0x19d   : > { %1297 = vmatprep.subr.bf16.mxu1 %v4387_v62  ;;  %v4406_v62 = vcombine.low %v853_v51, %v857_v52  ;;  %v5012_v50 = vld [vmem:[#allocation13 + $0x240] ss:$16 sps:$4 sm:$0xff]   ;;  %v5017_v51 = vld [vmem:[#allocation13 + $0x24] ss:$16 sps:$4 sm:$0xff]  }
 0x19e   : > { %v5020_v52 = vld [vmem:[#allocation13 + $0x224] ss:$16 sps:$4 sm:$0xff]  }
 0x1a0   : > { %1298 = vmatpush1.bf16.msra.mxu1 %v4386_v63  ;;  %v4397_v63 = vcombine.high %v844_v57, %v848_v58 }
 0x1a1   : > { %1299 = vmatprep.subr.bf16.mxu1 %v4379_v6  ;;  %v4398_v6 = vcombine.low %v845_v59, %v849_v60  ;;  %v5029_v59 = vld [vmem:[#allocation13 + $0x1e4] ss:$16 sps:$4 sm:$0xff]  }
 0x1a2   : > { %v5032_v60 = vld [vmem:[#allocation13 + $0x3e4] ss:$16 sps:$4 sm:$0xff]  }
 0x1a4   : > { %1300 = vmatpush1.bf16.msra.mxu1 %v4378_v5  ;;  %v4396_v5 = vcombine.low %v844_v57, %v848_v58  ;;  %v5021_v57 = vld [vmem:[#allocation13] ss:$16 sps:$4 sm:$0xff]  }
 0x1a5   : > { %1301 = vmatprep.subr.bf16.mxu1 %v4371_v14  ;;  %v4390_v14 = vcombine.low %v837_v3, %v841_v4  ;;  %v5024_v58 = vld [vmem:[#allocation13 + $0x200] ss:$16 sps:$4 sm:$0xff]   ;;  %v5041_v3 = vld [vmem:[#allocation13 + $0x1a4] ss:$16 sps:$4 sm:$0xff]  }
 0x1a6   : > { %v5044_v4 = vld [vmem:[#allocation13 + $0x3a4] ss:$16 sps:$4 sm:$0xff]  }
 0x1a8   : > { %1302 = vmatpush1.bf16.msra.mxu1 %v4370_v13  ;;  %v4388_v13 = vcombine.low %v836_v1, %v840_v2  ;;  %v5033_v1 = vld [vmem:[#allocation13 + $0x1c0] ss:$16 sps:$4 sm:$0xff]  }
 0x1a9   : > { %1373 = vmatprep.subr.bf16.mxu1 %v4431_v23  ;;  %v4373_v23 = vcombine.high %v820_v17, %v824_v18  ;;  %v5036_v2 = vld [vmem:[#allocation13 + $0x3c0] ss:$16 sps:$4 sm:$0xff]  }
 0x24b   : > { %v808_v26 = vpop.f32.mrf.mxu1 }
 0x24c   : > { %v809_v28 = vadd.f32 %v4362_v25, %v808_v26  ;;  %v4374_v26 = vcombine.low %v821_v19, %v825_v20 }
 0x24d   : > { %v4816_v27 = vpop.f32.mrf.mxu1 }
 0x24e   : > { %v815_v36 = vmax.f32 %v809_v28, 0.0  ;;  %v4981_v27 = vld [vmem:[#allocation13 + $0xe4] ss:$16 sps:$4 sm:$0xff]  }
 0x24f   : > { %v811_v29 = vpop.f32.mrf.mxu1  ;;  %v4984_v28 = vld [vmem:[#allocation13 + $0x2e4] ss:$16 sps:$4 sm:$0xff]  }
 0x250   : > { %v812_v30 = vadd.f32 %v4362_v25, %v811_v29  ;;  %v4372_v25 = vcombine.low %v820_v17, %v824_v18  ;;  %v4979_v29 = vld [vmem:[#allocation13 + $0xe0] ss:$16 sps:$4 sm:$0xff]  }
 0x251   : > { %v4817_v32 = vpop.f32.mrf.mxu1  ;;  %v5057_v17 = vld [vmem:[#allocation13 + $0x140] ss:$16 sps:$4 sm:$0xff]  }
 0x252   : > { %v816_v37 = vmax.f32 %v812_v30, 0.0  ;;  %v4982_v30 = vld [vmem:[#allocation13 + $0x2e0] ss:$16 sps:$4 sm:$0xff]   ;;  %v4990_v32 = vld [vmem:[#allocation13 + $0x2c4] ss:$16 sps:$4 sm:$0xff]  }
 0x253   : > { %v5060_v18 = vld [vmem:[#allocation13 + $0x340] ss:$16 sps:$4 sm:$0xff]  }
 0x254   : > { %v6126_v38 = vpack.c.bf16 %v816_v37, %v815_v36  ;;  %v4996_v36 = vld [vmem:[#allocation13 + $0x2a4] ss:$16 sps:$4 sm:$0xff]   ;;  %v4991_v37 = vld [vmem:[#allocation13 + $0xa0] ss:$16 sps:$4 sm:$0xff]  }
 0x256   : > { %1277 = vmatmul.mubr.bf16.vlgmr.msra.gmra.mxu0 %v6126_v38  ;;  %1320 = vmatmul.mubr.bf16.vlgmr.msra.gmra.mxu1 %v6126_v38 }
 0x257   : > { %1331 = vmatpush1.bf16.msra.mxu0 %v4428_v21  ;;  %1374 = vmatpush1.bf16.msra.mxu1 %v4430_v22  ;;  %v4380_v21 = vcombine.low %v828_v9, %v832_v10  ;;  %v4382_v22 = vcombine.low %v829_v11, %v833_v12  ;;  %v5045_v9 = vld [vmem:[#allocation13 + $0x180] ss:$16 sps:$4 sm:$0xff]   ;;  %v5053_v11 = vld [vmem:[#allocation13 + $0x164] ss:$16 sps:$4 sm:$0xff]  }
 0x258   : > { %1332 = vmatprep.subr.bf16.mxu0 %v4421_v39  ;;  %1375 = vmatprep.subr.bf16.mxu1 %v4423_v40  ;;  %v4999_v39 = vld [vmem:[#allocation13 + $0x84] ss:$16 sps:$4 sm:$0xff]   ;;  %v5048_v10 = vld [vmem:[#allocation13 + $0x380] ss:$16 sps:$4 sm:$0xff]  }
 0x259   : > { %1362 = vmatprep.mubr.bf16.mxu0 %v5861_v24  ;;  %1405 = vmatprep.mubr.bf16.mxu1 %v5861_v24  ;;  %v4375_v24 = vcombine.high %v821_v19, %v825_v20  ;;  %v5002_v40 = vld [vmem:[#allocation13 + $0x284] ss:$16 sps:$4 sm:$0xff]  }
 0x25a   : > { %v5056_v12 = vld [vmem:[#allocation13 + $0x364] ss:$16 sps:$4 sm:$0xff]  }
 0x25b   : > { %1333 = vmatpush1.bf16.msra.mxu0 %v4420_v45  ;;  %1376 = vmatpush1.bf16.msra.mxu1 %v4422_v46  ;;  %v5003_v45 = vld [vmem:[#allocation13 + $0x60] ss:$16 sps:$4 sm:$0xff]   ;;  %v5065_v19 = vld [vmem:[#allocation13 + $0x124] ss:$16 sps:$4 sm:$0xff]  }
 0x25c   : > { %1334 = vmatprep.subr.bf16.mxu0 %v4413_v47  ;;  %1377 = vmatprep.subr.bf16.mxu1 %v4415_v48  ;;  %v5006_v46 = vld [vmem:[#allocation13 + $0x260] ss:$16 sps:$4 sm:$0xff]   ;;  %v5011_v47 = vld [vmem:[#allocation13 + $0x44] ss:$16 sps:$4 sm:$0xff]  }
 0x25d   : > { %v5014_v48 = vld [vmem:[#allocation13 + $0x244] ss:$16 sps:$4 sm:$0xff]  }
 0x25e   : > { %v5068_v20 = vld [vmem:[#allocation13 + $0x324] ss:$16 sps:$4 sm:$0xff]  }
 0x25f   : > { %1335 = vmatpush1.bf16.msra.mxu0 %v4412_v53  ;;  %1378 = vmatpush1.bf16.msra.mxu1 %v4414_v54  ;;  %v5015_v53 = vld [vmem:[#allocation13 + $0x20] ss:$16 sps:$4 sm:$0xff]  }
 0x260   : > { %1336 = vmatprep.subr.bf16.mxu0 %v4405_v55  ;;  %1379 = vmatprep.subr.bf16.mxu1 %v4407_v56  ;;  %v5018_v54 = vld [vmem:[#allocation13 + $0x220] ss:$16 sps:$4 sm:$0xff]   ;;  %v5023_v55 = vld [vmem:[#allocation13 + $0x4] ss:$16 sps:$4 sm:$0xff]  }
 0x261   : > { %v5026_v56 = vld [vmem:[#allocation13 + $0x204] ss:$16 sps:$4 sm:$0xff]  }
 0x263   : > { %1337 = vmatpush1.bf16.msra.mxu0 %v4404_v61  ;;  %1380 = vmatpush1.bf16.msra.mxu1 %v4406_v62  ;;  %v5027_v61 = vld [vmem:[#allocation13 + $0x1e0] ss:$16 sps:$4 sm:$0xff]  }
 0x264   : > { %1338 = vmatprep.subr.bf16.mxu0 %v4397_v63  ;;  %1381 = vmatprep.subr.bf16.mxu1 %v4399_v0  ;;  %v5030_v62 = vld [vmem:[#allocation13 + $0x3e0] ss:$16 sps:$4 sm:$0xff]   ;;  %v5035_v63 = vld [vmem:[#allocation13 + $0x1c4] ss:$16 sps:$4 sm:$0xff]  }
 0x265   : > { %v5038_v0 = vld [vmem:[#allocation13 + $0x3c4] ss:$16 sps:$4 sm:$0xff]  }
 0x267   : > { %1339 = vmatpush1.bf16.msra.mxu0 %v4396_v5  ;;  %1382 = vmatpush1.bf16.msra.mxu1 %v4398_v6  ;;  %v5039_v5 = vld [vmem:[#allocation13 + $0x1a0] ss:$16 sps:$4 sm:$0xff]  }
 0x268   : > { %1340 = vmatprep.subr.bf16.mxu0 %v4389_v7  ;;  %1383 = vmatprep.subr.bf16.mxu1 %v4391_v8  ;;  %v5042_v6 = vld [vmem:[#allocation13 + $0x3a0] ss:$16 sps:$4 sm:$0xff]   ;;  %v5047_v7 = vld [vmem:[#allocation13 + $0x184] ss:$16 sps:$4 sm:$0xff]  }
 0x269   : > { %v5050_v8 = vld [vmem:[#allocation13 + $0x384] ss:$16 sps:$4 sm:$0xff]  }
 0x26b   : > { %1341 = vmatpush1.bf16.msra.mxu0 %v4388_v13  ;;  %1384 = vmatpush1.bf16.msra.mxu1 %v4390_v14  ;;  %v5051_v13 = vld [vmem:[#allocation13 + $0x160] ss:$16 sps:$4 sm:$0xff]  }
 0x26c   : > { %1342 = vmatprep.subr.bf16.mxu0 %v4381_v15  ;;  %1385 = vmatprep.subr.bf16.mxu1 %v4383_v16  ;;  %v5054_v14 = vld [vmem:[#allocation13 + $0x360] ss:$16 sps:$4 sm:$0xff]   ;;  %v5059_v15 = vld [vmem:[#allocation13 + $0x144] ss:$16 sps:$4 sm:$0xff]  }
 0x26d   : > { %v5062_v16 = vld [vmem:[#allocation13 + $0x344] ss:$16 sps:$4 sm:$0xff]  }
 0x26f   : > { %1343 = vmatpush1.bf16.msra.mxu0 %v4380_v21  ;;  %1386 = vmatpush1.bf16.msra.mxu1 %v4382_v22  ;;  %v5063_v21 = vld [vmem:[#allocation13 + $0x120] ss:$16 sps:$4 sm:$0xff]  }
 0x270   : > { %1344 = vmatprep.subr.bf16.mxu0 %v4373_v23  ;;  %1387 = vmatprep.subr.bf16.mxu1 %v4375_v24  ;;  %v5066_v22 = vld [vmem:[#allocation13 + $0x320] ss:$16 sps:$4 sm:$0xff]   ;;  %v5071_v24 = vld [vmem:[#allocation13 + $0x104] ss:$16 sps:$4 sm:$0xff]  }
 0x271   : > { %v5069_v23 = vld [vmem:[#allocation13 + $0x100] ss:$16 sps:$4 sm:$0xff]  }
 0x273   : > { %1345 = vmatpush1.bf16.msra.mxu0 %v4372_v25  ;;  %1388 = vmatpush1.bf16.msra.mxu1 %v4374_v26  ;;  %v5072_v25 = vld [vmem:[#allocation13 + $0x300] ss:$16 sps:$4 sm:$0xff]   ;;  %v5074_v26 = vld [vmem:[#allocation13 + $0x304] ss:$16 sps:$4 sm:$0xff]  }
 0x274   : > { %3160 = vmatprep.subr.bf16.mxu0 %v4981_v27  ;;  %3201 = vmatprep.subr.bf16.mxu1 %v4984_v28  ;;  %v5077_v27 = vld [vmem:[#allocation13 + $0x4e4] ss:$16 sps:$4 sm:$0xff]  }
 0x275   : > { %v5080_v28 = vld [vmem:[#allocation13 + $0x6e4] ss:$16 sps:$4 sm:$0xff]  }
 0x276   : > { %1363 = vmatmul.mubr.bf16.vlgmr.msra.gmra.mxu0 %v6126_v38  ;;  %1406 = vmatmul.mubr.bf16.vlgmr.msra.gmra.mxu1 %v6126_v38  ;;  %v4994_v38 = vld [vmem:[#allocation13 + $0x2a0] ss:$16 sps:$4 sm:$0xff]  }
 0x277   : > { %3161 = vmatpush1.bf16.msra.mxu0 %v4979_v29  ;;  %3202 = vmatpush1.bf16.msra.mxu1 %v4982_v30 }
 0x278   : > { %3162 = vmatprep.subr.bf16.mxu0 %v4987_v31  ;;  %3203 = vmatprep.subr.bf16.mxu1 %v4990_v32  ;;  %v884_v31 = vlaneseq }
 0x27b   : > { %3163 = vmatpush1.bf16.msra.mxu0 %v4985_v33  ;;  %3204 = vmatpush1.bf16.msra.mxu1 %v4988_v34  ;;  %v6132_v34 = vshrl.u32 %v884_v31, 7 }
 0x27c   : > { %3164 = vmatprep.subr.bf16.mxu0 %v4993_v35  ;;  %3205 = vmatprep.subr.bf16.mxu1 %v4996_v36 }
 0x27f   : > { %3165 = vmatpush1.bf16.msra.mxu0 %v4991_v37  ;;  %3206 = vmatpush1.bf16.msra.mxu1 %v4994_v38  ;;  %v6135_v37 = vsub.s32 1, %v6132_v34  ;;  %v6138_v38 = vsub.s32 3, %v6132_v34 }
 0x280   : > { %3166 = vmatprep.subr.bf16.mxu0 %v4999_v39  ;;  %3207 = vmatprep.subr.bf16.mxu1 %v5002_v40  ;;  %v6141_v39 = vsub.s32 0, %v6132_v34  ;;  %v6144_v40 = vsub.s32 2, %v6132_v34 }
 0x283   : > { %3167 = vmatpush1.bf16.msra.mxu0 %v4997_v41  ;;  %3208 = vmatpush1.bf16.msra.mxu1 %v5000_v42  ;;  %v882_v41 = vld [vmem:[#allocation11] sm:$0xff] }
 0x284   : > { %3168 = vmatprep.subr.bf16.mxu0 %v5005_v43  ;;  %3209 = vmatprep.subr.bf16.mxu1 %v5008_v44  ;;  %v891_v44 = vrot.slane %v882_v41, %v6135_v37 }
 0x287   : > { %3169 = vmatpush1.bf16.msra.mxu0 %v5003_v45  ;;  %3210 = vmatpush1.bf16.msra.mxu1 %v5006_v46  ;;  %v899_v45 = vrot.slane %v882_v41, %v6138_v38  ;;  %v887_v46 = vrot.slane %v882_v41, %v6141_v39 }
 0x288   : > { %3170 = vmatprep.subr.bf16.mxu0 %v5011_v47  ;;  %3211 = vmatprep.subr.bf16.mxu1 %v5014_v48  ;;  %v895_v47 = vrot.slane %v882_v41, %v6144_v40 }
 0x28b   : > { %3171 = vmatpush1.bf16.msra.mxu0 %v5009_v49  ;;  %3212 = vmatpush1.bf16.msra.mxu1 %v5012_v50 }
 0x28c   : > { %3172 = vmatprep.subr.bf16.mxu0 %v5017_v51  ;;  %3213 = vmatprep.subr.bf16.mxu1 %v5020_v52 }
 0x28f   : > { %3173 = vmatpush1.bf16.msra.mxu0 %v5015_v53  ;;  %3214 = vmatpush1.bf16.msra.mxu1 %v5018_v54 }
 0x290   : > { %3174 = vmatprep.subr.bf16.mxu0 %v5023_v55  ;;  %3215 = vmatprep.subr.bf16.mxu1 %v5026_v56 }
 0x293   : > { %3175 = vmatpush1.bf16.msra.mxu0 %v5021_v57  ;;  %3216 = vmatpush1.bf16.msra.mxu1 %v5024_v58 }
 0x294   : > { %3176 = vmatprep.subr.bf16.mxu0 %v5029_v59  ;;  %3217 = vmatprep.subr.bf16.mxu1 %v5032_v60 }
 0x297   : > { %3177 = vmatpush2.bf16.msra.mxu0 %v5027_v61  ;;  %3218 = vmatpush2.bf16.msra.mxu1 %v5030_v62 }
 0x298   : > { %3178 = vmatprep.subr.bf16.mxu0 %v5035_v63  ;;  %3219 = vmatprep.subr.bf16.mxu1 %v5038_v0 }
 0x29b   : > { %3179 = vmatpush2.bf16.msra.mxu0 %v5033_v1  ;;  %3220 = vmatpush2.bf16.msra.mxu1 %v5036_v2 }
 0x29c   : > { %3180 = vmatprep.subr.bf16.mxu0 %v5041_v3  ;;  %3221 = vmatprep.subr.bf16.mxu1 %v5044_v4 }
 0x29f   : > { %3181 = vmatpush2.bf16.msra.mxu0 %v5039_v5  ;;  %3222 = vmatpush2.bf16.msra.mxu1 %v5042_v6  ;;  %v902_v6 = vsub.s32 4, %v6132_v34 }
 0x2a0   : > { %3182 = vmatprep.subr.bf16.mxu0 %v5047_v7  ;;  %3223 = vmatprep.subr.bf16.mxu1 %v5050_v8  ;;  %v910_v7 = vsub.s32 6, %v6132_v34 }
 0x2a3   : > { %3183 = vmatpush2.bf16.msra.mxu0 %v5045_v9  ;;  %3224 = vmatpush2.bf16.msra.mxu1 %v5048_v10  ;;  %v906_v10 = vsub.s32 5, %v6132_v34 }
 0x2a4   : > { %3184 = vmatprep.subr.bf16.mxu0 %v5053_v11  ;;  %3225 = vmatprep.subr.bf16.mxu1 %v5056_v12  ;;  %v914_v11 = vsub.s32 7, %v6132_v34 }
 0x2a7   : > { %3185 = vmatpush2.bf16.msra.mxu0 %v5051_v13  ;;  %3226 = vmatpush2.bf16.msra.mxu1 %v5054_v14  ;;  %v903_v14 = vrot.slane %v882_v41, %v902_v6 }
 0x2a8   : > { %3186 = vmatprep.subr.bf16.mxu0 %v5059_v15  ;;  %3227 = vmatprep.subr.bf16.mxu1 %v5062_v16  ;;  %v911_v15 = vrot.slane %v882_v41, %v910_v7 }
 0x2ab   : > { %3187 = vmatpush2.bf16.msra.mxu0 %v5057_v17  ;;  %3228 = vmatpush2.bf16.msra.mxu1 %v5060_v18 }
 0x2ac   : > { %3188 = vmatprep.subr.bf16.mxu0 %v5065_v19  ;;  %3229 = vmatprep.subr.bf16.mxu1 %v5068_v20  ;;  %v907_v20 = vrot.slane %v882_v41, %v906_v10 }
 0x2af   : > { %3189 = vmatpush2.bf16.msra.mxu0 %v5063_v21  ;;  %3230 = vmatpush2.bf16.msra.mxu1 %v5066_v22  ;;  %v915_v21 = vrot.slane %v882_v41, %v914_v11 }
 0x2b0   : > { %3190 = vmatprep.subr.bf16.mxu0 %v5071_v24  ;;  %3231 = vmatprep.subr.bf16.mxu1 %v5074_v26 }
 0x2b3   : > { %3191 = vmatpush2.bf16.msra.mxu0 %v5069_v23  ;;  %3232 = vmatpush2.bf16.msra.mxu1 %v5072_v25 }
 0x2b4   : > { %3242 = vmatprep.subr.bf16.mxu0 %v5077_v27  ;;  %3283 = vmatprep.subr.bf16.mxu1 %v5080_v28 }
 0x316   : > { %v1278_v29 = vpop.f32.mrf.mxu0  ;;  %v1321_v30 = vpop.f32.mrf.mxu1 }
 0x317   : > { %v1279_v54 = vadd.f32 %v1278_v29, %v887_v46  ;;  %v1322_v55 = vadd.f32 %v1321_v30, %v895_v47 }
 0x318   : > { %v1280_v32 = vpop.f32.mrf.mxu0  ;;  %v1323_v33 = vpop.f32.mrf.mxu1 }
 0x319   : > { %v1281_v50 = vadd.f32 %v1280_v32, %v891_v44  ;;  %v1324_v51 = vadd.f32 %v1323_v33, %v899_v45  ;;  %v1416_v62 = vmax.f32 %v1279_v54, 0.0  ;;  %v1418_v63 = vmax.f32 %v1322_v55, 0.0 }
 0x31a   : > { %v1282_v35 = vpop.f32.mrf.mxu0  ;;  %v1325_v36 = vpop.f32.mrf.mxu1 }
 0x31b   : > { %v1283_v52 = vadd.f32 %v1282_v35, %v887_v46  ;;  %v1326_v53 = vadd.f32 %v1325_v36, %v895_v47  ;;  %v1417_v58 = vmax.f32 %v1281_v50, 0.0  ;;  %v1419_v59 = vmax.f32 %v1324_v51, 0.0 }
 0x31c   : > { %v1284_v42 = vpop.f32.mrf.mxu0  ;;  %v1327_v43 = vpop.f32.mrf.mxu1 }
 0x31d   : > { %v1285_v48 = vadd.f32 %v1284_v42, %v891_v44  ;;  %v1328_v49 = vadd.f32 %v1327_v43, %v899_v45  ;;  %v1424_v60 = vmax.f32 %v1283_v52, 0.0  ;;  %v1426_v61 = vmax.f32 %v1326_v53, 0.0 }
 0x31f   : > { %v1425_v56 = vmax.f32 %v1285_v48, 0.0  ;;  %v1427_v57 = vmax.f32 %v1328_v49, 0.0  ;;  %v1433_v2 = vmax.f32 %v1416_v62, %v1424_v60  ;;  %v1447_v3 = vmax.f32 %v1418_v63, %v1426_v61 }
 0x320   : > { %v5862_v60 = vmov 1966171168  }
 0x321   : > { %v1440_v0 = vmax.f32 %v1417_v58, %v1425_v56  ;;  %v1454_v1 = vmax.f32 %v1419_v59, %v1427_v57  ;;  %v1434_v8 = vrot.slane %v1433_v2, 4  ;;  %v1448_v9 = vrot.slane %v1447_v3, 4 }
 0x322   : > { %v1502_v61 = vunpack.c.l.s4 %v5862_v60 }
 0x323   : > { %v1441_v4 = vrot.slane %v1440_v0, 4  ;;  %v1455_v5 = vrot.slane %v1454_v1, 4  ;;  %v1435_v16 = vmax.f32 %v1433_v2, %v1434_v8  ;;  %v1449_v17 = vmax.f32 %v1447_v3, %v1448_v9 }
 0x325   : > { %v1442_v12 = vmax.f32 %v1440_v0, %v1441_v4  ;;  %v1456_v13 = vmax.f32 %v1454_v1, %v1455_v5  ;;  %v1436_v28 = vrot.slane %v1435_v16, 2  ;;  %v1450_v29 = vrot.slane %v1449_v17, 2 }
 0x327   : > { %v1443_v22 = vrot.slane %v1442_v12, 2  ;;  %v1457_v23 = vrot.slane %v1456_v13, 2  ;;  %v1437_v51 = vmax.f32 %v1435_v16, %v1436_v28  ;;  %v1451_v52 = vmax.f32 %v1449_v17, %v1450_v29 }
 0x329   : > { %v1444_v42 = vmax.f32 %v1442_v12, %v1443_v22  ;;  %v1458_v43 = vmax.f32 %v1456_v13, %v1457_v23  ;;  %v1438_v3 = vrot.slane %v1437_v51, 1  ;;  %v1452_v4 = vrot.slane %v1451_v52, 1 }
 0x32b   : > { %v1445_v59 = vrot.slane %v1444_v42, 1  ;;  %v1459_v62 = vrot.slane %v1458_v43, 1 }
 0x32d   : > { %v1446_v13 = vmax.f32 %v1444_v42, %v1445_v59 }
 0x336   : > { %v1364_v18 = vpop.f32.mrf.mxu0  ;;  %v1407_v19 = vpop.f32.mrf.mxu1 }
 0x337   : > { %v1365_v24 = vadd.f32 %v1364_v18, %v903_v14  ;;  %v1408_v25 = vadd.f32 %v1407_v19, %v911_v15 }
 0x338   : > { %v1366_v26 = vpop.f32.mrf.mxu0  ;;  %v1409_v27 = vpop.f32.mrf.mxu1 }
 0x339   : > { %v1367_v30 = vadd.f32 %v1366_v26, %v907_v20  ;;  %v1410_v31 = vadd.f32 %v1409_v27, %v915_v21  ;;  %v1420_v44 = vmax.f32 %v1365_v24, 0.0  ;;  %v1422_v45 = vmax.f32 %v1408_v25, 0.0 }
 0x33a   : > { %v1368_v32 = vpop.f32.mrf.mxu0  ;;  %v1411_v33 = vpop.f32.mrf.mxu1 }
 0x33b   : > { %v1369_v35 = vadd.f32 %v1368_v32, %v903_v14  ;;  %v1412_v36 = vadd.f32 %v1411_v33, %v911_v15  ;;  %v1421_v53 = vmax.f32 %v1367_v30, 0.0  ;;  %v1423_v54 = vmax.f32 %v1410_v31, 0.0 }
 0x33c   : > { %v1370_v46 = vpop.f32.mrf.mxu0  ;;  %v1413_v41 = vpop.f32.mrf.mxu1  ;;  %v1503_v14 = vunpack.c.0.s8 %v1502_v61  ;;  %v1460_v15 = vmax.f32 %v1458_v43, %v1459_v62 }
 0x33d   : > { %v1428_v47 = vmax.f32 %v1369_v35, 0.0  ;;  %v1430_v48 = vmax.f32 %v1412_v36, 0.0  ;;  %v1371_v49 = vadd.f32 %v1370_v46, %v907_v20  ;;  %v1414_v50 = vadd.f32 %v1413_v41, %v915_v21 }
 0x33e   : > { %v1439_v20 = vmax.f32 %v1437_v51, %v1438_v3  ;;  %v1453_v21 = vmax.f32 %v1451_v52, %v1452_v4  ;;  %v1506_v27 = vsub.s32 %v1503_v14, %v6132_v34  ;;  %v5083_v3 = vld [vmem:[#allocation13 + $0x4c4] ss:$16 sps:$4 sm:$0xff]   ;;  %v5090_v14 = vld [vmem:[#allocation13 + $0x6a0] ss:$16 sps:$4 sm:$0xff]   ;;  %v5177_v34 = vld [vmem:[#allocation13 + $0xc8] ss:$16 sps:$4 sm:$0xff]  }
 0x33f   : > { %v1461_v55 = vmax.f32 %v1420_v44, %v1428_v47  ;;  %v1475_v56 = vmax.f32 %v1422_v45, %v1430_v48  ;;  %v1429_v57 = vmax.f32 %v1371_v49, 0.0  ;;  %v1431_v58 = vmax.f32 %v1414_v50, 0.0 }
 0x340   : > { %v1497_v26 = vcombine.low %v1439_v20, %v1446_v13  ;;  %v1498_v28 = vcombine.low %v1453_v21, %v1460_v15  ;;  %v5087_v13 = vld [vmem:[#allocation13 + $0x4a0] ss:$16 sps:$4 sm:$0xff]   ;;  %v5095_v15 = vld [vmem:[#allocation13 + $0x484] ss:$16 sps:$4 sm:$0xff]  }
 0x341   : > { %v1462_v63 = vrot.slane %v1461_v55, 4  ;;  %v1476_v0 = vrot.slane %v1475_v56, 4  ;;  %v1468_v1 = vmax.f32 %v1421_v53, %v1429_v57  ;;  %v1482_v2 = vmax.f32 %v1423_v54, %v1431_v58  ;;  %v5104_v20 = vld [vmem:[#allocation13 + $0x664] ss:$16 sps:$4 sm:$0xff]   ;;  %v5099_v21 = vld [vmem:[#allocation13 + $0x460] ss:$16 sps:$4 sm:$0xff]  }
 0x342   : > { %v1507_v36 = vrot.slane %v1497_v26, %v1506_v27  ;;  %v1514_v42 = vrot.slane %v1498_v28, %v1506_v27  ;;  %v5108_v26 = vld [vmem:[#allocation13 + $0x640] ss:$16 sps:$4 sm:$0xff]   ;;  %v5116_v28 = vld [vmem:[#allocation13 + $0x624] ss:$16 sps:$4 sm:$0xff]  }
 0x343   : > { %v1463_v5 = vmax.f32 %v1461_v55, %v1462_v63  ;;  %v1477_v8 = vmax.f32 %v1475_v56, %v1476_v0  ;;  %v1469_v9 = vrot.slane %v1468_v1, 4  ;;  %v1483_v12 = vrot.slane %v1482_v2, 4  ;;  %v5075_v63 = vld [vmem:[#allocation13 + $0x4e0] ss:$16 sps:$4 sm:$0xff]  }
 0x344   : > { %v1529_v48 = vcombine.low %v1507_v36, %v1514_v42  ;;  %v5078_v0 = vld [vmem:[#allocation13 + $0x6e0] ss:$16 sps:$4 sm:$0xff]   ;;  %v5125_v36 = vld [vmem:[#allocation13 + $0x5e4] ss:$16 sps:$4 sm:$0xff]  }
 0x345   : > { %v1464_v16 = vrot.slane %v1463_v5, 2  ;;  %v1478_v17 = vrot.slane %v1477_v8, 2  ;;  %v1470_v18 = vmax.f32 %v1468_v1, %v1469_v9  ;;  %v1484_v19 = vmax.f32 %v1482_v2, %v1483_v12  ;;  %v5089_v9 = vld [vmem:[#allocation13 + $0x4a4] ss:$16 sps:$4 sm:$0xff]  }
 0x346   : > { %v1537_v52 = vrot.slane %v1529_v48, %v1506_v27  ;;  %v5092_v12 = vld [vmem:[#allocation13 + $0x6a4] ss:$16 sps:$4 sm:$0xff]  }
 0x347   : > { %v1465_v22 = vmax.f32 %v1463_v5, %v1464_v16  ;;  %v1479_v23 = vmax.f32 %v1477_v8, %v1478_v17  ;;  %v1471_v24 = vrot.slane %v1470_v18, 2  ;;  %v1485_v25 = vrot.slane %v1484_v19, 2  ;;  %v5081_v5 = vld [vmem:[#allocation13 + $0x4c0] ss:$16 sps:$4 sm:$0xff]   ;;  %v5098_v16 = vld [vmem:[#allocation13 + $0x684] ss:$16 sps:$4 sm:$0xff]  }
 0x348   : > { %v5084_v8 = vld [vmem:[#allocation13 + $0x6c0] ss:$16 sps:$4 sm:$0xff]   ;;  %v5128_v42 = vld [vmem:[#allocation13 + $0x7e4] ss:$16 sps:$4 sm:$0xff]  }
 0x349   : > { %v1466_v29 = vrot.slane %v1465_v22, 1  ;;  %v1480_v30 = vrot.slane %v1479_v23, 1  ;;  %v1472_v31 = vmax.f32 %v1470_v18, %v1471_v24  ;;  %v1486_v32 = vmax.f32 %v1484_v19, %v1485_v25  ;;  %v5093_v17 = vld [vmem:[#allocation13 + $0x480] ss:$16 sps:$4 sm:$0xff]   ;;  %v5101_v19 = vld [vmem:[#allocation13 + $0x464] ss:$16 sps:$4 sm:$0xff]  }
 0x34a   : > { %v5096_v18 = vld [vmem:[#allocation13 + $0x680] ss:$16 sps:$4 sm:$0xff]   ;;  %v5110_v24 = vld [vmem:[#allocation13 + $0x644] ss:$16 sps:$4 sm:$0xff]  }
 0x34b   : > { %v1473_v33 = vrot.slane %v1472_v31, 1  ;;  %v1487_v35 = vrot.slane %v1486_v32, 1  ;;  %v1467_v43 = vmax.f32 %v1465_v22, %v1466_v29  ;;  %v1481_v44 = vmax.f32 %v1479_v23, %v1480_v30  ;;  %v5102_v22 = vld [vmem:[#allocation13 + $0x660] ss:$16 sps:$4 sm:$0xff]   ;;  %v5107_v23 = vld [vmem:[#allocation13 + $0x444] ss:$16 sps:$4 sm:$0xff]  }
 0x34c   : > { %v5105_v25 = vld [vmem:[#allocation13 + $0x440] ss:$16 sps:$4 sm:$0xff]   ;;  %v5137_v48 = vld [vmem:[#allocation13 + $0x5a4] ss:$16 sps:$4 sm:$0xff]  }
 0x34d   : > { %v1474_v45 = vmax.f32 %v1472_v31, %v1473_v33  ;;  %v1488_v46 = vmax.f32 %v1486_v32, %v1487_v35  ;;  %v5111_v29 = vld [vmem:[#allocation13 + $0x420] ss:$16 sps:$4 sm:$0xff]   ;;  %v5119_v31 = vld [vmem:[#allocation13 + $0x404] ss:$16 sps:$4 sm:$0xff]  }
 0x34e   : > { %v5114_v30 = vld [vmem:[#allocation13 + $0x620] ss:$16 sps:$4 sm:$0xff]   ;;  %v5122_v32 = vld [vmem:[#allocation13 + $0x604] ss:$16 sps:$4 sm:$0xff]  }
 0x34f   : > { %v1499_v41 = vcombine.low %v1467_v43, %v1474_v45  ;;  %v1500_v47 = vcombine.low %v1481_v44, %v1488_v46  ;;  %v5117_v33 = vld [vmem:[#allocation13 + $0x400] ss:$16 sps:$4 sm:$0xff]   ;;  %v5131_v45 = vld [vmem:[#allocation13 + $0x5c4] ss:$16 sps:$4 sm:$0xff]  }
 0x350   : > { %v5120_v35 = vld [vmem:[#allocation13 + $0x600] ss:$16 sps:$4 sm:$0xff]   ;;  %v5134_v46 = vld [vmem:[#allocation13 + $0x7c4] ss:$16 sps:$4 sm:$0xff]  }
 0x351   : > { %v1521_v49 = vrot.slane %v1499_v41, %v1506_v27  ;;  %v1528_v50 = vrot.slane %v1500_v47, %v1506_v27  ;;  %v5123_v43 = vld [vmem:[#allocation13 + $0x5e0] ss:$16 sps:$4 sm:$0xff]  }
 0x352   : > { %v5126_v44 = vld [vmem:[#allocation13 + $0x7e0] ss:$16 sps:$4 sm:$0xff]  }
 0x353   : > { %v1530_v51 = vcombine.low %v1521_v49, %v1528_v50  ;;  %v5129_v41 = vld [vmem:[#allocation13 + $0x5c0] ss:$16 sps:$4 sm:$0xff]   ;;  %v5140_v49 = vld [vmem:[#allocation13 + $0x7a4] ss:$16 sps:$4 sm:$0xff]  }
 0x354   : > { %v5132_v47 = vld [vmem:[#allocation13 + $0x7c0] ss:$16 sps:$4 sm:$0xff]  }
 0x355   : > { %v1544_v53 = vrot.slane %v1530_v51, %v1506_v27  ;;  %v5113_v27 = vld [vmem:[#allocation13 + $0x424] ss:$16 sps:$4 sm:$0xff]   ;;  %v5135_v50 = vld [vmem:[#allocation13 + $0x5a0] ss:$16 sps:$4 sm:$0xff]  }
 0x356   : > { %v5138_v51 = vld [vmem:[#allocation13 + $0x7a0] ss:$16 sps:$4 sm:$0xff]  }
 0x357   : > { %v6163_v54 = vcombine.low %v1537_v52, %v1544_v53  ;;  %v5143_v52 = vld [vmem:[#allocation13 + $0x584] ss:$16 sps:$4 sm:$0xff]  }
 0x358   : > { %v5146_v53 = vld [vmem:[#allocation13 + $0x784] ss:$16 sps:$4 sm:$0xff]  }
 0x359   : > { %v1561_v55 = vrot.slane %v6163_v54, %v6135_v37  ;;  %v1569_v56 = vrot.slane %v6163_v54, %v6138_v38  ;;  %v1557_v57 = vrot.slane %v6163_v54, %v6141_v39  ;;  %v1565_v58 = vrot.slane %v6163_v54, %v6144_v40 }
 0x35a   : > { %v1577_v59 = vrot.slane %v6163_v54, %v906_v10  ;;  %v1585_v60 = vrot.slane %v6163_v54, %v914_v11  ;;  %v5086_v10 = vld [vmem:[#allocation13 + $0x6c4] ss:$16 sps:$4 sm:$0xff]  }
 0x35b   : > { %v6179_v61 = vpack.c.bf16 %v1561_v55, %v1561_v55  ;;  %v6181_v62 = vpack.c.bf16 %v1569_v56, %v1569_v56  ;;  %v6183_v1 = vpack.c.bf16 %v1557_v57, %v1557_v57  ;;  %v6185_v2 = vpack.c.bf16 %v1565_v58, %v1565_v58  ;;  %v5141_v55 = vld [vmem:[#allocation13 + $0x580] ss:$16 sps:$4 sm:$0xff]   ;;  %v5149_v57 = vld [vmem:[#allocation13 + $0x564] ss:$16 sps:$4 sm:$0xff]  }
 0x35c   : > { %v6191_v11 = vpack.c.bf16 %v1577_v59, %v1577_v59  ;;  %v6193_v4 = vpack.c.bf16 %v1585_v60, %v1585_v60  ;;  %v5144_v56 = vld [vmem:[#allocation13 + $0x780] ss:$16 sps:$4 sm:$0xff]   ;;  %v5152_v58 = vld [vmem:[#allocation13 + $0x764] ss:$16 sps:$4 sm:$0xff]  }
 0x35d   : > { %3192 = vmatprep.mubr.bf16.mxu0 %v6179_v61  ;;  %3233 = vmatprep.mubr.bf16.mxu1 %v6181_v62  ;;  %v5147_v59 = vld [vmem:[#allocation13 + $0x560] ss:$16 sps:$4 sm:$0xff]  }
 0x35e   : > { %3193 = vmatmul.mubr.bf16.vlgmr.msra.gmra.mxu0 %v6183_v1  ;;  %3234 = vmatmul.mubr.bf16.vlgmr.msra.gmra.mxu1 %v6185_v2  ;;  %v5150_v60 = vld [vmem:[#allocation13 + $0x760] ss:$16 sps:$4 sm:$0xff]  }
 0x35f   : > { %3243 = vmatpush1.bf16.msra.mxu0 %v5075_v63  ;;  %3284 = vmatpush1.bf16.msra.mxu1 %v5078_v0  ;;  %v5155_v63 = vld [vmem:[#allocation13 + $0x544] ss:$16 sps:$4 sm:$0xff]  }
 0x360   : > { %3274 = vmatprep.mubr.bf16.mxu0 %v6191_v11  ;;  %3315 = vmatprep.mubr.bf16.mxu1 %v6193_v4  ;;  %v5158_v0 = vld [vmem:[#allocation13 + $0x744] ss:$16 sps:$4 sm:$0xff]  }
 0x361   : > { %3244 = vmatprep.subr.bf16.mxu0 %v5083_v3  ;;  %3285 = vmatprep.subr.bf16.mxu1 %v5086_v10  ;;  %v5153_v3 = vld [vmem:[#allocation13 + $0x540] ss:$16 sps:$4 sm:$0xff]  }
 0x362   : > { %v5156_v10 = vld [vmem:[#allocation13 + $0x740] ss:$16 sps:$4 sm:$0xff]  }
 0x363   : > { %3245 = vmatpush1.bf16.msra.mxu0 %v5081_v5  ;;  %3286 = vmatpush1.bf16.msra.mxu1 %v5084_v8  ;;  %v5161_v5 = vld [vmem:[#allocation13 + $0x524] ss:$16 sps:$4 sm:$0xff]  }
 0x364   : > { %3246 = vmatprep.subr.bf16.mxu0 %v5089_v9  ;;  %3287 = vmatprep.subr.bf16.mxu1 %v5092_v12  ;;  %v5164_v8 = vld [vmem:[#allocation13 + $0x724] ss:$16 sps:$4 sm:$0xff]   ;;  %v5159_v9 = vld [vmem:[#allocation13 + $0x520] ss:$16 sps:$4 sm:$0xff]  }
 0x365   : > { %v5162_v12 = vld [vmem:[#allocation13 + $0x720] ss:$16 sps:$4 sm:$0xff]  }
 0x367   : > { %3247 = vmatpush1.bf16.msra.mxu0 %v5087_v13  ;;  %3288 = vmatpush1.bf16.msra.mxu1 %v5090_v14  ;;  %v5167_v13 = vld [vmem:[#allocation13 + $0x504] ss:$16 sps:$4 sm:$0xff]  }
 0x368   : > { %3248 = vmatprep.subr.bf16.mxu0 %v5095_v15  ;;  %3289 = vmatprep.subr.bf16.mxu1 %v5098_v16  ;;  %v5170_v14 = vld [vmem:[#allocation13 + $0x704] ss:$16 sps:$4 sm:$0xff]   ;;  %v5165_v15 = vld [vmem:[#allocation13 + $0x500] ss:$16 sps:$4 sm:$0xff]  }
 0x369   : > { %v5168_v16 = vld [vmem:[#allocation13 + $0x700] ss:$16 sps:$4 sm:$0xff]  }
 0x36b   : > { %3249 = vmatpush1.bf16.msra.mxu0 %v5093_v17  ;;  %3290 = vmatpush1.bf16.msra.mxu1 %v5096_v18  ;;  %v1573_v17 = vrot.slane %v6163_v54, %v902_v6  ;;  %v1581_v18 = vrot.slane %v6163_v54, %v910_v7  ;;  %v5180_v6 = vld [vmem:[#allocation13 + $0x2c8] ss:$16 sps:$4 sm:$0xff]   ;;  %v5185_v7 = vld [vmem:[#allocation13 + $0xac] ss:$16 sps:$4 sm:$0xff]  }
 0x36c   : > { %3250 = vmatprep.subr.bf16.mxu0 %v5101_v19  ;;  %3291 = vmatprep.subr.bf16.mxu1 %v5104_v20  ;;  %v5173_v19 = vld [vmem:[#allocation13 + $0xec] ss:$16 sps:$4 sm:$0xff]  }
 0x36d   : > { %v5176_v20 = vld [vmem:[#allocation13 + $0x2ec] ss:$16 sps:$4 sm:$0xff]  }
 0x36e   : > { %v5188_v54 = vld [vmem:[#allocation13 + $0x2ac] ss:$16 sps:$4 sm:$0xff]  }
 0x36f   : > { %3251 = vmatpush1.bf16.msra.mxu0 %v5099_v21  ;;  %3292 = vmatpush1.bf16.msra.mxu1 %v5102_v22  ;;  %v5171_v21 = vld [vmem:[#allocation13 + $0xe8] ss:$16 sps:$4 sm:$0xff]   ;;  %v6203_v22 = vpack.c.bf16 %v1573_v17, %v1573_v17  ;;  %v5251_v17 = vld [vmem:[#allocation13 + $0x14c] ss:$16 sps:$4 sm:$0xff]  }
 0x370   : > { %3252 = vmatprep.subr.bf16.mxu0 %v5107_v23  ;;  %3293 = vmatprep.subr.bf16.mxu1 %v5110_v24  ;;  %v6205_v23 = vpack.c.bf16 %v1581_v18, %v1581_v18  ;;  %v5174_v24 = vld [vmem:[#allocation13 + $0x2e8] ss:$16 sps:$4 sm:$0xff]   ;;  %v5254_v18 = vld [vmem:[#allocation13 + $0x34c] ss:$16 sps:$4 sm:$0xff]  }
 0x373   : > { %3253 = vmatpush1.bf16.msra.mxu0 %v5105_v25  ;;  %3294 = vmatpush1.bf16.msra.mxu1 %v5108_v26  ;;  %v5179_v25 = vld [vmem:[#allocation13 + $0xcc] ss:$16 sps:$4 sm:$0xff]  }
 0x374   : > { %3254 = vmatprep.subr.bf16.mxu0 %v5113_v27  ;;  %3295 = vmatprep.subr.bf16.mxu1 %v5116_v28  ;;  %v5182_v26 = vld [vmem:[#allocation13 + $0x2cc] ss:$16 sps:$4 sm:$0xff]   ;;  %v5183_v27 = vld [vmem:[#allocation13 + $0xa8] ss:$16 sps:$4 sm:$0xff]  }
 0x375   : > { %v5186_v28 = vld [vmem:[#allocation13 + $0x2a8] ss:$16 sps:$4 sm:$0xff]  }
 0x377   : > { %3255 = vmatpush1.bf16.msra.mxu0 %v5111_v29  ;;  %3296 = vmatpush1.bf16.msra.mxu1 %v5114_v30  ;;  %v5191_v29 = vld [vmem:[#allocation13 + $0x8c] ss:$16 sps:$4 sm:$0xff]  }
 0x378   : > { %3256 = vmatprep.subr.bf16.mxu0 %v5119_v31  ;;  %3297 = vmatprep.subr.bf16.mxu1 %v5122_v32  ;;  %v5194_v30 = vld [vmem:[#allocation13 + $0x28c] ss:$16 sps:$4 sm:$0xff]   ;;  %v5189_v31 = vld [vmem:[#allocation13 + $0x88] ss:$16 sps:$4 sm:$0xff]  }
 0x379   : > { %v5197_v32 = vld [vmem:[#allocation13 + $0x6c] ss:$16 sps:$4 sm:$0xff]  }
 0x37b   : > { %3257 = vmatpush1.bf16.msra.mxu0 %v5117_v33  ;;  %3298 = vmatpush1.bf16.msra.mxu1 %v5120_v35  ;;  %v5195_v33 = vld [vmem:[#allocation13 + $0x68] ss:$16 sps:$4 sm:$0xff]  }
 0x37c   : > { %3258 = vmatprep.subr.bf16.mxu0 %v5125_v36  ;;  %3299 = vmatprep.subr.bf16.mxu1 %v5128_v42  ;;  %v5198_v35 = vld [vmem:[#allocation13 + $0x268] ss:$16 sps:$4 sm:$0xff]   ;;  %v5203_v36 = vld [vmem:[#allocation13 + $0x4c] ss:$16 sps:$4 sm:$0xff]  }
 0x37d   : > { %v5206_v42 = vld [vmem:[#allocation13 + $0x24c] ss:$16 sps:$4 sm:$0xff]  }
 0x37f   : > { %3259 = vmatpush2.bf16.msra.mxu0 %v5123_v43  ;;  %3300 = vmatpush2.bf16.msra.mxu1 %v5126_v44  ;;  %v5201_v43 = vld [vmem:[#allocation13 + $0x48] ss:$16 sps:$4 sm:$0xff]  }
 0x380   : > { %3260 = vmatprep.subr.bf16.mxu0 %v5131_v45  ;;  %3301 = vmatprep.subr.bf16.mxu1 %v5134_v46  ;;  %v5204_v44 = vld [vmem:[#allocation13 + $0x248] ss:$16 sps:$4 sm:$0xff]   ;;  %v5209_v45 = vld [vmem:[#allocation13 + $0x2c] ss:$16 sps:$4 sm:$0xff]  }
 0x381   : > { %v5212_v46 = vld [vmem:[#allocation13 + $0x22c] ss:$16 sps:$4 sm:$0xff]  }
 0x383   : > { %3261 = vmatpush2.bf16.msra.mxu0 %v5129_v41  ;;  %3302 = vmatpush2.bf16.msra.mxu1 %v5132_v47  ;;  %v5207_v41 = vld [vmem:[#allocation13 + $0x28] ss:$16 sps:$4 sm:$0xff]  }
 0x384   : > { %3262 = vmatprep.subr.bf16.mxu0 %v5137_v48  ;;  %3303 = vmatprep.subr.bf16.mxu1 %v5140_v49  ;;  %v5210_v47 = vld [vmem:[#allocation13 + $0x228] ss:$16 sps:$4 sm:$0xff]   ;;  %v5215_v48 = vld [vmem:[#allocation13 + $0xc] ss:$16 sps:$4 sm:$0xff]  }
 0x385   : > { %v5218_v49 = vld [vmem:[#allocation13 + $0x20c] ss:$16 sps:$4 sm:$0xff]  }
 0x387   : > { %3263 = vmatpush2.bf16.msra.mxu0 %v5135_v50  ;;  %3304 = vmatpush2.bf16.msra.mxu1 %v5138_v51  ;;  %v5213_v50 = vld [vmem:[#allocation13 + $0x8] ss:$16 sps:$4 sm:$0xff]  }
 0x388   : > { %3264 = vmatprep.subr.bf16.mxu0 %v5143_v52  ;;  %3305 = vmatprep.subr.bf16.mxu1 %v5146_v53  ;;  %v5216_v51 = vld [vmem:[#allocation13 + $0x208] ss:$16 sps:$4 sm:$0xff]   ;;  %v5221_v52 = vld [vmem:[#allocation13 + $0x1ec] ss:$16 sps:$4 sm:$0xff]  }
 0x389   : > { %v5224_v53 = vld [vmem:[#allocation13 + $0x3ec] ss:$16 sps:$4 sm:$0xff]  }
 0x38b   : > { %3265 = vmatpush2.bf16.msra.mxu0 %v5141_v55  ;;  %3306 = vmatpush2.bf16.msra.mxu1 %v5144_v56  ;;  %v5219_v55 = vld [vmem:[#allocation13 + $0x1e8] ss:$16 sps:$4 sm:$0xff]  }
 0x38c   : > { %3266 = vmatprep.subr.bf16.mxu0 %v5149_v57  ;;  %3307 = vmatprep.subr.bf16.mxu1 %v5152_v58  ;;  %v5222_v56 = vld [vmem:[#allocation13 + $0x3e8] ss:$16 sps:$4 sm:$0xff]   ;;  %v5227_v57 = vld [vmem:[#allocation13 + $0x1cc] ss:$16 sps:$4 sm:$0xff]  }
 0x38d   : > { %v5230_v58 = vld [vmem:[#allocation13 + $0x3cc] ss:$16 sps:$4 sm:$0xff]  }
 0x38f   : > { %3267 = vmatpush2.bf16.msra.mxu0 %v5147_v59  ;;  %3308 = vmatpush2.bf16.msra.mxu1 %v5150_v60  ;;  %v5225_v59 = vld [vmem:[#allocation13 + $0x1c8] ss:$16 sps:$4 sm:$0xff]  }
 0x390   : > { %3268 = vmatprep.subr.bf16.mxu0 %v5155_v63  ;;  %3309 = vmatprep.subr.bf16.mxu1 %v5158_v0  ;;  %v5228_v60 = vld [vmem:[#allocation13 + $0x3c8] ss:$16 sps:$4 sm:$0xff]   ;;  %v5233_v63 = vld [vmem:[#allocation13 + $0x1ac] ss:$16 sps:$4 sm:$0xff]  }
 0x391   : > { %v5236_v0 = vld [vmem:[#allocation13 + $0x3ac] ss:$16 sps:$4 sm:$0xff]  }
 0x393   : > { %3269 = vmatpush2.bf16.msra.mxu0 %v5153_v3  ;;  %3310 = vmatpush2.bf16.msra.mxu1 %v5156_v10  ;;  %v5231_v3 = vld [vmem:[#allocation13 + $0x1a8] ss:$16 sps:$4 sm:$0xff]  }
 0x394   : > { %3270 = vmatprep.subr.bf16.mxu0 %v5161_v5  ;;  %3311 = vmatprep.subr.bf16.mxu1 %v5164_v8  ;;  %v5234_v10 = vld [vmem:[#allocation13 + $0x3a8] ss:$16 sps:$4 sm:$0xff]   ;;  %v5239_v5 = vld [vmem:[#allocation13 + $0x18c] ss:$16 sps:$4 sm:$0xff]  }
 0x395   : > { %v5242_v8 = vld [vmem:[#allocation13 + $0x38c] ss:$16 sps:$4 sm:$0xff]  }
 0x397   : > { %3271 = vmatpush2.bf16.msra.mxu0 %v5159_v9  ;;  %3312 = vmatpush2.bf16.msra.mxu1 %v5162_v12  ;;  %v5237_v9 = vld [vmem:[#allocation13 + $0x188] ss:$16 sps:$4 sm:$0xff]  }
 0x398   : > { %3272 = vmatprep.subr.bf16.mxu0 %v5167_v13  ;;  %3313 = vmatprep.subr.bf16.mxu1 %v5170_v14  ;;  %v5240_v12 = vld [vmem:[#allocation13 + $0x388] ss:$16 sps:$4 sm:$0xff]   ;;  %v5245_v13 = vld [vmem:[#allocation13 + $0x16c] ss:$16 sps:$4 sm:$0xff]  }
 0x399   : > { %v5248_v14 = vld [vmem:[#allocation13 + $0x36c] ss:$16 sps:$4 sm:$0xff]  }
 0x39b   : > { %3273 = vmatpush2.bf16.msra.mxu0 %v5165_v15  ;;  %3314 = vmatpush2.bf16.msra.mxu1 %v5168_v16  ;;  %v5243_v15 = vld [vmem:[#allocation13 + $0x168] ss:$16 sps:$4 sm:$0xff]  }
 0x39c   : > { %3324 = vmatprep.subr.bf16.mxu0 %v5173_v19  ;;  %3365 = vmatprep.subr.bf16.mxu1 %v5176_v20  ;;  %v5246_v16 = vld [vmem:[#allocation13 + $0x368] ss:$16 sps:$4 sm:$0xff]  }
 0x39d   : > { %v5249_v19 = vld [vmem:[#allocation13 + $0x148] ss:$16 sps:$4 sm:$0xff]  }
 0x39e   : > { %3275 = vmatmul.mubr.bf16.vlgmr.msra.gmra.mxu0 %v6203_v22  ;;  %3316 = vmatmul.mubr.bf16.vlgmr.msra.gmra.mxu1 %v6205_v23  ;;  %v5252_v20 = vld [vmem:[#allocation13 + $0x348] ss:$16 sps:$4 sm:$0xff]  }
 0x39f   : > { %3325 = vmatpush1.bf16.msra.mxu0 %v5171_v21  ;;  %3356 = vmatprep.mubr.bf16.mxu0 %v6179_v61  ;;  %v5192_v61 = vld [vmem:[#allocation13 + $0x288] ss:$16 sps:$4 sm:$0xff]   ;;  %v5257_v21 = vld [vmem:[#allocation13 + $0x12c] ss:$16 sps:$4 sm:$0xff]  }
 0x3a0   : > { %3366 = vmatpush1.bf16.msra.mxu1 %v5174_v24  ;;  %3397 = vmatprep.mubr.bf16.mxu1 %v6181_v62  ;;  %v5200_v62 = vld [vmem:[#allocation13 + $0x26c] ss:$16 sps:$4 sm:$0xff]  }
 0x3a1   : > { %3326 = vmatprep.subr.bf16.mxu0 %v5179_v25  ;;  %3367 = vmatprep.subr.bf16.mxu1 %v5182_v26  ;;  %v5260_v24 = vld [vmem:[#allocation13 + $0x32c] ss:$16 sps:$4 sm:$0xff]   ;;  %v5255_v25 = vld [vmem:[#allocation13 + $0x128] ss:$16 sps:$4 sm:$0xff]  }
 0x3a2   : > { %v5258_v26 = vld [vmem:[#allocation13 + $0x328] ss:$16 sps:$4 sm:$0xff]  }
 0x3a3   : > { %3327 = vmatpush1.bf16.msra.mxu0 %v5177_v34  ;;  %v5263_v34 = vld [vmem:[#allocation13 + $0x10c] ss:$16 sps:$4 sm:$0xff]  }
 0x3a4   : > { %3368 = vmatpush1.bf16.msra.mxu1 %v5180_v6  ;;  %3328 = vmatprep.subr.bf16.mxu0 %v5185_v7  ;;  %v5266_v6 = vld [vmem:[#allocation13 + $0x30c] ss:$16 sps:$4 sm:$0xff]   ;;  %v5261_v7 = vld [vmem:[#allocation13 + $0x108] ss:$16 sps:$4 sm:$0xff]  }
 0x3a5   : > { %3369 = vmatprep.subr.bf16.mxu1 %v5188_v54  ;;  %v5264_v54 = vld [vmem:[#allocation13 + $0x308] ss:$16 sps:$4 sm:$0xff]  }
 0x3a7   : > { %3329 = vmatpush1.bf16.msra.mxu0 %v5183_v27  ;;  %v5269_v27 = vld [vmem:[#allocation13 + $0x4ec] ss:$16 sps:$4 sm:$0xff]  }
 0x3a8   : > { %3370 = vmatpush1.bf16.msra.mxu1 %v5186_v28  ;;  %3330 = vmatprep.subr.bf16.mxu0 %v5191_v29  ;;  %v5272_v28 = vld [vmem:[#allocation13 + $0x6ec] ss:$16 sps:$4 sm:$0xff]   ;;  %v5267_v29 = vld [vmem:[#allocation13 + $0x4e8] ss:$16 sps:$4 sm:$0xff]  }
 0x3a9   : > { %3371 = vmatprep.subr.bf16.mxu1 %v5194_v30  ;;  %v5270_v30 = vld [vmem:[#allocation13 + $0x6e8] ss:$16 sps:$4 sm:$0xff]  }
 0x3ab   : > { %3331 = vmatpush1.bf16.msra.mxu0 %v5189_v31  ;;  %v5275_v31 = vld [vmem:[#allocation13 + $0x4cc] ss:$16 sps:$4 sm:$0xff]  }
 0x3ac   : > { %3372 = vmatpush1.bf16.msra.mxu1 %v5192_v61  ;;  %3332 = vmatprep.subr.bf16.mxu0 %v5197_v32  ;;  %v5278_v61 = vld [vmem:[#allocation13 + $0x6cc] ss:$16 sps:$4 sm:$0xff]   ;;  %v5273_v32 = vld [vmem:[#allocation13 + $0x4c8] ss:$16 sps:$4 sm:$0xff]  }
 0x3ad   : > { %3373 = vmatprep.subr.bf16.mxu1 %v5200_v62  ;;  %v5276_v62 = vld [vmem:[#allocation13 + $0x6c8] ss:$16 sps:$4 sm:$0xff]  }
 0x3af   : > { %3333 = vmatpush1.bf16.msra.mxu0 %v5195_v33  ;;  %v5281_v33 = vld [vmem:[#allocation13 + $0x4ac] ss:$16 sps:$4 sm:$0xff]  }
 0x3b0   : > { %3374 = vmatpush1.bf16.msra.mxu1 %v5198_v35  ;;  %3334 = vmatprep.subr.bf16.mxu0 %v5203_v36  ;;  %v5284_v35 = vld [vmem:[#allocation13 + $0x6ac] ss:$16 sps:$4 sm:$0xff]   ;;  %v5279_v36 = vld [vmem:[#allocation13 + $0x4a8] ss:$16 sps:$4 sm:$0xff]  }
 0x3b1   : > { %3375 = vmatprep.subr.bf16.mxu1 %v5206_v42  ;;  %v5287_v42 = vld [vmem:[#allocation13 + $0x48c] ss:$16 sps:$4 sm:$0xff]  }
 0x3b3   : > { %3335 = vmatpush1.bf16.msra.mxu0 %v5201_v43  ;;  %v5285_v43 = vld [vmem:[#allocation13 + $0x488] ss:$16 sps:$4 sm:$0xff]  }
 0x3b4   : > { %3376 = vmatpush1.bf16.msra.mxu1 %v5204_v44  ;;  %3336 = vmatprep.subr.bf16.mxu0 %v5209_v45  ;;  %v5293_v44 = vld [vmem:[#allocation13 + $0x46c] ss:$16 sps:$4 sm:$0xff]  }
 0x3b5   : > { %3377 = vmatprep.subr.bf16.mxu1 %v5212_v46  ;;  %v5296_v45 = vld [vmem:[#allocation13 + $0x66c] ss:$16 sps:$4 sm:$0xff]   ;;  %v5294_v46 = vld [vmem:[#allocation13 + $0x668] ss:$16 sps:$4 sm:$0xff]  }
 0x3b7   : > { %3337 = vmatpush1.bf16.msra.mxu0 %v5207_v41  ;;  %v5299_v41 = vld [vmem:[#allocation13 + $0x44c] ss:$16 sps:$4 sm:$0xff]  }
 0x3b8   : > { %3378 = vmatpush1.bf16.msra.mxu1 %v5210_v47  ;;  %3338 = vmatprep.subr.bf16.mxu0 %v5215_v48  ;;  %v5302_v47 = vld [vmem:[#allocation13 + $0x64c] ss:$16 sps:$4 sm:$0xff]   ;;  %v5297_v48 = vld [vmem:[#allocation13 + $0x448] ss:$16 sps:$4 sm:$0xff]  }
 0x3b9   : > { %3379 = vmatprep.subr.bf16.mxu1 %v5218_v49  ;;  %v5300_v49 = vld [vmem:[#allocation13 + $0x648] ss:$16 sps:$4 sm:$0xff]  }
 0x3bb   : > { %3339 = vmatpush1.bf16.msra.mxu0 %v5213_v50  ;;  %v5305_v50 = vld [vmem:[#allocation13 + $0x42c] ss:$16 sps:$4 sm:$0xff]  }
 0x3bc   : > { %3380 = vmatpush1.bf16.msra.mxu1 %v5216_v51  ;;  %3340 = vmatprep.subr.bf16.mxu0 %v5221_v52  ;;  %v5308_v51 = vld [vmem:[#allocation13 + $0x62c] ss:$16 sps:$4 sm:$0xff]   ;;  %v5303_v52 = vld [vmem:[#allocation13 + $0x428] ss:$16 sps:$4 sm:$0xff]  }
 0x3bd   : > { %3381 = vmatprep.subr.bf16.mxu1 %v5224_v53  ;;  %v5306_v53 = vld [vmem:[#allocation13 + $0x628] ss:$16 sps:$4 sm:$0xff]  }
 0x3bf   : > { %3341 = vmatpush2.bf16.msra.mxu0 %v5219_v55  ;;  %v5311_v55 = vld [vmem:[#allocation13 + $0x40c] ss:$16 sps:$4 sm:$0xff]  }
 0x3c0   : > { %3382 = vmatpush2.bf16.msra.mxu1 %v5222_v56  ;;  %3342 = vmatprep.subr.bf16.mxu0 %v5227_v57  ;;  %v5314_v56 = vld [vmem:[#allocation13 + $0x60c] ss:$16 sps:$4 sm:$0xff]   ;;  %v5309_v57 = vld [vmem:[#allocation13 + $0x408] ss:$16 sps:$4 sm:$0xff]  }
 0x3c1   : > { %3383 = vmatprep.subr.bf16.mxu1 %v5230_v58  ;;  %v5312_v58 = vld [vmem:[#allocation13 + $0x608] ss:$16 sps:$4 sm:$0xff]  }
 0x3c3   : > { %3343 = vmatpush2.bf16.msra.mxu0 %v5225_v59  ;;  %v5317_v59 = vld [vmem:[#allocation13 + $0x5ec] ss:$16 sps:$4 sm:$0xff]  }
 0x3c4   : > { %3384 = vmatpush2.bf16.msra.mxu1 %v5228_v60  ;;  %3344 = vmatprep.subr.bf16.mxu0 %v5233_v63  ;;  %v5320_v60 = vld [vmem:[#allocation13 + $0x7ec] ss:$16 sps:$4 sm:$0xff]   ;;  %v5315_v63 = vld [vmem:[#allocation13 + $0x5e8] ss:$16 sps:$4 sm:$0xff]  }
 0x3c5   : > { %3385 = vmatprep.subr.bf16.mxu1 %v5236_v0  ;;  %v5318_v0 = vld [vmem:[#allocation13 + $0x7e8] ss:$16 sps:$4 sm:$0xff]  }
 0x3c7   : > { %3345 = vmatpush2.bf16.msra.mxu0 %v5231_v3  ;;  %v5323_v3 = vld [vmem:[#allocation13 + $0x5cc] ss:$16 sps:$4 sm:$0xff]  }
 0x3c8   : > { %3386 = vmatpush2.bf16.msra.mxu1 %v5234_v10  ;;  %3346 = vmatprep.subr.bf16.mxu0 %v5239_v5  ;;  %v5326_v10 = vld [vmem:[#allocation13 + $0x7cc] ss:$16 sps:$4 sm:$0xff]   ;;  %v5321_v5 = vld [vmem:[#allocation13 + $0x5c8] ss:$16 sps:$4 sm:$0xff]  }
 0x3c9   : > { %3387 = vmatprep.subr.bf16.mxu1 %v5242_v8  ;;  %v5324_v8 = vld [vmem:[#allocation13 + $0x7c8] ss:$16 sps:$4 sm:$0xff]  }
 0x3cb   : > { %3347 = vmatpush2.bf16.msra.mxu0 %v5237_v9  ;;  %v5329_v9 = vld [vmem:[#allocation13 + $0x5ac] ss:$16 sps:$4 sm:$0xff]  }
 0x3cc   : > { %3388 = vmatpush2.bf16.msra.mxu1 %v5240_v12  ;;  %3348 = vmatprep.subr.bf16.mxu0 %v5245_v13  ;;  %v5332_v12 = vld [vmem:[#allocation13 + $0x7ac] ss:$16 sps:$4 sm:$0xff]   ;;  %v5327_v13 = vld [vmem:[#allocation13 + $0x5a8] ss:$16 sps:$4 sm:$0xff]  }
 0x3cd   : > { %3389 = vmatprep.subr.bf16.mxu1 %v5248_v14  ;;  %v5330_v14 = vld [vmem:[#allocation13 + $0x7a8] ss:$16 sps:$4 sm:$0xff]  }
 0x3cf   : > { %3349 = vmatpush2.bf16.msra.mxu0 %v5243_v15  ;;  %v5335_v15 = vld [vmem:[#allocation13 + $0x58c] ss:$16 sps:$4 sm:$0xff]  }
 0x3d0   : > { %3390 = vmatpush2.bf16.msra.mxu1 %v5246_v16  ;;  %3350 = vmatprep.subr.bf16.mxu0 %v5251_v17  ;;  %v5338_v16 = vld [vmem:[#allocation13 + $0x78c] ss:$16 sps:$4 sm:$0xff]   ;;  %v5333_v17 = vld [vmem:[#allocation13 + $0x588] ss:$16 sps:$4 sm:$0xff]  }
 0x3d1   : > { %3391 = vmatprep.subr.bf16.mxu1 %v5254_v18  ;;  %v5336_v18 = vld [vmem:[#allocation13 + $0x788] ss:$16 sps:$4 sm:$0xff]  }
 0x3d3   : > { %3351 = vmatpush2.bf16.msra.mxu0 %v5249_v19  ;;  %v5341_v19 = vld [vmem:[#allocation13 + $0x56c] ss:$16 sps:$4 sm:$0xff]  }
 0x3d4   : > { %3392 = vmatpush2.bf16.msra.mxu1 %v5252_v20  ;;  %3352 = vmatprep.subr.bf16.mxu0 %v5257_v21  ;;  %v5344_v20 = vld [vmem:[#allocation13 + $0x76c] ss:$16 sps:$4 sm:$0xff]   ;;  %v5339_v21 = vld [vmem:[#allocation13 + $0x568] ss:$16 sps:$4 sm:$0xff]  }
 0x3d5   : > { %3393 = vmatprep.subr.bf16.mxu1 %v5260_v24  ;;  %v5342_v24 = vld [vmem:[#allocation13 + $0x768] ss:$16 sps:$4 sm:$0xff]  }
 0x3d7   : > { %3353 = vmatpush2.bf16.msra.mxu0 %v5255_v25  ;;  %v5347_v25 = vld [vmem:[#allocation13 + $0x54c] ss:$16 sps:$4 sm:$0xff]  }
 0x3d8   : > { %3394 = vmatpush2.bf16.msra.mxu1 %v5258_v26  ;;  %3354 = vmatprep.subr.bf16.mxu0 %v5263_v34  ;;  %v5350_v26 = vld [vmem:[#allocation13 + $0x74c] ss:$16 sps:$4 sm:$0xff]   ;;  %v5345_v34 = vld [vmem:[#allocation13 + $0x548] ss:$16 sps:$4 sm:$0xff]  }
 0x3d9   : > { %3395 = vmatprep.subr.bf16.mxu1 %v5266_v6  ;;  %v5348_v6 = vld [vmem:[#allocation13 + $0x748] ss:$16 sps:$4 sm:$0xff]  }
 0x3db   : > { %3355 = vmatpush2.bf16.msra.mxu0 %v5261_v7  ;;  %v5353_v7 = vld [vmem:[#allocation13 + $0x52c] ss:$16 sps:$4 sm:$0xff]  }
 0x3dc   : > { %3396 = vmatpush2.bf16.msra.mxu1 %v5264_v54  ;;  %3406 = vmatprep.subr.bf16.mxu0 %v5269_v27  ;;  %v5356_v54 = vld [vmem:[#allocation13 + $0x72c] ss:$16 sps:$4 sm:$0xff]   ;;  %v5351_v27 = vld [vmem:[#allocation13 + $0x528] ss:$16 sps:$4 sm:$0xff]  }
 0x3dd   : > { %3447 = vmatprep.subr.bf16.mxu1 %v5272_v28  ;;  %v5354_v28 = vld [vmem:[#allocation13 + $0x728] ss:$16 sps:$4 sm:$0xff]  }
 0x3de   : > { %3357 = vmatmul.mubr.bf16.vlgmr.msra.gmra.mxu0 %v6183_v1  ;;  %v5282_v1 = vld [vmem:[#allocation13 + $0x6a8] ss:$16 sps:$4 sm:$0xff]  }
 0x3df   : > { %3398 = vmatmul.mubr.bf16.vlgmr.msra.gmra.mxu1 %v6185_v2  ;;  %3407 = vmatpush1.bf16.msra.mxu0 %v5267_v29  ;;  %v5290_v2 = vld [vmem:[#allocation13 + $0x68c] ss:$16 sps:$4 sm:$0xff]  }
 0x3e0   : > { %3438 = vmatprep.mubr.bf16.mxu0 %v6191_v11  ;;  %3448 = vmatpush1.bf16.msra.mxu1 %v5270_v30  ;;  %v5288_v11 = vld [vmem:[#allocation13 + $0x688] ss:$16 sps:$4 sm:$0xff]   ;;  %v5359_v29 = vld [vmem:[#allocation13 + $0x50c] ss:$16 sps:$4 sm:$0xff]  }
 0x3e1   : > { %3479 = vmatprep.mubr.bf16.mxu1 %v6193_v4  ;;  %3408 = vmatprep.subr.bf16.mxu0 %v5275_v31  ;;  %v5291_v4 = vld [vmem:[#allocation13 + $0x468] ss:$16 sps:$4 sm:$0xff]   ;;  %v5362_v30 = vld [vmem:[#allocation13 + $0x70c] ss:$16 sps:$4 sm:$0xff]  }
 0x3e2   : > { %3449 = vmatprep.subr.bf16.mxu1 %v5278_v61  ;;  %v5357_v31 = vld [vmem:[#allocation13 + $0x508] ss:$16 sps:$4 sm:$0xff]  }
 0x3e3   : > { %3409 = vmatpush1.bf16.msra.mxu0 %v5273_v32  ;;  %v5360_v61 = vld [vmem:[#allocation13 + $0x708] ss:$16 sps:$4 sm:$0xff]  }
 0x3e4   : > { %3450 = vmatpush1.bf16.msra.mxu1 %v5276_v62  ;;  %3410 = vmatprep.subr.bf16.mxu0 %v5281_v33  ;;  %v5365_v32 = vld [vmem:[#allocation16 + $0x74] ss:$8 sps:$4 sm:$0xff]   ;;  %v5363_v62 = vld [vmem:[#allocation16 + $0x70] ss:$8 sps:$4 sm:$0xff]   ;;  %v5368_v33 = vld [vmem:[#allocation16 + $0x64] ss:$8 sps:$4 sm:$0xff]  }
 0x3e5   : > { %3451 = vmatprep.subr.bf16.mxu1 %v5284_v35 }
 0x3e7   : > { %3411 = vmatpush1.bf16.msra.mxu0 %v5279_v36 }
 0x3e8   : > { %3452 = vmatpush1.bf16.msra.mxu1 %v5282_v1  ;;  %3412 = vmatprep.subr.bf16.mxu0 %v5287_v42  ;;  %v5366_v1 = vld [vmem:[#allocation16 + $0x60] ss:$8 sps:$4 sm:$0xff]  }
 0x3e9   : > { %3453 = vmatprep.subr.bf16.mxu1 %v5290_v2 }
 0x3eb   : > { %3413 = vmatpush1.bf16.msra.mxu0 %v5285_v43  ;;  %v5371_v43 = vld [vmem:[#allocation16 + $0x54] ss:$8 sps:$4 sm:$0xff]  }
 0x3ec   : > { %3454 = vmatpush1.bf16.msra.mxu1 %v5288_v11  ;;  %3414 = vmatprep.subr.bf16.mxu0 %v5293_v44 }
 0x3ed   : > { %3455 = vmatprep.subr.bf16.mxu1 %v5296_v45  ;;  %v5369_v45 = vld [vmem:[#allocation16 + $0x50] ss:$8 sps:$4 sm:$0xff]  }
 0x3ef   : > { %3415 = vmatpush1.bf16.msra.mxu0 %v5291_v4 }
 0x3f0   : > { %3456 = vmatpush1.bf16.msra.mxu1 %v5294_v46  ;;  %3416 = vmatprep.subr.bf16.mxu0 %v5299_v41  ;;  %v5374_v46 = vld [vmem:[#allocation16 + $0x44] ss:$8 sps:$4 sm:$0xff]   ;;  %v5411_v41 = vld [vmem:[#allocation16 + $0x170] ss:$8 sps:$4 sm:$0xff]  }
 0x3f1   : > { %3457 = vmatprep.subr.bf16.mxu1 %v5302_v47  ;;  %v5413_v47 = vld [vmem:[#allocation16 + $0x174] ss:$8 sps:$4 sm:$0xff]  }
 0x3f3   : > { %3417 = vmatpush1.bf16.msra.mxu0 %v5297_v48  ;;  %v5416_v48 = vld [vmem:[#allocation16 + $0x164] ss:$8 sps:$4 sm:$0xff]  }
 0x3f4   : > { %3458 = vmatpush1.bf16.msra.mxu1 %v5300_v49  ;;  %3418 = vmatprep.subr.bf16.mxu0 %v5305_v50  ;;  %v5377_v49 = vld [vmem:[#allocation16 + $0x34] ss:$8 sps:$4 sm:$0xff]   ;;  %v5414_v50 = vld [vmem:[#allocation16 + $0x160] ss:$8 sps:$4 sm:$0xff]  }
 0x3f5   : > { %3459 = vmatprep.subr.bf16.mxu1 %v5308_v51  ;;  %v5419_v51 = vld [vmem:[#allocation16 + $0x154] ss:$8 sps:$4 sm:$0xff]  }
 0x3f7   : > { %3419 = vmatpush1.bf16.msra.mxu0 %v5303_v52  ;;  %v5375_v52 = vld [vmem:[#allocation16 + $0x30] ss:$8 sps:$4 sm:$0xff]  }
 0x3f8   : > { %3460 = vmatpush1.bf16.msra.mxu1 %v5306_v53  ;;  %3420 = vmatprep.subr.bf16.mxu0 %v5311_v55  ;;  %v5380_v53 = vld [vmem:[#allocation16 + $0x24] ss:$8 sps:$4 sm:$0xff]   ;;  %v5417_v55 = vld [vmem:[#allocation16 + $0x150] ss:$8 sps:$4 sm:$0xff]  }
 0x3f9   : > { %3461 = vmatprep.subr.bf16.mxu1 %v5314_v56  ;;  %v5422_v56 = vld [vmem:[#allocation16 + $0x144] ss:$8 sps:$4 sm:$0xff]  }
 0x3fb   : > { %3421 = vmatpush1.bf16.msra.mxu0 %v5309_v57  ;;  %v5378_v57 = vld [vmem:[#allocation16 + $0x20] ss:$8 sps:$4 sm:$0xff]  }
 0x3fc   : > { %3462 = vmatpush1.bf16.msra.mxu1 %v5312_v58  ;;  %3422 = vmatprep.subr.bf16.mxu0 %v5317_v59  ;;  %v5383_v58 = vld [vmem:[#allocation16 + $0x14] ss:$8 sps:$4 sm:$0xff]   ;;  %v5420_v59 = vld [vmem:[#allocation16 + $0x140] ss:$8 sps:$4 sm:$0xff]  }
 0x3fd   : > { %3463 = vmatprep.subr.bf16.mxu1 %v5320_v60  ;;  %v5425_v60 = vld [vmem:[#allocation16 + $0x134] ss:$8 sps:$4 sm:$0xff]  }
 0x3ff   : > { %3423 = vmatpush2.bf16.msra.mxu0 %v5315_v63  ;;  %v5381_v63 = vld [vmem:[#allocation16 + $0x10] ss:$8 sps:$4 sm:$0xff]  }
 0x400   : > { %3464 = vmatpush2.bf16.msra.mxu1 %v5318_v0  ;;  %3424 = vmatprep.subr.bf16.mxu0 %v5323_v3  ;;  %v5386_v0 = vld [vmem:[#allocation16 + $0x4] ss:$8 sps:$4 sm:$0xff]   ;;  %v5423_v3 = vld [vmem:[#allocation16 + $0x130] ss:$8 sps:$4 sm:$0xff]  }
 0x401   : > { %3465 = vmatprep.subr.bf16.mxu1 %v5326_v10  ;;  %v5428_v10 = vld [vmem:[#allocation16 + $0x124] ss:$8 sps:$4 sm:$0xff]  }
 0x403   : > { %3425 = vmatpush2.bf16.msra.mxu0 %v5321_v5  ;;  %v5384_v5 = vld [vmem:[#allocation16] ss:$8 sps:$4 sm:$0xff]  }
 0x404   : > { %3466 = vmatpush2.bf16.msra.mxu1 %v5324_v8  ;;  %3426 = vmatprep.subr.bf16.mxu0 %v5329_v9  ;;  %v5389_v8 = vld [vmem:[#allocation16 + $0xf4] ss:$8 sps:$4 sm:$0xff]   ;;  %v5426_v9 = vld [vmem:[#allocation16 + $0x120] ss:$8 sps:$4 sm:$0xff]  }
 0x405   : > { %3467 = vmatprep.subr.bf16.mxu1 %v5332_v12  ;;  %v5431_v12 = vld [vmem:[#allocation16 + $0x114] ss:$8 sps:$4 sm:$0xff]  }
 0x407   : > { %3427 = vmatpush2.bf16.msra.mxu0 %v5327_v13  ;;  %v5387_v13 = vld [vmem:[#allocation16 + $0xf0] ss:$8 sps:$4 sm:$0xff]  }
 0x408   : > { %3468 = vmatpush2.bf16.msra.mxu1 %v5330_v14  ;;  %3428 = vmatprep.subr.bf16.mxu0 %v5335_v15  ;;  %v5392_v14 = vld [vmem:[#allocation16 + $0xe4] ss:$8 sps:$4 sm:$0xff]   ;;  %v5429_v15 = vld [vmem:[#allocation16 + $0x110] ss:$8 sps:$4 sm:$0xff]  }
 0x409   : > { %3469 = vmatprep.subr.bf16.mxu1 %v5338_v16  ;;  %v5434_v16 = vld [vmem:[#allocation16 + $0x104] ss:$8 sps:$4 sm:$0xff]  }
 0x40b   : > { %3429 = vmatpush2.bf16.msra.mxu0 %v5333_v17  ;;  %v5390_v17 = vld [vmem:[#allocation16 + $0xe0] ss:$8 sps:$4 sm:$0xff]  }
 0x40c   : > { %3470 = vmatpush2.bf16.msra.mxu1 %v5336_v18  ;;  %3430 = vmatprep.subr.bf16.mxu0 %v5341_v19  ;;  %v5395_v18 = vld [vmem:[#allocation16 + $0xd4] ss:$8 sps:$4 sm:$0xff]   ;;  %v5432_v19 = vld [vmem:[#allocation16 + $0x100] ss:$8 sps:$4 sm:$0xff]  }
 0x40d   : > { %3471 = vmatprep.subr.bf16.mxu1 %v5344_v20  ;;  %v5437_v20 = vld [vmem:[#allocation16 + $0x1f4] ss:$8 sps:$4 sm:$0xff]  }
 0x40f   : > { %3431 = vmatpush2.bf16.msra.mxu0 %v5339_v21  ;;  %v5393_v21 = vld [vmem:[#allocation16 + $0xd0] ss:$8 sps:$4 sm:$0xff]  }
 0x410   : > { %3472 = vmatpush2.bf16.msra.mxu1 %v5342_v24  ;;  %3432 = vmatprep.subr.bf16.mxu0 %v5347_v25  ;;  %v5398_v24 = vld [vmem:[#allocation16 + $0xc4] ss:$8 sps:$4 sm:$0xff]   ;;  %v5435_v25 = vld [vmem:[#allocation16 + $0x1f0] ss:$8 sps:$4 sm:$0xff]  }
 0x411   : > { %3473 = vmatprep.subr.bf16.mxu1 %v5350_v26  ;;  %v5440_v26 = vld [vmem:[#allocation16 + $0x1e4] ss:$8 sps:$4 sm:$0xff]  }
 0x413   : > { %3433 = vmatpush2.bf16.msra.mxu0 %v5345_v34  ;;  %v5396_v34 = vld [vmem:[#allocation16 + $0xc0] ss:$8 sps:$4 sm:$0xff]  }
 0x414   : > { %3474 = vmatpush2.bf16.msra.mxu1 %v5348_v6  ;;  %3434 = vmatprep.subr.bf16.mxu0 %v5353_v7  ;;  %v5401_v6 = vld [vmem:[#allocation16 + $0xb4] ss:$8 sps:$4 sm:$0xff]   ;;  %v5438_v7 = vld [vmem:[#allocation16 + $0x1e0] ss:$8 sps:$4 sm:$0xff]  }
 0x415   : > { %3475 = vmatprep.subr.bf16.mxu1 %v5356_v54  ;;  %v5443_v54 = vld [vmem:[#allocation16 + $0x1d4] ss:$8 sps:$4 sm:$0xff]  }
 0x417   : > { %3435 = vmatpush2.bf16.msra.mxu0 %v5351_v27  ;;  %v5399_v27 = vld [vmem:[#allocation16 + $0xb0] ss:$8 sps:$4 sm:$0xff]  }
 0x418   : > { %3476 = vmatpush2.bf16.msra.mxu1 %v5354_v28  ;;  %3436 = vmatprep.subr.bf16.mxu0 %v5359_v29  ;;  %v5404_v28 = vld [vmem:[#allocation16 + $0xa4] ss:$8 sps:$4 sm:$0xff]   ;;  %v5441_v29 = vld [vmem:[#allocation16 + $0x1d0] ss:$8 sps:$4 sm:$0xff]  }
 0x419   : > { %3477 = vmatprep.subr.bf16.mxu1 %v5362_v30  ;;  %v5446_v30 = vld [vmem:[#allocation16 + $0x1c4] ss:$8 sps:$4 sm:$0xff]  }
 0x41b   : > { %3437 = vmatpush2.bf16.msra.mxu0 %v5357_v31  ;;  %v5402_v31 = vld [vmem:[#allocation16 + $0xa0] ss:$8 sps:$4 sm:$0xff]  }
 0x41c   : > { %3478 = vmatpush2.bf16.msra.mxu1 %v5360_v61  ;;  %3892 = vmatprep.subr.bf16.mxu0 %v5365_v32  ;;  %v5407_v61 = vld [vmem:[#allocation16 + $0x94] ss:$8 sps:$4 sm:$0xff]   ;;  %v5444_v32 = vld [vmem:[#allocation16 + $0x1c0] ss:$8 sps:$4 sm:$0xff]  }
 0x41d   : > { %3933 = vmatprep.subr.bf16.mxu1 %v5413_v47 }
 0x41e   : > { %3439 = vmatmul.mubr.bf16.vlgmr.msra.gmra.mxu0 %v6203_v22  ;;  %v6216_v35 = vpop.f32.mrf.mxu0  ;;  %v6218_v36 = vpop.f32.mrf.mxu1 }
 0x41f   : > { %3480 = vmatmul.mubr.bf16.vlgmr.msra.gmra.mxu1 %v6205_v23  ;;  %3893 = vmatpush1.bf16.msra.mxu0 %v5363_v62  ;;  %v5372_v23 = vld [vmem:[#allocation16 + $0x40] ss:$8 sps:$4 sm:$0xff]   ;;  %v5449_v62 = vld [vmem:[#allocation16 + $0x1b4] ss:$8 sps:$4 sm:$0xff]  }
 0x420   : > { %v6221_v42 = vpop.f32.mrf.mxu0  ;;  %v6223_v2 = vpop.f32.mrf.mxu1  ;;  %3894 = vmatprep.subr.bf16.mxu0 %v5368_v33  ;;  %3934 = vmatpush1.bf16.msra.mxu1 %v5411_v41  ;;  %v6225_v33 = vld [vmem:[#allocation14] sm:$0xf] }
 0x421   : > { %3935 = vmatprep.subr.bf16.mxu1 %v5416_v48 }
 0x422   : > { %v3198_v11 = vpop.f32.mrf.mxu0  ;;  %v3239_v44 = vpop.f32.mrf.mxu1 }
 0x423   : > { %3895 = vmatpush1.bf16.msra.mxu0 %v5366_v1  ;;  %v5405_v1 = vld [vmem:[#allocation16 + $0x90] ss:$8 sps:$4 sm:$0xff]   ;;  %v3143_v44 = vrot.slane %v6225_v33, %v6141_v39 }
 0x424   : > { %v3199_v4 = vpop.f32.mrf.mxu0  ;;  %v3240_v22 = vpop.f32.mrf.mxu1  ;;  %3896 = vmatprep.subr.bf16.mxu0 %v5371_v43  ;;  %3936 = vmatpush1.bf16.msra.mxu1 %v5414_v50  ;;  %v5410_v43 = vld [vmem:[#allocation16 + $0x84] ss:$8 sps:$4 sm:$0xff]   ;;  %v5447_v11 = vld [vmem:[#allocation16 + $0x1b0] ss:$8 sps:$4 sm:$0xff]  }
 0x425   : > { %3937 = vmatprep.subr.bf16.mxu1 %v5419_v51  ;;  %v5408_v4 = vld [vmem:[#allocation16 + $0x80] ss:$8 sps:$4 sm:$0xff]   ;;  %v3195_v22 = vadd.f32 %v6216_v35, %v3143_v44 }
 0x426   : > { %v5450_v51 = vld [vmem:[#allocation16 + $0x1a0] ss:$8 sps:$4 sm:$0xff]  }
 0x427   : > { %3897 = vmatpush1.bf16.msra.mxu0 %v5369_v45  ;;  %v3147_v45 = vrot.slane %v6225_v33, %v6135_v37  ;;  %v3236_v41 = vadd.f32 %v6218_v36, %v3195_v22 }
 0x428   : > { %3898 = vmatprep.subr.bf16.mxu0 %v5374_v46  ;;  %3938 = vmatpush1.bf16.msra.mxu1 %v5417_v55 }
 0x429   : > { %3939 = vmatprep.subr.bf16.mxu1 %v5422_v56  ;;  %v3197_v46 = vadd.f32 %v6221_v42, %v3147_v45 }
 0x42b   : > { %3899 = vmatpush1.bf16.msra.mxu0 %v5372_v23  ;;  %v5452_v23 = vld [vmem:[#allocation16 + $0x1a4] ss:$8 sps:$4 sm:$0xff]  }
 0x42c   : > { %3900 = vmatprep.subr.bf16.mxu0 %v5377_v49  ;;  %3940 = vmatpush1.bf16.msra.mxu1 %v5420_v59  ;;  %v3238_v49 = vadd.f32 %v6223_v2, %v3197_v46  ;;  %v5453_v59 = vld [vmem:[#allocation16 + $0x190] ss:$8 sps:$4 sm:$0xff]   ;;  %v5458_v2 = vld [vmem:[#allocation16 + $0x184] ss:$8 sps:$4 sm:$0xff]  }
 0x42d   : > { %3941 = vmatprep.subr.bf16.mxu1 %v5425_v60 }
 0x42f   : > { %3901 = vmatpush1.bf16.msra.mxu0 %v5375_v52 }
 0x430   : > { %3902 = vmatprep.subr.bf16.mxu0 %v5380_v53  ;;  %3942 = vmatpush1.bf16.msra.mxu1 %v5423_v3 }
 0x431   : > { %3943 = vmatprep.subr.bf16.mxu1 %v5428_v10  ;;  %v5456_v10 = vld [vmem:[#allocation16 + $0x180] ss:$8 sps:$4 sm:$0xff]  }
 0x433   : > { %3903 = vmatpush1.bf16.msra.mxu0 %v5378_v57 }
 0x434   : > { %3904 = vmatprep.subr.bf16.mxu0 %v5383_v58  ;;  %3944 = vmatpush1.bf16.msra.mxu1 %v5426_v9  ;;  %v5455_v58 = vld [vmem:[#allocation16 + $0x194] ss:$8 sps:$4 sm:$0xff]  }
 0x435   : > { %3945 = vmatprep.subr.bf16.mxu1 %v5431_v12 }
 0x437   : > { %3905 = vmatpush1.bf16.msra.mxu0 %v5381_v63 }
 0x438   : > { %3906 = vmatprep.subr.bf16.mxu0 %v5386_v0  ;;  %3946 = vmatpush1.bf16.msra.mxu1 %v5429_v15 }
 0x439   : > { %3947 = vmatprep.subr.bf16.mxu1 %v5434_v16 }
 0x43b   : > { %3907 = vmatpush1.bf16.msra.mxu0 %v5384_v5 }
 0x43c   : > { %3908 = vmatprep.subr.bf16.mxu0 %v5389_v8  ;;  %3948 = vmatpush1.bf16.msra.mxu1 %v5432_v19  ;;  %v5460_v19 = vld [vmem:[#allocation19 + $0x38] sm:$0xff]  }
 0x43d   : > { %3949 = vmatprep.subr.bf16.mxu1 %v5437_v20  ;;  %v5461_v20 = vld [vmem:[#allocation19 + $0x70] sm:$0xff]  }
 0x43f   : > { %3909 = vmatpush2.bf16.msra.mxu0 %v5387_v13 }
 0x440   : > { %3910 = vmatprep.subr.bf16.mxu0 %v5392_v14  ;;  %3950 = vmatpush2.bf16.msra.mxu1 %v5435_v25  ;;  %v5464_v25 = vld [vmem:[#allocation19 + $0x28] sm:$0xff]  }
 0x441   : > { %3951 = vmatprep.subr.bf16.mxu1 %v5440_v26  ;;  %v5465_v26 = vld [vmem:[#allocation19 + $0x60] sm:$0xff]  }
 0x443   : > { %3911 = vmatpush2.bf16.msra.mxu0 %v5390_v17 }
 0x444   : > { %3912 = vmatprep.subr.bf16.mxu0 %v5395_v18  ;;  %3952 = vmatpush2.bf16.msra.mxu1 %v5438_v7  ;;  %v5459_v18 = vld [vmem:[#allocation19 + $0x78] sm:$0xff]  }
 0x445   : > { %3953 = vmatprep.subr.bf16.mxu1 %v5443_v54  ;;  %v5468_v7 = vld [vmem:[#allocation19 + $0x18] sm:$0xff]   ;;  %v5469_v54 = vld [vmem:[#allocation19 + $0x50] sm:$0xff]  }
 0x447   : > { %3913 = vmatpush2.bf16.msra.mxu0 %v5393_v21  ;;  %v5462_v21 = vld [vmem:[#allocation19 + $0x30] sm:$0xff]  }
 0x448   : > { %3914 = vmatprep.subr.bf16.mxu0 %v5398_v24  ;;  %3954 = vmatpush2.bf16.msra.mxu1 %v5441_v29  ;;  %v5463_v24 = vld [vmem:[#allocation19 + $0x68] sm:$0xff]   ;;  %v3155_v29 = vrot.slane %v6225_v33, %v6138_v38 }
 0x449   : > { %3955 = vmatprep.subr.bf16.mxu1 %v5446_v30 }
 0x44b   : > { %3915 = vmatpush2.bf16.msra.mxu0 %v5396_v34  ;;  %v5466_v34 = vld [vmem:[#allocation19 + $0x20] sm:$0xff]  }
 0x44c   : > { %3916 = vmatprep.subr.bf16.mxu0 %v5401_v6  ;;  %3956 = vmatpush2.bf16.msra.mxu1 %v5444_v32  ;;  %v5467_v6 = vld [vmem:[#allocation19 + $0x58] sm:$0xff]  }
 0x44d   : > { %3957 = vmatprep.subr.bf16.mxu1 %v5449_v62 }
 0x44f   : > { %3917 = vmatpush2.bf16.msra.mxu0 %v5399_v27  ;;  %v5470_v27 = vld [vmem:[#allocation19 + $0x10] sm:$0xff]  }
 0x450   : > { %3918 = vmatprep.subr.bf16.mxu0 %v5404_v28  ;;  %3958 = vmatpush2.bf16.msra.mxu1 %v5447_v11  ;;  %v3151_v28 = vrot.slane %v6225_v33, %v6144_v40 }
 0x451   : > { %3959 = vmatprep.subr.bf16.mxu1 %v5452_v23 }
 0x453   : > { %3919 = vmatpush2.bf16.msra.mxu0 %v5402_v31 }
 0x454   : > { %3920 = vmatprep.subr.bf16.mxu0 %v5407_v61  ;;  %3960 = vmatpush2.bf16.msra.mxu1 %v5450_v51  ;;  %v5471_v51 = vld [vmem:[#allocation19 + $0x48] sm:$0xff]  }
 0x455   : > { %3961 = vmatprep.subr.bf16.mxu1 %v5455_v58 }
 0x457   : > { %3921 = vmatpush2.bf16.msra.mxu0 %v5405_v1 }
 0x458   : > { %3922 = vmatprep.subr.bf16.mxu0 %v5410_v43  ;;  %3962 = vmatpush2.bf16.msra.mxu1 %v5453_v59 }
 0x459   : > { %3963 = vmatprep.subr.bf16.mxu1 %v5458_v2 }
 0x45b   : > { %3923 = vmatpush2.bf16.msra.mxu0 %v5408_v4 }
 0x45c   : > { %3964 = vmatpush2.bf16.msra.mxu1 %v5456_v10  ;;  %4779 = vmatprep.subr.bf16.mxu0 %v5459_v18 }
 0x45e   : > { %v3276_v47 = vpop.f32.mrf.mxu0  ;;  %v3317_v48 = vpop.f32.mrf.mxu1 }
 0x45f   : > { %v3277_v50 = vadd.f32 %v3276_v47, %v3236_v41 }
 0x460   : > { %v3278_v52 = vpop.f32.mrf.mxu0  ;;  %v3319_v53 = vpop.f32.mrf.mxu1 }
 0x461   : > { %v3318_v55 = vadd.f32 %v3317_v48, %v3277_v50  ;;  %v3279_v56 = vadd.f32 %v3278_v52, %v3238_v49  ;;  %v5472_v52 = vld [vmem:[#allocation19 + $0x8] sm:$0xff]  }
 0x462   : > { %v3280_v57 = vpop.f32.mrf.mxu0  ;;  %v3321_v35 = vpop.f32.mrf.mxu1 }
 0x463   : > { %v3320_v42 = vadd.f32 %v3319_v53, %v3279_v56  ;;  %v3488_v60 = vmax.f32 %v3318_v55, 0.0  ;;  %v5473_v56 = vld [vmem:[#allocation19 + $0x40] sm:$0xff]   ;;  %v3560_v35 = vld [vmem:[#allocation17] sm:$0x3] }
 0x464   : > { %v3281_v36 = vpop.f32.mrf.mxu0  ;;  %v3322_v63 = vpop.f32.mrf.mxu1  ;;  %v5474_v57 = vld [vmem:[#allocation19] sm:$0xff]   ;;  %v3885_v58 = vrot.slane %v3560_v35, %v6141_v39 }
 0x465   : > { %v3489_v0 = vmax.f32 %v3320_v42, 0.0  ;;  %v3492_v5 = vpack.c.bf16 %v3488_v60, %v3488_v60  ;;  %v3889_v42 = vrot.slane %v3560_v35, %v6135_v37 }
 0x467   : > { %v3493_v3 = vpack.c.bf16 %v3489_v0, %v3489_v0 }
 0x469   : > { %3924 = vmatprep.mubr.bf16.mxu0 %v3493_v3 }
 0x46a   : > { %3925 = vmatmul.mubr.bf16.vlgmr.msra.gmra.mxu0 %v3492_v5 }
 0x46b   : > { %4780 = vmatpush3.bf16.msra.mxu0 %v5460_v19 }
 0x46c   : > { %4781 = vmatprep.subr.bf16.mxu0 %v5461_v20 }
 0x46f   : > { %4782 = vmatpush3.bf16.msra.mxu0 %v5462_v21 }
 0x470   : > { %4783 = vmatprep.subr.bf16.mxu0 %v5463_v24 }
 0x473   : > { %4784 = vmatpush3.bf16.msra.mxu0 %v5464_v25 }
 0x474   : > { %4785 = vmatprep.subr.bf16.mxu0 %v5465_v26 }
 0x477   : > { %4786 = vmatpush3.bf16.msra.mxu0 %v5466_v34 }
 0x478   : > { %4787 = vmatprep.subr.bf16.mxu0 %v5467_v6 }
 0x47b   : > { %4788 = vmatpush3.bf16.msra.mxu0 %v5468_v7 }
 0x47c   : > { %4789 = vmatprep.subr.bf16.mxu0 %v5469_v54 }
 0x47f   : > { %4790 = vmatpush3.bf16.msra.mxu0 %v5470_v27 }
 0x480   : > { %4791 = vmatprep.subr.bf16.mxu0 %v5471_v51 }
 0x483   : > { %4792 = vmatpush3.bf16.msra.mxu0 %v5472_v52 }
 0x484   : > { %4793 = vmatprep.subr.bf16.mxu0 %v5473_v56 }
 0x487   : > { %4794 = vmatpush3.bf16.msra.mxu0 %v5474_v57 }
 0x49e   : > { %v3358_v8 = vpop.f32.mrf.mxu0 }
 0x49f   : > { %v3399_v9 = vpop.f32.mrf.mxu1  ;;  %v3359_v30 = vadd.f32 %v3358_v8, %v3151_v28 }
 0x4a0   : > { %v3360_v12 = vpop.f32.mrf.mxu0 }
 0x4a1   : > { %v3401_v13 = vpop.f32.mrf.mxu1  ;;  %v3361_v31 = vadd.f32 %v3360_v12, %v3155_v29  ;;  %v3400_v61 = vadd.f32 %v3399_v9, %v3359_v30 }
 0x4a2   : > { %v3362_v14 = vpop.f32.mrf.mxu0 }
 0x4a3   : > { %v3403_v15 = vpop.f32.mrf.mxu1  ;;  %v3402_v62 = vadd.f32 %v3401_v13, %v3361_v31  ;;  %v4010_v14 = vld [vmem:[#allocation20] sm:$0x1] }
 0x4a4   : > { %v3363_v16 = vpop.f32.mrf.mxu0 }
 0x4a5   : > { %v3404_v17 = vpop.f32.mrf.mxu1 }
 0x4de   : > { %v3440_v32 = vpop.f32.mrf.mxu0 }
 0x4df   : > { %v3441_v1 = vadd.f32 %v3440_v32, %v3400_v61  ;;  %v3481_v43 = vpop.f32.mrf.mxu1 }
 0x4e0   : > { %v3442_v11 = vpop.f32.mrf.mxu0 }
 0x4e1   : > { %v3482_v44 = vadd.f32 %v3481_v43, %v3441_v1  ;;  %v3443_v45 = vadd.f32 %v3442_v11, %v3402_v62  ;;  %v3483_v4 = vpop.f32.mrf.mxu1 }
 0x4e2   : > { %v3444_v22 = vpop.f32.mrf.mxu0 }
 0x4e3   : > { %v3484_v46 = vadd.f32 %v3483_v4, %v3443_v45  ;;  %v3485_v41 = vpop.f32.mrf.mxu1  ;;  %v3490_v47 = vmax.f32 %v3482_v44, 0.0 }
 0x4e4   : > { %v3445_v48 = vpop.f32.mrf.mxu0 }
 0x4e5   : > { %v3491_v40 = vmax.f32 %v3484_v46, 0.0  ;;  %v3486_v23 = vpop.f32.mrf.mxu1  ;;  %v3494_v38 = vpack.c.bf16 %v3490_v47, %v3490_v47 }
 0x4e7   : > { %v3495_v49 = vpack.c.bf16 %v3491_v40, %v3491_v40 }
 0x4e9   : > { %3965 = vmatprep.mubr.bf16.mxu1 %v3495_v49 }
 0x4ea   : > { %3966 = vmatmul.mubr.bf16.vlgmr.msra.gmra.mxu1 %v3494_v38 }
 0x52a   : > { %v3926_v33 = vpop.f32.mrf.mxu0 }
 0x52b   : > { %v3927_v59 = vadd.f32 %v3926_v33, %v3885_v58 }
 0x52c   : > { %v3928_v50 = vpop.f32.mrf.mxu0 }
 0x52d   : > { %v3929_v36 = vadd.f32 %v3928_v50, %v3889_v42 }
 0x52e   : > { %v3930_v53 = vpop.f32.mrf.mxu0 }
 0x530   : > { %v3931_v55 = vpop.f32.mrf.mxu0 }
 0x5aa   : > { %v3967_v60 = vpop.f32.mrf.mxu1 }
 0x5ab   : > { %v3968_v63 = vadd.f32 %v3967_v60, %v3927_v59 }
 0x5ac   : > { %v3969_v0 = vpop.f32.mrf.mxu1 }
 0x5ad   : > { %v3970_v2 = vadd.f32 %v3969_v0, %v3929_v36  ;;  %v3974_v3 = vmax.f32 %v3968_v63, 0.0 }
 0x5ae   : > { %v3971_v10 = vpop.f32.mrf.mxu1 }
 0x5af   : > { %v3975_v5 = vmax.f32 %v3970_v2, 0.0  ;;  %v3976_v12 = vpack.c.bf16 %v3974_v3, %v3974_v3 }
 0x5b0   : > { %v3972_v8 = vpop.f32.mrf.mxu1 }
 0x5b1   : > { %v3977_v9 = vpack.c.bf16 %v3975_v5, %v3975_v5 }
 0x5b3   : > { %4139 = vmatprep.mubr.bf16.mxu0 %v3977_v9 }
 0x5b4   : > { %4140 = vmatmul.mubr.bf16.vlgmr.msra.gmra.mxu0 %v3976_v12 }
 0x674   : > { %v4795_v13 = vpop.f32.mrf.mxu0 }
 0x676   : > { %v4796_v39 = vpop.f32.mrf.mxu0 }
 0x677   : > { %v4797_v15 = vadd.f32 %v4796_v39, %v4795_v13 }
 0x678   : > { %v4798_v37 = vpop.f32.mrf.mxu0 }
 0x679   : > { %v4142_v16 = vadd.f32 %v4797_v15, %v4010_v14 }
 0x67a   : > { %v4799_v17 = vpop.f32.mrf.mxu0 }
 0x67b   : > { %4147 = vst [vmem:[%s625_s19] sm:$0x1] %v4142_v16 }
 0x67c PF: > { %s30_s27 = sadd.s32 1, %s5837_s27   ;;  %s6280_s25 = smov %s5833_s26 }
 0x67d   : > { %p27_p2 = scmp.ge.s32.totalorder %s30_s27, 4   ;;  %s6281_s26 = smov %s6283_s22 }
 0x67f   :  { %29 = sbr.rel (!%p27_p2) target bundleno = 11 (0xb), region = 159 }
 0x684   :  { %4165 = vsyncpa [#allocation4], 1 }
 0x685   :  { %4167 = vsyncpa [#allocation4 + $0x1], 1 }
 0x686   :  { %4168 = vsyncpa [#allocation6], 1 }
 0x687   :  { %4169 = vsyncpa [#allocation9], 1 }
 0x688   :  { %4170 = vsyncpa [#allocation12], 1 }
 0x689   :  { %4171 = vsyncpa [#allocation15], 1 }
 0x68a   :  { %4172 = vsyncpa [#allocation18], 1 }
 0x68b   :  { %4173 = vsyncpa [#allocation21], 1 }

// kernel: pointnet_forward.7
= control target key start
LH: loop header
LB: loop body
LE: loop exit
PB: predicated region body
PF: predicated region fallthrough
CT: control target
= control target key end

     0   :  { %s6798_s0 = inlined_call_operand.vmem [shape: bf16[2,16,128], index: 0, kind: input, shape index: {}]   ;;  %s6799_s1 = inlined_call_operand.vmem [shape: bf16[2,128,64], index: 1, kind: input, shape index: {}]   ;;  %s6800_s2 = inlined_call_operand.vmem [shape: f32[1,64], index: 2, kind: input, shape index: {}]   ;;  %s6801_s3 = inlined_call_operand.vmem [shape: bf16[64,128], index: 3, kind: input, shape index: {}]   ;;  %s6802_s4 = inlined_call_operand.vmem [shape: f32[1,128], index: 4, kind: input, shape index: {}]   ;;  %s6803_s5 = inlined_call_operand.vmem [shape: bf16[128,1024], index: 5, kind: input, shape index: {}]   ;;  %s6804_s6 = inlined_call_operand.vmem [shape: f32[1,1024], index: 6, kind: input, shape index: {}]   ;;  %s6805_s7 = inlined_call_operand.vmem [shape: bf16[1024,512], index: 7, kind: input, shape index: {}]   ;;  %s6806_s8 = inlined_call_operand.vmem [shape: f32[1,512], index: 8, kind: input, shape index: {}]   ;;  %s6807_s9 = inlined_call_operand.vmem [shape: bf16[512,256], index: 9, kind: input, shape index: {}]   ;;  %s6808_s10 = inlined_call_operand.vmem [shape: f32[1,256], index: 10, kind: input, shape index: {}]   ;;  %s6809_s11 = inlined_call_operand.vmem [shape: bf16[256,128], index: 11, kind: input, shape index: {}]   ;;  %s6810_s12 = inlined_call_operand.vmem [shape: f32[1,128], index: 12, kind: input, shape index: {}]   ;;  %s6811_s13 = inlined_call_operand.hbm [shape: f32[2,1,128], index: 13, kind: output, shape index: {}]  }
   0x1   :  { %6814 = sst [smem:[#allocation8_spill]] %s6798_s0 }
   0x2   :  { %6815 = sst [smem:[#allocation9_spill]] %s6799_s1 }
   0x3   :  { %18 = vsyncpa [#allocation4], 0 }
   0x4   :  { %20 = vsyncpa [#allocation4 + $0x1], 0  ;;  %s5345_s25 = smov 0   ;;  %s5347_s26 = smov 0  }
   0x5   :  { %s5349_s27 = smov 0   ;;  %s5351_s28 = smov 0  }
   0x6   :  { %s5353_s29 = smov 0   ;;  %s5355_s30 = smov 0  }
   0x7 LB: > { %6816 = sst [smem:[#allocation6_spill]] %s5264_s29  ;;  %s4126_s14 = sadd.s32 4294967295, %s5268_s30   ;;  %s5268_s30 = sphi %s5355_s30, %s26_s30   ;;  %s5264_s29 = sphi %s5353_s29, %s6823_s29   ;;  %s5260_s28 = sphi %s5351_s28, %s6822_s28   ;;  %s5256_s27 = sphi %s5349_s27, %s6826_s27   ;;  %s5252_s26 = sphi %s5347_s26, %s6825_s26   ;;  %s5248_s25 = sphi %s5345_s25, %s6824_s25  }
   0x8   : > { %s4127_s15 = sadd.s32 4294967294, %s5268_s30   ;;  %s38_s16 = sadd.s32 1, %s5264_s29 }
   0x9   : > { %s330_s17 = sadd.s32 1, %s5256_s27  ;;  %p40_p0 = scmp.ge.s32.totalorder %s38_s16, 2 }
   0xa   : > { %p340_p1 = scmp.ne.s32.totalorder %s5256_s27, %s5252_s26  ;;  %p341_p2 = scmp.eq.s32.totalorder %s4126_s14, 1 }
   0xb   : > { %p346_p3 = scmp.ne.s32.totalorder %s5252_s26, %s5248_s25  ;;  %s6828_s16 = smov (%p40_p0, %s38_s16), 0 }
   0xc   : > { %6817 = sst [smem:[#allocation7_spill]] %s6828_s16  ;;  %p5385_p4 = por %p341_p2, %p340_p1 }
   0xd   : > { %p347_p5 = scmp.eq.s32.totalorder %s4127_s15, 1  ;;  %s327_s19 = ssub.s32 %s5264_s29, %s6828_s16 }
   0xe   : > { %p4130_p6 = scmp.ge.s32.totalorder %s5268_s30, 1  ;;  %p328_p7 = scmp.eq.s32.totalorder %s327_s19, 0 }
   0xf   : > { %p5392_p8 = por %p347_p5, %p346_p3  ;;  %p419_p9 = scmp.lt.s32.totalorder %s5268_s30, 3 }
  0x10   : > { %s5398_s21 = scalar_select %p328_p7, %s5256_s27, %s330_s17  }
  0x11   : > { %p420_p10 = pnand %p4130_p6, %p419_p9 }
  0x12   : > { %p472_p11 = scmp.lt.s32.totalorder (!%p420_p10), %s5260_s28, 1  ;;  %s6820_s1 = sld [smem:[#allocation9_spill]] (!%p420_p10) }
  0x13   : > { %423 = sbr.rel (%p420_p10) target bundleno = 1540 (0x604), region = 72  ;;  %s6821_s0 = sld [smem:[#allocation8_spill]] (!%p420_p10) }
  0x14   : > { %s4551_s23 = sshll.u32 (!%p420_p10), %s5260_s28, 4 }
  0x15   : > { %s6758_s17 = scalar_lea.hbm (!%p420_p10), %s6811_s13, %s4551_s23 }
  0x18   : > { %v4692_v0 = vld [vmem:[%s6801_s3 + $0x18] sm:$0xff]   ;;  %v5270_v1 = vmov 0.0   ;;  %vm5271_vm0 = vmmov 0   ;;  %s473_s24 = scalar_select %p472_p11, %s5260_s28, 1  ;;  %v4693_v11 = vld [vmem:[%s6801_s3 + $0x10] sm:$0xff]   ;;  %v4694_v12 = vld [vmem:[%s6801_s3 + $0x8] sm:$0xff]  }
  0x19   : > { %4592 = vmatprep.subr.bf16.mxu0 %v5270_v1  ;;  %4608 = vmatprep.mubr.msk.bf16.mxu0 %vm5271_vm0, %v5270_v1  ;;  %v4695_v13 = vld [vmem:[%s6801_s3] sm:$0xff]   ;;  %v759_v16 = vld [vmem:[%s6803_s5 + $0x1c8] sm:$0xff]  ;;  %vm654_vm1 = vcmask 523264   ;;  %s5274_s28 = smov [#allocation3]  }
  0x1a   : > { %4612 = vmatprep.subr.bf16.mxu1 %v5270_v1  ;;  %4620 = vmatprep.mubr.msk.bf16.mxu1 %vm5271_vm0, %v5270_v1  ;;  %s4555_s14 = sshll.u32 %s473_s24, 6  ;;  %s4554_s22 = sshll.u32 %s473_s24, 3  ;;  %v758_v14 = vld [vmem:[%s6803_s5 + $0x1c0] sm:$0xff]  ;;  %v763_v19 = vld [vmem:[%s6803_s5 + $0x1e8] sm:$0xff] }
  0x1b   : > { %4613 = vmatpush3.bf16.msra.mxu1 %v4692_v0  ;;  %s485_s19 = scalar_lea.vmem %s6820_s1, %s4555_s14  ;;  %s479_s29 = scalar_lea.vmem %s6821_s0, %s4554_s22  ;;  %v762_v15 = vld [vmem:[%s6803_s5 + $0x1e0] sm:$0xff]  ;;  %v4209_v20 = vcombine.low %v759_v16, %v763_v19  ;;  %v4210_v21 = vcombine.high %v759_v16, %v763_v19  ;;  %v751_v22 = vld [vmem:[%s6803_s5 + $0x188] sm:$0xff] }
  0x1c   : > { %4614 = vmatprep.subr.bf16.mxu1 %v5270_v1  ;;  %v4683_v2 = vld [vmem:[%s485_s19 + $0x38] sm:$0xff]   ;;  %v4684_v3 = vld [vmem:[%s485_s19 + $0x30] sm:$0xff]   ;;  %v4685_v4 = vld [vmem:[%s485_s19 + $0x28] sm:$0xff]   ;;  %v4207_v17 = vcombine.low %v758_v14, %v762_v15  ;;  %v4208_v18 = vcombine.high %v758_v14, %v762_v15 }
  0x1d   : > { %4593 = vmatpush3.bf16.msra.mxu0 %v4683_v2  ;;  %v4686_v5 = vld [vmem:[%s485_s19 + $0x20] sm:$0xff]   ;;  %v4687_v6 = vld [vmem:[%s485_s19 + $0x18] sm:$0xff]   ;;  %v4688_v7 = vld [vmem:[%s485_s19 + $0x10] sm:$0xff]  }
  0x1e   : > { %4594 = vmatprep.subr.bf16.mxu0 %v5270_v1  ;;  %v4689_v8 = vld [vmem:[%s485_s19 + $0x8] sm:$0xff]   ;;  %v4690_v9 = vld [vmem:[%s485_s19] sm:$0xff]   ;;  %s5196_s19 = sshll.u32 %s5274_s28, 4  ;;  %s5197_s19 = int_to_ptr.vmem [resolvable:$false] %s5196_s19 }
  0x1f   : > { %v4691_v10 = vld [vmem:[%s479_s29] sm:$0xff]   ;;  %4615 = vmatpush3.bf16.msra.mxu1 %v4693_v11  ;;  %v755_v23 = vld [vmem:[%s6803_s5 + $0x1a8] sm:$0xff]  ;;  %s469_s29 = sand.u32 1, %s5252_s26   ;;  %s5198_s0 = scalar_lea.vmem %s5197_s19, 32 }
  0x20   : > { %4616 = vmatprep.subr.bf16.mxu1 %v5270_v1  ;;  %v4202_v24 = vcombine.high %v751_v22, %v755_v23  ;;  %v4201_v25 = vcombine.low %v751_v22, %v755_v23  ;;  %v743_v26 = vld [vmem:[%s6803_s5 + $0x148] sm:$0xff]  ;;  %v4135_v42 = vld [vmem:[%s6800_s2] ss:$0 sm:$0xff]  ;;  %s470_s16 = scalar_lea.vmem [#allocation3], %s469_s29  ;;  %s4033_s22 = scalar_lea.sflag [#allocation4], %s469_s29 }
  0x21   : > { %4595 = vmatpush3.bf16.msra.mxu0 %v4684_v3  ;;  %v747_v27 = vld [vmem:[%s6803_s5 + $0x168] sm:$0xff]  ;;  %v750_v49 = vld [vmem:[%s6803_s5 + $0x180] sm:$0xff]  ;;  %s4045_s24 = sshll.u32 %s470_s16, 4  ;;  %s4046_s24 = int_to_ptr.vmem [resolvable:$true] %s4045_s24 }
  0x22   : > { %4596 = vmatprep.subr.bf16.mxu0 %v5270_v1  ;;  %v4194_v28 = vcombine.high %v743_v26, %v747_v27  ;;  %v4193_v29 = vcombine.low %v743_v26, %v747_v27  ;;  %v735_v30 = vld [vmem:[%s6803_s5 + $0x108] sm:$0xff]  ;;  %v754_v50 = vld [vmem:[%s6803_s5 + $0x1a0] sm:$0xff]  ;;  %v761_v26 = vld [vmem:[%s6803_s5 + $0x1d8] sm:$0xff]  ;;  %s5192_s1 = scalar_lea.vmem %s4046_s24, 16  ;;  %p5199_p1 = scmp.lt.s32.totalorder %s4046_s24, %s5197_s19 }
  0x23   : > { %4617 = vmatpush3.bf16.msra.mxu1 %v4694_v12  ;;  %v739_v31 = vld [vmem:[%s6803_s5 + $0x128] sm:$0xff]  ;;  %v4200_v54 = vcombine.high %v750_v49, %v754_v50  ;;  %v742_v55 = vld [vmem:[%s6803_s5 + $0x140] sm:$0xff]  ;;  %v4199_v57 = vcombine.low %v750_v49, %v754_v50  ;;  %v744_v49 = vld [vmem:[%s6803_s5 + $0x150] sm:$0xff]  ;;  %p5193_p12 = scmp.ne.s32.totalorder %s4046_s24, %s5192_s1  ;;  %p5200_p2 = scmp.lt.s32.totalorder %s5198_s0, %s5192_s1 }
  0x24   : > { %4618 = vmatprep.subr.bf16.mxu1 %v5270_v1  ;;  %v4186_v32 = vcombine.high %v735_v30, %v739_v31  ;;  %v4185_v33 = vcombine.low %v735_v30, %v739_v31  ;;  %v727_v34 = vld [vmem:[%s6803_s5 + $0xc8] sm:$0xff]  ;;  %v746_v56 = vld [vmem:[%s6803_s5 + $0x160] sm:$0xff]  ;;  %v748_v50 = vld [vmem:[%s6803_s5 + $0x170] sm:$0xff] }
  0x25   : > { %4597 = vmatpush3.bf16.msra.mxu0 %v4685_v4  ;;  %v731_v35 = vld [vmem:[%s6803_s5 + $0xe8] sm:$0xff]  ;;  %v4192_v58 = vcombine.high %v742_v55, %v746_v56  ;;  %v734_v59 = vld [vmem:[%s6803_s5 + $0x100] sm:$0xff]  ;;  %v4191_v61 = vcombine.low %v742_v55, %v746_v56  ;;  %v4196_v55 = vcombine.high %v744_v49, %v748_v50  ;;  %p5194_p13 = pnand %p5193_p12, %p5385_p4  ;;  %p5201_p3 = por %p5200_p2, %p5199_p1 }
  0x26   : > { %4598 = vmatprep.subr.bf16.mxu0 %v5270_v1  ;;  %v4178_v36 = vcombine.high %v727_v34, %v731_v35  ;;  %v4177_v37 = vcombine.low %v727_v34, %v731_v35  ;;  %v719_v38 = vld [vmem:[%s6803_s5 + $0x88] sm:$0xff]  ;;  %v738_v60 = vld [vmem:[%s6803_s5 + $0x120] sm:$0xff] }
  0x27   : > { %4619 = vmatpush3.bf16.msra.mxu1 %v4695_v13  ;;  %v723_v39 = vld [vmem:[%s6803_s5 + $0xa8] sm:$0xff]  ;;  %v4184_v62 = vcombine.high %v734_v59, %v738_v60  ;;  %v726_v63 = vld [vmem:[%s6803_s5 + $0xc0] sm:$0xff]  ;;  %p5195_p0 = pneg %p5194_p13 }
  0x28   : > { %1128 = vmatprep.subr.bf16.mxu1 %v4208_v18  ;;  %v4170_v40 = vcombine.high %v719_v38, %v723_v39  ;;  %v4169_v41 = vcombine.low %v719_v38, %v723_v39  ;;  %v730_v0 = vld [vmem:[%s6803_s5 + $0xe0] sm:$0xff]  ;;  %v715_v12 = vld [vmem:[%s6803_s5 + $0x68] sm:$0xff]  ;;  %v752_v39 = vld [vmem:[%s6803_s5 + $0x190] sm:$0xff] }
  0x29   : > { %4599 = vmatpush3.bf16.msra.mxu0 %v4686_v5  ;;  %v4176_v2 = vcombine.high %v726_v63, %v730_v0  ;;  %v718_v3 = vld [vmem:[%s6803_s5 + $0x80] sm:$0xff]  ;;  %v4175_v5 = vcombine.low %v726_v63, %v730_v0  ;;  %v703_v18 = vld [vmem:[%s6803_s5 + $0x8] sm:$0xff]  ;;  %p5202_p5 = pnand %p5201_p3, %p5195_p0 }
  0x2a   : > { %4600 = vmatprep.subr.bf16.mxu0 %v5270_v1  ;;  %v722_v4 = vld [vmem:[%s6803_s5 + $0xa0] sm:$0xff] }
  0x2b   : > { %v702_v16 = vld [vmem:[%s6803_s5] sm:$0xff] }
  0x2d   : > { %4601 = vmatpush3.bf16.msra.mxu0 %v4687_v6  ;;  %v4168_v6 = vcombine.high %v718_v3, %v722_v4 }
  0x2e   : > { %4602 = vmatprep.subr.bf16.mxu0 %v5270_v1 }
  0x31   : > { %4603 = vmatpush3.bf16.msra.mxu0 %v4688_v7  ;;  %v4167_v7 = vcombine.low %v718_v3, %v722_v4  ;;  %v729_v3 = vld [vmem:[%s6803_s5 + $0xd8] sm:$0xff] }
  0x32   : > { %4604 = vmatprep.subr.bf16.mxu0 %v5270_v1  ;;  %v733_v4 = vld [vmem:[%s6803_s5 + $0xf8] sm:$0xff] }
  0x35   : > { %4605 = vmatpush3.bf16.msra.mxu0 %v4689_v8  ;;  %v710_v8 = vld [vmem:[%s6803_s5 + $0x40] sm:$0xff] }
  0x36   : > { %4606 = vmatprep.subr.bf16.mxu0 %v5270_v1  ;;  %v4183_v1 = vcombine.low %v734_v59, %v738_v60  ;;  %v737_v59 = vld [vmem:[%s6803_s5 + $0x118] sm:$0xff] }
  0x37   : > { %v741_v60 = vld [vmem:[%s6803_s5 + $0x138] sm:$0xff] }
  0x38   : > { %v4190_v0 = vcombine.high %v737_v59, %v741_v60 }
  0x39   : > { %4607 = vmatpush3.bf16.msra.mxu0 %v4690_v9  ;;  %v714_v9 = vld [vmem:[%s6803_s5 + $0x60] sm:$0xff] }
  0x3a   : > { %1171 = vmatprep.subr.bf16.mxu0 %v4210_v21  ;;  %v4160_v11 = vcombine.high %v710_v8, %v714_v9  ;;  %v4159_v13 = vcombine.low %v710_v8, %v714_v9  ;;  %v4182_v8 = vcombine.high %v729_v3, %v733_v4  ;;  %v720_v9 = vld [vmem:[%s6803_s5 + $0x90] sm:$0xff] }
  0x3c   : > { %4609 = vmatmul.mubr.bf16.vlgmr.msra.gmra.mxu0 %v4691_v10  ;;  %v711_v10 = vld [vmem:[%s6803_s5 + $0x48] sm:$0xff] }
  0x3d   : > { %1172 = vmatpush1.bf16.msra.mxu0 %v4209_v20  ;;  %v4161_v14 = vcombine.low %v711_v10, %v715_v12  ;;  %v4162_v15 = vcombine.high %v711_v10, %v715_v12  ;;  %v707_v20 = vld [vmem:[%s6803_s5 + $0x28] sm:$0xff]  ;;  %v724_v10 = vld [vmem:[%s6803_s5 + $0xb0] sm:$0xff]  ;;  %v725_v12 = vld [vmem:[%s6803_s5 + $0xb8] sm:$0xff] }
  0x3e   : > { %1173 = vmatprep.subr.bf16.mxu0 %v4202_v24  ;;  %v4153_v22 = vcombine.low %v703_v18, %v707_v20  ;;  %v4154_v23 = vcombine.high %v703_v18, %v707_v20  ;;  %v760_v24 = vld [vmem:[%s6803_s5 + $0x1d0] sm:$0xff]  ;;  %v717_v20 = vld [vmem:[%s6803_s5 + $0x78] sm:$0xff] }
  0x3f   : > { %v716_v18 = vld [vmem:[%s6803_s5 + $0x70] sm:$0xff] }
  0x41   : > { %1174 = vmatpush1.bf16.msra.mxu0 %v4201_v25  ;;  %v764_v25 = vld [vmem:[%s6803_s5 + $0x1f0] sm:$0xff] }
  0x42   : > { %1175 = vmatprep.subr.bf16.mxu0 %v4194_v28  ;;  %v4212_v27 = vcombine.high %v760_v24, %v764_v25  ;;  %v765_v28 = vld [vmem:[%s6803_s5 + $0x1f8] sm:$0xff] }
  0x43   : > { %v4213_v30 = vcombine.low %v761_v26, %v765_v28  ;;  %v4214_v31 = vcombine.high %v761_v26, %v765_v28  ;;  %v708_v26 = vld [vmem:[%s6803_s5 + $0x30] sm:$0xff]  ;;  %v709_v28 = vld [vmem:[%s6803_s5 + $0x38] sm:$0xff] }
  0x45   : > { %1176 = vmatpush1.bf16.msra.mxu0 %v4193_v29  ;;  %v4211_v29 = vcombine.low %v760_v24, %v764_v25  ;;  %v704_v25 = vld [vmem:[%s6803_s5 + $0x10] sm:$0xff] }
  0x46   : > { %1177 = vmatprep.subr.bf16.mxu0 %v4186_v32  ;;  %v5272_v32 = vmov 0  }
  0x47   : > { %1203 = vmatprep.mubr.bf16.mxu0 %v5272_v32 }
  0x49   : > { %1178 = vmatpush1.bf16.msra.mxu0 %v4185_v33  ;;  %v4145_v33 = vld [vmem:[%s6802_s4] ss:$0 sm:$0xff] }
  0x4a   : > { %1179 = vmatprep.subr.bf16.mxu0 %v4178_v36 }
  0x4d   : > { %1180 = vmatpush1.bf16.msra.mxu0 %v4177_v37 }
  0x4e   : > { %1181 = vmatprep.subr.bf16.mxu0 %v4170_v40 }
  0x51   : > { %1182 = vmatpush1.bf16.msra.mxu0 %v4169_v41  ;;  %v756_v41 = vld [vmem:[%s6803_s5 + $0x1b0] sm:$0xff] }
  0x52   : > { %1183 = vmatprep.subr.bf16.mxu0 %v4162_v15  ;;  %v4172_v15 = vcombine.high %v720_v9, %v724_v10 }
  0x55   : > { %1184 = vmatpush1.bf16.msra.mxu0 %v4161_v14  ;;  %v4181_v14 = vcombine.low %v729_v3, %v733_v4  ;;  %v4746_v3 = vld [vmem:[%s6805_s7 + $0x1e4] ss:$16 sps:$4 sm:$0xff]  }
  0x56   : > { %1185 = vmatprep.subr.bf16.mxu0 %v4154_v23  ;;  %v4749_v4 = vld [vmem:[%s6805_s7 + $0x3e4] ss:$16 sps:$4 sm:$0xff]  }
  0x59   : > { %1186 = vmatpush1.bf16.msra.mxu0 %v4153_v22 }
  0x5a   : > { %1257 = vmatprep.subr.bf16.mxu0 %v4214_v31  ;;  %v4156_v31 = vcombine.high %v704_v25, %v708_v26 }
  0xfc   : > { %v605_v43 = vpop.f32.mrf.mxu0 }
  0xfd   : > { %v606_v45 = vadd.f32 %v4135_v42, %v605_v43  ;;  %v757_v43 = vld [vmem:[%s6803_s5 + $0x1b8] sm:$0xff] }
  0xfe   : > { %v4610_v44 = vpop.f32.mrf.mxu0 }
  0xff   : > { %v612_v51 = vmax.f32 %v606_v45, 0.0 }
 0x100   : > { %v608_v46 = vpop.f32.mrf.mxu0 }
 0x101   : > { %v609_v47 = vadd.f32 %v4135_v42, %v608_v46  ;;  %v753_v42 = vld [vmem:[%s6803_s5 + $0x198] sm:$0xff] }
 0x102   : > { %v4611_v48 = vpop.f32.mrf.mxu0 }
 0x103   : > { %v613_v52 = vmax.f32 %v609_v47, 0.0  ;;  %v4204_v47 = vcombine.high %v752_v39, %v756_v41  ;;  %v4206_v48 = vcombine.high %v753_v42, %v757_v43 }
 0x105   : > { %v614_v53 = vpack.c.bf16 %v613_v52, %v612_v51  ;;  %v745_v51 = vld [vmem:[%s6803_s5 + $0x158] sm:$0xff] }
 0x106   : > { %v749_v52 = vld [vmem:[%s6803_s5 + $0x178] sm:$0xff] }
 0x107   : > { %4621 = vmatmul.mubr.msk.bf16.vlgmr.msra.gmra.mxu1 %vm654_vm1, %v614_v53  ;;  %v4203_v53 = vcombine.low %v752_v39, %v756_v41  ;;  %v4198_v56 = vcombine.high %v745_v51, %v749_v52  ;;  %v4704_v39 = vld [vmem:[%s6805_s7 + $0xc4] ss:$16 sps:$4 sm:$0xff]   ;;  %v4702_v41 = vld [vmem:[%s6805_s7 + $0xc0] ss:$16 sps:$4 sm:$0xff]  }
 0x108   : > { %1129 = vmatpush1.bf16.msra.mxu1 %v4207_v17  ;;  %v706_v17 = vld [vmem:[%s6803_s5 + $0x20] sm:$0xff]  ;;  %1160 = vmatprep.mubr.bf16.mxu1 %v5272_v32 }
 0x109   : > { %1130 = vmatprep.subr.bf16.mxu1 %v4200_v54  ;;  %v4152_v19 = vcombine.high %v702_v16, %v706_v17  ;;  %v4151_v21 = vcombine.low %v702_v16, %v706_v17  ;;  %v4205_v54 = vcombine.low %v753_v42, %v757_v43  ;;  %v712_v17 = vld [vmem:[%s6803_s5 + $0x50] sm:$0xff] }
 0x10a   : > { %v4164_v23 = vcombine.high %v712_v17, %v716_v18  ;;  %v4705_v42 = vld [vmem:[%s6805_s7 + $0x2c0] ss:$16 sps:$4 sm:$0xff]   ;;  %v4710_v43 = vld [vmem:[%s6805_s7 + $0xa4] ss:$16 sps:$4 sm:$0xff]  }
 0x10c   : > { %1131 = vmatpush1.bf16.msra.mxu1 %v4199_v57  ;;  %v736_v57 = vld [vmem:[%s6803_s5 + $0x110] sm:$0xff] }
 0x10d   : > { %1132 = vmatprep.subr.bf16.mxu1 %v4192_v58  ;;  %v740_v58 = vld [vmem:[%s6803_s5 + $0x130] sm:$0xff] }
 0x10e   : > { %v4188_v63 = vcombine.high %v736_v57, %v740_v58 }
 0x110   : > { %1133 = vmatpush1.bf16.msra.mxu1 %v4191_v61  ;;  %v4195_v61 = vcombine.low %v744_v49, %v748_v50  ;;  %v4714_v49 = vld [vmem:[%s6805_s7 + $0x80] ss:$16 sps:$4 sm:$0xff]  }
 0x111   : > { %1134 = vmatprep.subr.bf16.mxu1 %v4184_v62  ;;  %v4197_v62 = vcombine.low %v745_v51, %v749_v52  ;;  %v4717_v50 = vld [vmem:[%s6805_s7 + $0x280] ss:$16 sps:$4 sm:$0xff]   ;;  %v4722_v51 = vld [vmem:[%s6805_s7 + $0x64] ss:$16 sps:$4 sm:$0xff]  }
 0x112   : > { %v4725_v52 = vld [vmem:[%s6805_s7 + $0x264] ss:$16 sps:$4 sm:$0xff]  }
 0x114   : > { %1135 = vmatpush1.bf16.msra.mxu1 %v4183_v1  ;;  %v728_v1 = vld [vmem:[%s6803_s5 + $0xd0] sm:$0xff] }
 0x115   : > { %1136 = vmatprep.subr.bf16.mxu1 %v4176_v2  ;;  %v732_v2 = vld [vmem:[%s6803_s5 + $0xf0] sm:$0xff] }
 0x118   : > { %1137 = vmatpush1.bf16.msra.mxu1 %v4175_v5  ;;  %v4187_v5 = vcombine.low %v736_v57, %v740_v58  ;;  %v4726_v57 = vld [vmem:[%s6805_s7 + $0x40] ss:$16 sps:$4 sm:$0xff]  }
 0x119   : > { %1138 = vmatprep.subr.bf16.mxu1 %v4168_v6  ;;  %v4189_v6 = vcombine.low %v737_v59, %v741_v60  ;;  %v4729_v58 = vld [vmem:[%s6805_s7 + $0x240] ss:$16 sps:$4 sm:$0xff]   ;;  %v4734_v59 = vld [vmem:[%s6805_s7 + $0x24] ss:$16 sps:$4 sm:$0xff]  }
 0x11a   : > { %v4737_v60 = vld [vmem:[%s6805_s7 + $0x224] ss:$16 sps:$4 sm:$0xff]  }
 0x11c   : > { %1139 = vmatpush1.bf16.msra.mxu1 %v4167_v7  ;;  %v4180_v7 = vcombine.high %v728_v1, %v732_v2 }
 0x11d   : > { %1140 = vmatprep.subr.bf16.mxu1 %v4160_v11  ;;  %v721_v11 = vld [vmem:[%s6803_s5 + $0x98] sm:$0xff] }
 0x11e   : > { %v4174_v16 = vcombine.high %v721_v11, %v725_v12  ;;  %v4173_v22 = vcombine.low %v721_v11, %v725_v12  ;;  %v4758_v11 = vld [vmem:[%s6805_s7 + $0x1a4] ss:$16 sps:$4 sm:$0xff]  }
 0x11f   : > { %v4761_v12 = vld [vmem:[%s6805_s7 + $0x3a4] ss:$16 sps:$4 sm:$0xff]  }
 0x120   : > { %1141 = vmatpush1.bf16.msra.mxu1 %v4159_v13  ;;  %v4179_v13 = vcombine.low %v728_v1, %v732_v2  ;;  %v4738_v1 = vld [vmem:[%s6805_s7] ss:$16 sps:$4 sm:$0xff]  }
 0x121   : > { %1142 = vmatprep.subr.bf16.mxu1 %v4152_v19  ;;  %v713_v19 = vld [vmem:[%s6803_s5 + $0x58] sm:$0xff]  ;;  %v4741_v2 = vld [vmem:[%s6805_s7 + $0x200] ss:$16 sps:$4 sm:$0xff]  }
 0x122   : > { %v4166_v24 = vcombine.high %v713_v19, %v717_v20 }
 0x124   : > { %1143 = vmatpush1.bf16.msra.mxu1 %v4151_v21  ;;  %v4171_v21 = vcombine.low %v720_v9, %v724_v10  ;;  %v4750_v9 = vld [vmem:[%s6805_s7 + $0x1c0] ss:$16 sps:$4 sm:$0xff]  }
 0x125   : > { %1214 = vmatprep.subr.bf16.mxu1 %v4212_v27  ;;  %v705_v27 = vld [vmem:[%s6803_s5 + $0x18] sm:$0xff]  ;;  %v4753_v10 = vld [vmem:[%s6805_s7 + $0x3c0] ss:$16 sps:$4 sm:$0xff]  }
 0x1c7   : > { %v692_v34 = vpop.f32.mrf.mxu1 }
 0x1c8   : > { %v693_v36 = vadd.f32 %v4145_v33, %v692_v34  ;;  %v4157_v34 = vcombine.low %v705_v27, %v709_v28 }
 0x1c9   : > { %v4622_v35 = vpop.f32.mrf.mxu1 }
 0x1ca   : > { %v699_v44 = vmax.f32 %v693_v36, 0.0  ;;  %v4698_v35 = vld [vmem:[%s6805_s7 + $0xe4] ss:$16 sps:$4 sm:$0xff]  }
 0x1cb   : > { %v695_v37 = vpop.f32.mrf.mxu1  ;;  %v4701_v36 = vld [vmem:[%s6805_s7 + $0x2e4] ss:$16 sps:$4 sm:$0xff]  }
 0x1cc   : > { %v696_v38 = vadd.f32 %v4145_v33, %v695_v37  ;;  %v4155_v33 = vcombine.low %v704_v25, %v708_v26  ;;  %v4696_v37 = vld [vmem:[%s6805_s7 + $0xe0] ss:$16 sps:$4 sm:$0xff]  }
 0x1cd   : > { %v4623_v40 = vpop.f32.mrf.mxu1  ;;  %v4774_v25 = vld [vmem:[%s6805_s7 + $0x140] ss:$16 sps:$4 sm:$0xff]  }
 0x1ce   : > { %v700_v45 = vmax.f32 %v696_v38, 0.0  ;;  %v4699_v38 = vld [vmem:[%s6805_s7 + $0x2e0] ss:$16 sps:$4 sm:$0xff]   ;;  %v4707_v40 = vld [vmem:[%s6805_s7 + $0x2c4] ss:$16 sps:$4 sm:$0xff]  }
 0x1cf   : > { %v4777_v26 = vld [vmem:[%s6805_s7 + $0x340] ss:$16 sps:$4 sm:$0xff]  }
 0x1d0   : > { %v5546_v46 = vpack.c.bf16 %v700_v45, %v699_v44  ;;  %v4713_v44 = vld [vmem:[%s6805_s7 + $0x2a4] ss:$16 sps:$4 sm:$0xff]   ;;  %v4708_v45 = vld [vmem:[%s6805_s7 + $0xa0] ss:$16 sps:$4 sm:$0xff]  }
 0x1d2   : > { %1161 = vmatmul.mubr.bf16.vlgmr.msra.gmra.mxu1 %v5546_v46  ;;  %1204 = vmatmul.mubr.bf16.vlgmr.msra.gmra.mxu0 %v5546_v46 }
 0x1d3   : > { %1215 = vmatpush1.bf16.msra.mxu1 %v4211_v29  ;;  %1258 = vmatpush1.bf16.msra.mxu0 %v4213_v30  ;;  %v4163_v29 = vcombine.low %v712_v17, %v716_v18  ;;  %v4165_v30 = vcombine.low %v713_v19, %v717_v20  ;;  %v4762_v17 = vld [vmem:[%s6805_s7 + $0x180] ss:$16 sps:$4 sm:$0xff]   ;;  %v4770_v19 = vld [vmem:[%s6805_s7 + $0x164] ss:$16 sps:$4 sm:$0xff]  }
 0x1d4   : > { %1216 = vmatprep.subr.bf16.mxu1 %v4204_v47  ;;  %1259 = vmatprep.subr.bf16.mxu0 %v4206_v48  ;;  %v4716_v47 = vld [vmem:[%s6805_s7 + $0x84] ss:$16 sps:$4 sm:$0xff]   ;;  %v4765_v18 = vld [vmem:[%s6805_s7 + $0x380] ss:$16 sps:$4 sm:$0xff]  }
 0x1d5   : > { %1246 = vmatprep.mubr.bf16.mxu1 %v5272_v32  ;;  %1289 = vmatprep.mubr.bf16.mxu0 %v5272_v32  ;;  %v4158_v32 = vcombine.high %v705_v27, %v709_v28  ;;  %v4719_v48 = vld [vmem:[%s6805_s7 + $0x284] ss:$16 sps:$4 sm:$0xff]  }
 0x1d6   : > { %v4773_v20 = vld [vmem:[%s6805_s7 + $0x364] ss:$16 sps:$4 sm:$0xff]  }
 0x1d7   : > { %1217 = vmatpush1.bf16.msra.mxu1 %v4203_v53  ;;  %1260 = vmatpush1.bf16.msra.mxu0 %v4205_v54  ;;  %v4720_v53 = vld [vmem:[%s6805_s7 + $0x60] ss:$16 sps:$4 sm:$0xff]   ;;  %v4782_v27 = vld [vmem:[%s6805_s7 + $0x124] ss:$16 sps:$4 sm:$0xff]  }
 0x1d8   : > { %1218 = vmatprep.subr.bf16.mxu1 %v4196_v55  ;;  %1261 = vmatprep.subr.bf16.mxu0 %v4198_v56  ;;  %v4723_v54 = vld [vmem:[%s6805_s7 + $0x260] ss:$16 sps:$4 sm:$0xff]   ;;  %v4728_v55 = vld [vmem:[%s6805_s7 + $0x44] ss:$16 sps:$4 sm:$0xff]  }
 0x1d9   : > { %v4731_v56 = vld [vmem:[%s6805_s7 + $0x244] ss:$16 sps:$4 sm:$0xff]  }
 0x1da   : > { %v4785_v28 = vld [vmem:[%s6805_s7 + $0x324] ss:$16 sps:$4 sm:$0xff]  }
 0x1db   : > { %1219 = vmatpush1.bf16.msra.mxu1 %v4195_v61  ;;  %1262 = vmatpush1.bf16.msra.mxu0 %v4197_v62  ;;  %v4732_v61 = vld [vmem:[%s6805_s7 + $0x20] ss:$16 sps:$4 sm:$0xff]  }
 0x1dc   : > { %1220 = vmatprep.subr.bf16.mxu1 %v4188_v63  ;;  %1263 = vmatprep.subr.bf16.mxu0 %v4190_v0  ;;  %v4735_v62 = vld [vmem:[%s6805_s7 + $0x220] ss:$16 sps:$4 sm:$0xff]   ;;  %v4740_v63 = vld [vmem:[%s6805_s7 + $0x4] ss:$16 sps:$4 sm:$0xff]  }
 0x1dd   : > { %v4743_v0 = vld [vmem:[%s6805_s7 + $0x204] ss:$16 sps:$4 sm:$0xff]  }
 0x1df   : > { %1221 = vmatpush1.bf16.msra.mxu1 %v4187_v5  ;;  %1264 = vmatpush1.bf16.msra.mxu0 %v4189_v6  ;;  %v4744_v5 = vld [vmem:[%s6805_s7 + $0x1e0] ss:$16 sps:$4 sm:$0xff]  }
 0x1e0   : > { %1222 = vmatprep.subr.bf16.mxu1 %v4180_v7  ;;  %1265 = vmatprep.subr.bf16.mxu0 %v4182_v8  ;;  %v4747_v6 = vld [vmem:[%s6805_s7 + $0x3e0] ss:$16 sps:$4 sm:$0xff]   ;;  %v4752_v7 = vld [vmem:[%s6805_s7 + $0x1c4] ss:$16 sps:$4 sm:$0xff]  }
 0x1e1   : > { %v4755_v8 = vld [vmem:[%s6805_s7 + $0x3c4] ss:$16 sps:$4 sm:$0xff]  }
 0x1e3   : > { %1223 = vmatpush1.bf16.msra.mxu1 %v4179_v13  ;;  %1266 = vmatpush1.bf16.msra.mxu0 %v4181_v14  ;;  %v4756_v13 = vld [vmem:[%s6805_s7 + $0x1a0] ss:$16 sps:$4 sm:$0xff]  }
 0x1e4   : > { %1224 = vmatprep.subr.bf16.mxu1 %v4172_v15  ;;  %1267 = vmatprep.subr.bf16.mxu0 %v4174_v16  ;;  %v4759_v14 = vld [vmem:[%s6805_s7 + $0x3a0] ss:$16 sps:$4 sm:$0xff]   ;;  %v4764_v15 = vld [vmem:[%s6805_s7 + $0x184] ss:$16 sps:$4 sm:$0xff]  }
 0x1e5   : > { %v4767_v16 = vld [vmem:[%s6805_s7 + $0x384] ss:$16 sps:$4 sm:$0xff]  }
 0x1e7   : > { %1225 = vmatpush1.bf16.msra.mxu1 %v4171_v21  ;;  %1268 = vmatpush1.bf16.msra.mxu0 %v4173_v22  ;;  %v4768_v21 = vld [vmem:[%s6805_s7 + $0x160] ss:$16 sps:$4 sm:$0xff]  }
 0x1e8   : > { %1226 = vmatprep.subr.bf16.mxu1 %v4164_v23  ;;  %1269 = vmatprep.subr.bf16.mxu0 %v4166_v24  ;;  %v4771_v22 = vld [vmem:[%s6805_s7 + $0x360] ss:$16 sps:$4 sm:$0xff]   ;;  %v4776_v23 = vld [vmem:[%s6805_s7 + $0x144] ss:$16 sps:$4 sm:$0xff]  }
 0x1e9   : > { %v4779_v24 = vld [vmem:[%s6805_s7 + $0x344] ss:$16 sps:$4 sm:$0xff]  }
 0x1eb   : > { %1227 = vmatpush1.bf16.msra.mxu1 %v4163_v29  ;;  %1270 = vmatpush1.bf16.msra.mxu0 %v4165_v30  ;;  %v4780_v29 = vld [vmem:[%s6805_s7 + $0x120] ss:$16 sps:$4 sm:$0xff]  }
 0x1ec   : > { %1228 = vmatprep.subr.bf16.mxu1 %v4156_v31  ;;  %1271 = vmatprep.subr.bf16.mxu0 %v4158_v32  ;;  %v4783_v30 = vld [vmem:[%s6805_s7 + $0x320] ss:$16 sps:$4 sm:$0xff]   ;;  %v4788_v32 = vld [vmem:[%s6805_s7 + $0x104] ss:$16 sps:$4 sm:$0xff]  }
 0x1ed   : > { %v4786_v31 = vld [vmem:[%s6805_s7 + $0x100] ss:$16 sps:$4 sm:$0xff]  }
 0x1ef   : > { %1229 = vmatpush1.bf16.msra.mxu1 %v4155_v33  ;;  %1272 = vmatpush1.bf16.msra.mxu0 %v4157_v34  ;;  %v4789_v33 = vld [vmem:[%s6805_s7 + $0x300] ss:$16 sps:$4 sm:$0xff]   ;;  %v4791_v34 = vld [vmem:[%s6805_s7 + $0x304] ss:$16 sps:$4 sm:$0xff]  }
 0x1f0   : > { %3044 = vmatprep.subr.bf16.mxu1 %v4698_v35  ;;  %3085 = vmatprep.subr.bf16.mxu0 %v4701_v36  ;;  %v4794_v35 = vld [vmem:[%s6805_s7 + $0x4e4] ss:$16 sps:$4 sm:$0xff]  }
 0x1f1   : > { %v4797_v36 = vld [vmem:[%s6805_s7 + $0x6e4] ss:$16 sps:$4 sm:$0xff]  }
 0x1f2   : > { %1247 = vmatmul.mubr.bf16.vlgmr.msra.gmra.mxu1 %v5546_v46  ;;  %1290 = vmatmul.mubr.bf16.vlgmr.msra.gmra.mxu0 %v5546_v46  ;;  %v4711_v46 = vld [vmem:[%s6805_s7 + $0x2a0] ss:$16 sps:$4 sm:$0xff]  }
 0x1f3   : > { %3045 = vmatpush1.bf16.msra.mxu1 %v4696_v37  ;;  %3086 = vmatpush1.bf16.msra.mxu0 %v4699_v38 }
 0x1f4   : > { %3046 = vmatprep.subr.bf16.mxu1 %v4704_v39  ;;  %3087 = vmatprep.subr.bf16.mxu0 %v4707_v40  ;;  %v768_v39 = vlaneseq }
 0x1f7   : > { %3047 = vmatpush1.bf16.msra.mxu1 %v4702_v41  ;;  %3088 = vmatpush1.bf16.msra.mxu0 %v4705_v42  ;;  %v5822_v42 = vshrl.u32 %v768_v39, 7 }
 0x1f8   : > { %3048 = vmatprep.subr.bf16.mxu1 %v4710_v43  ;;  %3089 = vmatprep.subr.bf16.mxu0 %v4713_v44 }
 0x1fb   : > { %3049 = vmatpush1.bf16.msra.mxu1 %v4708_v45  ;;  %3090 = vmatpush1.bf16.msra.mxu0 %v4711_v46  ;;  %v5825_v45 = vsub.s32 1, %v5822_v42  ;;  %v5828_v46 = vsub.s32 3, %v5822_v42 }
 0x1fc   : > { %3050 = vmatprep.subr.bf16.mxu1 %v4716_v47  ;;  %3091 = vmatprep.subr.bf16.mxu0 %v4719_v48  ;;  %v5831_v47 = vsub.s32 0, %v5822_v42  ;;  %v5834_v48 = vsub.s32 2, %v5822_v42 }
 0x1ff   : > { %3051 = vmatpush1.bf16.msra.mxu1 %v4714_v49  ;;  %3092 = vmatpush1.bf16.msra.mxu0 %v4717_v50  ;;  %v766_v49 = vld [vmem:[%s6804_s6] sm:$0xff] }
 0x200   : > { %3052 = vmatprep.subr.bf16.mxu1 %v4722_v51  ;;  %3093 = vmatprep.subr.bf16.mxu0 %v4725_v52  ;;  %v775_v52 = vrot.slane %v766_v49, %v5825_v45 }
 0x203   : > { %3053 = vmatpush1.bf16.msra.mxu1 %v4720_v53  ;;  %3094 = vmatpush1.bf16.msra.mxu0 %v4723_v54  ;;  %v783_v53 = vrot.slane %v766_v49, %v5828_v46  ;;  %v771_v54 = vrot.slane %v766_v49, %v5831_v47 }
 0x204   : > { %3054 = vmatprep.subr.bf16.mxu1 %v4728_v55  ;;  %3095 = vmatprep.subr.bf16.mxu0 %v4731_v56  ;;  %v779_v55 = vrot.slane %v766_v49, %v5834_v48 }
 0x207   : > { %3055 = vmatpush1.bf16.msra.mxu1 %v4726_v57  ;;  %3096 = vmatpush1.bf16.msra.mxu0 %v4729_v58 }
 0x208   : > { %3056 = vmatprep.subr.bf16.mxu1 %v4734_v59  ;;  %3097 = vmatprep.subr.bf16.mxu0 %v4737_v60 }
 0x20b   : > { %3057 = vmatpush1.bf16.msra.mxu1 %v4732_v61  ;;  %3098 = vmatpush1.bf16.msra.mxu0 %v4735_v62 }
 0x20c   : > { %3058 = vmatprep.subr.bf16.mxu1 %v4740_v63  ;;  %3099 = vmatprep.subr.bf16.mxu0 %v4743_v0 }
 0x20f   : > { %3059 = vmatpush1.bf16.msra.mxu1 %v4738_v1  ;;  %3100 = vmatpush1.bf16.msra.mxu0 %v4741_v2 }
 0x210   : > { %3060 = vmatprep.subr.bf16.mxu1 %v4746_v3  ;;  %3101 = vmatprep.subr.bf16.mxu0 %v4749_v4 }
 0x213   : > { %3061 = vmatpush2.bf16.msra.mxu1 %v4744_v5  ;;  %3102 = vmatpush2.bf16.msra.mxu0 %v4747_v6 }
 0x214   : > { %3062 = vmatprep.subr.bf16.mxu1 %v4752_v7  ;;  %3103 = vmatprep.subr.bf16.mxu0 %v4755_v8 }
 0x217   : > { %3063 = vmatpush2.bf16.msra.mxu1 %v4750_v9  ;;  %3104 = vmatpush2.bf16.msra.mxu0 %v4753_v10 }
 0x218   : > { %3064 = vmatprep.subr.bf16.mxu1 %v4758_v11  ;;  %3105 = vmatprep.subr.bf16.mxu0 %v4761_v12 }
 0x21b   : > { %3065 = vmatpush2.bf16.msra.mxu1 %v4756_v13  ;;  %3106 = vmatpush2.bf16.msra.mxu0 %v4759_v14  ;;  %v786_v14 = vsub.s32 4, %v5822_v42 }
 0x21c   : > { %3066 = vmatprep.subr.bf16.mxu1 %v4764_v15  ;;  %3107 = vmatprep.subr.bf16.mxu0 %v4767_v16  ;;  %v794_v15 = vsub.s32 6, %v5822_v42 }
 0x21f   : > { %3067 = vmatpush2.bf16.msra.mxu1 %v4762_v17  ;;  %3108 = vmatpush2.bf16.msra.mxu0 %v4765_v18  ;;  %v790_v18 = vsub.s32 5, %v5822_v42 }
 0x220   : > { %3068 = vmatprep.subr.bf16.mxu1 %v4770_v19  ;;  %3109 = vmatprep.subr.bf16.mxu0 %v4773_v20  ;;  %v798_v19 = vsub.s32 7, %v5822_v42 }
 0x223   : > { %3069 = vmatpush2.bf16.msra.mxu1 %v4768_v21  ;;  %3110 = vmatpush2.bf16.msra.mxu0 %v4771_v22  ;;  %v787_v22 = vrot.slane %v766_v49, %v786_v14 }
 0x224   : > { %3070 = vmatprep.subr.bf16.mxu1 %v4776_v23  ;;  %3111 = vmatprep.subr.bf16.mxu0 %v4779_v24  ;;  %v795_v23 = vrot.slane %v766_v49, %v794_v15 }
 0x227   : > { %3071 = vmatpush2.bf16.msra.mxu1 %v4774_v25  ;;  %3112 = vmatpush2.bf16.msra.mxu0 %v4777_v26 }
 0x228   : > { %3072 = vmatprep.subr.bf16.mxu1 %v4782_v27  ;;  %3113 = vmatprep.subr.bf16.mxu0 %v4785_v28  ;;  %v791_v28 = vrot.slane %v766_v49, %v790_v18 }
 0x22b   : > { %3073 = vmatpush2.bf16.msra.mxu1 %v4780_v29  ;;  %3114 = vmatpush2.bf16.msra.mxu0 %v4783_v30  ;;  %v799_v29 = vrot.slane %v766_v49, %v798_v19 }
 0x22c   : > { %3074 = vmatprep.subr.bf16.mxu1 %v4788_v32  ;;  %3115 = vmatprep.subr.bf16.mxu0 %v4791_v34 }
 0x22f   : > { %3075 = vmatpush2.bf16.msra.mxu1 %v4786_v31  ;;  %3116 = vmatpush2.bf16.msra.mxu0 %v4789_v33 }
 0x230   : > { %3126 = vmatprep.subr.bf16.mxu1 %v4794_v35  ;;  %3167 = vmatprep.subr.bf16.mxu0 %v4797_v36 }
 0x292   : > { %v1162_v37 = vpop.f32.mrf.mxu1  ;;  %v1205_v38 = vpop.f32.mrf.mxu0 }
 0x293   : > { %v1163_v62 = vadd.f32 %v1162_v37, %v771_v54  ;;  %v1206_v63 = vadd.f32 %v1205_v38, %v779_v55 }
 0x294   : > { %v1164_v40 = vpop.f32.mrf.mxu1  ;;  %v1207_v41 = vpop.f32.mrf.mxu0 }
 0x295   : > { %v1165_v58 = vadd.f32 %v1164_v40, %v775_v52  ;;  %v1208_v59 = vadd.f32 %v1207_v41, %v783_v53  ;;  %v1300_v6 = vmax.f32 %v1163_v62, 0.0  ;;  %v1302_v7 = vmax.f32 %v1206_v63, 0.0 }
 0x296   : > { %v1166_v43 = vpop.f32.mrf.mxu1  ;;  %v1209_v44 = vpop.f32.mrf.mxu0 }
 0x297   : > { %v1167_v60 = vadd.f32 %v1166_v43, %v771_v54  ;;  %v1210_v61 = vadd.f32 %v1209_v44, %v779_v55  ;;  %v1301_v2 = vmax.f32 %v1165_v58, 0.0  ;;  %v1303_v3 = vmax.f32 %v1208_v59, 0.0 }
 0x298   : > { %v1168_v50 = vpop.f32.mrf.mxu1  ;;  %v1211_v51 = vpop.f32.mrf.mxu0 }
 0x299   : > { %v1169_v56 = vadd.f32 %v1168_v50, %v775_v52  ;;  %v1212_v57 = vadd.f32 %v1211_v51, %v783_v53  ;;  %v1308_v4 = vmax.f32 %v1167_v60, 0.0  ;;  %v1310_v5 = vmax.f32 %v1210_v61, 0.0 }
 0x29b   : > { %v1309_v0 = vmax.f32 %v1169_v56, 0.0  ;;  %v1311_v1 = vmax.f32 %v1212_v57, 0.0  ;;  %v1317_v10 = vmax.f32 %v1300_v6, %v1308_v4  ;;  %v1331_v11 = vmax.f32 %v1302_v7, %v1310_v5 }
 0x29c   : > { %v5273_v4 = vmov 1966171168  }
 0x29d   : > { %v1324_v8 = vmax.f32 %v1301_v2, %v1309_v0  ;;  %v1338_v9 = vmax.f32 %v1303_v3, %v1311_v1  ;;  %v1318_v16 = vrot.slane %v1317_v10, 4  ;;  %v1332_v17 = vrot.slane %v1331_v11, 4 }
 0x29e   : > { %v1386_v5 = vunpack.c.l.s4 %v5273_v4 }
 0x29f   : > { %v1325_v12 = vrot.slane %v1324_v8, 4  ;;  %v1339_v13 = vrot.slane %v1338_v9, 4  ;;  %v1319_v24 = vmax.f32 %v1317_v10, %v1318_v16  ;;  %v1333_v25 = vmax.f32 %v1331_v11, %v1332_v17 }
 0x2a1   : > { %v1326_v20 = vmax.f32 %v1324_v8, %v1325_v12  ;;  %v1340_v21 = vmax.f32 %v1338_v9, %v1339_v13  ;;  %v1320_v36 = vrot.slane %v1319_v24, 2  ;;  %v1334_v37 = vrot.slane %v1333_v25, 2 }
 0x2a3   : > { %v1327_v30 = vrot.slane %v1326_v20, 2  ;;  %v1341_v31 = vrot.slane %v1340_v21, 2  ;;  %v1321_v59 = vmax.f32 %v1319_v24, %v1320_v36  ;;  %v1335_v60 = vmax.f32 %v1333_v25, %v1334_v37 }
 0x2a5   : > { %v1328_v50 = vmax.f32 %v1326_v20, %v1327_v30  ;;  %v1342_v51 = vmax.f32 %v1340_v21, %v1341_v31  ;;  %v1322_v11 = vrot.slane %v1321_v59, 1  ;;  %v1336_v12 = vrot.slane %v1335_v60, 1 }
 0x2a7   : > { %v1329_v3 = vrot.slane %v1328_v50, 1  ;;  %v1343_v6 = vrot.slane %v1342_v51, 1 }
 0x2a9   : > { %v1330_v21 = vmax.f32 %v1328_v50, %v1329_v3 }
 0x2b2   : > { %v1248_v26 = vpop.f32.mrf.mxu1  ;;  %v1291_v27 = vpop.f32.mrf.mxu0 }
 0x2b3   : > { %v1249_v32 = vadd.f32 %v1248_v26, %v787_v22  ;;  %v1292_v33 = vadd.f32 %v1291_v27, %v795_v23 }
 0x2b4   : > { %v1250_v34 = vpop.f32.mrf.mxu1  ;;  %v1293_v35 = vpop.f32.mrf.mxu0 }
 0x2b5   : > { %v1251_v38 = vadd.f32 %v1250_v34, %v791_v28  ;;  %v1294_v39 = vadd.f32 %v1293_v35, %v799_v29  ;;  %v1304_v52 = vmax.f32 %v1249_v32, 0.0  ;;  %v1306_v53 = vmax.f32 %v1292_v33, 0.0 }
 0x2b6   : > { %v1252_v40 = vpop.f32.mrf.mxu1  ;;  %v1295_v41 = vpop.f32.mrf.mxu0 }
 0x2b7   : > { %v1253_v43 = vadd.f32 %v1252_v40, %v787_v22  ;;  %v1296_v44 = vadd.f32 %v1295_v41, %v795_v23  ;;  %v1305_v61 = vmax.f32 %v1251_v38, 0.0  ;;  %v1307_v62 = vmax.f32 %v1294_v39, 0.0 }
 0x2b8   : > { %v1254_v54 = vpop.f32.mrf.mxu1  ;;  %v1297_v49 = vpop.f32.mrf.mxu0  ;;  %v1387_v22 = vunpack.c.0.s8 %v1386_v5  ;;  %v1344_v23 = vmax.f32 %v1342_v51, %v1343_v6 }
 0x2b9   : > { %v1312_v55 = vmax.f32 %v1253_v43, 0.0  ;;  %v1314_v56 = vmax.f32 %v1296_v44, 0.0  ;;  %v1255_v57 = vadd.f32 %v1254_v54, %v791_v28  ;;  %v1298_v58 = vadd.f32 %v1297_v49, %v799_v29 }
 0x2ba   : > { %v1323_v28 = vmax.f32 %v1321_v59, %v1322_v11  ;;  %v1337_v29 = vmax.f32 %v1335_v60, %v1336_v12  ;;  %v1390_v35 = vsub.s32 %v1387_v22, %v5822_v42  ;;  %v4807_v22 = vld [vmem:[%s6805_s7 + $0x6a0] ss:$16 sps:$4 sm:$0xff]   ;;  %v4891_v42 = vld [vmem:[%s6805_s7 + $0x2e8] ss:$16 sps:$4 sm:$0xff]  }
 0x2bb   : > { %v1345_v63 = vmax.f32 %v1304_v52, %v1312_v55  ;;  %v1359_v0 = vmax.f32 %v1306_v53, %v1314_v56  ;;  %v1313_v1 = vmax.f32 %v1255_v57, 0.0  ;;  %v1315_v2 = vmax.f32 %v1298_v58, 0.0 }
 0x2bc   : > { %v1381_v34 = vcombine.low %v1323_v28, %v1330_v21  ;;  %v1382_v36 = vcombine.low %v1337_v29, %v1344_v23  ;;  %v4804_v21 = vld [vmem:[%s6805_s7 + $0x4a0] ss:$16 sps:$4 sm:$0xff]   ;;  %v4812_v23 = vld [vmem:[%s6805_s7 + $0x484] ss:$16 sps:$4 sm:$0xff]  }
 0x2bd   : > { %v1346_v7 = vrot.slane %v1345_v63, 4  ;;  %v1360_v8 = vrot.slane %v1359_v0, 4  ;;  %v1352_v9 = vmax.f32 %v1305_v61, %v1313_v1  ;;  %v1366_v10 = vmax.f32 %v1307_v62, %v1315_v2  ;;  %v4821_v28 = vld [vmem:[%s6805_s7 + $0x664] ss:$16 sps:$4 sm:$0xff]   ;;  %v4816_v29 = vld [vmem:[%s6805_s7 + $0x460] ss:$16 sps:$4 sm:$0xff]  }
 0x2be   : > { %v1391_v44 = vrot.slane %v1381_v34, %v1390_v35  ;;  %v1398_v50 = vrot.slane %v1382_v36, %v1390_v35  ;;  %v4825_v34 = vld [vmem:[%s6805_s7 + $0x640] ss:$16 sps:$4 sm:$0xff]   ;;  %v4833_v36 = vld [vmem:[%s6805_s7 + $0x624] ss:$16 sps:$4 sm:$0xff]  }
 0x2bf   : > { %v1347_v13 = vmax.f32 %v1345_v63, %v1346_v7  ;;  %v1361_v16 = vmax.f32 %v1359_v0, %v1360_v8  ;;  %v1353_v17 = vrot.slane %v1352_v9, 4  ;;  %v1367_v20 = vrot.slane %v1366_v10, 4  ;;  %v4792_v7 = vld [vmem:[%s6805_s7 + $0x4e0] ss:$16 sps:$4 sm:$0xff]  }
 0x2c0   : > { %v1413_v56 = vcombine.low %v1391_v44, %v1398_v50  ;;  %v4795_v8 = vld [vmem:[%s6805_s7 + $0x6e0] ss:$16 sps:$4 sm:$0xff]   ;;  %v4842_v44 = vld [vmem:[%s6805_s7 + $0x5e4] ss:$16 sps:$4 sm:$0xff]  }
 0x2c1   : > { %v1348_v24 = vrot.slane %v1347_v13, 2  ;;  %v1362_v25 = vrot.slane %v1361_v16, 2  ;;  %v1354_v26 = vmax.f32 %v1352_v9, %v1353_v17  ;;  %v1368_v27 = vmax.f32 %v1366_v10, %v1367_v20  ;;  %v4806_v17 = vld [vmem:[%s6805_s7 + $0x4a4] ss:$16 sps:$4 sm:$0xff]  }
 0x2c2   : > { %v1421_v60 = vrot.slane %v1413_v56, %v1390_v35  ;;  %v4809_v20 = vld [vmem:[%s6805_s7 + $0x6a4] ss:$16 sps:$4 sm:$0xff]  }
 0x2c3   : > { %v1349_v30 = vmax.f32 %v1347_v13, %v1348_v24  ;;  %v1363_v31 = vmax.f32 %v1361_v16, %v1362_v25  ;;  %v1355_v32 = vrot.slane %v1354_v26, 2  ;;  %v1369_v33 = vrot.slane %v1368_v27, 2  ;;  %v4798_v13 = vld [vmem:[%s6805_s7 + $0x4c0] ss:$16 sps:$4 sm:$0xff]   ;;  %v4815_v24 = vld [vmem:[%s6805_s7 + $0x684] ss:$16 sps:$4 sm:$0xff]  }
 0x2c4   : > { %v4801_v16 = vld [vmem:[%s6805_s7 + $0x6c0] ss:$16 sps:$4 sm:$0xff]   ;;  %v4845_v50 = vld [vmem:[%s6805_s7 + $0x7e4] ss:$16 sps:$4 sm:$0xff]  }
 0x2c5   : > { %v1350_v37 = vrot.slane %v1349_v30, 1  ;;  %v1364_v38 = vrot.slane %v1363_v31, 1  ;;  %v1356_v39 = vmax.f32 %v1354_v26, %v1355_v32  ;;  %v1370_v40 = vmax.f32 %v1368_v27, %v1369_v33  ;;  %v4810_v25 = vld [vmem:[%s6805_s7 + $0x480] ss:$16 sps:$4 sm:$0xff]   ;;  %v4818_v27 = vld [vmem:[%s6805_s7 + $0x464] ss:$16 sps:$4 sm:$0xff]  }
 0x2c6   : > { %v4813_v26 = vld [vmem:[%s6805_s7 + $0x680] ss:$16 sps:$4 sm:$0xff]   ;;  %v4827_v32 = vld [vmem:[%s6805_s7 + $0x644] ss:$16 sps:$4 sm:$0xff]  }
 0x2c7   : > { %v1357_v41 = vrot.slane %v1356_v39, 1  ;;  %v1371_v43 = vrot.slane %v1370_v40, 1  ;;  %v1351_v51 = vmax.f32 %v1349_v30, %v1350_v37  ;;  %v1365_v52 = vmax.f32 %v1363_v31, %v1364_v38  ;;  %v4819_v30 = vld [vmem:[%s6805_s7 + $0x660] ss:$16 sps:$4 sm:$0xff]   ;;  %v4824_v31 = vld [vmem:[%s6805_s7 + $0x444] ss:$16 sps:$4 sm:$0xff]  }
 0x2c8   : > { %v4822_v33 = vld [vmem:[%s6805_s7 + $0x440] ss:$16 sps:$4 sm:$0xff]   ;;  %v4854_v56 = vld [vmem:[%s6805_s7 + $0x5a4] ss:$16 sps:$4 sm:$0xff]  }
 0x2c9   : > { %v1358_v53 = vmax.f32 %v1356_v39, %v1357_v41  ;;  %v1372_v54 = vmax.f32 %v1370_v40, %v1371_v43  ;;  %v4828_v37 = vld [vmem:[%s6805_s7 + $0x420] ss:$16 sps:$4 sm:$0xff]   ;;  %v4836_v39 = vld [vmem:[%s6805_s7 + $0x404] ss:$16 sps:$4 sm:$0xff]  }
 0x2ca   : > { %v4831_v38 = vld [vmem:[%s6805_s7 + $0x620] ss:$16 sps:$4 sm:$0xff]   ;;  %v4839_v40 = vld [vmem:[%s6805_s7 + $0x604] ss:$16 sps:$4 sm:$0xff]  }
 0x2cb   : > { %v1383_v49 = vcombine.low %v1351_v51, %v1358_v53  ;;  %v1384_v55 = vcombine.low %v1365_v52, %v1372_v54  ;;  %v4834_v41 = vld [vmem:[%s6805_s7 + $0x400] ss:$16 sps:$4 sm:$0xff]   ;;  %v4848_v53 = vld [vmem:[%s6805_s7 + $0x5c4] ss:$16 sps:$4 sm:$0xff]  }
 0x2cc   : > { %v4837_v43 = vld [vmem:[%s6805_s7 + $0x600] ss:$16 sps:$4 sm:$0xff]   ;;  %v4851_v54 = vld [vmem:[%s6805_s7 + $0x7c4] ss:$16 sps:$4 sm:$0xff]  }
 0x2cd   : > { %v1405_v57 = vrot.slane %v1383_v49, %v1390_v35  ;;  %v1412_v58 = vrot.slane %v1384_v55, %v1390_v35  ;;  %v4840_v51 = vld [vmem:[%s6805_s7 + $0x5e0] ss:$16 sps:$4 sm:$0xff]  }
 0x2ce   : > { %v4843_v52 = vld [vmem:[%s6805_s7 + $0x7e0] ss:$16 sps:$4 sm:$0xff]  }
 0x2cf   : > { %v1414_v59 = vcombine.low %v1405_v57, %v1412_v58  ;;  %v4846_v49 = vld [vmem:[%s6805_s7 + $0x5c0] ss:$16 sps:$4 sm:$0xff]   ;;  %v4857_v57 = vld [vmem:[%s6805_s7 + $0x7a4] ss:$16 sps:$4 sm:$0xff]  }
 0x2d0   : > { %v4849_v55 = vld [vmem:[%s6805_s7 + $0x7c0] ss:$16 sps:$4 sm:$0xff]  }
 0x2d1   : > { %v1428_v61 = vrot.slane %v1414_v59, %v1390_v35  ;;  %v4830_v35 = vld [vmem:[%s6805_s7 + $0x424] ss:$16 sps:$4 sm:$0xff]   ;;  %v4852_v58 = vld [vmem:[%s6805_s7 + $0x5a0] ss:$16 sps:$4 sm:$0xff]  }
 0x2d2   : > { %v4855_v59 = vld [vmem:[%s6805_s7 + $0x7a0] ss:$16 sps:$4 sm:$0xff]  }
 0x2d3   : > { %v5856_v62 = vcombine.low %v1421_v60, %v1428_v61  ;;  %v4860_v60 = vld [vmem:[%s6805_s7 + $0x584] ss:$16 sps:$4 sm:$0xff]  }
 0x2d4   : > { %v4863_v61 = vld [vmem:[%s6805_s7 + $0x784] ss:$16 sps:$4 sm:$0xff]  }
 0x2d5   : > { %v1445_v63 = vrot.slane %v5856_v62, %v5825_v45  ;;  %v1453_v0 = vrot.slane %v5856_v62, %v5828_v46  ;;  %v1441_v1 = vrot.slane %v5856_v62, %v5831_v47  ;;  %v1449_v2 = vrot.slane %v5856_v62, %v5834_v48 }
 0x2d6   : > { %v1461_v3 = vrot.slane %v5856_v62, %v790_v18  ;;  %v1469_v4 = vrot.slane %v5856_v62, %v798_v19  ;;  %v4800_v18 = vld [vmem:[%s6805_s7 + $0x4c4] ss:$16 sps:$4 sm:$0xff]  }
 0x2d7   : > { %v5872_v5 = vpack.c.bf16 %v1445_v63, %v1445_v63  ;;  %v5874_v6 = vpack.c.bf16 %v1453_v0, %v1453_v0  ;;  %v5882_v9 = vpack.c.bf16 %v1441_v1, %v1441_v1  ;;  %v5884_v10 = vpack.c.bf16 %v1449_v2, %v1449_v2  ;;  %v4803_v19 = vld [vmem:[%s6805_s7 + $0x6c4] ss:$16 sps:$4 sm:$0xff]   ;;  %v4858_v63 = vld [vmem:[%s6805_s7 + $0x580] ss:$16 sps:$4 sm:$0xff]  }
 0x2d8   : > { %v5896_v11 = vpack.c.bf16 %v1461_v3, %v1461_v3  ;;  %v5898_v12 = vpack.c.bf16 %v1469_v4, %v1469_v4  ;;  %v4861_v0 = vld [vmem:[%s6805_s7 + $0x780] ss:$16 sps:$4 sm:$0xff]   ;;  %v4866_v1 = vld [vmem:[%s6805_s7 + $0x564] ss:$16 sps:$4 sm:$0xff]  }
 0x2d9   : > { %3076 = vmatprep.mubr.bf16.mxu1 %v5872_v5  ;;  %3117 = vmatprep.mubr.bf16.mxu0 %v5874_v6  ;;  %v4869_v2 = vld [vmem:[%s6805_s7 + $0x764] ss:$16 sps:$4 sm:$0xff]   ;;  %v4864_v3 = vld [vmem:[%s6805_s7 + $0x560] ss:$16 sps:$4 sm:$0xff]  }
 0x2da   : > { %3077 = vmatmul.mubr.bf16.vlgmr.msra.gmra.mxu1 %v5882_v9  ;;  %3118 = vmatmul.mubr.bf16.vlgmr.msra.gmra.mxu0 %v5884_v10  ;;  %v4867_v4 = vld [vmem:[%s6805_s7 + $0x760] ss:$16 sps:$4 sm:$0xff]  }
 0x2db   : > { %3127 = vmatpush1.bf16.msra.mxu1 %v4792_v7  ;;  %3168 = vmatpush1.bf16.msra.mxu0 %v4795_v8  ;;  %v4872_v7 = vld [vmem:[%s6805_s7 + $0x544] ss:$16 sps:$4 sm:$0xff]  }
 0x2dc   : > { %3158 = vmatprep.mubr.bf16.mxu1 %v5896_v11  ;;  %3199 = vmatprep.mubr.bf16.mxu0 %v5898_v12  ;;  %v4875_v8 = vld [vmem:[%s6805_s7 + $0x744] ss:$16 sps:$4 sm:$0xff]  }
 0x2dd   : > { %3128 = vmatprep.subr.bf16.mxu1 %v4800_v18  ;;  %3169 = vmatprep.subr.bf16.mxu0 %v4803_v19  ;;  %v4870_v18 = vld [vmem:[%s6805_s7 + $0x540] ss:$16 sps:$4 sm:$0xff]  }
 0x2de   : > { %v4873_v19 = vld [vmem:[%s6805_s7 + $0x740] ss:$16 sps:$4 sm:$0xff]  }
 0x2df   : > { %3129 = vmatpush1.bf16.msra.mxu1 %v4798_v13  ;;  %3170 = vmatpush1.bf16.msra.mxu0 %v4801_v16  ;;  %v4878_v13 = vld [vmem:[%s6805_s7 + $0x524] ss:$16 sps:$4 sm:$0xff]  }
 0x2e0   : > { %3130 = vmatprep.subr.bf16.mxu1 %v4806_v17  ;;  %3171 = vmatprep.subr.bf16.mxu0 %v4809_v20  ;;  %v4881_v16 = vld [vmem:[%s6805_s7 + $0x724] ss:$16 sps:$4 sm:$0xff]   ;;  %v4876_v17 = vld [vmem:[%s6805_s7 + $0x520] ss:$16 sps:$4 sm:$0xff]  }
 0x2e1   : > { %v4879_v20 = vld [vmem:[%s6805_s7 + $0x720] ss:$16 sps:$4 sm:$0xff]  }
 0x2e3   : > { %3131 = vmatpush1.bf16.msra.mxu1 %v4804_v21  ;;  %3172 = vmatpush1.bf16.msra.mxu0 %v4807_v22  ;;  %v4884_v21 = vld [vmem:[%s6805_s7 + $0x504] ss:$16 sps:$4 sm:$0xff]  }
 0x2e4   : > { %3132 = vmatprep.subr.bf16.mxu1 %v4812_v23  ;;  %3173 = vmatprep.subr.bf16.mxu0 %v4815_v24  ;;  %v4887_v22 = vld [vmem:[%s6805_s7 + $0x704] ss:$16 sps:$4 sm:$0xff]   ;;  %v4882_v23 = vld [vmem:[%s6805_s7 + $0x500] ss:$16 sps:$4 sm:$0xff]  }
 0x2e5   : > { %v4885_v24 = vld [vmem:[%s6805_s7 + $0x700] ss:$16 sps:$4 sm:$0xff]  }
 0x2e7   : > { %3133 = vmatpush1.bf16.msra.mxu1 %v4810_v25  ;;  %3174 = vmatpush1.bf16.msra.mxu0 %v4813_v26  ;;  %v1457_v25 = vrot.slane %v5856_v62, %v786_v14  ;;  %v1465_v26 = vrot.slane %v5856_v62, %v794_v15  ;;  %v4896_v15 = vld [vmem:[%s6805_s7 + $0xcc] ss:$16 sps:$4 sm:$0xff]  }
 0x2e8   : > { %3134 = vmatprep.subr.bf16.mxu1 %v4818_v27  ;;  %3175 = vmatprep.subr.bf16.mxu0 %v4821_v28  ;;  %v4890_v27 = vld [vmem:[%s6805_s7 + $0xec] ss:$16 sps:$4 sm:$0xff]  }
 0x2e9   : > { %v4893_v28 = vld [vmem:[%s6805_s7 + $0x2ec] ss:$16 sps:$4 sm:$0xff]   ;;  %v6093_v14 = vpack.c.bf16 %v1465_v26, %v1465_v26 }
 0x2ea   : > { %v4899_v62 = vld [vmem:[%s6805_s7 + $0x2cc] ss:$16 sps:$4 sm:$0xff]  }
 0x2eb   : > { %3135 = vmatpush1.bf16.msra.mxu1 %v4816_v29  ;;  %3176 = vmatpush1.bf16.msra.mxu0 %v4819_v30  ;;  %v4888_v29 = vld [vmem:[%s6805_s7 + $0xe8] ss:$16 sps:$4 sm:$0xff]   ;;  %v6091_v30 = vpack.c.bf16 %v1457_v25, %v1457_v25  ;;  %v4968_v25 = vld [vmem:[%s6805_s7 + $0x14c] ss:$16 sps:$4 sm:$0xff]  }
 0x2ec   : > { %3136 = vmatprep.subr.bf16.mxu1 %v4824_v31  ;;  %3177 = vmatprep.subr.bf16.mxu0 %v4827_v32  ;;  %v4894_v31 = vld [vmem:[%s6805_s7 + $0xc8] ss:$16 sps:$4 sm:$0xff]   ;;  %v4971_v26 = vld [vmem:[%s6805_s7 + $0x34c] ss:$16 sps:$4 sm:$0xff]  }
 0x2ed   : > { %v4897_v32 = vld [vmem:[%s6805_s7 + $0x2c8] ss:$16 sps:$4 sm:$0xff]  }
 0x2ef   : > { %3137 = vmatpush1.bf16.msra.mxu1 %v4822_v33  ;;  %3178 = vmatpush1.bf16.msra.mxu0 %v4825_v34  ;;  %v4902_v33 = vld [vmem:[%s6805_s7 + $0xac] ss:$16 sps:$4 sm:$0xff]   ;;  %v4900_v34 = vld [vmem:[%s6805_s7 + $0xa8] ss:$16 sps:$4 sm:$0xff]  }
 0x2f0   : > { %3138 = vmatprep.subr.bf16.mxu1 %v4830_v35  ;;  %3179 = vmatprep.subr.bf16.mxu0 %v4833_v36  ;;  %v4908_v35 = vld [vmem:[%s6805_s7 + $0x8c] ss:$16 sps:$4 sm:$0xff]  }
 0x2f1   : > { %v4911_v36 = vld [vmem:[%s6805_s7 + $0x28c] ss:$16 sps:$4 sm:$0xff]  }
 0x2f3   : > { %3139 = vmatpush1.bf16.msra.mxu1 %v4828_v37  ;;  %3180 = vmatpush1.bf16.msra.mxu0 %v4831_v38  ;;  %v4906_v37 = vld [vmem:[%s6805_s7 + $0x88] ss:$16 sps:$4 sm:$0xff]  }
 0x2f4   : > { %3140 = vmatprep.subr.bf16.mxu1 %v4836_v39  ;;  %3181 = vmatprep.subr.bf16.mxu0 %v4839_v40  ;;  %v4909_v38 = vld [vmem:[%s6805_s7 + $0x288] ss:$16 sps:$4 sm:$0xff]   ;;  %v4914_v39 = vld [vmem:[%s6805_s7 + $0x6c] ss:$16 sps:$4 sm:$0xff]  }
 0x2f5   : > { %v4917_v40 = vld [vmem:[%s6805_s7 + $0x26c] ss:$16 sps:$4 sm:$0xff]  }
 0x2f7   : > { %3141 = vmatpush1.bf16.msra.mxu1 %v4834_v41  ;;  %3182 = vmatpush1.bf16.msra.mxu0 %v4837_v43  ;;  %v4912_v41 = vld [vmem:[%s6805_s7 + $0x68] ss:$16 sps:$4 sm:$0xff]  }
 0x2f8   : > { %3142 = vmatprep.subr.bf16.mxu1 %v4842_v44  ;;  %3183 = vmatprep.subr.bf16.mxu0 %v4845_v50  ;;  %v4915_v43 = vld [vmem:[%s6805_s7 + $0x268] ss:$16 sps:$4 sm:$0xff]   ;;  %v4920_v44 = vld [vmem:[%s6805_s7 + $0x4c] ss:$16 sps:$4 sm:$0xff]  }
 0x2f9   : > { %v4923_v50 = vld [vmem:[%s6805_s7 + $0x24c] ss:$16 sps:$4 sm:$0xff]  }
 0x2fb   : > { %3143 = vmatpush2.bf16.msra.mxu1 %v4840_v51  ;;  %3184 = vmatpush2.bf16.msra.mxu0 %v4843_v52  ;;  %v4918_v51 = vld [vmem:[%s6805_s7 + $0x48] ss:$16 sps:$4 sm:$0xff]  }
 0x2fc   : > { %3144 = vmatprep.subr.bf16.mxu1 %v4848_v53  ;;  %3185 = vmatprep.subr.bf16.mxu0 %v4851_v54  ;;  %v4921_v52 = vld [vmem:[%s6805_s7 + $0x248] ss:$16 sps:$4 sm:$0xff]   ;;  %v4926_v53 = vld [vmem:[%s6805_s7 + $0x2c] ss:$16 sps:$4 sm:$0xff]  }
 0x2fd   : > { %v4929_v54 = vld [vmem:[%s6805_s7 + $0x22c] ss:$16 sps:$4 sm:$0xff]  }
 0x2ff   : > { %3145 = vmatpush2.bf16.msra.mxu1 %v4846_v49  ;;  %3186 = vmatpush2.bf16.msra.mxu0 %v4849_v55  ;;  %v4924_v49 = vld [vmem:[%s6805_s7 + $0x28] ss:$16 sps:$4 sm:$0xff]  }
 0x300   : > { %3146 = vmatprep.subr.bf16.mxu1 %v4854_v56  ;;  %3187 = vmatprep.subr.bf16.mxu0 %v4857_v57  ;;  %v4927_v55 = vld [vmem:[%s6805_s7 + $0x228] ss:$16 sps:$4 sm:$0xff]   ;;  %v4932_v56 = vld [vmem:[%s6805_s7 + $0xc] ss:$16 sps:$4 sm:$0xff]  }
 0x301   : > { %v4935_v57 = vld [vmem:[%s6805_s7 + $0x20c] ss:$16 sps:$4 sm:$0xff]  }
 0x303   : > { %3147 = vmatpush2.bf16.msra.mxu1 %v4852_v58  ;;  %3188 = vmatpush2.bf16.msra.mxu0 %v4855_v59  ;;  %v4930_v58 = vld [vmem:[%s6805_s7 + $0x8] ss:$16 sps:$4 sm:$0xff]  }
 0x304   : > { %3148 = vmatprep.subr.bf16.mxu1 %v4860_v60  ;;  %3189 = vmatprep.subr.bf16.mxu0 %v4863_v61  ;;  %v4933_v59 = vld [vmem:[%s6805_s7 + $0x208] ss:$16 sps:$4 sm:$0xff]   ;;  %v4938_v60 = vld [vmem:[%s6805_s7 + $0x1ec] ss:$16 sps:$4 sm:$0xff]  }
 0x305   : > { %v4941_v61 = vld [vmem:[%s6805_s7 + $0x3ec] ss:$16 sps:$4 sm:$0xff]  }
 0x307   : > { %3149 = vmatpush2.bf16.msra.mxu1 %v4858_v63  ;;  %3190 = vmatpush2.bf16.msra.mxu0 %v4861_v0  ;;  %v4936_v63 = vld [vmem:[%s6805_s7 + $0x1e8] ss:$16 sps:$4 sm:$0xff]  }
 0x308   : > { %3150 = vmatprep.subr.bf16.mxu1 %v4866_v1  ;;  %3191 = vmatprep.subr.bf16.mxu0 %v4869_v2  ;;  %v4939_v0 = vld [vmem:[%s6805_s7 + $0x3e8] ss:$16 sps:$4 sm:$0xff]   ;;  %v4944_v1 = vld [vmem:[%s6805_s7 + $0x1cc] ss:$16 sps:$4 sm:$0xff]  }
 0x309   : > { %v4947_v2 = vld [vmem:[%s6805_s7 + $0x3cc] ss:$16 sps:$4 sm:$0xff]  }
 0x30b   : > { %3151 = vmatpush2.bf16.msra.mxu1 %v4864_v3  ;;  %3192 = vmatpush2.bf16.msra.mxu0 %v4867_v4  ;;  %v4942_v3 = vld [vmem:[%s6805_s7 + $0x1c8] ss:$16 sps:$4 sm:$0xff]  }
 0x30c   : > { %3152 = vmatprep.subr.bf16.mxu1 %v4872_v7  ;;  %3193 = vmatprep.subr.bf16.mxu0 %v4875_v8  ;;  %v4945_v4 = vld [vmem:[%s6805_s7 + $0x3c8] ss:$16 sps:$4 sm:$0xff]   ;;  %v4950_v7 = vld [vmem:[%s6805_s7 + $0x1ac] ss:$16 sps:$4 sm:$0xff]  }
 0x30d   : > { %v4953_v8 = vld [vmem:[%s6805_s7 + $0x3ac] ss:$16 sps:$4 sm:$0xff]  }
 0x30f   : > { %3153 = vmatpush2.bf16.msra.mxu1 %v4870_v18  ;;  %3194 = vmatpush2.bf16.msra.mxu0 %v4873_v19  ;;  %v4948_v18 = vld [vmem:[%s6805_s7 + $0x1a8] ss:$16 sps:$4 sm:$0xff]  }
 0x310   : > { %3154 = vmatprep.subr.bf16.mxu1 %v4878_v13  ;;  %3195 = vmatprep.subr.bf16.mxu0 %v4881_v16  ;;  %v4951_v19 = vld [vmem:[%s6805_s7 + $0x3a8] ss:$16 sps:$4 sm:$0xff]   ;;  %v4956_v13 = vld [vmem:[%s6805_s7 + $0x18c] ss:$16 sps:$4 sm:$0xff]  }
 0x311   : > { %v4959_v16 = vld [vmem:[%s6805_s7 + $0x38c] ss:$16 sps:$4 sm:$0xff]  }
 0x313   : > { %3155 = vmatpush2.bf16.msra.mxu1 %v4876_v17  ;;  %3196 = vmatpush2.bf16.msra.mxu0 %v4879_v20  ;;  %v4954_v17 = vld [vmem:[%s6805_s7 + $0x188] ss:$16 sps:$4 sm:$0xff]  }
 0x314   : > { %3156 = vmatprep.subr.bf16.mxu1 %v4884_v21  ;;  %3197 = vmatprep.subr.bf16.mxu0 %v4887_v22  ;;  %v4957_v20 = vld [vmem:[%s6805_s7 + $0x388] ss:$16 sps:$4 sm:$0xff]   ;;  %v4962_v21 = vld [vmem:[%s6805_s7 + $0x16c] ss:$16 sps:$4 sm:$0xff]  }
 0x315   : > { %v4965_v22 = vld [vmem:[%s6805_s7 + $0x36c] ss:$16 sps:$4 sm:$0xff]  }
 0x317   : > { %3157 = vmatpush2.bf16.msra.mxu1 %v4882_v23  ;;  %3198 = vmatpush2.bf16.msra.mxu0 %v4885_v24  ;;  %v4960_v23 = vld [vmem:[%s6805_s7 + $0x168] ss:$16 sps:$4 sm:$0xff]  }
 0x318   : > { %3208 = vmatprep.subr.bf16.mxu1 %v4890_v27  ;;  %3249 = vmatprep.subr.bf16.mxu0 %v4893_v28  ;;  %v4963_v24 = vld [vmem:[%s6805_s7 + $0x368] ss:$16 sps:$4 sm:$0xff]  }
 0x319   : > { %v4966_v27 = vld [vmem:[%s6805_s7 + $0x148] ss:$16 sps:$4 sm:$0xff]  }
 0x31a   : > { %3159 = vmatmul.mubr.bf16.vlgmr.msra.gmra.mxu1 %v6091_v30  ;;  %3200 = vmatmul.mubr.bf16.vlgmr.msra.gmra.mxu0 %v6093_v14  ;;  %v4969_v28 = vld [vmem:[%s6805_s7 + $0x348] ss:$16 sps:$4 sm:$0xff]  }
 0x31b   : > { %3209 = vmatpush1.bf16.msra.mxu1 %v4888_v29  ;;  %3240 = vmatprep.mubr.bf16.mxu1 %v5872_v5  ;;  %v4905_v5 = vld [vmem:[%s6805_s7 + $0x2ac] ss:$16 sps:$4 sm:$0xff]  }
 0x31c   : > { %3250 = vmatpush1.bf16.msra.mxu0 %v4891_v42  ;;  %3281 = vmatprep.mubr.bf16.mxu0 %v5874_v6  ;;  %v4903_v6 = vld [vmem:[%s6805_s7 + $0x2a8] ss:$16 sps:$4 sm:$0xff]   ;;  %v4974_v29 = vld [vmem:[%s6805_s7 + $0x12c] ss:$16 sps:$4 sm:$0xff]  }
 0x31d   : > { %3210 = vmatprep.subr.bf16.mxu1 %v4896_v15  ;;  %3251 = vmatprep.subr.bf16.mxu0 %v4899_v62  ;;  %v4977_v42 = vld [vmem:[%s6805_s7 + $0x32c] ss:$16 sps:$4 sm:$0xff]   ;;  %v4972_v15 = vld [vmem:[%s6805_s7 + $0x128] ss:$16 sps:$4 sm:$0xff]  }
 0x31e   : > { %v4975_v62 = vld [vmem:[%s6805_s7 + $0x328] ss:$16 sps:$4 sm:$0xff]  }
 0x31f   : > { %3211 = vmatpush1.bf16.msra.mxu1 %v4894_v31  ;;  %v4980_v31 = vld [vmem:[%s6805_s7 + $0x10c] ss:$16 sps:$4 sm:$0xff]  }
 0x320   : > { %3252 = vmatpush1.bf16.msra.mxu0 %v4897_v32  ;;  %3212 = vmatprep.subr.bf16.mxu1 %v4902_v33  ;;  %v4983_v32 = vld [vmem:[%s6805_s7 + $0x30c] ss:$16 sps:$4 sm:$0xff]   ;;  %v4978_v33 = vld [vmem:[%s6805_s7 + $0x108] ss:$16 sps:$4 sm:$0xff]  }
 0x321   : > { %3253 = vmatprep.subr.bf16.mxu0 %v4905_v5  ;;  %v4981_v5 = vld [vmem:[%s6805_s7 + $0x308] ss:$16 sps:$4 sm:$0xff]  }
 0x323   : > { %3213 = vmatpush1.bf16.msra.mxu1 %v4900_v34  ;;  %v4986_v34 = vld [vmem:[%s6805_s7 + $0x4ec] ss:$16 sps:$4 sm:$0xff]  }
 0x324   : > { %3254 = vmatpush1.bf16.msra.mxu0 %v4903_v6  ;;  %3214 = vmatprep.subr.bf16.mxu1 %v4908_v35  ;;  %v4989_v6 = vld [vmem:[%s6805_s7 + $0x6ec] ss:$16 sps:$4 sm:$0xff]   ;;  %v4984_v35 = vld [vmem:[%s6805_s7 + $0x4e8] ss:$16 sps:$4 sm:$0xff]  }
 0x325   : > { %3255 = vmatprep.subr.bf16.mxu0 %v4911_v36  ;;  %v4987_v36 = vld [vmem:[%s6805_s7 + $0x6e8] ss:$16 sps:$4 sm:$0xff]  }
 0x327   : > { %3215 = vmatpush1.bf16.msra.mxu1 %v4906_v37  ;;  %v4992_v37 = vld [vmem:[%s6805_s7 + $0x4cc] ss:$16 sps:$4 sm:$0xff]  }
 0x328   : > { %3256 = vmatpush1.bf16.msra.mxu0 %v4909_v38  ;;  %3216 = vmatprep.subr.bf16.mxu1 %v4914_v39  ;;  %v4995_v38 = vld [vmem:[%s6805_s7 + $0x6cc] ss:$16 sps:$4 sm:$0xff]   ;;  %v4990_v39 = vld [vmem:[%s6805_s7 + $0x4c8] ss:$16 sps:$4 sm:$0xff]  }
 0x329   : > { %3257 = vmatprep.subr.bf16.mxu0 %v4917_v40  ;;  %v4993_v40 = vld [vmem:[%s6805_s7 + $0x6c8] ss:$16 sps:$4 sm:$0xff]  }
 0x32b   : > { %3217 = vmatpush1.bf16.msra.mxu1 %v4912_v41  ;;  %v4999_v41 = vld [vmem:[%s6805_s7 + $0x6a8] ss:$16 sps:$4 sm:$0xff]  }
 0x32c   : > { %3258 = vmatpush1.bf16.msra.mxu0 %v4915_v43  ;;  %3218 = vmatprep.subr.bf16.mxu1 %v4920_v44  ;;  %v5007_v43 = vld [vmem:[%s6805_s7 + $0x68c] ss:$16 sps:$4 sm:$0xff]   ;;  %v5002_v44 = vld [vmem:[%s6805_s7 + $0x488] ss:$16 sps:$4 sm:$0xff]  }
 0x32d   : > { %3259 = vmatprep.subr.bf16.mxu0 %v4923_v50  ;;  %v5005_v50 = vld [vmem:[%s6805_s7 + $0x688] ss:$16 sps:$4 sm:$0xff]  }
 0x32f   : > { %3219 = vmatpush1.bf16.msra.mxu1 %v4918_v51  ;;  %v5010_v51 = vld [vmem:[%s6805_s7 + $0x46c] ss:$16 sps:$4 sm:$0xff]  }
 0x330   : > { %3260 = vmatpush1.bf16.msra.mxu0 %v4921_v52  ;;  %3220 = vmatprep.subr.bf16.mxu1 %v4926_v53  ;;  %v5013_v52 = vld [vmem:[%s6805_s7 + $0x66c] ss:$16 sps:$4 sm:$0xff]   ;;  %v5008_v53 = vld [vmem:[%s6805_s7 + $0x468] ss:$16 sps:$4 sm:$0xff]  }
 0x331   : > { %3261 = vmatprep.subr.bf16.mxu0 %v4929_v54  ;;  %v5011_v54 = vld [vmem:[%s6805_s7 + $0x668] ss:$16 sps:$4 sm:$0xff]  }
 0x333   : > { %3221 = vmatpush1.bf16.msra.mxu1 %v4924_v49  ;;  %v5016_v49 = vld [vmem:[%s6805_s7 + $0x44c] ss:$16 sps:$4 sm:$0xff]  }
 0x334   : > { %3262 = vmatpush1.bf16.msra.mxu0 %v4927_v55  ;;  %3222 = vmatprep.subr.bf16.mxu1 %v4932_v56  ;;  %v5019_v55 = vld [vmem:[%s6805_s7 + $0x64c] ss:$16 sps:$4 sm:$0xff]   ;;  %v5014_v56 = vld [vmem:[%s6805_s7 + $0x448] ss:$16 sps:$4 sm:$0xff]  }
 0x335   : > { %3263 = vmatprep.subr.bf16.mxu0 %v4935_v57  ;;  %v5017_v57 = vld [vmem:[%s6805_s7 + $0x648] ss:$16 sps:$4 sm:$0xff]  }
 0x337   : > { %3223 = vmatpush1.bf16.msra.mxu1 %v4930_v58  ;;  %v5022_v58 = vld [vmem:[%s6805_s7 + $0x42c] ss:$16 sps:$4 sm:$0xff]  }
 0x338   : > { %3264 = vmatpush1.bf16.msra.mxu0 %v4933_v59  ;;  %3224 = vmatprep.subr.bf16.mxu1 %v4938_v60  ;;  %v5025_v59 = vld [vmem:[%s6805_s7 + $0x62c] ss:$16 sps:$4 sm:$0xff]   ;;  %v5020_v60 = vld [vmem:[%s6805_s7 + $0x428] ss:$16 sps:$4 sm:$0xff]  }
 0x339   : > { %3265 = vmatprep.subr.bf16.mxu0 %v4941_v61  ;;  %v5023_v61 = vld [vmem:[%s6805_s7 + $0x628] ss:$16 sps:$4 sm:$0xff]  }
 0x33b   : > { %3225 = vmatpush2.bf16.msra.mxu1 %v4936_v63  ;;  %v5028_v63 = vld [vmem:[%s6805_s7 + $0x40c] ss:$16 sps:$4 sm:$0xff]  }
 0x33c   : > { %3266 = vmatpush2.bf16.msra.mxu0 %v4939_v0  ;;  %3226 = vmatprep.subr.bf16.mxu1 %v4944_v1  ;;  %v5031_v0 = vld [vmem:[%s6805_s7 + $0x60c] ss:$16 sps:$4 sm:$0xff]   ;;  %v5026_v1 = vld [vmem:[%s6805_s7 + $0x408] ss:$16 sps:$4 sm:$0xff]  }
 0x33d   : > { %3267 = vmatprep.subr.bf16.mxu0 %v4947_v2  ;;  %v5029_v2 = vld [vmem:[%s6805_s7 + $0x608] ss:$16 sps:$4 sm:$0xff]  }
 0x33f   : > { %3227 = vmatpush2.bf16.msra.mxu1 %v4942_v3  ;;  %v5034_v3 = vld [vmem:[%s6805_s7 + $0x5ec] ss:$16 sps:$4 sm:$0xff]  }
 0x340   : > { %3268 = vmatpush2.bf16.msra.mxu0 %v4945_v4  ;;  %3228 = vmatprep.subr.bf16.mxu1 %v4950_v7  ;;  %v5037_v4 = vld [vmem:[%s6805_s7 + $0x7ec] ss:$16 sps:$4 sm:$0xff]   ;;  %v5032_v7 = vld [vmem:[%s6805_s7 + $0x5e8] ss:$16 sps:$4 sm:$0xff]  }
 0x341   : > { %3269 = vmatprep.subr.bf16.mxu0 %v4953_v8  ;;  %v5035_v8 = vld [vmem:[%s6805_s7 + $0x7e8] ss:$16 sps:$4 sm:$0xff]  }
 0x343   : > { %3229 = vmatpush2.bf16.msra.mxu1 %v4948_v18  ;;  %v5040_v18 = vld [vmem:[%s6805_s7 + $0x5cc] ss:$16 sps:$4 sm:$0xff]  }
 0x344   : > { %3270 = vmatpush2.bf16.msra.mxu0 %v4951_v19  ;;  %3230 = vmatprep.subr.bf16.mxu1 %v4956_v13  ;;  %v5043_v19 = vld [vmem:[%s6805_s7 + $0x7cc] ss:$16 sps:$4 sm:$0xff]   ;;  %v5038_v13 = vld [vmem:[%s6805_s7 + $0x5c8] ss:$16 sps:$4 sm:$0xff]  }
 0x345   : > { %3271 = vmatprep.subr.bf16.mxu0 %v4959_v16  ;;  %v5041_v16 = vld [vmem:[%s6805_s7 + $0x7c8] ss:$16 sps:$4 sm:$0xff]  }
 0x347   : > { %3231 = vmatpush2.bf16.msra.mxu1 %v4954_v17  ;;  %v5046_v17 = vld [vmem:[%s6805_s7 + $0x5ac] ss:$16 sps:$4 sm:$0xff]  }
 0x348   : > { %3272 = vmatpush2.bf16.msra.mxu0 %v4957_v20  ;;  %3232 = vmatprep.subr.bf16.mxu1 %v4962_v21  ;;  %v5049_v20 = vld [vmem:[%s6805_s7 + $0x7ac] ss:$16 sps:$4 sm:$0xff]   ;;  %v5044_v21 = vld [vmem:[%s6805_s7 + $0x5a8] ss:$16 sps:$4 sm:$0xff]  }
 0x349   : > { %3273 = vmatprep.subr.bf16.mxu0 %v4965_v22  ;;  %v5047_v22 = vld [vmem:[%s6805_s7 + $0x7a8] ss:$16 sps:$4 sm:$0xff]  }
 0x34b   : > { %3233 = vmatpush2.bf16.msra.mxu1 %v4960_v23  ;;  %v5052_v23 = vld [vmem:[%s6805_s7 + $0x58c] ss:$16 sps:$4 sm:$0xff]  }
 0x34c   : > { %3274 = vmatpush2.bf16.msra.mxu0 %v4963_v24  ;;  %3234 = vmatprep.subr.bf16.mxu1 %v4968_v25  ;;  %v5055_v24 = vld [vmem:[%s6805_s7 + $0x78c] ss:$16 sps:$4 sm:$0xff]   ;;  %v5050_v25 = vld [vmem:[%s6805_s7 + $0x588] ss:$16 sps:$4 sm:$0xff]  }
 0x34d   : > { %3275 = vmatprep.subr.bf16.mxu0 %v4971_v26  ;;  %v5053_v26 = vld [vmem:[%s6805_s7 + $0x788] ss:$16 sps:$4 sm:$0xff]  }
 0x34f   : > { %3235 = vmatpush2.bf16.msra.mxu1 %v4966_v27  ;;  %v5058_v27 = vld [vmem:[%s6805_s7 + $0x56c] ss:$16 sps:$4 sm:$0xff]  }
 0x350   : > { %3276 = vmatpush2.bf16.msra.mxu0 %v4969_v28  ;;  %3236 = vmatprep.subr.bf16.mxu1 %v4974_v29  ;;  %v5061_v28 = vld [vmem:[%s6805_s7 + $0x76c] ss:$16 sps:$4 sm:$0xff]   ;;  %v5056_v29 = vld [vmem:[%s6805_s7 + $0x568] ss:$16 sps:$4 sm:$0xff]  }
 0x351   : > { %3277 = vmatprep.subr.bf16.mxu0 %v4977_v42  ;;  %v5059_v42 = vld [vmem:[%s6805_s7 + $0x768] ss:$16 sps:$4 sm:$0xff]  }
 0x353   : > { %3237 = vmatpush2.bf16.msra.mxu1 %v4972_v15  ;;  %v5064_v15 = vld [vmem:[%s6805_s7 + $0x54c] ss:$16 sps:$4 sm:$0xff]  }
 0x354   : > { %3278 = vmatpush2.bf16.msra.mxu0 %v4975_v62  ;;  %3238 = vmatprep.subr.bf16.mxu1 %v4980_v31  ;;  %v5067_v62 = vld [vmem:[%s6805_s7 + $0x74c] ss:$16 sps:$4 sm:$0xff]   ;;  %v5062_v31 = vld [vmem:[%s6805_s7 + $0x548] ss:$16 sps:$4 sm:$0xff]  }
 0x355   : > { %3279 = vmatprep.subr.bf16.mxu0 %v4983_v32  ;;  %v5065_v32 = vld [vmem:[%s6805_s7 + $0x748] ss:$16 sps:$4 sm:$0xff]  }
 0x357   : > { %3239 = vmatpush2.bf16.msra.mxu1 %v4978_v33  ;;  %v5070_v33 = vld [vmem:[%s6805_s7 + $0x52c] ss:$16 sps:$4 sm:$0xff]  }
 0x358   : > { %3280 = vmatpush2.bf16.msra.mxu0 %v4981_v5  ;;  %3290 = vmatprep.subr.bf16.mxu1 %v4986_v34  ;;  %v5073_v5 = vld [vmem:[%s6805_s7 + $0x72c] ss:$16 sps:$4 sm:$0xff]   ;;  %v5068_v34 = vld [vmem:[%s6805_s7 + $0x528] ss:$16 sps:$4 sm:$0xff]  }
 0x359   : > { %3331 = vmatprep.subr.bf16.mxu0 %v4989_v6  ;;  %v5071_v6 = vld [vmem:[%s6805_s7 + $0x728] ss:$16 sps:$4 sm:$0xff]  }
 0x35a   : > { %3241 = vmatmul.mubr.bf16.vlgmr.msra.gmra.mxu1 %v5882_v9  ;;  %v4998_v9 = vld [vmem:[%s6805_s7 + $0x4ac] ss:$16 sps:$4 sm:$0xff]  }
 0x35b   : > { %3282 = vmatmul.mubr.bf16.vlgmr.msra.gmra.mxu0 %v5884_v10  ;;  %3291 = vmatpush1.bf16.msra.mxu1 %v4984_v35  ;;  %v5001_v10 = vld [vmem:[%s6805_s7 + $0x6ac] ss:$16 sps:$4 sm:$0xff]  }
 0x35c   : > { %3322 = vmatprep.mubr.bf16.mxu1 %v5896_v11  ;;  %3332 = vmatpush1.bf16.msra.mxu0 %v4987_v36  ;;  %v4996_v11 = vld [vmem:[%s6805_s7 + $0x4a8] ss:$16 sps:$4 sm:$0xff]   ;;  %v5076_v35 = vld [vmem:[%s6805_s7 + $0x50c] ss:$16 sps:$4 sm:$0xff]  }
 0x35d   : > { %3363 = vmatprep.mubr.bf16.mxu0 %v5898_v12  ;;  %3292 = vmatprep.subr.bf16.mxu1 %v4992_v37  ;;  %v5004_v12 = vld [vmem:[%s6805_s7 + $0x48c] ss:$16 sps:$4 sm:$0xff]   ;;  %v5074_v37 = vld [vmem:[%s6805_s7 + $0x508] ss:$16 sps:$4 sm:$0xff]  }
 0x35e   : > { %3333 = vmatprep.subr.bf16.mxu0 %v4995_v38  ;;  %v5079_v36 = vld [vmem:[%s6805_s7 + $0x70c] ss:$16 sps:$4 sm:$0xff]   ;;  %v5077_v38 = vld [vmem:[%s6805_s7 + $0x708] ss:$16 sps:$4 sm:$0xff]  }
 0x35f   : > { %3293 = vmatpush1.bf16.msra.mxu1 %v4990_v39  ;;  %v5082_v39 = vld [vmem:[%s6807_s9 + $0x74] ss:$8 sps:$4 sm:$0xff]  }
 0x360   : > { %3334 = vmatpush1.bf16.msra.mxu0 %v4993_v40  ;;  %3294 = vmatprep.subr.bf16.mxu1 %v4998_v9  ;;  %v5080_v40 = vld [vmem:[%s6807_s9 + $0x70] ss:$8 sps:$4 sm:$0xff]   ;;  %v5085_v9 = vld [vmem:[%s6807_s9 + $0x64] ss:$8 sps:$4 sm:$0xff]  }
 0x361   : > { %3335 = vmatprep.subr.bf16.mxu0 %v5001_v10 }
 0x363   : > { %3295 = vmatpush1.bf16.msra.mxu1 %v4996_v11 }
 0x364   : > { %3336 = vmatpush1.bf16.msra.mxu0 %v4999_v41  ;;  %3296 = vmatprep.subr.bf16.mxu1 %v5004_v12  ;;  %v5083_v41 = vld [vmem:[%s6807_s9 + $0x60] ss:$8 sps:$4 sm:$0xff]  }
 0x365   : > { %3337 = vmatprep.subr.bf16.mxu0 %v5007_v43 }
 0x367   : > { %3297 = vmatpush1.bf16.msra.mxu1 %v5002_v44 }
 0x368   : > { %3338 = vmatpush1.bf16.msra.mxu0 %v5005_v50  ;;  %3298 = vmatprep.subr.bf16.mxu1 %v5010_v51 }
 0x369   : > { %3339 = vmatprep.subr.bf16.mxu0 %v5013_v52 }
 0x36b   : > { %3299 = vmatpush1.bf16.msra.mxu1 %v5008_v53  ;;  %v5091_v53 = vld [vmem:[%s6807_s9 + $0x44] ss:$8 sps:$4 sm:$0xff]  }
 0x36c   : > { %3340 = vmatpush1.bf16.msra.mxu0 %v5011_v54  ;;  %3300 = vmatprep.subr.bf16.mxu1 %v5016_v49  ;;  %v5128_v54 = vld [vmem:[%s6807_s9 + $0x170] ss:$8 sps:$4 sm:$0xff]   ;;  %v5130_v49 = vld [vmem:[%s6807_s9 + $0x174] ss:$8 sps:$4 sm:$0xff]  }
 0x36d   : > { %3341 = vmatprep.subr.bf16.mxu0 %v5019_v55  ;;  %v5133_v55 = vld [vmem:[%s6807_s9 + $0x164] ss:$8 sps:$4 sm:$0xff]  }
 0x36f   : > { %3301 = vmatpush1.bf16.msra.mxu1 %v5014_v56  ;;  %v5089_v56 = vld [vmem:[%s6807_s9 + $0x40] ss:$8 sps:$4 sm:$0xff]  }
 0x370   : > { %3342 = vmatpush1.bf16.msra.mxu0 %v5017_v57  ;;  %3302 = vmatprep.subr.bf16.mxu1 %v5022_v58  ;;  %v5094_v57 = vld [vmem:[%s6807_s9 + $0x34] ss:$8 sps:$4 sm:$0xff]   ;;  %v5131_v58 = vld [vmem:[%s6807_s9 + $0x160] ss:$8 sps:$4 sm:$0xff]  }
 0x371   : > { %3343 = vmatprep.subr.bf16.mxu0 %v5025_v59  ;;  %v5136_v59 = vld [vmem:[%s6807_s9 + $0x154] ss:$8 sps:$4 sm:$0xff]  }
 0x373   : > { %3303 = vmatpush1.bf16.msra.mxu1 %v5020_v60  ;;  %v5092_v60 = vld [vmem:[%s6807_s9 + $0x30] ss:$8 sps:$4 sm:$0xff]  }
 0x374   : > { %3344 = vmatpush1.bf16.msra.mxu0 %v5023_v61  ;;  %3304 = vmatprep.subr.bf16.mxu1 %v5028_v63  ;;  %v5097_v61 = vld [vmem:[%s6807_s9 + $0x24] ss:$8 sps:$4 sm:$0xff]   ;;  %v5134_v63 = vld [vmem:[%s6807_s9 + $0x150] ss:$8 sps:$4 sm:$0xff]  }
 0x375   : > { %3345 = vmatprep.subr.bf16.mxu0 %v5031_v0  ;;  %v5139_v0 = vld [vmem:[%s6807_s9 + $0x144] ss:$8 sps:$4 sm:$0xff]  }
 0x377   : > { %3305 = vmatpush1.bf16.msra.mxu1 %v5026_v1  ;;  %v5095_v1 = vld [vmem:[%s6807_s9 + $0x20] ss:$8 sps:$4 sm:$0xff]  }
 0x378   : > { %3346 = vmatpush1.bf16.msra.mxu0 %v5029_v2  ;;  %3306 = vmatprep.subr.bf16.mxu1 %v5034_v3  ;;  %v5100_v2 = vld [vmem:[%s6807_s9 + $0x14] ss:$8 sps:$4 sm:$0xff]   ;;  %v5137_v3 = vld [vmem:[%s6807_s9 + $0x140] ss:$8 sps:$4 sm:$0xff]  }
 0x379   : > { %3347 = vmatprep.subr.bf16.mxu0 %v5037_v4  ;;  %v5142_v4 = vld [vmem:[%s6807_s9 + $0x134] ss:$8 sps:$4 sm:$0xff]  }
 0x37b   : > { %3307 = vmatpush2.bf16.msra.mxu1 %v5032_v7  ;;  %v5098_v7 = vld [vmem:[%s6807_s9 + $0x10] ss:$8 sps:$4 sm:$0xff]  }
 0x37c   : > { %3348 = vmatpush2.bf16.msra.mxu0 %v5035_v8  ;;  %3308 = vmatprep.subr.bf16.mxu1 %v5040_v18  ;;  %v5103_v8 = vld [vmem:[%s6807_s9 + $0x4] ss:$8 sps:$4 sm:$0xff]   ;;  %v5140_v18 = vld [vmem:[%s6807_s9 + $0x130] ss:$8 sps:$4 sm:$0xff]  }
 0x37d   : > { %3349 = vmatprep.subr.bf16.mxu0 %v5043_v19  ;;  %v5145_v19 = vld [vmem:[%s6807_s9 + $0x124] ss:$8 sps:$4 sm:$0xff]  }
 0x37f   : > { %3309 = vmatpush2.bf16.msra.mxu1 %v5038_v13  ;;  %v5101_v13 = vld [vmem:[%s6807_s9] ss:$8 sps:$4 sm:$0xff]  }
 0x380   : > { %3350 = vmatpush2.bf16.msra.mxu0 %v5041_v16  ;;  %3310 = vmatprep.subr.bf16.mxu1 %v5046_v17  ;;  %v5106_v16 = vld [vmem:[%s6807_s9 + $0xf4] ss:$8 sps:$4 sm:$0xff]   ;;  %v5143_v17 = vld [vmem:[%s6807_s9 + $0x120] ss:$8 sps:$4 sm:$0xff]  }
 0x381   : > { %3351 = vmatprep.subr.bf16.mxu0 %v5049_v20  ;;  %v5148_v20 = vld [vmem:[%s6807_s9 + $0x114] ss:$8 sps:$4 sm:$0xff]  }
 0x383   : > { %3311 = vmatpush2.bf16.msra.mxu1 %v5044_v21  ;;  %v5104_v21 = vld [vmem:[%s6807_s9 + $0xf0] ss:$8 sps:$4 sm:$0xff]  }
 0x384   : > { %3352 = vmatpush2.bf16.msra.mxu0 %v5047_v22  ;;  %3312 = vmatprep.subr.bf16.mxu1 %v5052_v23  ;;  %v5109_v22 = vld [vmem:[%s6807_s9 + $0xe4] ss:$8 sps:$4 sm:$0xff]   ;;  %v5146_v23 = vld [vmem:[%s6807_s9 + $0x110] ss:$8 sps:$4 sm:$0xff]  }
 0x385   : > { %3353 = vmatprep.subr.bf16.mxu0 %v5055_v24  ;;  %v5151_v24 = vld [vmem:[%s6807_s9 + $0x104] ss:$8 sps:$4 sm:$0xff]  }
 0x387   : > { %3313 = vmatpush2.bf16.msra.mxu1 %v5050_v25  ;;  %v5107_v25 = vld [vmem:[%s6807_s9 + $0xe0] ss:$8 sps:$4 sm:$0xff]  }
 0x388   : > { %3354 = vmatpush2.bf16.msra.mxu0 %v5053_v26  ;;  %3314 = vmatprep.subr.bf16.mxu1 %v5058_v27  ;;  %v5112_v26 = vld [vmem:[%s6807_s9 + $0xd4] ss:$8 sps:$4 sm:$0xff]   ;;  %v5149_v27 = vld [vmem:[%s6807_s9 + $0x100] ss:$8 sps:$4 sm:$0xff]  }
 0x389   : > { %3355 = vmatprep.subr.bf16.mxu0 %v5061_v28  ;;  %v5154_v28 = vld [vmem:[%s6807_s9 + $0x1f4] ss:$8 sps:$4 sm:$0xff]  }
 0x38b   : > { %3315 = vmatpush2.bf16.msra.mxu1 %v5056_v29  ;;  %v5110_v29 = vld [vmem:[%s6807_s9 + $0xd0] ss:$8 sps:$4 sm:$0xff]  }
 0x38c   : > { %3356 = vmatpush2.bf16.msra.mxu0 %v5059_v42  ;;  %3316 = vmatprep.subr.bf16.mxu1 %v5064_v15  ;;  %v5115_v42 = vld [vmem:[%s6807_s9 + $0xc4] ss:$8 sps:$4 sm:$0xff]   ;;  %v5152_v15 = vld [vmem:[%s6807_s9 + $0x1f0] ss:$8 sps:$4 sm:$0xff]  }
 0x38d   : > { %3357 = vmatprep.subr.bf16.mxu0 %v5067_v62  ;;  %v5157_v62 = vld [vmem:[%s6807_s9 + $0x1e4] ss:$8 sps:$4 sm:$0xff]  }
 0x38f   : > { %3317 = vmatpush2.bf16.msra.mxu1 %v5062_v31  ;;  %v5113_v31 = vld [vmem:[%s6807_s9 + $0xc0] ss:$8 sps:$4 sm:$0xff]  }
 0x390   : > { %3358 = vmatpush2.bf16.msra.mxu0 %v5065_v32  ;;  %3318 = vmatprep.subr.bf16.mxu1 %v5070_v33  ;;  %v5118_v32 = vld [vmem:[%s6807_s9 + $0xb4] ss:$8 sps:$4 sm:$0xff]   ;;  %v5155_v33 = vld [vmem:[%s6807_s9 + $0x1e0] ss:$8 sps:$4 sm:$0xff]  }
 0x391   : > { %3359 = vmatprep.subr.bf16.mxu0 %v5073_v5  ;;  %v5160_v5 = vld [vmem:[%s6807_s9 + $0x1d4] ss:$8 sps:$4 sm:$0xff]  }
 0x393   : > { %3319 = vmatpush2.bf16.msra.mxu1 %v5068_v34  ;;  %v5116_v34 = vld [vmem:[%s6807_s9 + $0xb0] ss:$8 sps:$4 sm:$0xff]  }
 0x394   : > { %3360 = vmatpush2.bf16.msra.mxu0 %v5071_v6  ;;  %3320 = vmatprep.subr.bf16.mxu1 %v5076_v35  ;;  %v5121_v6 = vld [vmem:[%s6807_s9 + $0xa4] ss:$8 sps:$4 sm:$0xff]   ;;  %v5158_v35 = vld [vmem:[%s6807_s9 + $0x1d0] ss:$8 sps:$4 sm:$0xff]  }
 0x395   : > { %3361 = vmatprep.subr.bf16.mxu0 %v5079_v36  ;;  %v5163_v36 = vld [vmem:[%s6807_s9 + $0x1c4] ss:$8 sps:$4 sm:$0xff]  }
 0x397   : > { %3321 = vmatpush2.bf16.msra.mxu1 %v5074_v37  ;;  %v5119_v37 = vld [vmem:[%s6807_s9 + $0xa0] ss:$8 sps:$4 sm:$0xff]  }
 0x398   : > { %3362 = vmatpush2.bf16.msra.mxu0 %v5077_v38  ;;  %3776 = vmatprep.subr.bf16.mxu1 %v5082_v39  ;;  %v5124_v38 = vld [vmem:[%s6807_s9 + $0x94] ss:$8 sps:$4 sm:$0xff]   ;;  %v5161_v39 = vld [vmem:[%s6807_s9 + $0x1c0] ss:$8 sps:$4 sm:$0xff]  }
 0x399   : > { %3817 = vmatprep.subr.bf16.mxu0 %v5130_v49 }
 0x39a   : > { %3323 = vmatmul.mubr.bf16.vlgmr.msra.gmra.mxu1 %v6091_v30  ;;  %v6488_v10 = vpop.f32.mrf.mxu1  ;;  %v6490_v11 = vpop.f32.mrf.mxu0  ;;  %v5088_v30 = vld [vmem:[%s6807_s9 + $0x54] ss:$8 sps:$4 sm:$0xff]  }
 0x39b   : > { %3364 = vmatmul.mubr.bf16.vlgmr.msra.gmra.mxu0 %v6093_v14  ;;  %3777 = vmatpush1.bf16.msra.mxu1 %v5080_v40  ;;  %v5086_v14 = vld [vmem:[%s6807_s9 + $0x50] ss:$8 sps:$4 sm:$0xff]   ;;  %v5166_v40 = vld [vmem:[%s6807_s9 + $0x1b4] ss:$8 sps:$4 sm:$0xff]  }
 0x39c   : > { %v6496_v12 = vpop.f32.mrf.mxu1  ;;  %v6498_v43 = vpop.f32.mrf.mxu0  ;;  %3778 = vmatprep.subr.bf16.mxu1 %v5085_v9  ;;  %3818 = vmatpush1.bf16.msra.mxu0 %v5128_v54  ;;  %v6653_v9 = vld [vmem:[%s6806_s8] sm:$0xf] }
 0x39d   : > { %3819 = vmatprep.subr.bf16.mxu0 %v5133_v55 }
 0x39e   : > { %v3082_v44 = vpop.f32.mrf.mxu1  ;;  %v3123_v50 = vpop.f32.mrf.mxu0 }
 0x39f   : > { %3779 = vmatpush1.bf16.msra.mxu1 %v5083_v41  ;;  %v5122_v41 = vld [vmem:[%s6807_s9 + $0x90] ss:$8 sps:$4 sm:$0xff]   ;;  %v3027_v50 = vrot.slane %v6653_v9, %v5831_v47 }
 0x3a0   : > { %v3083_v51 = vpop.f32.mrf.mxu1  ;;  %v3124_v52 = vpop.f32.mrf.mxu0  ;;  %3780 = vmatprep.subr.bf16.mxu1 %v5088_v30  ;;  %3820 = vmatpush1.bf16.msra.mxu0 %v5131_v58  ;;  %v5127_v30 = vld [vmem:[%s6807_s9 + $0x84] ss:$8 sps:$4 sm:$0xff]   ;;  %v5164_v44 = vld [vmem:[%s6807_s9 + $0x1b0] ss:$8 sps:$4 sm:$0xff]  }
 0x3a1   : > { %3821 = vmatprep.subr.bf16.mxu0 %v5136_v59  ;;  %v5125_v51 = vld [vmem:[%s6807_s9 + $0x80] ss:$8 sps:$4 sm:$0xff]   ;;  %v3079_v52 = vadd.f32 %v6488_v10, %v3027_v50 }
 0x3a2   : > { %v5167_v59 = vld [vmem:[%s6807_s9 + $0x1a0] ss:$8 sps:$4 sm:$0xff]  }
 0x3a3   : > { %3781 = vmatpush1.bf16.msra.mxu1 %v5086_v14  ;;  %v3031_v14 = vrot.slane %v6653_v9, %v5825_v45  ;;  %v3120_v54 = vadd.f32 %v6490_v11, %v3079_v52 }
 0x3a4   : > { %3782 = vmatprep.subr.bf16.mxu1 %v5091_v53  ;;  %3822 = vmatpush1.bf16.msra.mxu0 %v5134_v63 }
 0x3a5   : > { %3823 = vmatprep.subr.bf16.mxu0 %v5139_v0  ;;  %v3081_v53 = vadd.f32 %v6496_v12, %v3031_v14  ;;  %v5172_v0 = vld [vmem:[%s6807_s9 + $0x194] ss:$8 sps:$4 sm:$0xff]  }
 0x3a7   : > { %3783 = vmatpush1.bf16.msra.mxu1 %v5089_v56  ;;  %v5169_v56 = vld [vmem:[%s6807_s9 + $0x1a4] ss:$8 sps:$4 sm:$0xff]  }
 0x3a8   : > { %3784 = vmatprep.subr.bf16.mxu1 %v5094_v57  ;;  %3824 = vmatpush1.bf16.msra.mxu0 %v5137_v3  ;;  %v3122_v57 = vadd.f32 %v6498_v43, %v3081_v53  ;;  %v5170_v43 = vld [vmem:[%s6807_s9 + $0x190] ss:$8 sps:$4 sm:$0xff]  }
 0x3a9   : > { %3825 = vmatprep.subr.bf16.mxu0 %v5142_v4 }
 0x3ab   : > { %3785 = vmatpush1.bf16.msra.mxu1 %v5092_v60 }
 0x3ac   : > { %3786 = vmatprep.subr.bf16.mxu1 %v5097_v61  ;;  %3826 = vmatpush1.bf16.msra.mxu0 %v5140_v18 }
 0x3ad   : > { %3827 = vmatprep.subr.bf16.mxu0 %v5145_v19  ;;  %v5173_v19 = vld [vmem:[%s6807_s9 + $0x180] ss:$8 sps:$4 sm:$0xff]  }
 0x3af   : > { %3787 = vmatpush1.bf16.msra.mxu1 %v5095_v1 }
 0x3b0   : > { %3788 = vmatprep.subr.bf16.mxu1 %v5100_v2  ;;  %3828 = vmatpush1.bf16.msra.mxu0 %v5143_v17 }
 0x3b1   : > { %3829 = vmatprep.subr.bf16.mxu0 %v5148_v20 }
 0x3b3   : > { %3789 = vmatpush1.bf16.msra.mxu1 %v5098_v7 }
 0x3b4   : > { %3790 = vmatprep.subr.bf16.mxu1 %v5103_v8  ;;  %3830 = vmatpush1.bf16.msra.mxu0 %v5146_v23  ;;  %v5175_v8 = vld [vmem:[%s6807_s9 + $0x184] ss:$8 sps:$4 sm:$0xff]  }
 0x3b5   : > { %3831 = vmatprep.subr.bf16.mxu0 %v5151_v24 }
 0x3b7   : > { %3791 = vmatpush1.bf16.msra.mxu1 %v5101_v13 }
 0x3b8   : > { %3792 = vmatprep.subr.bf16.mxu1 %v5106_v16  ;;  %3832 = vmatpush1.bf16.msra.mxu0 %v5149_v27  ;;  %v5177_v27 = vld [vmem:[%s6809_s11 + $0x38] sm:$0xff]  }
 0x3b9   : > { %3833 = vmatprep.subr.bf16.mxu0 %v5154_v28  ;;  %v5178_v28 = vld [vmem:[%s6809_s11 + $0x70] sm:$0xff]  }
 0x3bb   : > { %3793 = vmatpush2.bf16.msra.mxu1 %v5104_v21 }
 0x3bc   : > { %3794 = vmatprep.subr.bf16.mxu1 %v5109_v22  ;;  %3834 = vmatpush2.bf16.msra.mxu0 %v5152_v15  ;;  %v5181_v15 = vld [vmem:[%s6809_s11 + $0x28] sm:$0xff]  }
 0x3bd   : > { %3835 = vmatprep.subr.bf16.mxu0 %v5157_v62  ;;  %v5182_v62 = vld [vmem:[%s6809_s11 + $0x60] sm:$0xff]  }
 0x3bf   : > { %3795 = vmatpush2.bf16.msra.mxu1 %v5107_v25 }
 0x3c0   : > { %3796 = vmatprep.subr.bf16.mxu1 %v5112_v26  ;;  %3836 = vmatpush2.bf16.msra.mxu0 %v5155_v33  ;;  %v5176_v26 = vld [vmem:[%s6809_s11 + $0x78] sm:$0xff]  }
 0x3c1   : > { %3837 = vmatprep.subr.bf16.mxu0 %v5160_v5  ;;  %v5185_v33 = vld [vmem:[%s6809_s11 + $0x18] sm:$0xff]   ;;  %v5186_v5 = vld [vmem:[%s6809_s11 + $0x50] sm:$0xff]  }
 0x3c3   : > { %3797 = vmatpush2.bf16.msra.mxu1 %v5110_v29  ;;  %v5179_v29 = vld [vmem:[%s6809_s11 + $0x30] sm:$0xff]  }
 0x3c4   : > { %3798 = vmatprep.subr.bf16.mxu1 %v5115_v42  ;;  %3838 = vmatpush2.bf16.msra.mxu0 %v5158_v35  ;;  %v5180_v42 = vld [vmem:[%s6809_s11 + $0x68] sm:$0xff]   ;;  %v3039_v35 = vrot.slane %v6653_v9, %v5828_v46 }
 0x3c5   : > { %3839 = vmatprep.subr.bf16.mxu0 %v5163_v36 }
 0x3c7   : > { %3799 = vmatpush2.bf16.msra.mxu1 %v5113_v31  ;;  %v5183_v31 = vld [vmem:[%s6809_s11 + $0x20] sm:$0xff]  }
 0x3c8   : > { %3800 = vmatprep.subr.bf16.mxu1 %v5118_v32  ;;  %3840 = vmatpush2.bf16.msra.mxu0 %v5161_v39  ;;  %v5184_v32 = vld [vmem:[%s6809_s11 + $0x58] sm:$0xff]  }
 0x3c9   : > { %3841 = vmatprep.subr.bf16.mxu0 %v5166_v40 }
 0x3cb   : > { %3801 = vmatpush2.bf16.msra.mxu1 %v5116_v34  ;;  %v5187_v34 = vld [vmem:[%s6809_s11 + $0x10] sm:$0xff]  }
 0x3cc   : > { %3802 = vmatprep.subr.bf16.mxu1 %v5121_v6  ;;  %3842 = vmatpush2.bf16.msra.mxu0 %v5164_v44  ;;  %v3035_v6 = vrot.slane %v6653_v9, %v5834_v48 }
 0x3cd   : > { %3843 = vmatprep.subr.bf16.mxu0 %v5169_v56 }
 0x3cf   : > { %3803 = vmatpush2.bf16.msra.mxu1 %v5119_v37 }
 0x3d0   : > { %3804 = vmatprep.subr.bf16.mxu1 %v5124_v38  ;;  %3844 = vmatpush2.bf16.msra.mxu0 %v5167_v59  ;;  %v5188_v59 = vld [vmem:[%s6809_s11 + $0x48] sm:$0xff]  }
 0x3d1   : > { %3845 = vmatprep.subr.bf16.mxu0 %v5172_v0 }
 0x3d3   : > { %3805 = vmatpush2.bf16.msra.mxu1 %v5122_v41 }
 0x3d4   : > { %3806 = vmatprep.subr.bf16.mxu1 %v5127_v30  ;;  %3846 = vmatpush2.bf16.msra.mxu0 %v5170_v43 }
 0x3d5   : > { %3847 = vmatprep.subr.bf16.mxu0 %v5175_v8 }
 0x3d7   : > { %3807 = vmatpush2.bf16.msra.mxu1 %v5125_v51 }
 0x3d8   : > { %3848 = vmatpush2.bf16.msra.mxu0 %v5173_v19  ;;  %4570 = vmatprep.subr.bf16.mxu1 %v5176_v26 }
 0x3da   : > { %v3160_v49 = vpop.f32.mrf.mxu1  ;;  %v3201_v55 = vpop.f32.mrf.mxu0 }
 0x3db   : > { %v3161_v58 = vadd.f32 %v3160_v49, %v3120_v54 }
 0x3dc   : > { %v3162_v60 = vpop.f32.mrf.mxu1  ;;  %v3203_v10 = vpop.f32.mrf.mxu0 }
 0x3dd   : > { %v3202_v12 = vadd.f32 %v3201_v55, %v3161_v58  ;;  %v3163_v61 = vadd.f32 %v3162_v60, %v3122_v57  ;;  %v5189_v60 = vld [vmem:[%s6809_s11 + $0x8] sm:$0xff]  }
 0x3de   : > { %v3164_v11 = vpop.f32.mrf.mxu1  ;;  %v3205_v63 = vpop.f32.mrf.mxu0 }
 0x3df   : > { %v3204_v1 = vadd.f32 %v3203_v10, %v3163_v61  ;;  %v3372_v2 = vmax.f32 %v3202_v12, 0.0  ;;  %v5190_v61 = vld [vmem:[%s6809_s11 + $0x40] sm:$0xff]  }
 0x3e0   : > { %v3165_v3 = vpop.f32.mrf.mxu1  ;;  %v3206_v4 = vpop.f32.mrf.mxu0  ;;  %v5191_v11 = vld [vmem:[%s6809_s11] sm:$0xff]  }
 0x3e1   : > { %v3373_v7 = vmax.f32 %v3204_v1, 0.0  ;;  %v3376_v13 = vpack.c.bf16 %v3372_v2, %v3372_v2  ;;  %v3444_v63 = vld [vmem:[%s6808_s10] sm:$0x3] }
 0x3e2   : > { %v3769_v0 = vrot.slane %v3444_v63, %v5831_v47  ;;  %v3773_v1 = vrot.slane %v3444_v63, %v5825_v45  ;;  %v3894_v45 = vld [vmem:[%s6810_s12] sm:$0x1] }
 0x3e3   : > { %v3377_v18 = vpack.c.bf16 %v3373_v7, %v3373_v7 }
 0x3e5   : > { %3808 = vmatprep.mubr.bf16.mxu1 %v3377_v18 }
 0x3e6   : > { %3809 = vmatmul.mubr.bf16.vlgmr.msra.gmra.mxu1 %v3376_v13 }
 0x3e7   : > { %4571 = vmatpush3.bf16.msra.mxu1 %v5177_v27 }
 0x3e8   : > { %4572 = vmatprep.subr.bf16.mxu1 %v5178_v28 }
 0x3eb   : > { %4573 = vmatpush3.bf16.msra.mxu1 %v5179_v29 }
 0x3ec   : > { %4574 = vmatprep.subr.bf16.mxu1 %v5180_v42 }
 0x3ef   : > { %4575 = vmatpush3.bf16.msra.mxu1 %v5181_v15 }
 0x3f0   : > { %4576 = vmatprep.subr.bf16.mxu1 %v5182_v62 }
 0x3f3   : > { %4577 = vmatpush3.bf16.msra.mxu1 %v5183_v31 }
 0x3f4   : > { %4578 = vmatprep.subr.bf16.mxu1 %v5184_v32 }
 0x3f7   : > { %4579 = vmatpush3.bf16.msra.mxu1 %v5185_v33 }
 0x3f8   : > { %4580 = vmatprep.subr.bf16.mxu1 %v5186_v5 }
 0x3fb   : > { %4581 = vmatpush3.bf16.msra.mxu1 %v5187_v34 }
 0x3fc   : > { %4582 = vmatprep.subr.bf16.mxu1 %v5188_v59 }
 0x3ff   : > { %4583 = vmatpush3.bf16.msra.mxu1 %v5189_v60 }
 0x400   : > { %4584 = vmatprep.subr.bf16.mxu1 %v5190_v61 }
 0x403   : > { %4585 = vmatpush3.bf16.msra.mxu1 %v5191_v11 }
 0x41a   : > { %v3242_v16 = vpop.f32.mrf.mxu1 }
 0x41b   : > { %v3283_v17 = vpop.f32.mrf.mxu0  ;;  %v3243_v36 = vadd.f32 %v3242_v16, %v3035_v6 }
 0x41c   : > { %v3244_v20 = vpop.f32.mrf.mxu1 }
 0x41d   : > { %v3285_v21 = vpop.f32.mrf.mxu0  ;;  %v3245_v37 = vadd.f32 %v3244_v20, %v3039_v35  ;;  %v3284_v38 = vadd.f32 %v3283_v17, %v3243_v36 }
 0x41e   : > { %v3246_v22 = vpop.f32.mrf.mxu1 }
 0x41f   : > { %v3287_v23 = vpop.f32.mrf.mxu0  ;;  %v3286_v40 = vadd.f32 %v3285_v21, %v3245_v37 }
 0x420   : > { %v3247_v24 = vpop.f32.mrf.mxu1 }
 0x421   : > { %v3288_v25 = vpop.f32.mrf.mxu0 }
 0x45a   : > { %v3324_v39 = vpop.f32.mrf.mxu1 }
 0x45b   : > { %v3325_v41 = vadd.f32 %v3324_v39, %v3284_v38  ;;  %v3365_v30 = vpop.f32.mrf.mxu0 }
 0x45c   : > { %v3326_v44 = vpop.f32.mrf.mxu1 }
 0x45d   : > { %v3366_v50 = vadd.f32 %v3365_v30, %v3325_v41  ;;  %v3327_v14 = vadd.f32 %v3326_v44, %v3286_v40  ;;  %v3367_v51 = vpop.f32.mrf.mxu0 }
 0x45e   : > { %v3328_v52 = vpop.f32.mrf.mxu1 }
 0x45f   : > { %v3368_v53 = vadd.f32 %v3367_v51, %v3327_v14  ;;  %v3369_v54 = vpop.f32.mrf.mxu0  ;;  %v3374_v49 = vmax.f32 %v3366_v50, 0.0 }
 0x460   : > { %v3329_v55 = vpop.f32.mrf.mxu1 }
 0x461   : > { %v3375_v48 = vmax.f32 %v3368_v53, 0.0  ;;  %v3370_v56 = vpop.f32.mrf.mxu0  ;;  %v3378_v46 = vpack.c.bf16 %v3374_v49, %v3374_v49 }
 0x463   : > { %v3379_v57 = vpack.c.bf16 %v3375_v48, %v3375_v48 }
 0x465   : > { %3849 = vmatprep.mubr.bf16.mxu0 %v3379_v57 }
 0x466   : > { %3850 = vmatmul.mubr.bf16.vlgmr.msra.gmra.mxu0 %v3378_v46 }
 0x4a6   : > { %v3810_v9 = vpop.f32.mrf.mxu1 }
 0x4a7   : > { %v3811_v43 = vadd.f32 %v3810_v9, %v3769_v0 }
 0x4a8   : > { %v3812_v58 = vpop.f32.mrf.mxu1 }
 0x4a9   : > { %v3813_v3 = vadd.f32 %v3812_v58, %v3773_v1 }
 0x4aa   : > { %v3814_v10 = vpop.f32.mrf.mxu1 }
 0x4ac   : > { %v3815_v12 = vpop.f32.mrf.mxu1 }
 0x526   : > { %v3851_v2 = vpop.f32.mrf.mxu0 }
 0x527   : > { %v3852_v4 = vadd.f32 %v3851_v2, %v3811_v43 }
 0x528   : > { %v3853_v7 = vpop.f32.mrf.mxu0 }
 0x529   : > { %v3854_v8 = vadd.f32 %v3853_v7, %v3813_v3  ;;  %v3858_v18 = vmax.f32 %v3852_v4, 0.0 }
 0x52a   : > { %v3855_v19 = vpop.f32.mrf.mxu0 }
 0x52b   : > { %v3859_v13 = vmax.f32 %v3854_v8, 0.0  ;;  %v3860_v20 = vpack.c.bf16 %v3858_v18, %v3858_v18 }
 0x52c   : > { %v3856_v16 = vpop.f32.mrf.mxu0 }
 0x52d   : > { %v3861_v17 = vpack.c.bf16 %v3859_v13, %v3859_v13 }
 0x52f   : > { %4023 = vmatprep.mubr.bf16.mxu1 %v3861_v17 }
 0x530   : > { %4024 = vmatmul.mubr.bf16.vlgmr.msra.gmra.mxu1 %v3860_v20 }
 0x5f0   : > { %v4586_v47 = vpop.f32.mrf.mxu1 }
 0x5f2   : > { %v4587_v21 = vpop.f32.mrf.mxu1 }
 0x5f3   : > { %v4588_v22 = vadd.f32 %v4587_v21, %v4586_v47 }
 0x5f4   : > { %v4589_v23 = vpop.f32.mrf.mxu1 }
 0x5f5   : > { %v4026_v24 = vadd.f32 %v4588_v22, %v3894_v45 }
 0x5f6   : > { %v4590_v25 = vpop.f32.mrf.mxu1 }
 0x5f7   : > { %4031 = vst [vmem:[%s470_s16] sm:$0x1] %v4026_v24 }
 0x5f8   : > { %5205 = shalt.err (!%p5202_p5)
}
 0x5f9   : > { %s5206_s23 = scalar_lea.hbm %s6758_s17, 16  ;;  %s5210_s14 = scalar_lea.hbm %s6811_s13, 32 }
 0x5fa   : > { %p5207_p6 = scmp.ne.s32.totalorder %s6758_s17, %s5206_s23  ;;  %p5211_p10 = scmp.lt.s32.totalorder %s6758_s17, %s6811_s13 }
 0x5fb   : > { %p5212_p11 = scmp.lt.s32.totalorder %s5210_s14, %s5206_s23 }
 0x5fc   : > { %p5208_p7 = pnand %p5207_p6, %p5385_p4 }
 0x5fd   : > { %p5213_p12 = por %p5212_p11, %p5211_p10 }
 0x5fe   : > { %p5209_p9 = pneg %p5208_p7 }
 0x600   : > { %p5214_p13 = pnand %p5213_p12, %p5209_p9 }
 0x602   : > { %5217 = shalt.err (!%p5214_p13)
}
 0x603   : > { %4624 = dma.vmem_to_hbm [thread:$0]  (%p5385_p4), %s4046_s24, 16, %s6758_s17, %s4033_s22  }
 0x604 PF: > { %p4630_p0 = scmp.ge.s32.totalorder %s5268_s30, 2  ;;  %s4057_s1 = sand.u32 1, %s5248_s25  }
 0x605   : > { %s4058_s19 = scalar_lea.sflag [#allocation4], %s4057_s1 }
 0x606   : > { %p4627_p1 = pnand %p4630_p0, %p5392_p8 }
 0x608   : > { %p4628_p2 = pneg %p4627_p1 }
 0x60a   : > { %5243 = dma.done.wait (%p4628_p2), %s4058_s19, 16  }
 0x60b   : > { %5245 = vsyncadd (%p4628_p2), %s4058_s19, 4294967280  ;;  %s26_s30 = sadd.s32 1, %s5268_s30   ;;  %s6822_s28 = sld [smem:[#allocation6_spill]] }
 0x60c   : > { %p23_p3 = scmp.ge.s32.totalorder %s26_s30, 4   ;;  %s6823_s29 = sld [smem:[#allocation7_spill]] }
 0x60d   : > { %s6824_s25 = smov %s5252_s26  ;;  %s6825_s26 = smov %s5256_s27 }
 0x60e   : > { %s6826_s27 = smov %s5398_s21  ;;  %25 = sbr.rel (!%p23_p3) target bundleno = 7 (0x7), region = 118 }
 0x613   :  { %4062 = vsyncpa [#allocation4], 1 }
 0x614   :  { %4064 = vsyncpa [#allocation4 + $0x1], 1 }

// kernel: pointnet_forward.6
= control target key start
LH: loop header
LB: loop body
LE: loop exit
PB: predicated region body
PF: predicated region fallthrough
CT: control target
= control target key end

     0   :  { %s11533_s0 = inlined_call_operand.vmem [shape: bf16[2,16,128], index: 0, kind: input, shape index: {}]   ;;  %s11534_s1 = inlined_call_operand.vmem [shape: bf16[128,64], index: 1, kind: input, shape index: {}]   ;;  %s11535_s2 = inlined_call_operand.hbm [shape: f32[1,64], index: 2, kind: input, shape index: {}]   ;;  %s11536_s3 = inlined_call_operand.hbm [shape: bf16[64,128], index: 3, kind: input, shape index: {}]   ;;  %s11537_s4 = inlined_call_operand.hbm [shape: f32[1,128], index: 4, kind: input, shape index: {}]   ;;  %s11538_s5 = inlined_call_operand.hbm [shape: bf16[128,1024], index: 5, kind: input, shape index: {}]   ;;  %s11539_s6 = inlined_call_operand.hbm [shape: f32[1,1024], index: 6, kind: input, shape index: {}]   ;;  %s11540_s7 = inlined_call_operand.vmem [shape: bf16[1024,512], index: 7, kind: input, shape index: {}]   ;;  %s11541_s8 = inlined_call_operand.hbm [shape: f32[1,512], index: 8, kind: input, shape index: {}]   ;;  %s11542_s9 = inlined_call_operand.hbm [shape: bf16[512,256], index: 9, kind: input, shape index: {}]   ;;  %s11543_s10 = inlined_call_operand.hbm [shape: f32[1,256], index: 10, kind: input, shape index: {}]   ;;  %s11544_s11 = inlined_call_operand.hbm [shape: bf16[256,4096], index: 11, kind: input, shape index: {}]   ;;  %s11545_s12 = inlined_call_operand.hbm [shape: f32[1,4096], index: 12, kind: input, shape index: {}]   ;;  %s11546_s13 = inlined_call_operand.vmem [shape: f32[2,1,4096], index: 13, kind: output, shape index: {}]  }
   0x1   :  { %11550 = sst [smem:[#allocation25_spill]] %s11535_s2 }
   0x2   :  { %11551 = sst [smem:[#allocation26_spill]] %s11536_s3 }
   0x3   :  { %18 = vsyncpa [#allocation4], 0 }
   0x4   :  { %19 = vsyncpa [#allocation6], 0 }
   0x5   :  { %20 = vsyncpa [#allocation9], 0 }
   0x6   :  { %21 = vsyncpa [#allocation12], 0 }
   0x7   :  { %22 = vsyncpa [#allocation15], 0 }
   0x8   :  { %23 = vsyncpa [#allocation18], 0  ;;  %s10292_s25 = smov 0   ;;  %s10294_s26 = smov 0  }
   0x9   :  { %s10296_s27 = smov 0  }
   0xa LB: > { %s10201_s28 = smov [#allocation5]   ;;  %s8275_s30 = sadd.s32 4294967295, %s10199_s27   ;;  %s10199_s27 = sphi %s10296_s27, %s29_s27   ;;  %s10195_s26 = sphi %s10294_s26, %s11561_s26   ;;  %s10191_s25 = sphi %s10292_s25, %s11560_s25  }
   0xb   : > { %s378_s29 = sshll.u32 %s10201_s28, 4  ;;  %p8277_p0 = scmp.ge.s32.totalorder %s10199_s27, 1  ;;  %s379_s29 = int_to_ptr.vmem [resolvable:$true] %s378_s29 }
   0xc   : > { %p352_p1 = scmp.lt.s32.totalorder %s10199_s27, 3  ;;  %p10310_p2 = scmp.eq.s32.totalorder %s8275_s30, 0 }
   0xd   : > { %s10202_s16 = smov [#allocation8]   ;;  %s10203_s19 = smov [#allocation11]  }
   0xe   : > { %s11552_s14 = scalar_select %p10310_p2, 1, 0 }
   0xf   : > { %p10314_p3 = pnand %p8277_p0, %p352_p1  ;;  %s402_s17 = sshll.u32 %s10202_s16, 4  ;;  %s10320_s17 = int_to_ptr.vmem [resolvable:$true] %s402_s17 }
  0x10   : > { %s10328_s20 = sshll.u32 %s10203_s19, 4  ;;  %s9904_s22 = scalar_lea.vmem %s379_s29, 512  ;;  %s431_s20 = int_to_ptr.vmem [resolvable:$true] %s10328_s20 }
  0x11   : > { %s11553_s15 = scalar_select %p10314_p3, 1, 0 }
  0x12   : > { %p9304_p4 = pneg %p10314_p3  ;;  %p9905_p7 = scmp.ne.s32.totalorder %s379_s29, %s9904_s22 }
  0x13   : > { %p9912_p10 = scmp.lt.s32.totalorder %s379_s29, %s379_s29  ;;  %p9913_p11 = scmp.lt.s32.totalorder %s9904_s22, %s9904_s22 }
  0x14   : > { %p10324_p5 = pnand %p10310_p2, %p9304_p4 }
  0x15   : > { %p9914_p12 = por %p9913_p11, %p9912_p10 }
  0x16   : > { %p10332_p6 = pneg %p10324_p5 }
  0x18   : > { %p9907_p8 = pnand %p9905_p7, %p10332_p6 }
  0x1a   : > { %p9908_p9 = pneg %p9907_p8 }
  0x1c   : > { %p9915_p13 = pnand %p9914_p12, %p9908_p9 }
  0x1e   : > { %9918 = shalt.err (!%p9915_p13)
}
  0x1f   : > { %s10204_s23 = smov 64   ;;  %s10205_s24 = smov 4  }
  0x20   : > { %s11556_s3 = sld [smem:[#allocation26_spill]]  ;;  %s9930_s16 = scalar_lea.vmem %s10320_s17, 8192 }
  0x21   : > { %p9931_p0 = scmp.ne.s32.totalorder %s10320_s17, %s9930_s16  ;;  %p9938_p7 = scmp.lt.s32.totalorder %s10320_s17, %s10320_s17 }
  0x22   : > { %p9939_p8 = scmp.lt.s32.totalorder %s9930_s16, %s9930_s16 }
  0x23   : > { %p9933_p1 = pnand %p9931_p0, %p10332_p6 }
  0x24   : > { %p9940_p9 = por %p9939_p8, %p9938_p7 }
  0x25   : > { %p9934_p4 = pneg %p9933_p1 }
  0x26   : > { %9310 = dma.hbm_to_vmem [thread:$0]  (!%p10324_p5), %s11556_s3, 512, %s379_s29, [#allocation6], %s10204_s23, %s10204_s23, %s10205_s24  }
  0x27   : > { %p9941_p10 = pnand %p9940_p9, %p9934_p4 }
  0x29   : > { %9944 = shalt.err (!%p9941_p10)
}
  0x2a   : > { %s10206_s19 = smov 512   ;;  %s10207_s22 = smov 32  }
  0x2b   : > { %9316 = dma.hbm_to_vmem [thread:$0]  (!%p10324_p5), %s11538_s5, 8192, %s10320_s17, [#allocation9], %s10206_s19, %s10206_s19, %s10207_s22  }
  0x2c   : > { %s10208_s23 = smov [#allocation14]   ;;  %s9956_s30 = scalar_lea.vmem %s431_s20, 64 }
  0x2d   : > { %s454_s24 = sshll.u32 %s10208_s23, 4  ;;  %p9957_p11 = scmp.ne.s32.totalorder %s431_s20, %s9956_s30  ;;  %s455_s24 = int_to_ptr.vmem [resolvable:$true] %s454_s24 }
  0x2e   : > { %p9964_p0 = scmp.lt.s32.totalorder %s431_s20, %s431_s20  ;;  %p9965_p1 = scmp.lt.s32.totalorder %s9956_s30, %s9956_s30 }
  0x2f   : > { %p9959_p12 = pnand %p9957_p11, %p10332_p6 }
  0x30   : > { %p9966_p4 = por %p9965_p1, %p9964_p0 }
  0x31   : > { %p9960_p13 = pneg %p9959_p12 }
  0x33   : > { %p9967_p7 = pnand %p9966_p4, %p9960_p13 }
  0x35   : > { %9970 = shalt.err (!%p9967_p7)
}
  0x36   : > { %9322 = dma.hbm_to_vmem [thread:$0]  (!%p10324_p5), %s11541_s8, 64, %s431_s20, [#allocation12]  }
  0x37   : > { %s9982_s17 = scalar_lea.vmem %s455_s24, 32  ;;  %p9990_p11 = scmp.lt.s32.totalorder %s455_s24, %s455_s24 }
  0x38   : > { %p9983_p8 = scmp.ne.s32.totalorder %s455_s24, %s9982_s17  ;;  %p9991_p12 = scmp.lt.s32.totalorder %s9982_s17, %s9982_s17 }
  0x3a   : > { %p9985_p9 = pnand %p9983_p8, %p10332_p6  ;;  %p9992_p2 = por %p9991_p12, %p9990_p11 }
  0x3c   : > { %p9986_p10 = pneg %p9985_p9 }
  0x3e   : > { %p9993_p3 = pnand %p9992_p2, %p9986_p10 }
  0x40   : > { %9996 = shalt.err (!%p9993_p3)
}
  0x41   : > { %9328 = dma.hbm_to_vmem [thread:$0]  (!%p10324_p5), %s11543_s10, 32, %s455_s24, [#allocation15]  }
  0x42   : > { %s41_s3 = sadd.s32 1, %s10195_s26  ;;  %s10209_s20 = smov [#allocation3]  }
  0x43   : > { %s368_s28 = sshll.u32 %s10209_s20, 4  ;;  %p43_p13 = scmp.ge.s32.totalorder %s41_s3, 2  ;;  %s369_s28 = int_to_ptr.vmem [resolvable:$true] %s368_s28 }
  0x44   : > { %s10008_s29 = scalar_lea.vmem %s369_s28, 16  ;;  %s10015_s23 = scalar_lea.vmem %s369_s28, 32 }
  0x45   : > { %p10009_p0 = scmp.ne.s32.totalorder %s369_s28, %s10008_s29  ;;  %p10016_p2 = scmp.lt.s32.totalorder %s369_s28, %s369_s28 }
  0x46   : > { %p10017_p3 = scmp.lt.s32.totalorder %s10015_s23, %s10008_s29 }
  0x47   : > { %p10011_p1 = pnand %p10009_p0, %p10332_p6 }
  0x48   : > { %p10018_p7 = por %p10017_p3, %p10016_p2 }
  0x49   : > { %p10012_p4 = pneg %p10011_p1 }
  0x4b   : > { %p10019_p8 = pnand %p10018_p7, %p10012_p4 }
  0x4d   : > { %10022 = shalt.err (!%p10019_p8)
}
  0x4e   : > { %s11557_s2 = sld [smem:[#allocation25_spill]]  ;;  %s11563_s3 = smov (%p43_p13, %s41_s3), 0 }
  0x4f   : > { %s10210_s16 = smov [#allocation7]   ;;  %s10211_s19 = smov [#allocation10]  }
  0x50   : > { %s392_s17 = sshll.u32 %s10210_s16, 4  ;;  %s416_s22 = sshll.u32 %s10211_s19, 4  ;;  %s393_s17 = int_to_ptr.vmem [resolvable:$true] %s392_s17  ;;  %s417_s22 = int_to_ptr.vmem [resolvable:$true] %s416_s22 }
  0x51   : > { %s10034_s20 = scalar_lea.vmem %s393_s17, 16  ;;  %s10041_s29 = scalar_lea.vmem %s393_s17, 32 }
  0x52   : > { %p10035_p9 = scmp.ne.s32.totalorder %s393_s17, %s10034_s20  ;;  %p10042_p12 = scmp.lt.s32.totalorder %s393_s17, %s393_s17 }
  0x53   : > { %p10043_p0 = scmp.lt.s32.totalorder %s10041_s29, %s10034_s20 }
  0x54   : > { %9307 = dma.hbm_to_vmem [thread:$0]  (!%p10324_p5), %s11557_s2, 16, %s369_s28, [#allocation4]  }
  0x55   : > { %p10037_p10 = pnand %p10035_p9, %p10332_p6  ;;  %p10044_p1 = por %p10043_p0, %p10042_p12 }
  0x57   : > { %p10038_p11 = pneg %p10037_p10 }
  0x59   : > { %p10045_p4 = pnand %p10044_p1, %p10038_p11 }
  0x5b   : > { %10048 = shalt.err (!%p10045_p4)
}
  0x5c   : > { %9313 = dma.hbm_to_vmem [thread:$0]  (!%p10324_p5), %s11537_s4, 16, %s393_s17, [#allocation6]  }
  0x5d   : > { %s10060_s30 = scalar_lea.vmem %s417_s22, 128  ;;  %p10068_p7 = scmp.lt.s32.totalorder %s417_s22, %s417_s22 }
  0x5e   : > { %p10061_p13 = scmp.ne.s32.totalorder %s417_s22, %s10060_s30  ;;  %p10069_p8 = scmp.lt.s32.totalorder %s10060_s30, %s10060_s30 }
  0x60   : > { %p10063_p2 = pnand %p10061_p13, %p10332_p6  ;;  %p10070_p9 = por %p10069_p8, %p10068_p7 }
  0x62   : > { %p10064_p3 = pneg %p10063_p2 }
  0x64   : > { %p10071_p10 = pnand %p10070_p9, %p10064_p3 }
  0x66   : > { %10074 = shalt.err (!%p10071_p10)
}
  0x67   : > { %9319 = dma.hbm_to_vmem [thread:$0]  (!%p10324_p5), %s11539_s6, 128, %s417_s22, [#allocation9]  }
  0x68   : > { %s10212_s19 = smov [#allocation13]  }
  0x69   : > { %s440_s20 = sshll.u32 %s10212_s19, 4  ;;  %s441_s20 = int_to_ptr.vmem [resolvable:$true] %s440_s20 }
  0x6a   : > { %s10086_s17 = scalar_lea.vmem %s441_s20, 8192  ;;  %p10094_p1 = scmp.lt.s32.totalorder %s441_s20, %s441_s20 }
  0x6b   : > { %p10087_p11 = scmp.ne.s32.totalorder %s441_s20, %s10086_s17  ;;  %p10095_p4 = scmp.lt.s32.totalorder %s10086_s17, %s10086_s17 }
  0x6d   : > { %p10089_p12 = pnand %p10087_p11, %p10332_p6  ;;  %p10096_p13 = por %p10095_p4, %p10094_p1 }
  0x6f   : > { %p10090_p0 = pneg %p10089_p12 }
  0x71   : > { %p10097_p2 = pnand %p10096_p13, %p10090_p0 }
  0x73   : > { %10100 = shalt.err (!%p10097_p2)
}
  0x74   : > { %s10213_s29 = smov 128   ;;  %s10214_s28 = smov 8  }
  0x75   : > { %9325 = dma.hbm_to_vmem [thread:$0]  (!%p10324_p5), %s11542_s9, 8192, %s441_s20, [#allocation12], %s10213_s29, %s10213_s29, %s10214_s28  }
  0x76   : > { %s10215_s30 = smov [#allocation16]  }
  0x77   : > { %s464_s24 = sshll.u32 %s10215_s30, 4  ;;  %s465_s24 = int_to_ptr.vmem [resolvable:$true] %s464_s24 }
  0x78   : > { %s10112_s16 = scalar_lea.vmem %s465_s24, 65536  ;;  %p10120_p9 = scmp.lt.s32.totalorder %s465_s24, %s465_s24 }
  0x79   : > { %p10113_p3 = scmp.ne.s32.totalorder %s465_s24, %s10112_s16  ;;  %p10121_p10 = scmp.lt.s32.totalorder %s10112_s16, %s10112_s16 }
  0x7b   : > { %p10115_p7 = pnand %p10113_p3, %p10332_p6  ;;  %p10122_p11 = por %p10121_p10, %p10120_p9 }
  0x7d   : > { %p10116_p8 = pneg %p10115_p7 }
  0x7f   : > { %p10123_p12 = pnand %p10122_p11, %p10116_p8 }
  0x81   : > { %10126 = shalt.err (!%p10123_p12)
}
  0x82   : > { %s10216_s19 = smov 2048   ;;  %s10217_s20 = smov [#allocation17]  }
  0x83   : > { %9331 = dma.hbm_to_vmem [thread:$0]  (!%p10324_p5), %s11544_s11, 65536, %s465_s24, [#allocation15], %s10216_s19, %s10216_s19, %s10213_s29  }
  0x84   : > { %s478_s28 = sshll.u32 %s10217_s20, 4  ;;  %s479_s28 = int_to_ptr.vmem [resolvable:$true] %s478_s28 }
  0x85   : > { %s10138_s23 = scalar_lea.vmem %s479_s28, 512  ;;  %p10146_p13 = scmp.lt.s32.totalorder %s479_s28, %s479_s28 }
  0x86   : > { %p10139_p0 = scmp.ne.s32.totalorder %s479_s28, %s10138_s23  ;;  %p10147_p2 = scmp.lt.s32.totalorder %s10138_s23, %s10138_s23 }
  0x88   : > { %p10141_p1 = pnand %p10139_p0, %p10332_p6  ;;  %p10148_p3 = por %p10147_p2, %p10146_p13 }
  0x8a   : > { %p10142_p4 = pneg %p10141_p1 }
  0x8c   : > { %p10149_p7 = pnand %p10148_p3, %p10142_p4 }
  0x8e   : > { %10152 = shalt.err (!%p10149_p7)
}
  0x8f   : > { %9334 = dma.hbm_to_vmem [thread:$0]  (!%p10324_p5), %s11545_s12, 512, %s479_s28, [#allocation18]  }
  0x90   : > { %p11558_p8 = scmp.ne.s32.totalorder %s11553_s15, 0 }
  0x91   : > { %p11559_p9 = scmp.ne.s32.totalorder (!%p11558_p8), %s11552_s14, 0 }
  0x92   : > { %504 = sbr.rel (%p11558_p8) target bundleno = 2121 (0x849), region = 72 }
  0x97   : > { %10166 = dma.done.wait (%p11559_p9), [#allocation4], 16  }
  0x98   : > { %10168 = vsyncadd (%p11559_p9), [#allocation4], 4294967280 }
  0x99   : > { %10170 = dma.done.wait (%p11559_p9), [#allocation6], 528  }
  0x9a   : > { %10172 = vsyncadd (%p11559_p9), [#allocation6], 4294966768 }
  0x9b   : > { %10174 = dma.done.wait (%p11559_p9), [#allocation9], 8320  }
  0x9c   : > { %10176 = vsyncadd (%p11559_p9), [#allocation9], 4294958976 }
  0x9d   : > { %10178 = dma.done.wait (%p11559_p9), [#allocation12], 8256  }
  0x9e   : > { %10180 = vsyncadd (%p11559_p9), [#allocation12], 4294959040 }
  0x9f   : > { %10182 = dma.done.wait (%p11559_p9), [#allocation15], 65568  }
  0xa0   : > { %10184 = vsyncadd (%p11559_p9), [#allocation15], 4294901728 }
  0xa1   : > { %10186 = dma.done.wait (%p11559_p9), [#allocation18], 512  }
  0xa2   : > { %10188 = vsyncadd (%p11559_p9), [#allocation18], 4294966784  ;;  %v10218_v0 = vmov 0.0   ;;  %vm10219_vm0 = vmmov 0   ;;  %p588_p5 = scmp.lt.s32.totalorder %s10191_s25, 1  ;;  %v9400_v1 = vld [vmem:[%s11534_s1 + $0x38] sm:$0xff]  }
  0xa3   : > { %9232 = vmatprep.subr.bf16.mxu0 %v10218_v0  ;;  %9248 = vmatprep.mubr.msk.bf16.mxu0 %vm10219_vm0, %v10218_v0  ;;  %v9401_v2 = vld [vmem:[%s11534_s1 + $0x30] sm:$0xff]   ;;  %v9402_v3 = vld [vmem:[%s11534_s1 + $0x28] sm:$0xff]   ;;  %v9409_v4 = vld [vmem:[#allocation5 + $0x18] sm:$0xff]   ;;  %vm769_vm1 = vcmask 523264  }
  0xa4   : > { %9252 = vmatprep.subr.bf16.mxu1 %v10218_v0  ;;  %9260 = vmatprep.mubr.msk.bf16.mxu1 %vm10219_vm0, %v10218_v0  ;;  %s11565_s25 = smov (!%p588_p5, %s10191_s25), 1  ;;  %v9403_v5 = vld [vmem:[%s11534_s1 + $0x20] sm:$0xff]   ;;  %v9404_v6 = vld [vmem:[%s11534_s1 + $0x18] sm:$0xff]   ;;  %v9405_v7 = vld [vmem:[%s11534_s1 + $0x10] sm:$0xff]  }
  0xa5   : > { %9233 = vmatpush3.bf16.msra.mxu0 %v9400_v1  ;;  %s9217_s21 = sshll.u32 %s11565_s25, 3  ;;  %9253 = vmatpush3.bf16.msra.mxu1 %v9409_v4  ;;  %v9406_v8 = vld [vmem:[%s11534_s1 + $0x8] sm:$0xff]   ;;  %v9407_v9 = vld [vmem:[%s11534_s1] sm:$0xff]   ;;  %v9410_v11 = vld [vmem:[#allocation5 + $0x10] sm:$0xff]   ;;  %s8302_s16 = sshll.u32 %s11565_s25, 5 }
  0xa6   : > { %9234 = vmatprep.subr.bf16.mxu0 %v10218_v0  ;;  %s595_s17 = scalar_lea.vmem %s11533_s0, %s9217_s21  ;;  %9254 = vmatprep.subr.bf16.mxu1 %v10218_v0  ;;  %v9411_v12 = vld [vmem:[#allocation5 + $0x8] sm:$0xff]   ;;  %v9412_v13 = vld [vmem:[#allocation5] sm:$0xff]   ;;  %v8303_v42 = vld [vmem:[#allocation3] ss:$0 sm:$0xff] }
  0xa7   : > { %v9408_v10 = vld [vmem:[%s595_s17] sm:$0xff]   ;;  %v874_v16 = vld [vmem:[#allocation8 + $0x1c8] sm:$0xff]  ;;  %s11447_s17 = scalar_lea.vmem %s11546_s13, %s8302_s16 }
  0xa8   : > { %v873_v14 = vld [vmem:[#allocation8 + $0x1c0] sm:$0xff]  ;;  %v878_v19 = vld [vmem:[#allocation8 + $0x1e8] sm:$0xff] }
  0xa9   : > { %9235 = vmatpush3.bf16.msra.mxu0 %v9401_v2  ;;  %9255 = vmatpush3.bf16.msra.mxu1 %v9410_v11  ;;  %v877_v15 = vld [vmem:[#allocation8 + $0x1e0] sm:$0xff]  ;;  %v8377_v20 = vcombine.low %v874_v16, %v878_v19  ;;  %v8378_v21 = vcombine.high %v874_v16, %v878_v19  ;;  %v866_v22 = vld [vmem:[#allocation8 + $0x188] sm:$0xff] }
  0xaa   : > { %9236 = vmatprep.subr.bf16.mxu0 %v10218_v0  ;;  %9256 = vmatprep.subr.bf16.mxu1 %v10218_v0  ;;  %v8375_v17 = vcombine.low %v873_v14, %v877_v15  ;;  %v8376_v18 = vcombine.high %v873_v14, %v877_v15  ;;  %v870_v23 = vld [vmem:[#allocation8 + $0x1a8] sm:$0xff]  ;;  %v865_v49 = vld [vmem:[#allocation8 + $0x180] sm:$0xff] }
  0xab   : > { %v8370_v24 = vcombine.high %v866_v22, %v870_v23  ;;  %v8369_v25 = vcombine.low %v866_v22, %v870_v23  ;;  %v858_v26 = vld [vmem:[#allocation8 + $0x148] sm:$0xff]  ;;  %v869_v50 = vld [vmem:[#allocation8 + $0x1a0] sm:$0xff] }
  0xac   : > { %v862_v27 = vld [vmem:[#allocation8 + $0x168] sm:$0xff]  ;;  %v8368_v54 = vcombine.high %v865_v49, %v869_v50  ;;  %v857_v55 = vld [vmem:[#allocation8 + $0x140] sm:$0xff]  ;;  %v8367_v57 = vcombine.low %v865_v49, %v869_v50  ;;  %v859_v49 = vld [vmem:[#allocation8 + $0x150] sm:$0xff] }
  0xad   : > { %9237 = vmatpush3.bf16.msra.mxu0 %v9402_v3  ;;  %9257 = vmatpush3.bf16.msra.mxu1 %v9411_v12  ;;  %v8362_v28 = vcombine.high %v858_v26, %v862_v27  ;;  %v8361_v29 = vcombine.low %v858_v26, %v862_v27  ;;  %v850_v30 = vld [vmem:[#allocation8 + $0x108] sm:$0xff]  ;;  %v861_v56 = vld [vmem:[#allocation8 + $0x160] sm:$0xff]  ;;  %v876_v26 = vld [vmem:[#allocation8 + $0x1d8] sm:$0xff] }
  0xae   : > { %9238 = vmatprep.subr.bf16.mxu0 %v10218_v0  ;;  %9258 = vmatprep.subr.bf16.mxu1 %v10218_v0  ;;  %v854_v31 = vld [vmem:[#allocation8 + $0x128] sm:$0xff]  ;;  %v8360_v58 = vcombine.high %v857_v55, %v861_v56  ;;  %v849_v59 = vld [vmem:[#allocation8 + $0x100] sm:$0xff]  ;;  %v8359_v61 = vcombine.low %v857_v55, %v861_v56  ;;  %v863_v50 = vld [vmem:[#allocation8 + $0x170] sm:$0xff] }
  0xaf   : > { %v8354_v32 = vcombine.high %v850_v30, %v854_v31  ;;  %v8353_v33 = vcombine.low %v850_v30, %v854_v31  ;;  %v842_v34 = vld [vmem:[#allocation8 + $0xc8] sm:$0xff]  ;;  %v853_v60 = vld [vmem:[#allocation8 + $0x120] sm:$0xff]  ;;  %v8364_v55 = vcombine.high %v859_v49, %v863_v50 }
  0xb0   : > { %v846_v35 = vld [vmem:[#allocation8 + $0xe8] sm:$0xff]  ;;  %v8352_v62 = vcombine.high %v849_v59, %v853_v60  ;;  %v841_v63 = vld [vmem:[#allocation8 + $0xc0] sm:$0xff]  ;;  %v8351_v1 = vcombine.low %v849_v59, %v853_v60  ;;  %v852_v59 = vld [vmem:[#allocation8 + $0x118] sm:$0xff] }
  0xb1   : > { %9239 = vmatpush3.bf16.msra.mxu0 %v9403_v5  ;;  %9259 = vmatpush3.bf16.msra.mxu1 %v9412_v13  ;;  %v8346_v36 = vcombine.high %v842_v34, %v846_v35  ;;  %v8345_v37 = vcombine.low %v842_v34, %v846_v35  ;;  %v834_v38 = vld [vmem:[#allocation8 + $0x88] sm:$0xff]  ;;  %v833_v3 = vld [vmem:[#allocation8 + $0x80] sm:$0xff]  ;;  %v856_v60 = vld [vmem:[#allocation8 + $0x138] sm:$0xff] }
  0xb2   : > { %9240 = vmatprep.subr.bf16.mxu0 %v10218_v0  ;;  %1243 = vmatprep.subr.bf16.mxu1 %v8376_v18  ;;  %v838_v39 = vld [vmem:[#allocation8 + $0xa8] sm:$0xff]  ;;  %v837_v4 = vld [vmem:[#allocation8 + $0xa0] sm:$0xff] }
  0xb3   : > { %v8338_v40 = vcombine.high %v834_v38, %v838_v39  ;;  %v8337_v41 = vcombine.low %v834_v38, %v838_v39  ;;  %v830_v12 = vld [vmem:[#allocation8 + $0x68] sm:$0xff]  ;;  %v817_v16 = vld [vmem:[#allocation8] sm:$0xff]  ;;  %v867_v39 = vld [vmem:[#allocation8 + $0x190] sm:$0xff] }
  0xb4   : > { %v818_v18 = vld [vmem:[#allocation8 + $0x8] sm:$0xff] }
  0xb5   : > { %9241 = vmatpush3.bf16.msra.mxu0 %v9404_v6  ;;  %v8336_v6 = vcombine.high %v833_v3, %v837_v4 }
  0xb6   : > { %9242 = vmatprep.subr.bf16.mxu0 %v10218_v0 }
  0xb9   : > { %9243 = vmatpush3.bf16.msra.mxu0 %v9405_v7  ;;  %v8335_v7 = vcombine.low %v833_v3, %v837_v4  ;;  %v844_v3 = vld [vmem:[#allocation8 + $0xd8] sm:$0xff] }
  0xba   : > { %9244 = vmatprep.subr.bf16.mxu0 %v10218_v0  ;;  %v848_v4 = vld [vmem:[#allocation8 + $0xf8] sm:$0xff] }
  0xbd   : > { %9245 = vmatpush3.bf16.msra.mxu0 %v9406_v8  ;;  %v825_v8 = vld [vmem:[#allocation8 + $0x40] sm:$0xff] }
  0xbe   : > { %9246 = vmatprep.subr.bf16.mxu0 %v10218_v0  ;;  %v845_v0 = vld [vmem:[#allocation8 + $0xe0] sm:$0xff] }
  0xbf   : > { %v8344_v2 = vcombine.high %v841_v63, %v845_v0  ;;  %v8343_v5 = vcombine.low %v841_v63, %v845_v0  ;;  %v8358_v0 = vcombine.high %v852_v59, %v856_v60 }
  0xc1   : > { %9247 = vmatpush3.bf16.msra.mxu0 %v9407_v9  ;;  %v829_v9 = vld [vmem:[#allocation8 + $0x60] sm:$0xff] }
  0xc2   : > { %1286 = vmatprep.subr.bf16.mxu0 %v8378_v21  ;;  %v8328_v11 = vcombine.high %v825_v8, %v829_v9  ;;  %v8327_v13 = vcombine.low %v825_v8, %v829_v9  ;;  %v8350_v8 = vcombine.high %v844_v3, %v848_v4  ;;  %v835_v9 = vld [vmem:[#allocation8 + $0x90] sm:$0xff] }
  0xc4   : > { %9249 = vmatmul.mubr.bf16.vlgmr.msra.gmra.mxu0 %v9408_v10  ;;  %v826_v10 = vld [vmem:[#allocation8 + $0x48] sm:$0xff] }
  0xc5   : > { %1287 = vmatpush1.bf16.msra.mxu0 %v8377_v20  ;;  %v8329_v14 = vcombine.low %v826_v10, %v830_v12  ;;  %v8330_v15 = vcombine.high %v826_v10, %v830_v12  ;;  %v822_v20 = vld [vmem:[#allocation8 + $0x28] sm:$0xff]  ;;  %v839_v10 = vld [vmem:[#allocation8 + $0xb0] sm:$0xff]  ;;  %v840_v12 = vld [vmem:[#allocation8 + $0xb8] sm:$0xff] }
  0xc6   : > { %1288 = vmatprep.subr.bf16.mxu0 %v8370_v24  ;;  %v8321_v22 = vcombine.low %v818_v18, %v822_v20  ;;  %v8322_v23 = vcombine.high %v818_v18, %v822_v20  ;;  %v875_v24 = vld [vmem:[#allocation8 + $0x1d0] sm:$0xff]  ;;  %v832_v20 = vld [vmem:[#allocation8 + $0x78] sm:$0xff] }
  0xc7   : > { %v831_v18 = vld [vmem:[#allocation8 + $0x70] sm:$0xff] }
  0xc9   : > { %1289 = vmatpush1.bf16.msra.mxu0 %v8369_v25  ;;  %v879_v25 = vld [vmem:[#allocation8 + $0x1f0] sm:$0xff] }
  0xca   : > { %1290 = vmatprep.subr.bf16.mxu0 %v8362_v28  ;;  %v8380_v27 = vcombine.high %v875_v24, %v879_v25  ;;  %v880_v28 = vld [vmem:[#allocation8 + $0x1f8] sm:$0xff] }
  0xcb   : > { %v8381_v30 = vcombine.low %v876_v26, %v880_v28  ;;  %v8382_v31 = vcombine.high %v876_v26, %v880_v28  ;;  %v823_v26 = vld [vmem:[#allocation8 + $0x30] sm:$0xff]  ;;  %v824_v28 = vld [vmem:[#allocation8 + $0x38] sm:$0xff] }
  0xcd   : > { %1291 = vmatpush1.bf16.msra.mxu0 %v8361_v29  ;;  %v8379_v29 = vcombine.low %v875_v24, %v879_v25  ;;  %v819_v25 = vld [vmem:[#allocation8 + $0x10] sm:$0xff] }
  0xce   : > { %1292 = vmatprep.subr.bf16.mxu0 %v8354_v32  ;;  %v10220_v32 = vmov 0  }
  0xcf   : > { %1318 = vmatprep.mubr.bf16.mxu0 %v10220_v32 }
  0xd1   : > { %1293 = vmatpush1.bf16.msra.mxu0 %v8353_v33  ;;  %v8313_v33 = vld [vmem:[#allocation7] ss:$0 sm:$0xff] }
  0xd2   : > { %1294 = vmatprep.subr.bf16.mxu0 %v8346_v36 }
  0xd5   : > { %1295 = vmatpush1.bf16.msra.mxu0 %v8345_v37 }
  0xd6   : > { %1296 = vmatprep.subr.bf16.mxu0 %v8338_v40 }
  0xd9   : > { %1297 = vmatpush1.bf16.msra.mxu0 %v8337_v41  ;;  %v871_v41 = vld [vmem:[#allocation8 + $0x1b0] sm:$0xff] }
  0xda   : > { %1298 = vmatprep.subr.bf16.mxu0 %v8330_v15  ;;  %v8340_v15 = vcombine.high %v835_v9, %v839_v10 }
  0xdd   : > { %1299 = vmatpush1.bf16.msra.mxu0 %v8329_v14  ;;  %v8349_v14 = vcombine.low %v844_v3, %v848_v4  ;;  %v9463_v3 = vld [vmem:[%s11540_s7 + $0x1e4] ss:$16 sps:$4 sm:$0xff]  }
  0xde   : > { %1300 = vmatprep.subr.bf16.mxu0 %v8322_v23  ;;  %v9466_v4 = vld [vmem:[%s11540_s7 + $0x3e4] ss:$16 sps:$4 sm:$0xff]  }
  0xe1   : > { %1301 = vmatpush1.bf16.msra.mxu0 %v8321_v22 }
  0xe2   : > { %1372 = vmatprep.subr.bf16.mxu0 %v8382_v31  ;;  %v8324_v31 = vcombine.high %v819_v25, %v823_v26 }
 0x184   : > { %v720_v43 = vpop.f32.mrf.mxu0 }
 0x185   : > { %v721_v45 = vadd.f32 %v8303_v42, %v720_v43  ;;  %v872_v43 = vld [vmem:[#allocation8 + $0x1b8] sm:$0xff] }
 0x186   : > { %v9250_v44 = vpop.f32.mrf.mxu0 }
 0x187   : > { %v727_v51 = vmax.f32 %v721_v45, 0.0 }
 0x188   : > { %v723_v46 = vpop.f32.mrf.mxu0 }
 0x189   : > { %v724_v47 = vadd.f32 %v8303_v42, %v723_v46  ;;  %v868_v42 = vld [vmem:[#allocation8 + $0x198] sm:$0xff] }
 0x18a   : > { %v9251_v48 = vpop.f32.mrf.mxu0 }
 0x18b   : > { %v728_v52 = vmax.f32 %v724_v47, 0.0  ;;  %v8372_v47 = vcombine.high %v867_v39, %v871_v41  ;;  %v8374_v48 = vcombine.high %v868_v42, %v872_v43 }
 0x18d   : > { %v729_v53 = vpack.c.bf16 %v728_v52, %v727_v51  ;;  %v860_v51 = vld [vmem:[#allocation8 + $0x158] sm:$0xff] }
 0x18e   : > { %v864_v52 = vld [vmem:[#allocation8 + $0x178] sm:$0xff] }
 0x18f   : > { %9261 = vmatmul.mubr.msk.bf16.vlgmr.msra.gmra.mxu1 %vm769_vm1, %v729_v53  ;;  %v8371_v53 = vcombine.low %v867_v39, %v871_v41  ;;  %v8366_v56 = vcombine.high %v860_v51, %v864_v52  ;;  %v9421_v39 = vld [vmem:[%s11540_s7 + $0xc4] ss:$16 sps:$4 sm:$0xff]   ;;  %v9419_v41 = vld [vmem:[%s11540_s7 + $0xc0] ss:$16 sps:$4 sm:$0xff]  }
 0x190   : > { %1244 = vmatpush1.bf16.msra.mxu1 %v8375_v17  ;;  %v821_v17 = vld [vmem:[#allocation8 + $0x20] sm:$0xff]  ;;  %1275 = vmatprep.mubr.bf16.mxu1 %v10220_v32 }
 0x191   : > { %1245 = vmatprep.subr.bf16.mxu1 %v8368_v54  ;;  %v8320_v19 = vcombine.high %v817_v16, %v821_v17  ;;  %v8319_v21 = vcombine.low %v817_v16, %v821_v17  ;;  %v8373_v54 = vcombine.low %v868_v42, %v872_v43  ;;  %v827_v17 = vld [vmem:[#allocation8 + $0x50] sm:$0xff]  ;;  %v9422_v42 = vld [vmem:[%s11540_s7 + $0x2c0] ss:$16 sps:$4 sm:$0xff]  }
 0x192   : > { %v8332_v23 = vcombine.high %v827_v17, %v831_v18  ;;  %v9427_v43 = vld [vmem:[%s11540_s7 + $0xa4] ss:$16 sps:$4 sm:$0xff]  }
 0x194   : > { %1246 = vmatpush1.bf16.msra.mxu1 %v8367_v57  ;;  %v851_v57 = vld [vmem:[#allocation8 + $0x110] sm:$0xff] }
 0x195   : > { %1247 = vmatprep.subr.bf16.mxu1 %v8360_v58  ;;  %v855_v58 = vld [vmem:[#allocation8 + $0x130] sm:$0xff] }
 0x196   : > { %v8356_v63 = vcombine.high %v851_v57, %v855_v58 }
 0x198   : > { %1248 = vmatpush1.bf16.msra.mxu1 %v8359_v61  ;;  %v8363_v61 = vcombine.low %v859_v49, %v863_v50  ;;  %v9431_v49 = vld [vmem:[%s11540_s7 + $0x80] ss:$16 sps:$4 sm:$0xff]  }
 0x199   : > { %1249 = vmatprep.subr.bf16.mxu1 %v8352_v62  ;;  %v8365_v62 = vcombine.low %v860_v51, %v864_v52  ;;  %v9434_v50 = vld [vmem:[%s11540_s7 + $0x280] ss:$16 sps:$4 sm:$0xff]   ;;  %v9439_v51 = vld [vmem:[%s11540_s7 + $0x64] ss:$16 sps:$4 sm:$0xff]  }
 0x19a   : > { %v9442_v52 = vld [vmem:[%s11540_s7 + $0x264] ss:$16 sps:$4 sm:$0xff]  }
 0x19c   : > { %1250 = vmatpush1.bf16.msra.mxu1 %v8351_v1  ;;  %v843_v1 = vld [vmem:[#allocation8 + $0xd0] sm:$0xff] }
 0x19d   : > { %1251 = vmatprep.subr.bf16.mxu1 %v8344_v2  ;;  %v847_v2 = vld [vmem:[#allocation8 + $0xf0] sm:$0xff] }
 0x1a0   : > { %1252 = vmatpush1.bf16.msra.mxu1 %v8343_v5  ;;  %v8355_v5 = vcombine.low %v851_v57, %v855_v58  ;;  %v9443_v57 = vld [vmem:[%s11540_s7 + $0x40] ss:$16 sps:$4 sm:$0xff]  }
 0x1a1   : > { %1253 = vmatprep.subr.bf16.mxu1 %v8336_v6  ;;  %v8357_v6 = vcombine.low %v852_v59, %v856_v60  ;;  %v9446_v58 = vld [vmem:[%s11540_s7 + $0x240] ss:$16 sps:$4 sm:$0xff]   ;;  %v9451_v59 = vld [vmem:[%s11540_s7 + $0x24] ss:$16 sps:$4 sm:$0xff]  }
 0x1a2   : > { %v9454_v60 = vld [vmem:[%s11540_s7 + $0x224] ss:$16 sps:$4 sm:$0xff]  }
 0x1a4   : > { %1254 = vmatpush1.bf16.msra.mxu1 %v8335_v7  ;;  %v8348_v7 = vcombine.high %v843_v1, %v847_v2 }
 0x1a5   : > { %1255 = vmatprep.subr.bf16.mxu1 %v8328_v11  ;;  %v836_v11 = vld [vmem:[#allocation8 + $0x98] sm:$0xff] }
 0x1a6   : > { %v8342_v16 = vcombine.high %v836_v11, %v840_v12  ;;  %v8341_v22 = vcombine.low %v836_v11, %v840_v12  ;;  %v9475_v11 = vld [vmem:[%s11540_s7 + $0x1a4] ss:$16 sps:$4 sm:$0xff]  }
 0x1a7   : > { %v9478_v12 = vld [vmem:[%s11540_s7 + $0x3a4] ss:$16 sps:$4 sm:$0xff]  }
 0x1a8   : > { %1256 = vmatpush1.bf16.msra.mxu1 %v8327_v13  ;;  %v8347_v13 = vcombine.low %v843_v1, %v847_v2  ;;  %v9455_v1 = vld [vmem:[%s11540_s7] ss:$16 sps:$4 sm:$0xff]  }
 0x1a9   : > { %1257 = vmatprep.subr.bf16.mxu1 %v8320_v19  ;;  %v828_v19 = vld [vmem:[#allocation8 + $0x58] sm:$0xff] }
 0x1aa   : > { %v8334_v24 = vcombine.high %v828_v19, %v832_v20  ;;  %v9458_v2 = vld [vmem:[%s11540_s7 + $0x200] ss:$16 sps:$4 sm:$0xff]  }
 0x1ac   : > { %1258 = vmatpush1.bf16.msra.mxu1 %v8319_v21  ;;  %v8339_v21 = vcombine.low %v835_v9, %v839_v10  ;;  %v9467_v9 = vld [vmem:[%s11540_s7 + $0x1c0] ss:$16 sps:$4 sm:$0xff]  }
 0x1ad   : > { %1329 = vmatprep.subr.bf16.mxu1 %v8380_v27  ;;  %v820_v27 = vld [vmem:[#allocation8 + $0x18] sm:$0xff] }
 0x1ae   : > { %v9470_v10 = vld [vmem:[%s11540_s7 + $0x3c0] ss:$16 sps:$4 sm:$0xff]  }
 0x24f   : > { %v807_v34 = vpop.f32.mrf.mxu1 }
 0x250   : > { %v808_v36 = vadd.f32 %v8313_v33, %v807_v34  ;;  %v8325_v34 = vcombine.low %v820_v27, %v824_v28 }
 0x251   : > { %v9262_v35 = vpop.f32.mrf.mxu1 }
 0x252   : > { %v814_v44 = vmax.f32 %v808_v36, 0.0  ;;  %v9415_v35 = vld [vmem:[%s11540_s7 + $0xe4] ss:$16 sps:$4 sm:$0xff]  }
 0x253   : > { %v810_v37 = vpop.f32.mrf.mxu1  ;;  %v9418_v36 = vld [vmem:[%s11540_s7 + $0x2e4] ss:$16 sps:$4 sm:$0xff]  }
 0x254   : > { %v811_v38 = vadd.f32 %v8313_v33, %v810_v37  ;;  %v8323_v33 = vcombine.low %v819_v25, %v823_v26  ;;  %v9413_v37 = vld [vmem:[%s11540_s7 + $0xe0] ss:$16 sps:$4 sm:$0xff]  }
 0x255   : > { %v9263_v40 = vpop.f32.mrf.mxu1  ;;  %v9491_v25 = vld [vmem:[%s11540_s7 + $0x140] ss:$16 sps:$4 sm:$0xff]  }
 0x256   : > { %v815_v45 = vmax.f32 %v811_v38, 0.0  ;;  %v9416_v38 = vld [vmem:[%s11540_s7 + $0x2e0] ss:$16 sps:$4 sm:$0xff]   ;;  %v9424_v40 = vld [vmem:[%s11540_s7 + $0x2c4] ss:$16 sps:$4 sm:$0xff]  }
 0x257   : > { %v9494_v26 = vld [vmem:[%s11540_s7 + $0x340] ss:$16 sps:$4 sm:$0xff]  }
 0x258   : > { %v10473_v46 = vpack.c.bf16 %v815_v45, %v814_v44  ;;  %v9430_v44 = vld [vmem:[%s11540_s7 + $0x2a4] ss:$16 sps:$4 sm:$0xff]   ;;  %v9425_v45 = vld [vmem:[%s11540_s7 + $0xa0] ss:$16 sps:$4 sm:$0xff]  }
 0x25a   : > { %1276 = vmatmul.mubr.bf16.vlgmr.msra.gmra.mxu1 %v10473_v46  ;;  %1319 = vmatmul.mubr.bf16.vlgmr.msra.gmra.mxu0 %v10473_v46 }
 0x25b   : > { %1330 = vmatpush1.bf16.msra.mxu1 %v8379_v29  ;;  %1373 = vmatpush1.bf16.msra.mxu0 %v8381_v30  ;;  %v8331_v29 = vcombine.low %v827_v17, %v831_v18  ;;  %v8333_v30 = vcombine.low %v828_v19, %v832_v20  ;;  %v9479_v17 = vld [vmem:[%s11540_s7 + $0x180] ss:$16 sps:$4 sm:$0xff]   ;;  %v9487_v19 = vld [vmem:[%s11540_s7 + $0x164] ss:$16 sps:$4 sm:$0xff]  }
 0x25c   : > { %1331 = vmatprep.subr.bf16.mxu1 %v8372_v47  ;;  %1374 = vmatprep.subr.bf16.mxu0 %v8374_v48  ;;  %v9433_v47 = vld [vmem:[%s11540_s7 + $0x84] ss:$16 sps:$4 sm:$0xff]   ;;  %v9482_v18 = vld [vmem:[%s11540_s7 + $0x380] ss:$16 sps:$4 sm:$0xff]  }
 0x25d   : > { %1361 = vmatprep.mubr.bf16.mxu1 %v10220_v32  ;;  %1404 = vmatprep.mubr.bf16.mxu0 %v10220_v32  ;;  %v8326_v32 = vcombine.high %v820_v27, %v824_v28  ;;  %v9436_v48 = vld [vmem:[%s11540_s7 + $0x284] ss:$16 sps:$4 sm:$0xff]  }
 0x25e   : > { %v9490_v20 = vld [vmem:[%s11540_s7 + $0x364] ss:$16 sps:$4 sm:$0xff]  }
 0x25f   : > { %1332 = vmatpush1.bf16.msra.mxu1 %v8371_v53  ;;  %1375 = vmatpush1.bf16.msra.mxu0 %v8373_v54  ;;  %v9437_v53 = vld [vmem:[%s11540_s7 + $0x60] ss:$16 sps:$4 sm:$0xff]   ;;  %v9499_v27 = vld [vmem:[%s11540_s7 + $0x124] ss:$16 sps:$4 sm:$0xff]  }
 0x260   : > { %1333 = vmatprep.subr.bf16.mxu1 %v8364_v55  ;;  %1376 = vmatprep.subr.bf16.mxu0 %v8366_v56  ;;  %v9440_v54 = vld [vmem:[%s11540_s7 + $0x260] ss:$16 sps:$4 sm:$0xff]   ;;  %v9445_v55 = vld [vmem:[%s11540_s7 + $0x44] ss:$16 sps:$4 sm:$0xff]  }
 0x261   : > { %v9448_v56 = vld [vmem:[%s11540_s7 + $0x244] ss:$16 sps:$4 sm:$0xff]  }
 0x262   : > { %v9502_v28 = vld [vmem:[%s11540_s7 + $0x324] ss:$16 sps:$4 sm:$0xff]  }
 0x263   : > { %1334 = vmatpush1.bf16.msra.mxu1 %v8363_v61  ;;  %1377 = vmatpush1.bf16.msra.mxu0 %v8365_v62  ;;  %v9449_v61 = vld [vmem:[%s11540_s7 + $0x20] ss:$16 sps:$4 sm:$0xff]  }
 0x264   : > { %1335 = vmatprep.subr.bf16.mxu1 %v8356_v63  ;;  %1378 = vmatprep.subr.bf16.mxu0 %v8358_v0  ;;  %v9452_v62 = vld [vmem:[%s11540_s7 + $0x220] ss:$16 sps:$4 sm:$0xff]   ;;  %v9457_v63 = vld [vmem:[%s11540_s7 + $0x4] ss:$16 sps:$4 sm:$0xff]  }
 0x265   : > { %v9460_v0 = vld [vmem:[%s11540_s7 + $0x204] ss:$16 sps:$4 sm:$0xff]  }
 0x267   : > { %1336 = vmatpush1.bf16.msra.mxu1 %v8355_v5  ;;  %1379 = vmatpush1.bf16.msra.mxu0 %v8357_v6  ;;  %v9461_v5 = vld [vmem:[%s11540_s7 + $0x1e0] ss:$16 sps:$4 sm:$0xff]  }
 0x268   : > { %1337 = vmatprep.subr.bf16.mxu1 %v8348_v7  ;;  %1380 = vmatprep.subr.bf16.mxu0 %v8350_v8  ;;  %v9464_v6 = vld [vmem:[%s11540_s7 + $0x3e0] ss:$16 sps:$4 sm:$0xff]   ;;  %v9469_v7 = vld [vmem:[%s11540_s7 + $0x1c4] ss:$16 sps:$4 sm:$0xff]  }
 0x269   : > { %v9472_v8 = vld [vmem:[%s11540_s7 + $0x3c4] ss:$16 sps:$4 sm:$0xff]  }
 0x26b   : > { %1338 = vmatpush1.bf16.msra.mxu1 %v8347_v13  ;;  %1381 = vmatpush1.bf16.msra.mxu0 %v8349_v14  ;;  %v9473_v13 = vld [vmem:[%s11540_s7 + $0x1a0] ss:$16 sps:$4 sm:$0xff]  }
 0x26c   : > { %1339 = vmatprep.subr.bf16.mxu1 %v8340_v15  ;;  %1382 = vmatprep.subr.bf16.mxu0 %v8342_v16  ;;  %v9476_v14 = vld [vmem:[%s11540_s7 + $0x3a0] ss:$16 sps:$4 sm:$0xff]   ;;  %v9481_v15 = vld [vmem:[%s11540_s7 + $0x184] ss:$16 sps:$4 sm:$0xff]  }
 0x26d   : > { %v9484_v16 = vld [vmem:[%s11540_s7 + $0x384] ss:$16 sps:$4 sm:$0xff]  }
 0x26f   : > { %1340 = vmatpush1.bf16.msra.mxu1 %v8339_v21  ;;  %1383 = vmatpush1.bf16.msra.mxu0 %v8341_v22  ;;  %v9485_v21 = vld [vmem:[%s11540_s7 + $0x160] ss:$16 sps:$4 sm:$0xff]  }
 0x270   : > { %1341 = vmatprep.subr.bf16.mxu1 %v8332_v23  ;;  %1384 = vmatprep.subr.bf16.mxu0 %v8334_v24  ;;  %v9488_v22 = vld [vmem:[%s11540_s7 + $0x360] ss:$16 sps:$4 sm:$0xff]   ;;  %v9493_v23 = vld [vmem:[%s11540_s7 + $0x144] ss:$16 sps:$4 sm:$0xff]  }
 0x271   : > { %v9496_v24 = vld [vmem:[%s11540_s7 + $0x344] ss:$16 sps:$4 sm:$0xff]  }
 0x273   : > { %1342 = vmatpush1.bf16.msra.mxu1 %v8331_v29  ;;  %1385 = vmatpush1.bf16.msra.mxu0 %v8333_v30  ;;  %v9497_v29 = vld [vmem:[%s11540_s7 + $0x120] ss:$16 sps:$4 sm:$0xff]  }
 0x274   : > { %1343 = vmatprep.subr.bf16.mxu1 %v8324_v31  ;;  %1386 = vmatprep.subr.bf16.mxu0 %v8326_v32  ;;  %v9500_v30 = vld [vmem:[%s11540_s7 + $0x320] ss:$16 sps:$4 sm:$0xff]   ;;  %v9505_v32 = vld [vmem:[%s11540_s7 + $0x104] ss:$16 sps:$4 sm:$0xff]  }
 0x275   : > { %v9503_v31 = vld [vmem:[%s11540_s7 + $0x100] ss:$16 sps:$4 sm:$0xff]  }
 0x277   : > { %1344 = vmatpush1.bf16.msra.mxu1 %v8323_v33  ;;  %1387 = vmatpush1.bf16.msra.mxu0 %v8325_v34  ;;  %v9506_v33 = vld [vmem:[%s11540_s7 + $0x300] ss:$16 sps:$4 sm:$0xff]   ;;  %v9508_v34 = vld [vmem:[%s11540_s7 + $0x304] ss:$16 sps:$4 sm:$0xff]  }
 0x278   : > { %3159 = vmatprep.subr.bf16.mxu1 %v9415_v35  ;;  %3200 = vmatprep.subr.bf16.mxu0 %v9418_v36  ;;  %v9511_v35 = vld [vmem:[%s11540_s7 + $0x4e4] ss:$16 sps:$4 sm:$0xff]  }
 0x279   : > { %v9514_v36 = vld [vmem:[%s11540_s7 + $0x6e4] ss:$16 sps:$4 sm:$0xff]  }
 0x27a   : > { %1362 = vmatmul.mubr.bf16.vlgmr.msra.gmra.mxu1 %v10473_v46  ;;  %1405 = vmatmul.mubr.bf16.vlgmr.msra.gmra.mxu0 %v10473_v46  ;;  %v9428_v46 = vld [vmem:[%s11540_s7 + $0x2a0] ss:$16 sps:$4 sm:$0xff]  }
 0x27b   : > { %3160 = vmatpush1.bf16.msra.mxu1 %v9413_v37  ;;  %3201 = vmatpush1.bf16.msra.mxu0 %v9416_v38 }
 0x27c   : > { %3161 = vmatprep.subr.bf16.mxu1 %v9421_v39  ;;  %3202 = vmatprep.subr.bf16.mxu0 %v9424_v40  ;;  %v883_v39 = vlaneseq }
 0x27f   : > { %3162 = vmatpush1.bf16.msra.mxu1 %v9419_v41  ;;  %3203 = vmatpush1.bf16.msra.mxu0 %v9422_v42  ;;  %v10677_v42 = vshrl.u32 %v883_v39, 7 }
 0x280   : > { %3163 = vmatprep.subr.bf16.mxu1 %v9427_v43  ;;  %3204 = vmatprep.subr.bf16.mxu0 %v9430_v44 }
 0x283   : > { %3164 = vmatpush1.bf16.msra.mxu1 %v9425_v45  ;;  %3205 = vmatpush1.bf16.msra.mxu0 %v9428_v46  ;;  %v10680_v45 = vsub.s32 1, %v10677_v42  ;;  %v10683_v46 = vsub.s32 3, %v10677_v42 }
 0x284   : > { %3165 = vmatprep.subr.bf16.mxu1 %v9433_v47  ;;  %3206 = vmatprep.subr.bf16.mxu0 %v9436_v48  ;;  %v10686_v47 = vsub.s32 0, %v10677_v42  ;;  %v10689_v48 = vsub.s32 2, %v10677_v42 }
 0x287   : > { %3166 = vmatpush1.bf16.msra.mxu1 %v9431_v49  ;;  %3207 = vmatpush1.bf16.msra.mxu0 %v9434_v50  ;;  %v881_v49 = vld [vmem:[#allocation10] sm:$0xff] }
 0x288   : > { %3167 = vmatprep.subr.bf16.mxu1 %v9439_v51  ;;  %3208 = vmatprep.subr.bf16.mxu0 %v9442_v52  ;;  %v890_v52 = vrot.slane %v881_v49, %v10680_v45 }
 0x28b   : > { %3168 = vmatpush1.bf16.msra.mxu1 %v9437_v53  ;;  %3209 = vmatpush1.bf16.msra.mxu0 %v9440_v54  ;;  %v898_v53 = vrot.slane %v881_v49, %v10683_v46  ;;  %v886_v54 = vrot.slane %v881_v49, %v10686_v47 }
 0x28c   : > { %3169 = vmatprep.subr.bf16.mxu1 %v9445_v55  ;;  %3210 = vmatprep.subr.bf16.mxu0 %v9448_v56  ;;  %v894_v55 = vrot.slane %v881_v49, %v10689_v48 }
 0x28f   : > { %3170 = vmatpush1.bf16.msra.mxu1 %v9443_v57  ;;  %3211 = vmatpush1.bf16.msra.mxu0 %v9446_v58 }
 0x290   : > { %3171 = vmatprep.subr.bf16.mxu1 %v9451_v59  ;;  %3212 = vmatprep.subr.bf16.mxu0 %v9454_v60 }
 0x293   : > { %3172 = vmatpush1.bf16.msra.mxu1 %v9449_v61  ;;  %3213 = vmatpush1.bf16.msra.mxu0 %v9452_v62 }
 0x294   : > { %3173 = vmatprep.subr.bf16.mxu1 %v9457_v63  ;;  %3214 = vmatprep.subr.bf16.mxu0 %v9460_v0 }
 0x297   : > { %3174 = vmatpush1.bf16.msra.mxu1 %v9455_v1  ;;  %3215 = vmatpush1.bf16.msra.mxu0 %v9458_v2 }
 0x298   : > { %3175 = vmatprep.subr.bf16.mxu1 %v9463_v3  ;;  %3216 = vmatprep.subr.bf16.mxu0 %v9466_v4 }
 0x29b   : > { %3176 = vmatpush2.bf16.msra.mxu1 %v9461_v5  ;;  %3217 = vmatpush2.bf16.msra.mxu0 %v9464_v6 }
 0x29c   : > { %3177 = vmatprep.subr.bf16.mxu1 %v9469_v7  ;;  %3218 = vmatprep.subr.bf16.mxu0 %v9472_v8 }
 0x29f   : > { %3178 = vmatpush2.bf16.msra.mxu1 %v9467_v9  ;;  %3219 = vmatpush2.bf16.msra.mxu0 %v9470_v10 }
 0x2a0   : > { %3179 = vmatprep.subr.bf16.mxu1 %v9475_v11  ;;  %3220 = vmatprep.subr.bf16.mxu0 %v9478_v12 }
 0x2a3   : > { %3180 = vmatpush2.bf16.msra.mxu1 %v9473_v13  ;;  %3221 = vmatpush2.bf16.msra.mxu0 %v9476_v14  ;;  %v10696_v14 = vsub.s32 4, %v10677_v42 }
 0x2a4   : > { %3181 = vmatprep.subr.bf16.mxu1 %v9481_v15  ;;  %3222 = vmatprep.subr.bf16.mxu0 %v9484_v16  ;;  %v10699_v15 = vsub.s32 6, %v10677_v42 }
 0x2a7   : > { %3182 = vmatpush2.bf16.msra.mxu1 %v9479_v17  ;;  %3223 = vmatpush2.bf16.msra.mxu0 %v9482_v18  ;;  %v10702_v18 = vsub.s32 5, %v10677_v42 }
 0x2a8   : > { %3183 = vmatprep.subr.bf16.mxu1 %v9487_v19  ;;  %3224 = vmatprep.subr.bf16.mxu0 %v9490_v20  ;;  %v10705_v19 = vsub.s32 7, %v10677_v42 }
 0x2ab   : > { %3184 = vmatpush2.bf16.msra.mxu1 %v9485_v21  ;;  %3225 = vmatpush2.bf16.msra.mxu0 %v9488_v22  ;;  %v902_v22 = vrot.slane %v881_v49, %v10696_v14 }
 0x2ac   : > { %3185 = vmatprep.subr.bf16.mxu1 %v9493_v23  ;;  %3226 = vmatprep.subr.bf16.mxu0 %v9496_v24  ;;  %v910_v23 = vrot.slane %v881_v49, %v10699_v15 }
 0x2af   : > { %3186 = vmatpush2.bf16.msra.mxu1 %v9491_v25  ;;  %3227 = vmatpush2.bf16.msra.mxu0 %v9494_v26 }
 0x2b0   : > { %3187 = vmatprep.subr.bf16.mxu1 %v9499_v27  ;;  %3228 = vmatprep.subr.bf16.mxu0 %v9502_v28  ;;  %v906_v28 = vrot.slane %v881_v49, %v10702_v18 }
 0x2b3   : > { %3188 = vmatpush2.bf16.msra.mxu1 %v9497_v29  ;;  %3229 = vmatpush2.bf16.msra.mxu0 %v9500_v30  ;;  %v914_v29 = vrot.slane %v881_v49, %v10705_v19 }
 0x2b4   : > { %3189 = vmatprep.subr.bf16.mxu1 %v9505_v32  ;;  %3230 = vmatprep.subr.bf16.mxu0 %v9508_v34 }
 0x2b7   : > { %3190 = vmatpush2.bf16.msra.mxu1 %v9503_v31  ;;  %3231 = vmatpush2.bf16.msra.mxu0 %v9506_v33 }
 0x2b8   : > { %3241 = vmatprep.subr.bf16.mxu1 %v9511_v35  ;;  %3282 = vmatprep.subr.bf16.mxu0 %v9514_v36 }
 0x31a   : > { %v1277_v37 = vpop.f32.mrf.mxu1  ;;  %v1320_v38 = vpop.f32.mrf.mxu0 }
 0x31b   : > { %v1278_v62 = vadd.f32 %v1277_v37, %v886_v54  ;;  %v1321_v63 = vadd.f32 %v1320_v38, %v894_v55 }
 0x31c   : > { %v1279_v40 = vpop.f32.mrf.mxu1  ;;  %v1322_v41 = vpop.f32.mrf.mxu0 }
 0x31d   : > { %v1280_v58 = vadd.f32 %v1279_v40, %v890_v52  ;;  %v1323_v59 = vadd.f32 %v1322_v41, %v898_v53  ;;  %v1415_v6 = vmax.f32 %v1278_v62, 0.0  ;;  %v1417_v7 = vmax.f32 %v1321_v63, 0.0 }
 0x31e   : > { %v1281_v43 = vpop.f32.mrf.mxu1  ;;  %v1324_v44 = vpop.f32.mrf.mxu0 }
 0x31f   : > { %v1282_v60 = vadd.f32 %v1281_v43, %v886_v54  ;;  %v1325_v61 = vadd.f32 %v1324_v44, %v894_v55  ;;  %v1416_v2 = vmax.f32 %v1280_v58, 0.0  ;;  %v1418_v3 = vmax.f32 %v1323_v59, 0.0 }
 0x320   : > { %v1283_v50 = vpop.f32.mrf.mxu1  ;;  %v1326_v51 = vpop.f32.mrf.mxu0 }
 0x321   : > { %v1284_v56 = vadd.f32 %v1283_v50, %v890_v52  ;;  %v1327_v57 = vadd.f32 %v1326_v51, %v898_v53  ;;  %v1423_v4 = vmax.f32 %v1282_v60, 0.0  ;;  %v1425_v5 = vmax.f32 %v1325_v61, 0.0 }
 0x323   : > { %v1424_v0 = vmax.f32 %v1284_v56, 0.0  ;;  %v1426_v1 = vmax.f32 %v1327_v57, 0.0  ;;  %v1432_v10 = vmax.f32 %v1415_v6, %v1423_v4  ;;  %v1446_v11 = vmax.f32 %v1417_v7, %v1425_v5 }
 0x325   : > { %v1439_v8 = vmax.f32 %v1416_v2, %v1424_v0  ;;  %v1453_v9 = vmax.f32 %v1418_v3, %v1426_v1  ;;  %v1433_v16 = vrot.slane %v1432_v10, 4  ;;  %v1447_v17 = vrot.slane %v1446_v11, 4 }
 0x326   : > { %v10221_v3 = vmov 1966171168  }
 0x327   : > { %v1440_v12 = vrot.slane %v1439_v8, 4  ;;  %v1454_v13 = vrot.slane %v1453_v9, 4  ;;  %v1434_v24 = vmax.f32 %v1432_v10, %v1433_v16  ;;  %v1448_v25 = vmax.f32 %v1446_v11, %v1447_v17 }
 0x328   : > { %v1501_v4 = vunpack.c.l.s4 %v10221_v3 }
 0x329   : > { %v1441_v20 = vmax.f32 %v1439_v8, %v1440_v12  ;;  %v1455_v21 = vmax.f32 %v1453_v9, %v1454_v13  ;;  %v1435_v36 = vrot.slane %v1434_v24, 2  ;;  %v1449_v37 = vrot.slane %v1448_v25, 2 }
 0x32b   : > { %v1442_v30 = vrot.slane %v1441_v20, 2  ;;  %v1456_v31 = vrot.slane %v1455_v21, 2  ;;  %v1436_v59 = vmax.f32 %v1434_v24, %v1435_v36  ;;  %v1450_v60 = vmax.f32 %v1448_v25, %v1449_v37 }
 0x32d   : > { %v1443_v50 = vmax.f32 %v1441_v20, %v1442_v30  ;;  %v1457_v51 = vmax.f32 %v1455_v21, %v1456_v31  ;;  %v1437_v11 = vrot.slane %v1436_v59, 1  ;;  %v1451_v12 = vrot.slane %v1450_v60, 1 }
 0x32e   : > { %v1502_v21 = vunpack.c.0.s8 %v1501_v4 }
 0x32f   : > { %v1444_v5 = vrot.slane %v1443_v50, 1  ;;  %v1458_v6 = vrot.slane %v1457_v51, 1 }
 0x33a   : > { %v1363_v26 = vpop.f32.mrf.mxu1  ;;  %v1406_v27 = vpop.f32.mrf.mxu0 }
 0x33b   : > { %v1364_v32 = vadd.f32 %v1363_v26, %v902_v22  ;;  %v1407_v33 = vadd.f32 %v1406_v27, %v910_v23 }
 0x33c   : > { %v1365_v34 = vpop.f32.mrf.mxu1  ;;  %v1408_v35 = vpop.f32.mrf.mxu0 }
 0x33d   : > { %v1366_v38 = vadd.f32 %v1365_v34, %v906_v28  ;;  %v1409_v39 = vadd.f32 %v1408_v35, %v914_v29  ;;  %v1419_v52 = vmax.f32 %v1364_v32, 0.0  ;;  %v1421_v53 = vmax.f32 %v1407_v33, 0.0 }
 0x33e   : > { %v1367_v40 = vpop.f32.mrf.mxu1  ;;  %v1410_v41 = vpop.f32.mrf.mxu0  ;;  %v10712_v34 = vsub.s32 %v1502_v21, %v10677_v42  ;;  %v9526_v21 = vld [vmem:[%s11540_s7 + $0x6a4] ss:$16 sps:$4 sm:$0xff]  }
 0x33f   : > { %v1368_v43 = vadd.f32 %v1367_v40, %v902_v22  ;;  %v1411_v44 = vadd.f32 %v1410_v41, %v910_v23  ;;  %v1420_v61 = vmax.f32 %v1366_v38, 0.0  ;;  %v1422_v62 = vmax.f32 %v1409_v39, 0.0 }
 0x340   : > { %v1369_v54 = vpop.f32.mrf.mxu1  ;;  %v1412_v49 = vpop.f32.mrf.mxu0  ;;  %v1445_v22 = vmax.f32 %v1443_v50, %v1444_v5  ;;  %v1459_v23 = vmax.f32 %v1457_v51, %v1458_v6  ;;  %v9509_v6 = vld [vmem:[%s11540_s7 + $0x4e0] ss:$16 sps:$4 sm:$0xff]  }
 0x341   : > { %v1427_v55 = vmax.f32 %v1368_v43, 0.0  ;;  %v1429_v56 = vmax.f32 %v1411_v44, 0.0  ;;  %v1370_v57 = vadd.f32 %v1369_v54, %v906_v28  ;;  %v1413_v58 = vadd.f32 %v1412_v49, %v914_v29 }
 0x342   : > { %v1438_v28 = vmax.f32 %v1436_v59, %v1437_v11  ;;  %v1452_v29 = vmax.f32 %v1450_v60, %v1451_v12  ;;  %v9520_v11 = vld [vmem:[%s11540_s7 + $0x6c4] ss:$16 sps:$4 sm:$0xff]  }
 0x343   : > { %v1460_v63 = vmax.f32 %v1419_v52, %v1427_v55  ;;  %v1474_v0 = vmax.f32 %v1421_v53, %v1429_v56  ;;  %v1428_v1 = vmax.f32 %v1370_v57, 0.0  ;;  %v1430_v2 = vmax.f32 %v1413_v58, 0.0 }
 0x344   : > { %v1496_v35 = vcombine.low %v1438_v28, %v1445_v22  ;;  %v1497_v36 = vcombine.low %v1452_v29, %v1459_v23  ;;  %v9521_v22 = vld [vmem:[%s11540_s7 + $0x4a0] ss:$16 sps:$4 sm:$0xff]   ;;  %v9535_v28 = vld [vmem:[%s11540_s7 + $0x464] ss:$16 sps:$4 sm:$0xff]  }
 0x345   : > { %v1461_v7 = vrot.slane %v1460_v63, 4  ;;  %v1475_v8 = vrot.slane %v1474_v0, 4  ;;  %v1467_v9 = vmax.f32 %v1420_v61, %v1428_v1  ;;  %v1481_v10 = vmax.f32 %v1422_v62, %v1430_v2  ;;  %v9524_v23 = vld [vmem:[%s11540_s7 + $0x6a0] ss:$16 sps:$4 sm:$0xff]   ;;  %v9538_v29 = vld [vmem:[%s11540_s7 + $0x664] ss:$16 sps:$4 sm:$0xff]  }
 0x346   : > { %v1506_v44 = vrot.slane %v1496_v35, %v10712_v34  ;;  %v1513_v50 = vrot.slane %v1497_v36, %v10712_v34  ;;  %v9539_v35 = vld [vmem:[%s11540_s7 + $0x440] ss:$16 sps:$4 sm:$0xff]  }
 0x347   : > { %v1462_v13 = vmax.f32 %v1460_v63, %v1461_v7  ;;  %v1476_v16 = vmax.f32 %v1474_v0, %v1475_v8  ;;  %v1468_v17 = vrot.slane %v1467_v9, 4  ;;  %v1482_v20 = vrot.slane %v1481_v10, 4  ;;  %v9512_v7 = vld [vmem:[%s11540_s7 + $0x6e0] ss:$16 sps:$4 sm:$0xff]  }
 0x348   : > { %v1528_v42 = vcombine.low %v1506_v44, %v1513_v50  ;;  %v9542_v36 = vld [vmem:[%s11540_s7 + $0x640] ss:$16 sps:$4 sm:$0xff]  }
 0x349   : > { %v1463_v24 = vrot.slane %v1462_v13, 2  ;;  %v1477_v25 = vrot.slane %v1476_v16, 2  ;;  %v1469_v26 = vmax.f32 %v1467_v9, %v1468_v17  ;;  %v1483_v27 = vmax.f32 %v1481_v10, %v1482_v20  ;;  %v9517_v10 = vld [vmem:[%s11540_s7 + $0x4c4] ss:$16 sps:$4 sm:$0xff]   ;;  %v9518_v17 = vld [vmem:[%s11540_s7 + $0x6c0] ss:$16 sps:$4 sm:$0xff]  }
 0x34a   : > { %v1536_v59 = vrot.slane %v1528_v42, %v10712_v34  ;;  %v9523_v20 = vld [vmem:[%s11540_s7 + $0x4a4] ss:$16 sps:$4 sm:$0xff]   ;;  %v9551_v44 = vld [vmem:[%s11540_s7 + $0x400] ss:$16 sps:$4 sm:$0xff]  }
 0x34b   : > { %v1464_v30 = vmax.f32 %v1462_v13, %v1463_v24  ;;  %v1478_v31 = vmax.f32 %v1476_v16, %v1477_v25  ;;  %v1470_v32 = vrot.slane %v1469_v26, 2  ;;  %v1484_v33 = vrot.slane %v1483_v27, 2  ;;  %v9515_v16 = vld [vmem:[%s11540_s7 + $0x4c0] ss:$16 sps:$4 sm:$0xff]   ;;  %v9529_v24 = vld [vmem:[%s11540_s7 + $0x484] ss:$16 sps:$4 sm:$0xff]  }
 0x34c   : > { %v9532_v25 = vld [vmem:[%s11540_s7 + $0x684] ss:$16 sps:$4 sm:$0xff]   ;;  %v9554_v50 = vld [vmem:[%s11540_s7 + $0x600] ss:$16 sps:$4 sm:$0xff]  }
 0x34d   : > { %v1465_v37 = vrot.slane %v1464_v30, 1  ;;  %v1479_v38 = vrot.slane %v1478_v31, 1  ;;  %v1471_v39 = vmax.f32 %v1469_v26, %v1470_v32  ;;  %v1485_v40 = vmax.f32 %v1483_v27, %v1484_v33  ;;  %v9527_v26 = vld [vmem:[%s11540_s7 + $0x480] ss:$16 sps:$4 sm:$0xff]   ;;  %v9541_v32 = vld [vmem:[%s11540_s7 + $0x444] ss:$16 sps:$4 sm:$0xff]  }
 0x34e   : > { %v9530_v27 = vld [vmem:[%s11540_s7 + $0x680] ss:$16 sps:$4 sm:$0xff]   ;;  %v9544_v33 = vld [vmem:[%s11540_s7 + $0x644] ss:$16 sps:$4 sm:$0xff]  }
 0x34f   : > { %v1472_v41 = vrot.slane %v1471_v39, 1  ;;  %v1486_v43 = vrot.slane %v1485_v40, 1  ;;  %v1466_v51 = vmax.f32 %v1464_v30, %v1465_v37  ;;  %v1480_v52 = vmax.f32 %v1478_v31, %v1479_v38  ;;  %v9533_v30 = vld [vmem:[%s11540_s7 + $0x460] ss:$16 sps:$4 sm:$0xff]   ;;  %v9547_v37 = vld [vmem:[%s11540_s7 + $0x424] ss:$16 sps:$4 sm:$0xff]  }
 0x350   : > { %v9536_v31 = vld [vmem:[%s11540_s7 + $0x660] ss:$16 sps:$4 sm:$0xff]   ;;  %v9550_v38 = vld [vmem:[%s11540_s7 + $0x624] ss:$16 sps:$4 sm:$0xff]  }
 0x351   : > { %v1473_v53 = vmax.f32 %v1471_v39, %v1472_v41  ;;  %v1487_v54 = vmax.f32 %v1485_v40, %v1486_v43  ;;  %v9545_v39 = vld [vmem:[%s11540_s7 + $0x420] ss:$16 sps:$4 sm:$0xff]   ;;  %v9553_v41 = vld [vmem:[%s11540_s7 + $0x404] ss:$16 sps:$4 sm:$0xff]  }
 0x352   : > { %v9548_v40 = vld [vmem:[%s11540_s7 + $0x620] ss:$16 sps:$4 sm:$0xff]   ;;  %v9556_v43 = vld [vmem:[%s11540_s7 + $0x604] ss:$16 sps:$4 sm:$0xff]  }
 0x353   : > { %v1498_v49 = vcombine.low %v1466_v51, %v1473_v53  ;;  %v1499_v55 = vcombine.low %v1480_v52, %v1487_v54  ;;  %v9559_v51 = vld [vmem:[%s11540_s7 + $0x5e4] ss:$16 sps:$4 sm:$0xff]   ;;  %v9557_v53 = vld [vmem:[%s11540_s7 + $0x5e0] ss:$16 sps:$4 sm:$0xff]  }
 0x354   : > { %v9562_v52 = vld [vmem:[%s11540_s7 + $0x7e4] ss:$16 sps:$4 sm:$0xff]   ;;  %v9560_v54 = vld [vmem:[%s11540_s7 + $0x7e0] ss:$16 sps:$4 sm:$0xff]  }
 0x355   : > { %v1520_v56 = vrot.slane %v1498_v49, %v10712_v34  ;;  %v1527_v57 = vrot.slane %v1499_v55, %v10712_v34  ;;  %v9565_v49 = vld [vmem:[%s11540_s7 + $0x5c4] ss:$16 sps:$4 sm:$0xff]   ;;  %v9563_v42 = vld [vmem:[%s11540_s7 + $0x5c0] ss:$16 sps:$4 sm:$0xff]  }
 0x356   : > { %v9568_v55 = vld [vmem:[%s11540_s7 + $0x7c4] ss:$16 sps:$4 sm:$0xff]  }
 0x357   : > { %v1529_v58 = vcombine.low %v1520_v56, %v1527_v57  ;;  %v9566_v56 = vld [vmem:[%s11540_s7 + $0x7c0] ss:$16 sps:$4 sm:$0xff]   ;;  %v9571_v57 = vld [vmem:[%s11540_s7 + $0x5a4] ss:$16 sps:$4 sm:$0xff]  }
 0x359   : > { %v1543_v60 = vrot.slane %v1529_v58, %v10712_v34  ;;  %v9574_v58 = vld [vmem:[%s11540_s7 + $0x7a4] ss:$16 sps:$4 sm:$0xff]  }
 0x35b   : > { %v10720_v61 = vcombine.low %v1536_v59, %v1543_v60  ;;  %v9569_v59 = vld [vmem:[%s11540_s7 + $0x5a0] ss:$16 sps:$4 sm:$0xff]  }
 0x35c   : > { %v9572_v60 = vld [vmem:[%s11540_s7 + $0x7a0] ss:$16 sps:$4 sm:$0xff]  }
 0x35d   : > { %v1560_v62 = vrot.slane %v10720_v61, %v10680_v45  ;;  %v1568_v63 = vrot.slane %v10720_v61, %v10683_v46  ;;  %v1556_v0 = vrot.slane %v10720_v61, %v10686_v47  ;;  %v1564_v1 = vrot.slane %v10720_v61, %v10689_v48 }
 0x35e   : > { %v1576_v2 = vrot.slane %v10720_v61, %v10702_v18  ;;  %v1584_v3 = vrot.slane %v10720_v61, %v10705_v19 }
 0x35f   : > { %v10734_v4 = vpack.c.bf16 %v1560_v62, %v1560_v62  ;;  %v10736_v5 = vpack.c.bf16 %v1568_v63, %v1568_v63  ;;  %v10744_v8 = vpack.c.bf16 %v1556_v0, %v1556_v0  ;;  %v10746_v9 = vpack.c.bf16 %v1564_v1, %v1564_v1  ;;  %v9577_v62 = vld [vmem:[%s11540_s7 + $0x584] ss:$16 sps:$4 sm:$0xff]   ;;  %v9575_v0 = vld [vmem:[%s11540_s7 + $0x580] ss:$16 sps:$4 sm:$0xff]  }
 0x360   : > { %v10758_v12 = vpack.c.bf16 %v1576_v2, %v1576_v2  ;;  %v10760_v13 = vpack.c.bf16 %v1584_v3, %v1584_v3  ;;  %v9580_v63 = vld [vmem:[%s11540_s7 + $0x784] ss:$16 sps:$4 sm:$0xff]   ;;  %v9578_v1 = vld [vmem:[%s11540_s7 + $0x780] ss:$16 sps:$4 sm:$0xff]  }
 0x361   : > { %3191 = vmatprep.mubr.bf16.mxu1 %v10734_v4  ;;  %3232 = vmatprep.mubr.bf16.mxu0 %v10736_v5  ;;  %v9583_v2 = vld [vmem:[%s11540_s7 + $0x564] ss:$16 sps:$4 sm:$0xff]  }
 0x362   : > { %3192 = vmatmul.mubr.bf16.vlgmr.msra.gmra.mxu1 %v10744_v8  ;;  %3233 = vmatmul.mubr.bf16.vlgmr.msra.gmra.mxu0 %v10746_v9  ;;  %v9586_v3 = vld [vmem:[%s11540_s7 + $0x764] ss:$16 sps:$4 sm:$0xff]  }
 0x363   : > { %3242 = vmatpush1.bf16.msra.mxu1 %v9509_v6  ;;  %3283 = vmatpush1.bf16.msra.mxu0 %v9512_v7  ;;  %v9581_v6 = vld [vmem:[%s11540_s7 + $0x560] ss:$16 sps:$4 sm:$0xff]  }
 0x364   : > { %3273 = vmatprep.mubr.bf16.mxu1 %v10758_v12  ;;  %3314 = vmatprep.mubr.bf16.mxu0 %v10760_v13  ;;  %v9584_v7 = vld [vmem:[%s11540_s7 + $0x760] ss:$16 sps:$4 sm:$0xff]  }
 0x365   : > { %3243 = vmatprep.subr.bf16.mxu1 %v9517_v10  ;;  %3284 = vmatprep.subr.bf16.mxu0 %v9520_v11  ;;  %v9589_v10 = vld [vmem:[%s11540_s7 + $0x544] ss:$16 sps:$4 sm:$0xff]  }
 0x366   : > { %v9592_v11 = vld [vmem:[%s11540_s7 + $0x744] ss:$16 sps:$4 sm:$0xff]  }
 0x367   : > { %3244 = vmatpush1.bf16.msra.mxu1 %v9515_v16  ;;  %3285 = vmatpush1.bf16.msra.mxu0 %v9518_v17  ;;  %v9587_v16 = vld [vmem:[%s11540_s7 + $0x540] ss:$16 sps:$4 sm:$0xff]  }
 0x368   : > { %3245 = vmatprep.subr.bf16.mxu1 %v9523_v20  ;;  %3286 = vmatprep.subr.bf16.mxu0 %v9526_v21  ;;  %v9590_v17 = vld [vmem:[%s11540_s7 + $0x740] ss:$16 sps:$4 sm:$0xff]   ;;  %v9595_v20 = vld [vmem:[%s11540_s7 + $0x524] ss:$16 sps:$4 sm:$0xff]  }
 0x369   : > { %v9598_v21 = vld [vmem:[%s11540_s7 + $0x724] ss:$16 sps:$4 sm:$0xff]  }
 0x36b   : > { %3246 = vmatpush1.bf16.msra.mxu1 %v9521_v22  ;;  %3287 = vmatpush1.bf16.msra.mxu0 %v9524_v23  ;;  %v9593_v22 = vld [vmem:[%s11540_s7 + $0x520] ss:$16 sps:$4 sm:$0xff]  }
 0x36c   : > { %3247 = vmatprep.subr.bf16.mxu1 %v9529_v24  ;;  %3288 = vmatprep.subr.bf16.mxu0 %v9532_v25  ;;  %v9596_v23 = vld [vmem:[%s11540_s7 + $0x720] ss:$16 sps:$4 sm:$0xff]   ;;  %v9601_v24 = vld [vmem:[%s11540_s7 + $0x504] ss:$16 sps:$4 sm:$0xff]  }
 0x36d   : > { %v9604_v25 = vld [vmem:[%s11540_s7 + $0x704] ss:$16 sps:$4 sm:$0xff]  }
 0x36f   : > { %3248 = vmatpush1.bf16.msra.mxu1 %v9527_v26  ;;  %3289 = vmatpush1.bf16.msra.mxu0 %v9530_v27  ;;  %v9599_v26 = vld [vmem:[%s11540_s7 + $0x500] ss:$16 sps:$4 sm:$0xff]  }
 0x370   : > { %3249 = vmatprep.subr.bf16.mxu1 %v9535_v28  ;;  %3290 = vmatprep.subr.bf16.mxu0 %v9538_v29  ;;  %v9602_v27 = vld [vmem:[%s11540_s7 + $0x700] ss:$16 sps:$4 sm:$0xff]   ;;  %v1572_v28 = vrot.slane %v10720_v61, %v10696_v14  ;;  %v1580_v29 = vrot.slane %v10720_v61, %v10699_v15  ;;  %v9608_v61 = vld [vmem:[%s11540_s7 + $0x2e8] ss:$16 sps:$4 sm:$0xff]  }
 0x373   : > { %3250 = vmatpush1.bf16.msra.mxu1 %v9533_v30  ;;  %3291 = vmatpush1.bf16.msra.mxu0 %v9536_v31  ;;  %v9607_v30 = vld [vmem:[%s11540_s7 + $0xec] ss:$16 sps:$4 sm:$0xff]  }
 0x374   : > { %3251 = vmatprep.subr.bf16.mxu1 %v9541_v32  ;;  %3292 = vmatprep.subr.bf16.mxu0 %v9544_v33  ;;  %v9610_v31 = vld [vmem:[%s11540_s7 + $0x2ec] ss:$16 sps:$4 sm:$0xff]   ;;  %v9605_v32 = vld [vmem:[%s11540_s7 + $0xe8] ss:$16 sps:$4 sm:$0xff]   ;;  %v10951_v33 = vpack.c.bf16 %v1572_v28, %v1572_v28 }
 0x375   : > { %v9674_v28 = vld [vmem:[%s11540_s7 + $0x388] ss:$16 sps:$4 sm:$0xff]  }
 0x377   : > { %3252 = vmatpush1.bf16.msra.mxu1 %v9539_v35  ;;  %3293 = vmatpush1.bf16.msra.mxu0 %v9542_v36  ;;  %v10953_v35 = vpack.c.bf16 %v1580_v29, %v1580_v29  ;;  %v9613_v36 = vld [vmem:[%s11540_s7 + $0xcc] ss:$16 sps:$4 sm:$0xff]  }
 0x378   : > { %3253 = vmatprep.subr.bf16.mxu1 %v9547_v37  ;;  %3294 = vmatprep.subr.bf16.mxu0 %v9550_v38  ;;  %v9616_v37 = vld [vmem:[%s11540_s7 + $0x2cc] ss:$16 sps:$4 sm:$0xff]   ;;  %v9611_v38 = vld [vmem:[%s11540_s7 + $0xc8] ss:$16 sps:$4 sm:$0xff]  }
 0x379   : > { %v9679_v29 = vld [vmem:[%s11540_s7 + $0x16c] ss:$16 sps:$4 sm:$0xff]  }
 0x37b   : > { %3254 = vmatpush1.bf16.msra.mxu1 %v9545_v39  ;;  %3295 = vmatpush1.bf16.msra.mxu0 %v9548_v40  ;;  %v9614_v39 = vld [vmem:[%s11540_s7 + $0x2c8] ss:$16 sps:$4 sm:$0xff]   ;;  %v9619_v40 = vld [vmem:[%s11540_s7 + $0xac] ss:$16 sps:$4 sm:$0xff]  }
 0x37c   : > { %3255 = vmatprep.subr.bf16.mxu1 %v9553_v41  ;;  %3296 = vmatprep.subr.bf16.mxu0 %v9556_v43  ;;  %v9617_v41 = vld [vmem:[%s11540_s7 + $0xa8] ss:$16 sps:$4 sm:$0xff]   ;;  %v9625_v43 = vld [vmem:[%s11540_s7 + $0x8c] ss:$16 sps:$4 sm:$0xff]  }
 0x37f   : > { %3256 = vmatpush1.bf16.msra.mxu1 %v9551_v44  ;;  %3297 = vmatpush1.bf16.msra.mxu0 %v9554_v50  ;;  %v9628_v44 = vld [vmem:[%s11540_s7 + $0x28c] ss:$16 sps:$4 sm:$0xff]   ;;  %v9623_v50 = vld [vmem:[%s11540_s7 + $0x88] ss:$16 sps:$4 sm:$0xff]  }
 0x380   : > { %3257 = vmatprep.subr.bf16.mxu1 %v9559_v51  ;;  %3298 = vmatprep.subr.bf16.mxu0 %v9562_v52  ;;  %v9626_v51 = vld [vmem:[%s11540_s7 + $0x288] ss:$16 sps:$4 sm:$0xff]   ;;  %v9631_v52 = vld [vmem:[%s11540_s7 + $0x6c] ss:$16 sps:$4 sm:$0xff]  }
 0x383   : > { %3258 = vmatpush2.bf16.msra.mxu1 %v9557_v53  ;;  %3299 = vmatpush2.bf16.msra.mxu0 %v9560_v54  ;;  %v9634_v53 = vld [vmem:[%s11540_s7 + $0x26c] ss:$16 sps:$4 sm:$0xff]   ;;  %v9629_v54 = vld [vmem:[%s11540_s7 + $0x68] ss:$16 sps:$4 sm:$0xff]  }
 0x384   : > { %3259 = vmatprep.subr.bf16.mxu1 %v9565_v49  ;;  %3300 = vmatprep.subr.bf16.mxu0 %v9568_v55  ;;  %v9632_v49 = vld [vmem:[%s11540_s7 + $0x268] ss:$16 sps:$4 sm:$0xff]   ;;  %v9637_v55 = vld [vmem:[%s11540_s7 + $0x4c] ss:$16 sps:$4 sm:$0xff]  }
 0x387   : > { %3260 = vmatpush2.bf16.msra.mxu1 %v9563_v42  ;;  %3301 = vmatpush2.bf16.msra.mxu0 %v9566_v56  ;;  %v9640_v42 = vld [vmem:[%s11540_s7 + $0x24c] ss:$16 sps:$4 sm:$0xff]   ;;  %v9635_v56 = vld [vmem:[%s11540_s7 + $0x48] ss:$16 sps:$4 sm:$0xff]  }
 0x388   : > { %3261 = vmatprep.subr.bf16.mxu1 %v9571_v57  ;;  %3302 = vmatprep.subr.bf16.mxu0 %v9574_v58  ;;  %v9638_v57 = vld [vmem:[%s11540_s7 + $0x248] ss:$16 sps:$4 sm:$0xff]   ;;  %v9643_v58 = vld [vmem:[%s11540_s7 + $0x2c] ss:$16 sps:$4 sm:$0xff]  }
 0x38b   : > { %3262 = vmatpush2.bf16.msra.mxu1 %v9569_v59  ;;  %3303 = vmatpush2.bf16.msra.mxu0 %v9572_v60  ;;  %v9646_v59 = vld [vmem:[%s11540_s7 + $0x22c] ss:$16 sps:$4 sm:$0xff]   ;;  %v9641_v60 = vld [vmem:[%s11540_s7 + $0x28] ss:$16 sps:$4 sm:$0xff]  }
 0x38c   : > { %3263 = vmatprep.subr.bf16.mxu1 %v9577_v62  ;;  %3304 = vmatprep.subr.bf16.mxu0 %v9580_v63  ;;  %v9644_v62 = vld [vmem:[%s11540_s7 + $0x228] ss:$16 sps:$4 sm:$0xff]   ;;  %v9649_v63 = vld [vmem:[%s11540_s7 + $0xc] ss:$16 sps:$4 sm:$0xff]  }
 0x38f   : > { %3264 = vmatpush2.bf16.msra.mxu1 %v9575_v0  ;;  %3305 = vmatpush2.bf16.msra.mxu0 %v9578_v1  ;;  %v9652_v0 = vld [vmem:[%s11540_s7 + $0x20c] ss:$16 sps:$4 sm:$0xff]   ;;  %v9647_v1 = vld [vmem:[%s11540_s7 + $0x8] ss:$16 sps:$4 sm:$0xff]  }
 0x390   : > { %3265 = vmatprep.subr.bf16.mxu1 %v9583_v2  ;;  %3306 = vmatprep.subr.bf16.mxu0 %v9586_v3  ;;  %v9650_v2 = vld [vmem:[%s11540_s7 + $0x208] ss:$16 sps:$4 sm:$0xff]   ;;  %v9655_v3 = vld [vmem:[%s11540_s7 + $0x1ec] ss:$16 sps:$4 sm:$0xff]  }
 0x393   : > { %3266 = vmatpush2.bf16.msra.mxu1 %v9581_v6  ;;  %3307 = vmatpush2.bf16.msra.mxu0 %v9584_v7  ;;  %v9658_v6 = vld [vmem:[%s11540_s7 + $0x3ec] ss:$16 sps:$4 sm:$0xff]   ;;  %v9653_v7 = vld [vmem:[%s11540_s7 + $0x1e8] ss:$16 sps:$4 sm:$0xff]  }
 0x394   : > { %3267 = vmatprep.subr.bf16.mxu1 %v9589_v10  ;;  %3308 = vmatprep.subr.bf16.mxu0 %v9592_v11  ;;  %v9656_v10 = vld [vmem:[%s11540_s7 + $0x3e8] ss:$16 sps:$4 sm:$0xff]   ;;  %v9661_v11 = vld [vmem:[%s11540_s7 + $0x1cc] ss:$16 sps:$4 sm:$0xff]  }
 0x397   : > { %3268 = vmatpush2.bf16.msra.mxu1 %v9587_v16  ;;  %3309 = vmatpush2.bf16.msra.mxu0 %v9590_v17  ;;  %v9664_v16 = vld [vmem:[%s11540_s7 + $0x3cc] ss:$16 sps:$4 sm:$0xff]   ;;  %v9659_v17 = vld [vmem:[%s11540_s7 + $0x1c8] ss:$16 sps:$4 sm:$0xff]  }
 0x398   : > { %3269 = vmatprep.subr.bf16.mxu1 %v9595_v20  ;;  %3310 = vmatprep.subr.bf16.mxu0 %v9598_v21  ;;  %v9662_v20 = vld [vmem:[%s11540_s7 + $0x3c8] ss:$16 sps:$4 sm:$0xff]   ;;  %v9667_v21 = vld [vmem:[%s11540_s7 + $0x1ac] ss:$16 sps:$4 sm:$0xff]  }
 0x39b   : > { %3270 = vmatpush2.bf16.msra.mxu1 %v9593_v22  ;;  %3311 = vmatpush2.bf16.msra.mxu0 %v9596_v23  ;;  %v9670_v22 = vld [vmem:[%s11540_s7 + $0x3ac] ss:$16 sps:$4 sm:$0xff]   ;;  %v9665_v23 = vld [vmem:[%s11540_s7 + $0x1a8] ss:$16 sps:$4 sm:$0xff]  }
 0x39c   : > { %3271 = vmatprep.subr.bf16.mxu1 %v9601_v24  ;;  %3312 = vmatprep.subr.bf16.mxu0 %v9604_v25  ;;  %v9668_v24 = vld [vmem:[%s11540_s7 + $0x3a8] ss:$16 sps:$4 sm:$0xff]   ;;  %v9673_v25 = vld [vmem:[%s11540_s7 + $0x18c] ss:$16 sps:$4 sm:$0xff]  }
 0x39f   : > { %3272 = vmatpush2.bf16.msra.mxu1 %v9599_v26  ;;  %3313 = vmatpush2.bf16.msra.mxu0 %v9602_v27  ;;  %v9676_v26 = vld [vmem:[%s11540_s7 + $0x38c] ss:$16 sps:$4 sm:$0xff]   ;;  %v9671_v27 = vld [vmem:[%s11540_s7 + $0x188] ss:$16 sps:$4 sm:$0xff]  }
 0x3a0   : > { %3323 = vmatprep.subr.bf16.mxu1 %v9607_v30  ;;  %3364 = vmatprep.subr.bf16.mxu0 %v9610_v31  ;;  %v9682_v30 = vld [vmem:[%s11540_s7 + $0x36c] ss:$16 sps:$4 sm:$0xff]   ;;  %v9677_v31 = vld [vmem:[%s11540_s7 + $0x168] ss:$16 sps:$4 sm:$0xff]  }
 0x3a2   : > { %3274 = vmatmul.mubr.bf16.vlgmr.msra.gmra.mxu1 %v10951_v33  ;;  %3315 = vmatmul.mubr.bf16.vlgmr.msra.gmra.mxu0 %v10953_v35 }
 0x3a3   : > { %3324 = vmatpush1.bf16.msra.mxu1 %v9605_v32  ;;  %3355 = vmatprep.mubr.bf16.mxu1 %v10734_v4  ;;  %v9622_v4 = vld [vmem:[%s11540_s7 + $0x2ac] ss:$16 sps:$4 sm:$0xff]   ;;  %v9680_v32 = vld [vmem:[%s11540_s7 + $0x368] ss:$16 sps:$4 sm:$0xff]  }
 0x3a4   : > { %3365 = vmatpush1.bf16.msra.mxu0 %v9608_v61  ;;  %3396 = vmatprep.mubr.bf16.mxu0 %v10736_v5  ;;  %v9620_v5 = vld [vmem:[%s11540_s7 + $0x2a8] ss:$16 sps:$4 sm:$0xff]   ;;  %v9685_v61 = vld [vmem:[%s11540_s7 + $0x14c] ss:$16 sps:$4 sm:$0xff]  }
 0x3a5   : > { %3325 = vmatprep.subr.bf16.mxu1 %v9613_v36  ;;  %3366 = vmatprep.subr.bf16.mxu0 %v9616_v37  ;;  %v9688_v36 = vld [vmem:[%s11540_s7 + $0x34c] ss:$16 sps:$4 sm:$0xff]   ;;  %v9683_v37 = vld [vmem:[%s11540_s7 + $0x148] ss:$16 sps:$4 sm:$0xff]  }
 0x3a7   : > { %3326 = vmatpush1.bf16.msra.mxu1 %v9611_v38  ;;  %v9686_v38 = vld [vmem:[%s11540_s7 + $0x348] ss:$16 sps:$4 sm:$0xff]  }
 0x3a8   : > { %3367 = vmatpush1.bf16.msra.mxu0 %v9614_v39  ;;  %3327 = vmatprep.subr.bf16.mxu1 %v9619_v40  ;;  %v9691_v39 = vld [vmem:[%s11540_s7 + $0x12c] ss:$16 sps:$4 sm:$0xff]  }
 0x3a9   : > { %3368 = vmatprep.subr.bf16.mxu0 %v9622_v4  ;;  %v9694_v40 = vld [vmem:[%s11540_s7 + $0x32c] ss:$16 sps:$4 sm:$0xff]   ;;  %v9689_v4 = vld [vmem:[%s11540_s7 + $0x128] ss:$16 sps:$4 sm:$0xff]  }
 0x3ab   : > { %3328 = vmatpush1.bf16.msra.mxu1 %v9617_v41  ;;  %v9692_v41 = vld [vmem:[%s11540_s7 + $0x328] ss:$16 sps:$4 sm:$0xff]  }
 0x3ac   : > { %3369 = vmatpush1.bf16.msra.mxu0 %v9620_v5  ;;  %3329 = vmatprep.subr.bf16.mxu1 %v9625_v43  ;;  %v9697_v5 = vld [vmem:[%s11540_s7 + $0x10c] ss:$16 sps:$4 sm:$0xff]  }
 0x3ad   : > { %3370 = vmatprep.subr.bf16.mxu0 %v9628_v44  ;;  %v9700_v43 = vld [vmem:[%s11540_s7 + $0x30c] ss:$16 sps:$4 sm:$0xff]   ;;  %v9695_v44 = vld [vmem:[%s11540_s7 + $0x108] ss:$16 sps:$4 sm:$0xff]  }
 0x3af   : > { %3330 = vmatpush1.bf16.msra.mxu1 %v9623_v50  ;;  %v9698_v50 = vld [vmem:[%s11540_s7 + $0x308] ss:$16 sps:$4 sm:$0xff]  }
 0x3b0   : > { %3371 = vmatpush1.bf16.msra.mxu0 %v9626_v51  ;;  %3331 = vmatprep.subr.bf16.mxu1 %v9631_v52  ;;  %v9703_v51 = vld [vmem:[%s11540_s7 + $0x4ec] ss:$16 sps:$4 sm:$0xff]  }
 0x3b1   : > { %3372 = vmatprep.subr.bf16.mxu0 %v9634_v53  ;;  %v9706_v52 = vld [vmem:[%s11540_s7 + $0x6ec] ss:$16 sps:$4 sm:$0xff]   ;;  %v9701_v53 = vld [vmem:[%s11540_s7 + $0x4e8] ss:$16 sps:$4 sm:$0xff]  }
 0x3b3   : > { %3332 = vmatpush1.bf16.msra.mxu1 %v9629_v54  ;;  %v9704_v54 = vld [vmem:[%s11540_s7 + $0x6e8] ss:$16 sps:$4 sm:$0xff]  }
 0x3b4   : > { %3373 = vmatpush1.bf16.msra.mxu0 %v9632_v49  ;;  %3333 = vmatprep.subr.bf16.mxu1 %v9637_v55  ;;  %v9709_v49 = vld [vmem:[%s11540_s7 + $0x4cc] ss:$16 sps:$4 sm:$0xff]  }
 0x3b5   : > { %3374 = vmatprep.subr.bf16.mxu0 %v9640_v42  ;;  %v9712_v55 = vld [vmem:[%s11540_s7 + $0x6cc] ss:$16 sps:$4 sm:$0xff]   ;;  %v9707_v42 = vld [vmem:[%s11540_s7 + $0x4c8] ss:$16 sps:$4 sm:$0xff]  }
 0x3b7   : > { %3334 = vmatpush1.bf16.msra.mxu1 %v9635_v56  ;;  %v9710_v56 = vld [vmem:[%s11540_s7 + $0x6c8] ss:$16 sps:$4 sm:$0xff]  }
 0x3b8   : > { %3375 = vmatpush1.bf16.msra.mxu0 %v9638_v57  ;;  %3335 = vmatprep.subr.bf16.mxu1 %v9643_v58  ;;  %v9716_v57 = vld [vmem:[%s11540_s7 + $0x6a8] ss:$16 sps:$4 sm:$0xff]   ;;  %v9724_v58 = vld [vmem:[%s11540_s7 + $0x68c] ss:$16 sps:$4 sm:$0xff]  }
 0x3b9   : > { %3376 = vmatprep.subr.bf16.mxu0 %v9646_v59  ;;  %v9719_v59 = vld [vmem:[%s11540_s7 + $0x488] ss:$16 sps:$4 sm:$0xff]  }
 0x3bb   : > { %3336 = vmatpush1.bf16.msra.mxu1 %v9641_v60  ;;  %v9722_v60 = vld [vmem:[%s11540_s7 + $0x688] ss:$16 sps:$4 sm:$0xff]  }
 0x3bc   : > { %3377 = vmatpush1.bf16.msra.mxu0 %v9644_v62  ;;  %3337 = vmatprep.subr.bf16.mxu1 %v9649_v63  ;;  %v9727_v62 = vld [vmem:[%s11540_s7 + $0x46c] ss:$16 sps:$4 sm:$0xff]  }
 0x3bd   : > { %3378 = vmatprep.subr.bf16.mxu0 %v9652_v0  ;;  %v9730_v63 = vld [vmem:[%s11540_s7 + $0x66c] ss:$16 sps:$4 sm:$0xff]   ;;  %v9725_v0 = vld [vmem:[%s11540_s7 + $0x468] ss:$16 sps:$4 sm:$0xff]  }
 0x3bf   : > { %3338 = vmatpush1.bf16.msra.mxu1 %v9647_v1  ;;  %v9728_v1 = vld [vmem:[%s11540_s7 + $0x668] ss:$16 sps:$4 sm:$0xff]  }
 0x3c0   : > { %3379 = vmatpush1.bf16.msra.mxu0 %v9650_v2  ;;  %3339 = vmatprep.subr.bf16.mxu1 %v9655_v3  ;;  %v9733_v2 = vld [vmem:[%s11540_s7 + $0x44c] ss:$16 sps:$4 sm:$0xff]  }
 0x3c1   : > { %3380 = vmatprep.subr.bf16.mxu0 %v9658_v6  ;;  %v9736_v3 = vld [vmem:[%s11540_s7 + $0x64c] ss:$16 sps:$4 sm:$0xff]   ;;  %v9731_v6 = vld [vmem:[%s11540_s7 + $0x448] ss:$16 sps:$4 sm:$0xff]  }
 0x3c3   : > { %3340 = vmatpush2.bf16.msra.mxu1 %v9653_v7  ;;  %v9734_v7 = vld [vmem:[%s11540_s7 + $0x648] ss:$16 sps:$4 sm:$0xff]  }
 0x3c4   : > { %3381 = vmatpush2.bf16.msra.mxu0 %v9656_v10  ;;  %3341 = vmatprep.subr.bf16.mxu1 %v9661_v11  ;;  %v9739_v10 = vld [vmem:[%s11540_s7 + $0x42c] ss:$16 sps:$4 sm:$0xff]  }
 0x3c5   : > { %3382 = vmatprep.subr.bf16.mxu0 %v9664_v16  ;;  %v9742_v11 = vld [vmem:[%s11540_s7 + $0x62c] ss:$16 sps:$4 sm:$0xff]   ;;  %v9737_v16 = vld [vmem:[%s11540_s7 + $0x428] ss:$16 sps:$4 sm:$0xff]  }
 0x3c7   : > { %3342 = vmatpush2.bf16.msra.mxu1 %v9659_v17  ;;  %v9740_v17 = vld [vmem:[%s11540_s7 + $0x628] ss:$16 sps:$4 sm:$0xff]  }
 0x3c8   : > { %3383 = vmatpush2.bf16.msra.mxu0 %v9662_v20  ;;  %3343 = vmatprep.subr.bf16.mxu1 %v9667_v21  ;;  %v9745_v20 = vld [vmem:[%s11540_s7 + $0x40c] ss:$16 sps:$4 sm:$0xff]  }
 0x3c9   : > { %3384 = vmatprep.subr.bf16.mxu0 %v9670_v22  ;;  %v9748_v21 = vld [vmem:[%s11540_s7 + $0x60c] ss:$16 sps:$4 sm:$0xff]   ;;  %v9743_v22 = vld [vmem:[%s11540_s7 + $0x408] ss:$16 sps:$4 sm:$0xff]  }
 0x3cb   : > { %3344 = vmatpush2.bf16.msra.mxu1 %v9665_v23  ;;  %v9746_v23 = vld [vmem:[%s11540_s7 + $0x608] ss:$16 sps:$4 sm:$0xff]  }
 0x3cc   : > { %3385 = vmatpush2.bf16.msra.mxu0 %v9668_v24  ;;  %3345 = vmatprep.subr.bf16.mxu1 %v9673_v25  ;;  %v9751_v24 = vld [vmem:[%s11540_s7 + $0x5ec] ss:$16 sps:$4 sm:$0xff]  }
 0x3cd   : > { %3386 = vmatprep.subr.bf16.mxu0 %v9676_v26  ;;  %v9754_v25 = vld [vmem:[%s11540_s7 + $0x7ec] ss:$16 sps:$4 sm:$0xff]   ;;  %v9749_v26 = vld [vmem:[%s11540_s7 + $0x5e8] ss:$16 sps:$4 sm:$0xff]  }
 0x3cf   : > { %3346 = vmatpush2.bf16.msra.mxu1 %v9671_v27  ;;  %v9752_v27 = vld [vmem:[%s11540_s7 + $0x7e8] ss:$16 sps:$4 sm:$0xff]  }
 0x3d0   : > { %3387 = vmatpush2.bf16.msra.mxu0 %v9674_v28  ;;  %3347 = vmatprep.subr.bf16.mxu1 %v9679_v29  ;;  %v9757_v28 = vld [vmem:[%s11540_s7 + $0x5cc] ss:$16 sps:$4 sm:$0xff]  }
 0x3d1   : > { %3388 = vmatprep.subr.bf16.mxu0 %v9682_v30  ;;  %v9760_v29 = vld [vmem:[%s11540_s7 + $0x7cc] ss:$16 sps:$4 sm:$0xff]   ;;  %v9755_v30 = vld [vmem:[%s11540_s7 + $0x5c8] ss:$16 sps:$4 sm:$0xff]  }
 0x3d3   : > { %3348 = vmatpush2.bf16.msra.mxu1 %v9677_v31  ;;  %v9758_v31 = vld [vmem:[%s11540_s7 + $0x7c8] ss:$16 sps:$4 sm:$0xff]  }
 0x3d4   : > { %3389 = vmatpush2.bf16.msra.mxu0 %v9680_v32  ;;  %3349 = vmatprep.subr.bf16.mxu1 %v9685_v61  ;;  %v9763_v32 = vld [vmem:[%s11540_s7 + $0x5ac] ss:$16 sps:$4 sm:$0xff]  }
 0x3d5   : > { %3390 = vmatprep.subr.bf16.mxu0 %v9688_v36  ;;  %v9766_v61 = vld [vmem:[%s11540_s7 + $0x7ac] ss:$16 sps:$4 sm:$0xff]   ;;  %v9761_v36 = vld [vmem:[%s11540_s7 + $0x5a8] ss:$16 sps:$4 sm:$0xff]  }
 0x3d7   : > { %3350 = vmatpush2.bf16.msra.mxu1 %v9683_v37  ;;  %v9764_v37 = vld [vmem:[%s11540_s7 + $0x7a8] ss:$16 sps:$4 sm:$0xff]  }
 0x3d8   : > { %3391 = vmatpush2.bf16.msra.mxu0 %v9686_v38  ;;  %3351 = vmatprep.subr.bf16.mxu1 %v9691_v39  ;;  %v9769_v38 = vld [vmem:[%s11540_s7 + $0x58c] ss:$16 sps:$4 sm:$0xff]  }
 0x3d9   : > { %3392 = vmatprep.subr.bf16.mxu0 %v9694_v40  ;;  %v9772_v39 = vld [vmem:[%s11540_s7 + $0x78c] ss:$16 sps:$4 sm:$0xff]   ;;  %v9767_v40 = vld [vmem:[%s11540_s7 + $0x588] ss:$16 sps:$4 sm:$0xff]  }
 0x3db   : > { %3352 = vmatpush2.bf16.msra.mxu1 %v9689_v4  ;;  %v9770_v4 = vld [vmem:[%s11540_s7 + $0x788] ss:$16 sps:$4 sm:$0xff]  }
 0x3dc   : > { %3393 = vmatpush2.bf16.msra.mxu0 %v9692_v41  ;;  %3353 = vmatprep.subr.bf16.mxu1 %v9697_v5  ;;  %v9775_v41 = vld [vmem:[%s11540_s7 + $0x56c] ss:$16 sps:$4 sm:$0xff]  }
 0x3dd   : > { %3394 = vmatprep.subr.bf16.mxu0 %v9700_v43  ;;  %v9778_v5 = vld [vmem:[%s11540_s7 + $0x76c] ss:$16 sps:$4 sm:$0xff]   ;;  %v9773_v43 = vld [vmem:[%s11540_s7 + $0x568] ss:$16 sps:$4 sm:$0xff]  }
 0x3df   : > { %3354 = vmatpush2.bf16.msra.mxu1 %v9695_v44  ;;  %v9776_v44 = vld [vmem:[%s11540_s7 + $0x768] ss:$16 sps:$4 sm:$0xff]  }
 0x3e0   : > { %3395 = vmatpush2.bf16.msra.mxu0 %v9698_v50  ;;  %3405 = vmatprep.subr.bf16.mxu1 %v9703_v51  ;;  %v9781_v50 = vld [vmem:[%s11540_s7 + $0x54c] ss:$16 sps:$4 sm:$0xff]  }
 0x3e1   : > { %3446 = vmatprep.subr.bf16.mxu0 %v9706_v52  ;;  %v9784_v51 = vld [vmem:[%s11540_s7 + $0x74c] ss:$16 sps:$4 sm:$0xff]   ;;  %v9779_v52 = vld [vmem:[%s11540_s7 + $0x548] ss:$16 sps:$4 sm:$0xff]  }
 0x3e2   : > { %3356 = vmatmul.mubr.bf16.vlgmr.msra.gmra.mxu1 %v10744_v8  ;;  %v9715_v8 = vld [vmem:[%s11540_s7 + $0x4ac] ss:$16 sps:$4 sm:$0xff]  }
 0x3e3   : > { %3397 = vmatmul.mubr.bf16.vlgmr.msra.gmra.mxu0 %v10746_v9  ;;  %3406 = vmatpush1.bf16.msra.mxu1 %v9701_v53  ;;  %v9718_v9 = vld [vmem:[%s11540_s7 + $0x6ac] ss:$16 sps:$4 sm:$0xff]   ;;  %v9782_v53 = vld [vmem:[%s11540_s7 + $0x748] ss:$16 sps:$4 sm:$0xff]  }
 0x3e4   : > { %3437 = vmatprep.mubr.bf16.mxu1 %v10758_v12  ;;  %3447 = vmatpush1.bf16.msra.mxu0 %v9704_v54  ;;  %v9713_v12 = vld [vmem:[%s11540_s7 + $0x4a8] ss:$16 sps:$4 sm:$0xff]   ;;  %v9787_v54 = vld [vmem:[%s11540_s7 + $0x52c] ss:$16 sps:$4 sm:$0xff]  }
 0x3e5   : > { %3478 = vmatprep.mubr.bf16.mxu0 %v10760_v13  ;;  %3407 = vmatprep.subr.bf16.mxu1 %v9709_v49  ;;  %v9721_v13 = vld [vmem:[%s11540_s7 + $0x48c] ss:$16 sps:$4 sm:$0xff]  }
 0x3e6   : > { %3448 = vmatprep.subr.bf16.mxu0 %v9712_v55  ;;  %v9790_v49 = vld [vmem:[%s11540_s7 + $0x72c] ss:$16 sps:$4 sm:$0xff]   ;;  %v9785_v55 = vld [vmem:[%s11540_s7 + $0x528] ss:$16 sps:$4 sm:$0xff]  }
 0x3e7   : > { %3408 = vmatpush1.bf16.msra.mxu1 %v9707_v42  ;;  %v9788_v42 = vld [vmem:[%s11540_s7 + $0x728] ss:$16 sps:$4 sm:$0xff]  }
 0x3e8   : > { %3449 = vmatpush1.bf16.msra.mxu0 %v9710_v56  ;;  %3409 = vmatprep.subr.bf16.mxu1 %v9715_v8  ;;  %v9793_v56 = vld [vmem:[%s11540_s7 + $0x50c] ss:$16 sps:$4 sm:$0xff]  }
 0x3e9   : > { %3450 = vmatprep.subr.bf16.mxu0 %v9718_v9  ;;  %v9796_v8 = vld [vmem:[%s11540_s7 + $0x70c] ss:$16 sps:$4 sm:$0xff]   ;;  %v9791_v9 = vld [vmem:[%s11540_s7 + $0x508] ss:$16 sps:$4 sm:$0xff]  }
 0x3eb   : > { %3410 = vmatpush1.bf16.msra.mxu1 %v9713_v12  ;;  %v9794_v12 = vld [vmem:[%s11540_s7 + $0x708] ss:$16 sps:$4 sm:$0xff]  }
 0x3ec   : > { %3451 = vmatpush1.bf16.msra.mxu0 %v9716_v57  ;;  %3411 = vmatprep.subr.bf16.mxu1 %v9721_v13  ;;  %v9799_v57 = vld [vmem:[#allocation13 + $0x74] ss:$8 sps:$4 sm:$0xff]   ;;  %v9797_v13 = vld [vmem:[#allocation13 + $0x70] ss:$8 sps:$4 sm:$0xff]  }
 0x3ed   : > { %3452 = vmatprep.subr.bf16.mxu0 %v9724_v58  ;;  %v9802_v58 = vld [vmem:[#allocation13 + $0x64] ss:$8 sps:$4 sm:$0xff]  }
 0x3ef   : > { %3412 = vmatpush1.bf16.msra.mxu1 %v9719_v59 }
 0x3f0   : > { %3453 = vmatpush1.bf16.msra.mxu0 %v9722_v60  ;;  %3413 = vmatprep.subr.bf16.mxu1 %v9727_v62  ;;  %v9800_v62 = vld [vmem:[#allocation13 + $0x60] ss:$8 sps:$4 sm:$0xff]  }
 0x3f1   : > { %3454 = vmatprep.subr.bf16.mxu0 %v9730_v63 }
 0x3f3   : > { %3414 = vmatpush1.bf16.msra.mxu1 %v9725_v0 }
 0x3f4   : > { %3455 = vmatpush1.bf16.msra.mxu0 %v9728_v1  ;;  %3415 = vmatprep.subr.bf16.mxu1 %v9733_v2  ;;  %v9805_v1 = vld [vmem:[#allocation13 + $0x54] ss:$8 sps:$4 sm:$0xff]  }
 0x3f5   : > { %3456 = vmatprep.subr.bf16.mxu0 %v9736_v3 }
 0x3f7   : > { %3416 = vmatpush1.bf16.msra.mxu1 %v9731_v6  ;;  %v9803_v6 = vld [vmem:[#allocation13 + $0x50] ss:$8 sps:$4 sm:$0xff]  }
 0x3f8   : > { %3457 = vmatpush1.bf16.msra.mxu0 %v9734_v7  ;;  %3417 = vmatprep.subr.bf16.mxu1 %v9739_v10  ;;  %v9808_v10 = vld [vmem:[#allocation13 + $0x44] ss:$8 sps:$4 sm:$0xff]  }
 0x3f9   : > { %3458 = vmatprep.subr.bf16.mxu0 %v9742_v11  ;;  %v9845_v11 = vld [vmem:[#allocation13 + $0x170] ss:$8 sps:$4 sm:$0xff]  }
 0x3fb   : > { %3418 = vmatpush1.bf16.msra.mxu1 %v9737_v16  ;;  %v9847_v16 = vld [vmem:[#allocation13 + $0x174] ss:$8 sps:$4 sm:$0xff]  }
 0x3fc   : > { %3459 = vmatpush1.bf16.msra.mxu0 %v9740_v17  ;;  %3419 = vmatprep.subr.bf16.mxu1 %v9745_v20  ;;  %v9850_v17 = vld [vmem:[#allocation13 + $0x164] ss:$8 sps:$4 sm:$0xff]   ;;  %v9811_v20 = vld [vmem:[#allocation13 + $0x34] ss:$8 sps:$4 sm:$0xff]  }
 0x3fd   : > { %3460 = vmatprep.subr.bf16.mxu0 %v9748_v21  ;;  %v9848_v21 = vld [vmem:[#allocation13 + $0x160] ss:$8 sps:$4 sm:$0xff]  }
 0x3ff   : > { %3420 = vmatpush1.bf16.msra.mxu1 %v9743_v22  ;;  %v9853_v22 = vld [vmem:[#allocation13 + $0x154] ss:$8 sps:$4 sm:$0xff]  }
 0x400   : > { %3461 = vmatpush1.bf16.msra.mxu0 %v9746_v23  ;;  %3421 = vmatprep.subr.bf16.mxu1 %v9751_v24  ;;  %v9809_v23 = vld [vmem:[#allocation13 + $0x30] ss:$8 sps:$4 sm:$0xff]   ;;  %v9814_v24 = vld [vmem:[#allocation13 + $0x24] ss:$8 sps:$4 sm:$0xff]  }
 0x401   : > { %3462 = vmatprep.subr.bf16.mxu0 %v9754_v25  ;;  %v9851_v25 = vld [vmem:[#allocation13 + $0x150] ss:$8 sps:$4 sm:$0xff]  }
 0x403   : > { %3422 = vmatpush2.bf16.msra.mxu1 %v9749_v26  ;;  %v9856_v26 = vld [vmem:[#allocation13 + $0x144] ss:$8 sps:$4 sm:$0xff]  }
 0x404   : > { %3463 = vmatpush2.bf16.msra.mxu0 %v9752_v27  ;;  %3423 = vmatprep.subr.bf16.mxu1 %v9757_v28  ;;  %v9812_v27 = vld [vmem:[#allocation13 + $0x20] ss:$8 sps:$4 sm:$0xff]   ;;  %v9817_v28 = vld [vmem:[#allocation13 + $0x14] ss:$8 sps:$4 sm:$0xff]  }
 0x405   : > { %3464 = vmatprep.subr.bf16.mxu0 %v9760_v29  ;;  %v9854_v29 = vld [vmem:[#allocation13 + $0x140] ss:$8 sps:$4 sm:$0xff]  }
 0x407   : > { %3424 = vmatpush2.bf16.msra.mxu1 %v9755_v30  ;;  %v9859_v30 = vld [vmem:[#allocation13 + $0x134] ss:$8 sps:$4 sm:$0xff]  }
 0x408   : > { %3465 = vmatpush2.bf16.msra.mxu0 %v9758_v31  ;;  %3425 = vmatprep.subr.bf16.mxu1 %v9763_v32  ;;  %v9815_v31 = vld [vmem:[#allocation13 + $0x10] ss:$8 sps:$4 sm:$0xff]   ;;  %v9820_v32 = vld [vmem:[#allocation13 + $0x4] ss:$8 sps:$4 sm:$0xff]  }
 0x409   : > { %3466 = vmatprep.subr.bf16.mxu0 %v9766_v61  ;;  %v9857_v61 = vld [vmem:[#allocation13 + $0x130] ss:$8 sps:$4 sm:$0xff]  }
 0x40b   : > { %3426 = vmatpush2.bf16.msra.mxu1 %v9761_v36  ;;  %v9862_v36 = vld [vmem:[#allocation13 + $0x124] ss:$8 sps:$4 sm:$0xff]  }
 0x40c   : > { %3467 = vmatpush2.bf16.msra.mxu0 %v9764_v37  ;;  %3427 = vmatprep.subr.bf16.mxu1 %v9769_v38  ;;  %v9818_v37 = vld [vmem:[#allocation13] ss:$8 sps:$4 sm:$0xff]   ;;  %v9823_v38 = vld [vmem:[#allocation13 + $0xf4] ss:$8 sps:$4 sm:$0xff]  }
 0x40d   : > { %3468 = vmatprep.subr.bf16.mxu0 %v9772_v39  ;;  %v9860_v39 = vld [vmem:[#allocation13 + $0x120] ss:$8 sps:$4 sm:$0xff]  }
 0x40f   : > { %3428 = vmatpush2.bf16.msra.mxu1 %v9767_v40  ;;  %v9865_v40 = vld [vmem:[#allocation13 + $0x114] ss:$8 sps:$4 sm:$0xff]  }
 0x410   : > { %3469 = vmatpush2.bf16.msra.mxu0 %v9770_v4  ;;  %3429 = vmatprep.subr.bf16.mxu1 %v9775_v41  ;;  %v9821_v4 = vld [vmem:[#allocation13 + $0xf0] ss:$8 sps:$4 sm:$0xff]   ;;  %v9826_v41 = vld [vmem:[#allocation13 + $0xe4] ss:$8 sps:$4 sm:$0xff]  }
 0x411   : > { %3470 = vmatprep.subr.bf16.mxu0 %v9778_v5  ;;  %v9863_v5 = vld [vmem:[#allocation13 + $0x110] ss:$8 sps:$4 sm:$0xff]  }
 0x413   : > { %3430 = vmatpush2.bf16.msra.mxu1 %v9773_v43  ;;  %v9868_v43 = vld [vmem:[#allocation13 + $0x104] ss:$8 sps:$4 sm:$0xff]  }
 0x414   : > { %3471 = vmatpush2.bf16.msra.mxu0 %v9776_v44  ;;  %3431 = vmatprep.subr.bf16.mxu1 %v9781_v50  ;;  %v9824_v44 = vld [vmem:[#allocation13 + $0xe0] ss:$8 sps:$4 sm:$0xff]   ;;  %v9829_v50 = vld [vmem:[#allocation13 + $0xd4] ss:$8 sps:$4 sm:$0xff]  }
 0x415   : > { %3472 = vmatprep.subr.bf16.mxu0 %v9784_v51  ;;  %v9866_v51 = vld [vmem:[#allocation13 + $0x100] ss:$8 sps:$4 sm:$0xff]  }
 0x417   : > { %3432 = vmatpush2.bf16.msra.mxu1 %v9779_v52  ;;  %v9871_v52 = vld [vmem:[#allocation13 + $0x1f4] ss:$8 sps:$4 sm:$0xff]  }
 0x418   : > { %3473 = vmatpush2.bf16.msra.mxu0 %v9782_v53  ;;  %3433 = vmatprep.subr.bf16.mxu1 %v9787_v54  ;;  %v9827_v53 = vld [vmem:[#allocation13 + $0xd0] ss:$8 sps:$4 sm:$0xff]   ;;  %v9832_v54 = vld [vmem:[#allocation13 + $0xc4] ss:$8 sps:$4 sm:$0xff]  }
 0x419   : > { %3474 = vmatprep.subr.bf16.mxu0 %v9790_v49  ;;  %v9869_v49 = vld [vmem:[#allocation13 + $0x1f0] ss:$8 sps:$4 sm:$0xff]  }
 0x41b   : > { %3434 = vmatpush2.bf16.msra.mxu1 %v9785_v55  ;;  %v9874_v55 = vld [vmem:[#allocation13 + $0x1e4] ss:$8 sps:$4 sm:$0xff]  }
 0x41c   : > { %3475 = vmatpush2.bf16.msra.mxu0 %v9788_v42  ;;  %3435 = vmatprep.subr.bf16.mxu1 %v9793_v56  ;;  %v9830_v42 = vld [vmem:[#allocation13 + $0xc0] ss:$8 sps:$4 sm:$0xff]   ;;  %v9835_v56 = vld [vmem:[#allocation13 + $0xb4] ss:$8 sps:$4 sm:$0xff]  }
 0x41d   : > { %3476 = vmatprep.subr.bf16.mxu0 %v9796_v8  ;;  %v9872_v8 = vld [vmem:[#allocation13 + $0x1e0] ss:$8 sps:$4 sm:$0xff]  }
 0x41f   : > { %3436 = vmatpush2.bf16.msra.mxu1 %v9791_v9  ;;  %v9877_v9 = vld [vmem:[#allocation13 + $0x1d4] ss:$8 sps:$4 sm:$0xff]  }
 0x420   : > { %3477 = vmatpush2.bf16.msra.mxu0 %v9794_v12  ;;  %3891 = vmatprep.subr.bf16.mxu1 %v9799_v57  ;;  %v9833_v12 = vld [vmem:[#allocation13 + $0xb0] ss:$8 sps:$4 sm:$0xff]   ;;  %v9838_v57 = vld [vmem:[#allocation13 + $0xa4] ss:$8 sps:$4 sm:$0xff]  }
 0x421   : > { %3932 = vmatprep.subr.bf16.mxu0 %v9847_v16 }
 0x422   : > { %3438 = vmatmul.mubr.bf16.vlgmr.msra.gmra.mxu1 %v10951_v33  ;;  %v11339_v59 = vpop.f32.mrf.mxu1  ;;  %v11341_v60 = vpop.f32.mrf.mxu0 }
 0x423   : > { %3479 = vmatmul.mubr.bf16.vlgmr.msra.gmra.mxu0 %v10953_v35  ;;  %3892 = vmatpush1.bf16.msra.mxu1 %v9797_v13  ;;  %v9806_v35 = vld [vmem:[#allocation13 + $0x40] ss:$8 sps:$4 sm:$0xff]   ;;  %v9875_v13 = vld [vmem:[#allocation13 + $0x1d0] ss:$8 sps:$4 sm:$0xff]  }
 0x424   : > { %v11344_v63 = vpop.f32.mrf.mxu1  ;;  %v11346_v0 = vpop.f32.mrf.mxu0  ;;  %3893 = vmatprep.subr.bf16.mxu1 %v9802_v58  ;;  %3933 = vmatpush1.bf16.msra.mxu0 %v9845_v11  ;;  %v9880_v58 = vld [vmem:[#allocation13 + $0x1c4] ss:$8 sps:$4 sm:$0xff]  }
 0x425   : > { %3934 = vmatprep.subr.bf16.mxu0 %v9850_v17  ;;  %v9842_v17 = vld [vmem:[#allocation13 + $0x80] ss:$8 sps:$4 sm:$0xff]  }
 0x426   : > { %v3197_v2 = vpop.f32.mrf.mxu1  ;;  %v3238_v3 = vpop.f32.mrf.mxu0 }
 0x427   : > { %3894 = vmatpush1.bf16.msra.mxu1 %v9800_v62  ;;  %v9836_v62 = vld [vmem:[#allocation13 + $0xa0] ss:$8 sps:$4 sm:$0xff]   ;;  %v9883_v3 = vld [vmem:[#allocation13 + $0x1b4] ss:$8 sps:$4 sm:$0xff]  }
 0x428   : > { %v3198_v7 = vpop.f32.mrf.mxu1  ;;  %v3239_v33 = vpop.f32.mrf.mxu0  ;;  %3895 = vmatprep.subr.bf16.mxu1 %v9805_v1  ;;  %3935 = vmatpush1.bf16.msra.mxu0 %v9848_v21  ;;  %v9841_v1 = vld [vmem:[#allocation13 + $0x94] ss:$8 sps:$4 sm:$0xff]   ;;  %v9878_v2 = vld [vmem:[#allocation13 + $0x1c0] ss:$8 sps:$4 sm:$0xff]  }
 0x429   : > { %3936 = vmatprep.subr.bf16.mxu0 %v9853_v22  ;;  %v9839_v7 = vld [vmem:[#allocation13 + $0x90] ss:$8 sps:$4 sm:$0xff]   ;;  %v9844_v33 = vld [vmem:[#allocation13 + $0x84] ss:$8 sps:$4 sm:$0xff]  }
 0x42b   : > { %3896 = vmatpush1.bf16.msra.mxu1 %v9803_v6  ;;  %v11348_v6 = vld [vmem:[#allocation11] sm:$0xf] }
 0x42c   : > { %3897 = vmatprep.subr.bf16.mxu1 %v9808_v10  ;;  %3937 = vmatpush1.bf16.msra.mxu0 %v9851_v25  ;;  %v9881_v10 = vld [vmem:[#allocation13 + $0x1b0] ss:$8 sps:$4 sm:$0xff]   ;;  %v3142_v11 = vrot.slane %v11348_v6, %v10686_v47  ;;  %v3146_v16 = vrot.slane %v11348_v6, %v10680_v45 }
 0x42d   : > { %3938 = vmatprep.subr.bf16.mxu0 %v9856_v26 }
 0x42f   : > { %3898 = vmatpush1.bf16.msra.mxu1 %v9806_v35  ;;  %v3194_v35 = vadd.f32 %v11339_v59, %v3142_v11 }
 0x430   : > { %3899 = vmatprep.subr.bf16.mxu1 %v9811_v20  ;;  %3939 = vmatpush1.bf16.msra.mxu0 %v9854_v29  ;;  %v3196_v20 = vadd.f32 %v11344_v63, %v3146_v16  ;;  %v4073_v16 = vld [vmem:[#allocation16 + $0x300] sm:$0xff] }
 0x431   : > { %3940 = vmatprep.subr.bf16.mxu0 %v9859_v30  ;;  %v3235_v21 = vadd.f32 %v11341_v60, %v3194_v35 }
 0x432   : > { %v3237_v25 = vadd.f32 %v11346_v0, %v3196_v20  ;;  %v9892_v0 = vld [vmem:[#allocation13 + $0x184] ss:$8 sps:$4 sm:$0xff]  }
 0x433   : > { %3900 = vmatpush1.bf16.msra.mxu1 %v9809_v23 }
 0x434   : > { %3901 = vmatprep.subr.bf16.mxu1 %v9814_v24  ;;  %3941 = vmatpush1.bf16.msra.mxu0 %v9857_v61  ;;  %v9886_v24 = vld [vmem:[#allocation13 + $0x1a4] ss:$8 sps:$4 sm:$0xff]   ;;  %v9889_v61 = vld [vmem:[#allocation13 + $0x194] ss:$8 sps:$4 sm:$0xff]  }
 0x435   : > { %3942 = vmatprep.subr.bf16.mxu0 %v9862_v36  ;;  %v9887_v36 = vld [vmem:[#allocation13 + $0x190] ss:$8 sps:$4 sm:$0xff]  }
 0x437   : > { %3902 = vmatpush1.bf16.msra.mxu1 %v9812_v27  ;;  %v9884_v27 = vld [vmem:[#allocation13 + $0x1a0] ss:$8 sps:$4 sm:$0xff]  }
 0x438   : > { %3903 = vmatprep.subr.bf16.mxu1 %v9817_v28  ;;  %3943 = vmatpush1.bf16.msra.mxu0 %v9860_v39 }
 0x439   : > { %3944 = vmatprep.subr.bf16.mxu0 %v9865_v40 }
 0x43b   : > { %3904 = vmatpush1.bf16.msra.mxu1 %v9815_v31 }
 0x43c   : > { %3905 = vmatprep.subr.bf16.mxu1 %v9820_v32  ;;  %3945 = vmatpush1.bf16.msra.mxu0 %v9863_v5 }
 0x43d   : > { %3946 = vmatprep.subr.bf16.mxu0 %v9868_v43 }
 0x43f   : > { %3906 = vmatpush1.bf16.msra.mxu1 %v9818_v37 }
 0x440   : > { %3907 = vmatprep.subr.bf16.mxu1 %v9823_v38  ;;  %3947 = vmatpush1.bf16.msra.mxu0 %v9866_v51 }
 0x441   : > { %3948 = vmatprep.subr.bf16.mxu0 %v9871_v52 }
 0x443   : > { %3908 = vmatpush2.bf16.msra.mxu1 %v9821_v4  ;;  %v9890_v4 = vld [vmem:[#allocation13 + $0x180] ss:$8 sps:$4 sm:$0xff]  }
 0x444   : > { %3909 = vmatprep.subr.bf16.mxu1 %v9826_v41  ;;  %3949 = vmatpush2.bf16.msra.mxu0 %v9869_v49  ;;  %v4201_v49 = vld [vmem:[#allocation16 + $0x700] sm:$0xff] }
 0x445   : > { %3950 = vmatprep.subr.bf16.mxu0 %v9874_v55  ;;  %v4217_v55 = vld [vmem:[#allocation16 + $0x780] sm:$0xff] }
 0x447   : > { %3910 = vmatpush2.bf16.msra.mxu1 %v9824_v44 }
 0x448   : > { %3911 = vmatprep.subr.bf16.mxu1 %v9829_v50  ;;  %3951 = vmatpush2.bf16.msra.mxu0 %v9872_v8  ;;  %v8928_v8 = vcombine.high %v4201_v49, %v4217_v55 }
 0x449   : > { %3952 = vmatprep.subr.bf16.mxu0 %v9877_v9  ;;  %v11368_v9 = vld [vmem:[#allocation16 + $0x788] sm:$0xff] }
 0x44b   : > { %3912 = vmatpush2.bf16.msra.mxu1 %v9827_v53 }
 0x44c   : > { %3913 = vmatprep.subr.bf16.mxu1 %v9832_v54  ;;  %3953 = vmatpush2.bf16.msra.mxu0 %v9875_v13 }
 0x44d   : > { %3954 = vmatprep.subr.bf16.mxu0 %v9880_v58 }
 0x44f   : > { %3914 = vmatpush2.bf16.msra.mxu1 %v9830_v42  ;;  %v11366_v42 = vld [vmem:[#allocation16 + $0x708] sm:$0xff] }
 0x450   : > { %3915 = vmatprep.subr.bf16.mxu1 %v9835_v56  ;;  %3955 = vmatpush2.bf16.msra.mxu0 %v9878_v2  ;;  %v8927_v56 = vcombine.low %v4201_v49, %v4217_v55  ;;  %v8930_v13 = vcombine.high %v11366_v42, %v11368_v9 }
 0x451   : > { %3956 = vmatprep.subr.bf16.mxu0 %v9883_v3 }
 0x453   : > { %3916 = vmatpush2.bf16.msra.mxu1 %v9833_v12  ;;  %v4169_v12 = vld [vmem:[#allocation16 + $0x600] sm:$0xff] }
 0x454   : > { %3917 = vmatprep.subr.bf16.mxu1 %v9838_v57  ;;  %3957 = vmatpush2.bf16.msra.mxu0 %v9881_v10  ;;  %v4185_v57 = vld [vmem:[#allocation16 + $0x680] sm:$0xff] }
 0x455   : > { %3958 = vmatprep.subr.bf16.mxu0 %v9886_v24  ;;  %v8896_v58 = vcombine.high %v4169_v12, %v4185_v57  ;;  %v8895_v2 = vcombine.low %v4169_v12, %v4185_v57  ;;  %v4345_v12 = vld [vmem:[#allocation16 + $0xb80] sm:$0xff] }
 0x457   : > { %3918 = vmatpush2.bf16.msra.mxu1 %v9836_v62  ;;  %v4137_v62 = vld [vmem:[#allocation16 + $0x500] sm:$0xff] }
 0x458   : > { %3919 = vmatprep.subr.bf16.mxu1 %v9841_v1  ;;  %3959 = vmatpush2.bf16.msra.mxu0 %v9884_v27  ;;  %v4153_v1 = vld [vmem:[#allocation16 + $0x580] sm:$0xff] }
 0x459   : > { %3960 = vmatprep.subr.bf16.mxu0 %v9889_v61  ;;  %v8864_v3 = vcombine.high %v4137_v62, %v4153_v1  ;;  %v8863_v10 = vcombine.low %v4137_v62, %v4153_v1  ;;  %v4473_v61 = vld [vmem:[#allocation16 + $0xf80] sm:$0xff] }
 0x45b   : > { %3920 = vmatpush2.bf16.msra.mxu1 %v9839_v7  ;;  %v4105_v7 = vld [vmem:[#allocation16 + $0x400] sm:$0xff] }
 0x45c   : > { %3921 = vmatprep.subr.bf16.mxu1 %v9844_v33  ;;  %3961 = vmatpush2.bf16.msra.mxu0 %v9887_v36  ;;  %v4121_v33 = vld [vmem:[#allocation16 + $0x480] sm:$0xff] }
 0x45d   : > { %3962 = vmatprep.subr.bf16.mxu0 %v9892_v0  ;;  %v8832_v11 = vcombine.high %v4105_v7, %v4121_v33  ;;  %v8831_v35 = vcombine.low %v4105_v7, %v4121_v33  ;;  %v4393_v0 = vld [vmem:[#allocation16 + $0xd00] sm:$0xff] }
 0x45f   : > { %3922 = vmatpush2.bf16.msra.mxu1 %v9842_v17  ;;  %v4089_v17 = vld [vmem:[#allocation16 + $0x380] sm:$0xff] }
 0x460   : > { %3963 = vmatpush2.bf16.msra.mxu0 %v9890_v4  ;;  %7217 = vmatprep.subr.bf16.mxu1 %v8928_v8  ;;  %v8800_v20 = vcombine.high %v4073_v16, %v4089_v17  ;;  %v4329_v8 = vld [vmem:[#allocation16 + $0xb00] sm:$0xff] }
 0x461   : > { %7258 = vmatprep.subr.bf16.mxu0 %v8930_v13  ;;  %v9056_v62 = vcombine.high %v4329_v8, %v4345_v12 }
 0x462   : > { %v3275_v22 = vpop.f32.mrf.mxu1  ;;  %v3316_v23 = vpop.f32.mrf.mxu0 }
 0x463   : > { %v3276_v26 = vadd.f32 %v3275_v22, %v3235_v21  ;;  %v4041_v21 = vld [vmem:[#allocation16 + $0x200] sm:$0xff] }
 0x464   : > { %v3277_v28 = vpop.f32.mrf.mxu1  ;;  %v3318_v29 = vpop.f32.mrf.mxu0  ;;  %v4057_v22 = vld [vmem:[#allocation16 + $0x280] sm:$0xff] }
 0x465   : > { %v3317_v30 = vadd.f32 %v3316_v23, %v3276_v26  ;;  %v3278_v31 = vadd.f32 %v3277_v28, %v3237_v25  ;;  %v8799_v23 = vcombine.low %v4073_v16, %v4089_v17  ;;  %v8768_v24 = vcombine.high %v4041_v21, %v4057_v22  ;;  %v4009_v25 = vld [vmem:[#allocation16 + $0x100] sm:$0xff] }
 0x466   : > { %v3279_v32 = vpop.f32.mrf.mxu1  ;;  %v3320_v59 = vpop.f32.mrf.mxu0  ;;  %v4025_v26 = vld [vmem:[#allocation16 + $0x180] sm:$0xff]  ;;  %v8767_v27 = vcombine.low %v4041_v21, %v4057_v22 }
 0x467   : > { %v3319_v63 = vadd.f32 %v3318_v29, %v3278_v31  ;;  %v3487_v37 = vmax.f32 %v3317_v30, 0.0  ;;  %v8736_v28 = vcombine.high %v4009_v25, %v4025_v26  ;;  %v3977_v29 = vld [vmem:[#allocation16] sm:$0xff]  ;;  %v8735_v31 = vcombine.low %v4009_v25, %v4025_v26  ;;  %v4186_v26 = vld [vmem:[#allocation16 + $0x688] sm:$0xff] }
 0x468   : > { %v3280_v60 = vpop.f32.mrf.mxu1  ;;  %v3321_v38 = vpop.f32.mrf.mxu0  ;;  %v3993_v30 = vld [vmem:[#allocation16 + $0x80] sm:$0xff] }
 0x469   : > { %v3488_v39 = vmax.f32 %v3319_v63, 0.0  ;;  %v3491_v41 = vpack.c.bf16 %v3487_v37, %v3487_v37  ;;  %v8704_v32 = vcombine.high %v3977_v29, %v3993_v30  ;;  %v4457_v59 = vld [vmem:[#allocation16 + $0xf00] sm:$0xff]  ;;  %v8703_v63 = vcombine.low %v3977_v29, %v3993_v30 }
 0x46a   : > { %v9184_v36 = vcombine.high %v4457_v59, %v4473_v61  ;;  %v4425_v37 = vld [vmem:[#allocation16 + $0xe00] sm:$0xff]  ;;  %v9183_v38 = vcombine.low %v4457_v59, %v4473_v61 }
 0x46b   : > { %v3492_v40 = vpack.c.bf16 %v3488_v39, %v3488_v39  ;;  %v4441_v60 = vld [vmem:[#allocation16 + $0xe80] sm:$0xff] }
 0x46c   : > { %v9152_v39 = vcombine.high %v4425_v37, %v4441_v60  ;;  %v9151_v4 = vcombine.low %v4425_v37, %v4441_v60 }
 0x46d   : > { %3923 = vmatprep.mubr.bf16.mxu1 %v3492_v40  ;;  %v4409_v40 = vld [vmem:[#allocation16 + $0xd80] sm:$0xff] }
 0x46e   : > { %3924 = vmatmul.mubr.bf16.vlgmr.msra.gmra.mxu1 %v3491_v41  ;;  %v3150_v41 = vrot.slane %v11348_v6, %v10689_v48  ;;  %v9119_v49 = vcombine.low %v4393_v0, %v4409_v40 }
 0x46f   : > { %7218 = vmatpush1.bf16.msra.mxu1 %v8927_v56 }
 0x470   : > { %7219 = vmatprep.subr.bf16.mxu1 %v8896_v58 }
 0x473   : > { %7220 = vmatpush1.bf16.msra.mxu1 %v8895_v2  ;;  %v4297_v2 = vld [vmem:[#allocation16 + $0xa00] sm:$0xff] }
 0x474   : > { %7221 = vmatprep.subr.bf16.mxu1 %v8864_v3  ;;  %v4313_v3 = vld [vmem:[#allocation16 + $0xa80] sm:$0xff] }
 0x477   : > { %7222 = vmatpush1.bf16.msra.mxu1 %v8863_v10  ;;  %v9055_v10 = vcombine.low %v4329_v8, %v4345_v12  ;;  %v4458_v12 = vld [vmem:[#allocation16 + $0xf08] sm:$0xff] }
 0x478   : > { %7223 = vmatprep.subr.bf16.mxu1 %v8832_v11 }
 0x47b   : > { %7224 = vmatpush1.bf16.msra.mxu1 %v8831_v35 }
 0x47c   : > { %7225 = vmatprep.subr.bf16.mxu1 %v8800_v20 }
 0x47f   : > { %7226 = vmatpush1.bf16.msra.mxu1 %v8799_v23  ;;  %v9023_v23 = vcombine.low %v4297_v2, %v4313_v3 }
 0x480   : > { %7227 = vmatprep.subr.bf16.mxu1 %v8768_v24 }
 0x483   : > { %7228 = vmatpush1.bf16.msra.mxu1 %v8767_v27 }
 0x484   : > { %7229 = vmatprep.subr.bf16.mxu1 %v8736_v28  ;;  %v8929_v28 = vcombine.low %v11366_v42, %v11368_v9 }
 0x487   : > { %7230 = vmatpush1.bf16.msra.mxu1 %v8735_v31  ;;  %v4138_v31 = vld [vmem:[#allocation16 + $0x508] sm:$0xff] }
 0x488   : > { %7231 = vmatprep.subr.bf16.mxu1 %v8704_v32  ;;  %v4154_v32 = vld [vmem:[#allocation16 + $0x588] sm:$0xff] }
 0x489   : > { %v8866_v61 = vcombine.high %v4138_v31, %v4154_v32  ;;  %v8865_v37 = vcombine.low %v4138_v31, %v4154_v32 }
 0x48b   : > { %7232 = vmatpush1.bf16.msra.mxu1 %v8703_v63  ;;  %v4106_v63 = vld [vmem:[#allocation16 + $0x408] sm:$0xff] }
 0x48c   : > { %7233 = vmatprep.subr.bf16.mxu1 %v9184_v36  ;;  %v4122_v36 = vld [vmem:[#allocation16 + $0x488] sm:$0xff] }
 0x48d   : > { %v8834_v60 = vcombine.high %v4106_v63, %v4122_v36  ;;  %v8833_v42 = vcombine.low %v4106_v63, %v4122_v36  ;;  %v4233_v36 = vld [vmem:[#allocation16 + $0x800] sm:$0xff] }
 0x48f   : > { %7234 = vmatpush2.bf16.msra.mxu1 %v9183_v38  ;;  %v4074_v38 = vld [vmem:[#allocation16 + $0x308] sm:$0xff] }
 0x490   : > { %7235 = vmatprep.subr.bf16.mxu1 %v9152_v39  ;;  %v4090_v39 = vld [vmem:[#allocation16 + $0x388] sm:$0xff] }
 0x491   : > { %v8802_v9 = vcombine.high %v4074_v38, %v4090_v39 }
 0x493   : > { %7236 = vmatpush2.bf16.msra.mxu1 %v9151_v4  ;;  %v8801_v4 = vcombine.low %v4074_v38, %v4090_v39  ;;  %v4250_v39 = vld [vmem:[#allocation16 + $0x888] sm:$0xff] }
 0x4a2   : > { %v11358_v5 = vpop.f32.mrf.mxu1 }
 0x4a3   : > { %v11360_v43 = vpop.f32.mrf.mxu0  ;;  %v3358_v55 = vadd.f32 %v11358_v5, %v3150_v41 }
 0x4a4   : > { %v11362_v44 = vpop.f32.mrf.mxu1 }
 0x4a5   : > { %v11364_v50 = vpop.f32.mrf.mxu0  ;;  %v3399_v58 = vadd.f32 %v11360_v43, %v3358_v55  ;;  %v3994_v55 = vld [vmem:[#allocation16 + $0x88] sm:$0xff] }
 0x4a6   : > { %v3361_v51 = vpop.f32.mrf.mxu1 }
 0x4a7   : > { %v3402_v52 = vpop.f32.mrf.mxu0  ;;  %v9120_v51 = vcombine.high %v4393_v0, %v4409_v40  ;;  %v4042_v0 = vld [vmem:[#allocation16 + $0x208] sm:$0xff] }
 0x4a8   : > { %v3362_v53 = vpop.f32.mrf.mxu1  ;;  %v4361_v52 = vld [vmem:[#allocation16 + $0xc00] sm:$0xff]  ;;  %v4058_v40 = vld [vmem:[#allocation16 + $0x288] sm:$0xff] }
 0x4a9   : > { %v3403_v54 = vpop.f32.mrf.mxu0  ;;  %v4377_v53 = vld [vmem:[#allocation16 + $0xc80] sm:$0xff]  ;;  %7237 = vmatprep.subr.bf16.mxu1 %v9120_v51  ;;  %v8770_v41 = vcombine.high %v4042_v0, %v4058_v40  ;;  %v4010_v51 = vld [vmem:[#allocation16 + $0x108] sm:$0xff] }
 0x4aa   : > { %v3154_v54 = vrot.slane %v11348_v6, %v10683_v46  ;;  %v9088_v56 = vcombine.high %v4361_v52, %v4377_v53  ;;  %7238 = vmatpush2.bf16.msra.mxu1 %v9119_v49  ;;  %v9087_v13 = vcombine.low %v4361_v52, %v4377_v53  ;;  %v4026_v52 = vld [vmem:[#allocation16 + $0x188] sm:$0xff]  ;;  %v8769_v53 = vcombine.low %v4042_v0, %v4058_v40 }
 0x4ab   : > { %v3978_v49 = vld [vmem:[#allocation16 + $0x8] sm:$0xff] }
 0x4ac   : > { %v3360_v57 = vadd.f32 %v11362_v44, %v3154_v54  ;;  %7239 = vmatprep.subr.bf16.mxu1 %v9088_v56  ;;  %v9024_v44 = vcombine.high %v4297_v2, %v4313_v3  ;;  %v8738_v54 = vcombine.high %v4010_v51, %v4026_v52  ;;  %v8737_v56 = vcombine.low %v4010_v51, %v4026_v52  ;;  %v4204_v51 = vld [vmem:[#allocation16 + $0x718] sm:$0xff] }
 0x4ad   : > { %v8706_v8 = vcombine.high %v3978_v49, %v3994_v55 }
 0x4ae   : > { %v3401_v6 = vadd.f32 %v11364_v50, %v3360_v57  ;;  %7240 = vmatpush2.bf16.msra.mxu1 %v9087_v13  ;;  %v4170_v50 = vld [vmem:[#allocation16 + $0x608] sm:$0xff]  ;;  %v8705_v13 = vcombine.low %v3978_v49, %v3994_v55 }
 0x4af   : > { %7241 = vmatprep.subr.bf16.mxu1 %v9056_v62  ;;  %v8898_v30 = vcombine.high %v4170_v50, %v4186_v26  ;;  %v8897_v59 = vcombine.low %v4170_v50, %v4186_v26  ;;  %v4474_v57 = vld [vmem:[#allocation16 + $0xf88] sm:$0xff]  ;;  %v4265_v26 = vld [vmem:[#allocation16 + $0x900] sm:$0xff] }
 0x4b0   : > { %v4426_v62 = vld [vmem:[#allocation16 + $0xe08] sm:$0xff]  ;;  %v9185_v2 = vcombine.low %v4458_v12, %v4474_v57 }
 0x4b2   : > { %7242 = vmatpush2.bf16.msra.mxu1 %v9055_v10  ;;  %v4362_v10 = vld [vmem:[#allocation16 + $0xc08] sm:$0xff] }
 0x4b3   : > { %7243 = vmatprep.subr.bf16.mxu1 %v9024_v44  ;;  %v4330_v44 = vld [vmem:[#allocation16 + $0xb08] sm:$0xff] }
 0x4b6   : > { %7244 = vmatpush2.bf16.msra.mxu1 %v9023_v23 }
 0x4e2   : > { %v3439_v1 = vpop.f32.mrf.mxu1 }
 0x4e3   : > { %v3440_v7 = vadd.f32 %v3439_v1, %v3399_v58  ;;  %v3480_v33 = vpop.f32.mrf.mxu0  ;;  %v9186_v58 = vcombine.high %v4458_v12, %v4474_v57  ;;  %v4442_v1 = vld [vmem:[#allocation16 + $0xe88] sm:$0xff] }
 0x4e4   : > { %v3441_v5 = vpop.f32.mrf.mxu1  ;;  %v9154_v3 = vcombine.high %v4426_v62, %v4442_v1 }
 0x4e5   : > { %v3481_v11 = vadd.f32 %v3480_v33, %v3440_v7  ;;  %v3442_v16 = vadd.f32 %v3441_v5, %v3401_v6  ;;  %v3482_v17 = vpop.f32.mrf.mxu0  ;;  %v4394_v6 = vld [vmem:[#allocation16 + $0xd08] sm:$0xff]  ;;  %v9153_v33 = vcombine.low %v4426_v62, %v4442_v1 }
 0x4e6   : > { %v3443_v35 = vpop.f32.mrf.mxu1  ;;  %v4410_v7 = vld [vmem:[#allocation16 + $0xd88] sm:$0xff] }
 0x4e7   : > { %v3483_v20 = vadd.f32 %v3482_v17, %v3442_v16  ;;  %v3484_v43 = vpop.f32.mrf.mxu0  ;;  %v3489_v21 = vmax.f32 %v3481_v11, 0.0  ;;  %v9122_v5 = vcombine.high %v4394_v6, %v4410_v7  ;;  %v4378_v11 = vld [vmem:[#allocation16 + $0xc88] sm:$0xff]  ;;  %v9121_v16 = vcombine.low %v4394_v6, %v4410_v7 }
 0x4e8   : > { %v3444_v22 = vpop.f32.mrf.mxu1  ;;  %v9090_v17 = vcombine.high %v4362_v10, %v4378_v11  ;;  %v4346_v35 = vld [vmem:[#allocation16 + $0xb88] sm:$0xff] }
 0x4e9   : > { %v3490_v24 = vmax.f32 %v3483_v20, 0.0  ;;  %v3485_v25 = vpop.f32.mrf.mxu0  ;;  %v3493_v29 = vpack.c.bf16 %v3489_v21, %v3489_v21  ;;  %v9089_v20 = vcombine.low %v4362_v10, %v4378_v11  ;;  %v9058_v43 = vcombine.high %v4330_v44, %v4346_v35  ;;  %v4298_v21 = vld [vmem:[#allocation16 + $0xa08] sm:$0xff]  ;;  %v4187_v10 = vld [vmem:[#allocation16 + $0x690] sm:$0xff]  ;;  %v4172_v11 = vld [vmem:[#allocation16 + $0x618] sm:$0xff] }
 0x4ea   : > { %v4314_v22 = vld [vmem:[#allocation16 + $0xa88] sm:$0xff]  ;;  %v9057_v23 = vcombine.low %v4330_v44, %v4346_v35  ;;  %v4139_v35 = vld [vmem:[#allocation16 + $0x510] sm:$0xff] }
 0x4eb   : > { %v3494_v27 = vpack.c.bf16 %v3490_v24, %v3490_v24  ;;  %v9026_v24 = vcombine.high %v4298_v21, %v4314_v22  ;;  %v9025_v25 = vcombine.low %v4298_v21, %v4314_v22  ;;  %v4155_v21 = vld [vmem:[#allocation16 + $0x590] sm:$0xff]  ;;  %v4140_v22 = vld [vmem:[#allocation16 + $0x518] sm:$0xff] }
 0x4ed   : > { %3964 = vmatprep.mubr.bf16.mxu0 %v3494_v27  ;;  %v4281_v27 = vld [vmem:[#allocation16 + $0x980] sm:$0xff] }
 0x4ee   : > { %3965 = vmatmul.mubr.bf16.vlgmr.msra.gmra.mxu0 %v3493_v29  ;;  %v8992_v29 = vcombine.high %v4265_v26, %v4281_v27  ;;  %v8991_v32 = vcombine.low %v4265_v26, %v4281_v27  ;;  %v4107_v27 = vld [vmem:[#allocation16 + $0x410] sm:$0xff] }
 0x4ef   : > { %7259 = vmatpush1.bf16.msra.mxu0 %v8929_v28  ;;  %v4266_v28 = vld [vmem:[#allocation16 + $0x908] sm:$0xff] }
 0x4f0   : > { %7260 = vmatprep.subr.bf16.mxu0 %v8898_v30  ;;  %v4282_v30 = vld [vmem:[#allocation16 + $0x988] sm:$0xff]  ;;  %7245 = vmatprep.subr.bf16.mxu1 %v8992_v29  ;;  %v4108_v29 = vld [vmem:[#allocation16 + $0x418] sm:$0xff] }
 0x4f1   : > { %7246 = vmatpush2.bf16.msra.mxu1 %v8991_v32 }
 0x4f3   : > { %7261 = vmatpush1.bf16.msra.mxu0 %v8897_v59  ;;  %v8993_v59 = vcombine.low %v4266_v28, %v4282_v30 }
 0x4f4   : > { %7262 = vmatprep.subr.bf16.mxu0 %v8866_v61  ;;  %v8994_v61 = vcombine.high %v4266_v28, %v4282_v30  ;;  %v4123_v28 = vld [vmem:[#allocation16 + $0x490] sm:$0xff]  ;;  %v4124_v30 = vld [vmem:[#allocation16 + $0x498] sm:$0xff] }
 0x4f7   : > { %7263 = vmatpush1.bf16.msra.mxu0 %v8865_v37  ;;  %v4249_v37 = vld [vmem:[#allocation16 + $0x880] sm:$0xff] }
 0x4f8   : > { %7264 = vmatprep.subr.bf16.mxu0 %v8834_v60  ;;  %v4234_v60 = vld [vmem:[#allocation16 + $0x808] sm:$0xff]  ;;  %v8960_v38 = vcombine.high %v4233_v36, %v4249_v37 }
 0x4f9   : > { %v8961_v0 = vcombine.low %v4234_v60, %v4250_v39  ;;  %v8962_v40 = vcombine.high %v4234_v60, %v4250_v39  ;;  %v4092_v60 = vld [vmem:[#allocation16 + $0x398] sm:$0xff]  ;;  %v8837_v39 = vcombine.low %v4108_v29, %v4124_v30 }
 0x4fa   : > { %7247 = vmatprep.subr.bf16.mxu1 %v8960_v38  ;;  %v8835_v38 = vcombine.low %v4107_v27, %v4123_v28 }
 0x4fb   : > { %7265 = vmatpush1.bf16.msra.mxu0 %v8833_v42 }
 0x4fc   : > { %7266 = vmatprep.subr.bf16.mxu0 %v8802_v9  ;;  %v8959_v9 = vcombine.low %v4233_v36, %v4249_v37  ;;  %v4091_v36 = vld [vmem:[#allocation16 + $0x390] sm:$0xff]  ;;  %v4076_v37 = vld [vmem:[#allocation16 + $0x318] sm:$0xff] }
 0x4fe   : > { %7248 = vmatpush2.bf16.msra.mxu1 %v8959_v9  ;;  %v8806_v9 = vcombine.high %v4076_v37, %v4092_v60 }
 0x4ff   : > { %7267 = vmatpush1.bf16.msra.mxu0 %v8801_v4  ;;  %v4203_v4 = vld [vmem:[#allocation16 + $0x710] sm:$0xff] }
 0x500   : > { %7268 = vmatprep.subr.bf16.mxu0 %v8770_v41  ;;  %v4219_v41 = vld [vmem:[#allocation16 + $0x790] sm:$0xff] }
 0x501   : > { %v8931_v52 = vcombine.low %v4203_v4, %v4219_v41 }
 0x503   : > { %7269 = vmatpush1.bf16.msra.mxu0 %v8769_v53  ;;  %v8932_v53 = vcombine.high %v4203_v4, %v4219_v41  ;;  %v4044_v4 = vld [vmem:[#allocation16 + $0x218] sm:$0xff] }
 0x504   : > { %7270 = vmatprep.subr.bf16.mxu0 %v8738_v54  ;;  %v4220_v54 = vld [vmem:[#allocation16 + $0x798] sm:$0xff] }
 0x505   : > { %v8933_v49 = vcombine.low %v4204_v51, %v4220_v54  ;;  %v8934_v55 = vcombine.high %v4204_v51, %v4220_v54  ;;  %7299 = vmatprep.subr.bf16.mxu1 %v8932_v53  ;;  %v4060_v41 = vld [vmem:[#allocation16 + $0x298] sm:$0xff] }
 0x506   : > { %v8774_v54 = vcombine.high %v4044_v4, %v4060_v41 }
 0x507   : > { %7271 = vmatpush1.bf16.msra.mxu0 %v8737_v56  ;;  %v3559_v56 = vld [vmem:[#allocation14] sm:$0x3] }
 0x508   : > { %7272 = vmatprep.subr.bf16.mxu0 %v8706_v8  ;;  %v3884_v8 = vrot.slane %v3559_v56, %v10686_v47  ;;  %v3888_v12 = vrot.slane %v3559_v56, %v10680_v45  ;;  %v4012_v56 = vld [vmem:[#allocation16 + $0x118] sm:$0xff] }
 0x50b   : > { %7273 = vmatpush1.bf16.msra.mxu0 %v8705_v13 }
 0x50c   : > { %7274 = vmatprep.subr.bf16.mxu0 %v9186_v58 }
 0x50f   : > { %7275 = vmatpush2.bf16.msra.mxu0 %v9185_v2 }
 0x510   : > { %7276 = vmatprep.subr.bf16.mxu0 %v9154_v3 }
 0x513   : > { %7277 = vmatpush2.bf16.msra.mxu0 %v9153_v33  ;;  %v4171_v33 = vld [vmem:[#allocation16 + $0x610] sm:$0xff] }
 0x514   : > { %7278 = vmatprep.subr.bf16.mxu0 %v9122_v5 }
 0x517   : > { %7279 = vmatpush2.bf16.msra.mxu0 %v9121_v16  ;;  %v4188_v16 = vld [vmem:[#allocation16 + $0x698] sm:$0xff] }
 0x518   : > { %7280 = vmatprep.subr.bf16.mxu0 %v9090_v17 }
 0x51b   : > { %7281 = vmatpush2.bf16.msra.mxu0 %v9089_v20  ;;  %v8900_v20 = vcombine.high %v4171_v33, %v4187_v10 }
 0x51c   : > { %7282 = vmatprep.subr.bf16.mxu0 %v9058_v43  ;;  %v8902_v43 = vcombine.high %v4172_v11, %v4188_v16 }
 0x51f   : > { %7283 = vmatpush2.bf16.msra.mxu0 %v9057_v23  ;;  %v4156_v23 = vld [vmem:[#allocation16 + $0x598] sm:$0xff] }
 0x520   : > { %7284 = vmatprep.subr.bf16.mxu0 %v9026_v24  ;;  %v8899_v24 = vcombine.low %v4171_v33, %v4187_v10  ;;  %v8870_v26 = vcombine.high %v4140_v22, %v4156_v23  ;;  %v8869_v32 = vcombine.low %v4140_v22, %v4156_v23  ;;  %v4459_v10 = vld [vmem:[#allocation16 + $0xf10] sm:$0xff] }
 0x521   : > { %v4427_v23 = vld [vmem:[#allocation16 + $0xe10] sm:$0xff] }
 0x523   : > { %7285 = vmatpush2.bf16.msra.mxu0 %v9025_v25  ;;  %v8901_v25 = vcombine.low %v4172_v11, %v4188_v16  ;;  %v4475_v11 = vld [vmem:[#allocation16 + $0xf90] sm:$0xff]  ;;  %v4460_v16 = vld [vmem:[#allocation16 + $0xf18] sm:$0xff] }
 0x524   : > { %7286 = vmatprep.subr.bf16.mxu0 %v8994_v61  ;;  %v8838_v61 = vcombine.high %v4108_v29, %v4124_v30  ;;  %v4395_v30 = vld [vmem:[#allocation16 + $0xd10] sm:$0xff] }
 0x527   : > { %7287 = vmatpush2.bf16.msra.mxu0 %v8993_v59  ;;  %v8836_v59 = vcombine.high %v4107_v27, %v4123_v28 }
 0x528   : > { %7288 = vmatprep.subr.bf16.mxu0 %v8962_v40  ;;  %v4059_v40 = vld [vmem:[#allocation16 + $0x290] sm:$0xff] }
 0x52b   : > { %7289 = vmatpush2.bf16.msra.mxu0 %v8961_v0  ;;  %v4043_v0 = vld [vmem:[#allocation16 + $0x210] sm:$0xff] }
 0x52c   : > { %7340 = vmatprep.subr.bf16.mxu0 %v8934_v55  ;;  %v8772_v53 = vcombine.high %v4043_v0, %v4059_v40  ;;  %v4027_v55 = vld [vmem:[#allocation16 + $0x190] sm:$0xff] }
 0x52e   : > { %v3925_v50 = vpop.f32.mrf.mxu1 }
 0x52f   : > { %v3926_v57 = vadd.f32 %v3925_v50, %v3884_v8  ;;  %v8868_v50 = vcombine.high %v4139_v35, %v4155_v21  ;;  %v4028_v8 = vld [vmem:[#allocation16 + $0x198] sm:$0xff] }
 0x530   : > { %v3927_v31 = vpop.f32.mrf.mxu1 }
 0x531   : > { %v3928_v58 = vadd.f32 %v3927_v31, %v3888_v12  ;;  %v8867_v31 = vcombine.low %v4139_v35, %v4155_v21  ;;  %v8771_v12 = vcombine.low %v4043_v0, %v4059_v40  ;;  %v4476_v35 = vld [vmem:[#allocation16 + $0xf98] sm:$0xff]  ;;  %v9188_v21 = vcombine.high %v4459_v10, %v4475_v11 }
 0x532   : > { %v3929_v63 = vpop.f32.mrf.mxu1  ;;  %v9190_v22 = vcombine.high %v4460_v16, %v4476_v35  ;;  %v9189_v27 = vcombine.low %v4460_v16, %v4476_v35  ;;  %v4235_v35 = vld [vmem:[#allocation16 + $0x810] sm:$0xff] }
 0x533   : > { %v4075_v63 = vld [vmem:[#allocation16 + $0x310] sm:$0xff] }
 0x534   : > { %v3930_v42 = vpop.f32.mrf.mxu1  ;;  %v8803_v51 = vcombine.low %v4075_v63, %v4091_v36 }
 0x535   : > { %v8804_v42 = vcombine.high %v4075_v63, %v4091_v36 }
 0x5ae   : > { %v3966_v13 = vpop.f32.mrf.mxu0 }
 0x5af   : > { %v3967_v62 = vadd.f32 %v3966_v13, %v3926_v57  ;;  %v8773_v57 = vcombine.low %v4044_v4, %v4060_v41  ;;  %v4331_v41 = vld [vmem:[#allocation16 + $0xb10] sm:$0xff] }
 0x5b0   : > { %v3968_v1 = vpop.f32.mrf.mxu0 }
 0x5b1   : > { %v3969_v2 = vadd.f32 %v3968_v1, %v3928_v58  ;;  %v3973_v3 = vmax.f32 %v3967_v62, 0.0  ;;  %v8742_v58 = vcombine.high %v4012_v56, %v4028_v8  ;;  %v3979_v62 = vld [vmem:[#allocation16 + $0x10] sm:$0xff] }
 0x5b2   : > { %v3970_v6 = vpop.f32.mrf.mxu0  ;;  %v3995_v1 = vld [vmem:[#allocation16 + $0x90] sm:$0xff] }
 0x5b3   : > { %v3974_v7 = vmax.f32 %v3969_v2, 0.0  ;;  %v11386_v44 = vpack.c.bf16 %v3973_v3, %v3973_v3  ;;  %v3980_v2 = vld [vmem:[#allocation16 + $0x18] sm:$0xff]  ;;  %v8708_v33 = vcombine.high %v3979_v62, %v3995_v1 }
 0x5b4   : > { %v3971_v5 = vpop.f32.mrf.mxu0  ;;  %v3996_v3 = vld [vmem:[#allocation16 + $0x98] sm:$0xff] }
 0x5b5   : > { %v11384_v17 = vpack.c.bf16 %v3974_v7, %v3974_v7  ;;  %v8741_v7 = vcombine.low %v4012_v56, %v4028_v8  ;;  %v8710_v5 = vcombine.high %v3980_v2, %v3996_v3  ;;  %v4299_v8 = vld [vmem:[#allocation16 + $0xa10] sm:$0xff] }
 0x5b7   : > { %7249 = vmatprep.mubr.bf16.mxu1 %v11384_v17  ;;  %7290 = vmatprep.mubr.bf16.mxu0 %v11384_v17 }
 0x5b8   : > { %7250 = vmatmul.mubr.bf16.vlgmr.msra.gmra.mxu1 %v11386_v44  ;;  %7291 = vmatmul.mubr.bf16.vlgmr.msra.gmra.mxu0 %v11386_v44 }
 0x5b9   : > { %7300 = vmatpush1.bf16.msra.mxu1 %v8931_v52  ;;  %7341 = vmatpush1.bf16.msra.mxu0 %v8933_v49  ;;  %v8805_v52 = vcombine.low %v4076_v37, %v4092_v60  ;;  %v4011_v49 = vld [vmem:[#allocation16 + $0x110] sm:$0xff] }
 0x5ba   : > { %7331 = vmatprep.mubr.bf16.mxu1 %v11384_v17  ;;  %7372 = vmatprep.mubr.bf16.mxu0 %v11384_v17  ;;  %v8740_v13 = vcombine.high %v4011_v49, %v4027_v55  ;;  %v8739_v6 = vcombine.low %v4011_v49, %v4027_v55  ;;  %v4363_v60 = vld [vmem:[#allocation16 + $0xc10] sm:$0xff] }
 0x5bb   : > { %7301 = vmatprep.subr.bf16.mxu1 %v8900_v20  ;;  %7342 = vmatprep.subr.bf16.mxu0 %v8902_v43  ;;  %v8707_v20 = vcombine.low %v3979_v62, %v3995_v1  ;;  %v8709_v43 = vcombine.low %v3980_v2, %v3996_v3  ;;  %v4267_v3 = vld [vmem:[#allocation16 + $0x910] sm:$0xff] }
 0x5bd   : > { %7302 = vmatpush1.bf16.msra.mxu1 %v8899_v24  ;;  %7343 = vmatpush1.bf16.msra.mxu0 %v8901_v25  ;;  %v4443_v24 = vld [vmem:[#allocation16 + $0xe90] sm:$0xff]  ;;  %v4428_v25 = vld [vmem:[#allocation16 + $0xe18] sm:$0xff] }
 0x5be   : > { %7303 = vmatprep.subr.bf16.mxu1 %v8868_v50  ;;  %7344 = vmatprep.subr.bf16.mxu0 %v8870_v26  ;;  %v4444_v50 = vld [vmem:[#allocation16 + $0xe98] sm:$0xff]  ;;  %v9187_v26 = vcombine.low %v4459_v10, %v4475_v11  ;;  %v9156_v28 = vcombine.high %v4427_v23, %v4443_v24 }
 0x5bf   : > { %v9158_v29 = vcombine.high %v4428_v25, %v4444_v50  ;;  %v9157_v63 = vcombine.low %v4428_v25, %v4444_v50  ;;  %v4205_v50 = vld [vmem:[#allocation16 + $0x720] sm:$0xff] }
 0x5c1   : > { %7304 = vmatpush1.bf16.msra.mxu1 %v8867_v31  ;;  %7345 = vmatpush1.bf16.msra.mxu0 %v8869_v32  ;;  %v4411_v31 = vld [vmem:[#allocation16 + $0xd90] sm:$0xff]  ;;  %v4396_v32 = vld [vmem:[#allocation16 + $0xd18] sm:$0xff] }
 0x5c2   : > { %7305 = vmatprep.subr.bf16.mxu1 %v8836_v59  ;;  %7346 = vmatprep.subr.bf16.mxu0 %v8838_v61  ;;  %v4412_v59 = vld [vmem:[#allocation16 + $0xd98] sm:$0xff]  ;;  %v9155_v61 = vcombine.low %v4427_v23, %v4443_v24  ;;  %v9124_v36 = vcombine.high %v4395_v30, %v4411_v31 }
 0x5c3   : > { %v9126_v37 = vcombine.high %v4396_v32, %v4412_v59  ;;  %v9125_v0 = vcombine.low %v4396_v32, %v4412_v59  ;;  %v4173_v59 = vld [vmem:[#allocation16 + $0x620] sm:$0xff] }
 0x5c5   : > { %7306 = vmatpush1.bf16.msra.mxu1 %v8835_v38  ;;  %7347 = vmatpush1.bf16.msra.mxu0 %v8837_v39  ;;  %v4379_v38 = vld [vmem:[#allocation16 + $0xc90] sm:$0xff]  ;;  %v4364_v39 = vld [vmem:[#allocation16 + $0xc18] sm:$0xff] }
 0x5c6   : > { %7307 = vmatprep.subr.bf16.mxu1 %v8804_v42  ;;  %7348 = vmatprep.subr.bf16.mxu0 %v8806_v9  ;;  %v4380_v42 = vld [vmem:[#allocation16 + $0xc98] sm:$0xff]  ;;  %v9123_v9 = vcombine.low %v4395_v30, %v4411_v31  ;;  %v9092_v40 = vcombine.high %v4363_v60, %v4379_v38 }
 0x5c7   : > { %v9094_v4 = vcombine.high %v4364_v39, %v4380_v42  ;;  %v9093_v49 = vcombine.low %v4364_v39, %v4380_v42  ;;  %v4141_v42 = vld [vmem:[#allocation16 + $0x520] sm:$0xff] }
 0x5c9   : > { %7308 = vmatpush1.bf16.msra.mxu1 %v8803_v51  ;;  %7349 = vmatpush1.bf16.msra.mxu0 %v8805_v52  ;;  %v4347_v51 = vld [vmem:[#allocation16 + $0xb90] sm:$0xff]  ;;  %v4332_v52 = vld [vmem:[#allocation16 + $0xb18] sm:$0xff] }
 0x5ca   : > { %7309 = vmatprep.subr.bf16.mxu1 %v8772_v53  ;;  %7350 = vmatprep.subr.bf16.mxu0 %v8774_v54  ;;  %v4348_v53 = vld [vmem:[#allocation16 + $0xb98] sm:$0xff]  ;;  %v9091_v54 = vcombine.low %v4363_v60, %v4379_v38  ;;  %v9060_v55 = vcombine.high %v4331_v41, %v4347_v51 }
 0x5cb   : > { %v9062_v56 = vcombine.high %v4332_v52, %v4348_v53  ;;  %v9061_v62 = vcombine.low %v4332_v52, %v4348_v53  ;;  %v4109_v53 = vld [vmem:[#allocation16 + $0x420] sm:$0xff] }
 0x5cd   : > { %7310 = vmatpush1.bf16.msra.mxu1 %v8771_v12  ;;  %7351 = vmatpush1.bf16.msra.mxu0 %v8773_v57  ;;  %v4315_v12 = vld [vmem:[#allocation16 + $0xa90] sm:$0xff]  ;;  %v4300_v57 = vld [vmem:[#allocation16 + $0xa18] sm:$0xff] }
 0x5ce   : > { %7311 = vmatprep.subr.bf16.mxu1 %v8740_v13  ;;  %7352 = vmatprep.subr.bf16.mxu0 %v8742_v58  ;;  %v4316_v13 = vld [vmem:[#allocation16 + $0xa98] sm:$0xff]  ;;  %v9059_v58 = vcombine.low %v4331_v41, %v4347_v51  ;;  %v9028_v1 = vcombine.high %v4299_v8, %v4315_v12 }
 0x5cf   : > { %v9030_v2 = vcombine.high %v4300_v57, %v4316_v13  ;;  %v9029_v10 = vcombine.low %v4300_v57, %v4316_v13  ;;  %v4077_v13 = vld [vmem:[#allocation16 + $0x320] sm:$0xff] }
 0x5d1   : > { %7312 = vmatpush1.bf16.msra.mxu1 %v8739_v6  ;;  %7353 = vmatpush1.bf16.msra.mxu0 %v8741_v7  ;;  %v4283_v6 = vld [vmem:[#allocation16 + $0x990] sm:$0xff]  ;;  %v4268_v7 = vld [vmem:[#allocation16 + $0x918] sm:$0xff] }
 0x5d2   : > { %7313 = vmatprep.subr.bf16.mxu1 %v8708_v33  ;;  %7354 = vmatprep.subr.bf16.mxu0 %v8710_v5  ;;  %v4284_v33 = vld [vmem:[#allocation16 + $0x998] sm:$0xff]  ;;  %v9027_v5 = vcombine.low %v4299_v8, %v4315_v12  ;;  %v8996_v11 = vcombine.high %v4267_v3, %v4283_v6 }
 0x5d3   : > { %v8998_v16 = vcombine.high %v4268_v7, %v4284_v33  ;;  %v8997_v23 = vcombine.low %v4268_v7, %v4284_v33  ;;  %v4045_v33 = vld [vmem:[#allocation16 + $0x220] sm:$0xff] }
 0x5d5   : > { %7314 = vmatpush1.bf16.msra.mxu1 %v8707_v20  ;;  %7355 = vmatpush1.bf16.msra.mxu0 %v8709_v43  ;;  %v4251_v20 = vld [vmem:[#allocation16 + $0x890] sm:$0xff]  ;;  %v4236_v43 = vld [vmem:[#allocation16 + $0x818] sm:$0xff] }
 0x5d6   : > { %7315 = vmatprep.subr.bf16.mxu1 %v9188_v21  ;;  %7356 = vmatprep.subr.bf16.mxu0 %v9190_v22  ;;  %v4252_v21 = vld [vmem:[#allocation16 + $0x898] sm:$0xff]  ;;  %v8995_v22 = vcombine.low %v4267_v3, %v4283_v6  ;;  %v8964_v24 = vcombine.high %v4235_v35, %v4251_v20 }
 0x5d7   : > { %v8966_v25 = vcombine.high %v4236_v43, %v4252_v21  ;;  %v8965_v30 = vcombine.low %v4236_v43, %v4252_v21  ;;  %v4013_v21 = vld [vmem:[#allocation16 + $0x120] sm:$0xff] }
 0x5d9   : > { %7316 = vmatpush2.bf16.msra.mxu1 %v9187_v26  ;;  %7357 = vmatpush2.bf16.msra.mxu0 %v9189_v27  ;;  %v4221_v26 = vld [vmem:[#allocation16 + $0x7a0] sm:$0xff]  ;;  %v4206_v27 = vld [vmem:[#allocation16 + $0x728] sm:$0xff] }
 0x5da   : > { %7317 = vmatprep.subr.bf16.mxu1 %v9156_v28  ;;  %7358 = vmatprep.subr.bf16.mxu0 %v9158_v29  ;;  %v4222_v28 = vld [vmem:[#allocation16 + $0x7a8] sm:$0xff]  ;;  %v8963_v29 = vcombine.low %v4235_v35, %v4251_v20  ;;  %v8936_v31 = vcombine.high %v4205_v50, %v4221_v26 }
 0x5db   : > { %v8938_v32 = vcombine.high %v4206_v27, %v4222_v28  ;;  %v8937_v60 = vcombine.low %v4206_v27, %v4222_v28  ;;  %v3981_v28 = vld [vmem:[#allocation16 + $0x20] sm:$0xff] }
 0x5dd   : > { %7318 = vmatpush2.bf16.msra.mxu1 %v9155_v61  ;;  %7359 = vmatpush2.bf16.msra.mxu0 %v9157_v63  ;;  %v4189_v61 = vld [vmem:[#allocation16 + $0x6a0] sm:$0xff]  ;;  %v4174_v63 = vld [vmem:[#allocation16 + $0x628] sm:$0xff] }
 0x5de   : > { %7319 = vmatprep.subr.bf16.mxu1 %v9124_v36  ;;  %7360 = vmatprep.subr.bf16.mxu0 %v9126_v37  ;;  %v4190_v36 = vld [vmem:[#allocation16 + $0x6a8] sm:$0xff]  ;;  %v8935_v37 = vcombine.low %v4205_v50, %v4221_v26  ;;  %v8904_v38 = vcombine.high %v4173_v59, %v4189_v61 }
 0x5df   : > { %v8906_v39 = vcombine.high %v4174_v63, %v4190_v36  ;;  %v8905_v41 = vcombine.low %v4174_v63, %v4190_v36  ;;  %v4461_v36 = vld [vmem:[#allocation16 + $0xf20] sm:$0xff] }
 0x5e1   : > { %7320 = vmatpush2.bf16.msra.mxu1 %v9123_v9  ;;  %7361 = vmatpush2.bf16.msra.mxu0 %v9125_v0  ;;  %v4157_v9 = vld [vmem:[#allocation16 + $0x5a0] sm:$0xff]  ;;  %v4142_v0 = vld [vmem:[#allocation16 + $0x528] sm:$0xff] }
 0x5e2   : > { %7321 = vmatprep.subr.bf16.mxu1 %v9092_v40  ;;  %7362 = vmatprep.subr.bf16.mxu0 %v9094_v4  ;;  %v4158_v40 = vld [vmem:[#allocation16 + $0x5a8] sm:$0xff]  ;;  %v8903_v4 = vcombine.low %v4173_v59, %v4189_v61  ;;  %v8872_v51 = vcombine.high %v4141_v42, %v4157_v9 }
 0x5e3   : > { %v8874_v52 = vcombine.high %v4142_v0, %v4158_v40  ;;  %v8873_v8 = vcombine.low %v4142_v0, %v4158_v40  ;;  %v4429_v40 = vld [vmem:[#allocation16 + $0xe20] sm:$0xff] }
 0x5e5   : > { %7322 = vmatpush2.bf16.msra.mxu1 %v9091_v54  ;;  %7363 = vmatpush2.bf16.msra.mxu0 %v9093_v49  ;;  %v4125_v54 = vld [vmem:[#allocation16 + $0x4a0] sm:$0xff]  ;;  %v4110_v49 = vld [vmem:[#allocation16 + $0x428] sm:$0xff] }
 0x5e6   : > { %7323 = vmatprep.subr.bf16.mxu1 %v9060_v55  ;;  %7364 = vmatprep.subr.bf16.mxu0 %v9062_v56  ;;  %v4126_v55 = vld [vmem:[#allocation16 + $0x4a8] sm:$0xff]  ;;  %v8871_v56 = vcombine.low %v4141_v42, %v4157_v9  ;;  %v8840_v12 = vcombine.high %v4109_v53, %v4125_v54 }
 0x5e7   : > { %v8842_v57 = vcombine.high %v4110_v49, %v4126_v55  ;;  %v8841_v3 = vcombine.low %v4110_v49, %v4126_v55  ;;  %v4397_v55 = vld [vmem:[#allocation16 + $0xd20] sm:$0xff] }
 0x5e9   : > { %7324 = vmatpush2.bf16.msra.mxu1 %v9059_v58  ;;  %7365 = vmatpush2.bf16.msra.mxu0 %v9061_v62  ;;  %v4093_v58 = vld [vmem:[#allocation16 + $0x3a0] sm:$0xff]  ;;  %v4078_v62 = vld [vmem:[#allocation16 + $0x328] sm:$0xff] }
 0x5ea   : > { %7325 = vmatprep.subr.bf16.mxu1 %v9028_v1  ;;  %7366 = vmatprep.subr.bf16.mxu0 %v9030_v2  ;;  %v4094_v1 = vld [vmem:[#allocation16 + $0x3a8] sm:$0xff]  ;;  %v8839_v2 = vcombine.low %v4109_v53, %v4125_v54  ;;  %v8808_v6 = vcombine.high %v4077_v13, %v4093_v58 }
 0x5eb   : > { %v8810_v7 = vcombine.high %v4078_v62, %v4094_v1  ;;  %v8809_v35 = vcombine.low %v4078_v62, %v4094_v1  ;;  %v4365_v1 = vld [vmem:[#allocation16 + $0xc20] sm:$0xff] }
 0x5ed   : > { %7326 = vmatpush2.bf16.msra.mxu1 %v9027_v5  ;;  %7367 = vmatpush2.bf16.msra.mxu0 %v9029_v10  ;;  %v4061_v5 = vld [vmem:[#allocation16 + $0x2a0] sm:$0xff]  ;;  %v4046_v10 = vld [vmem:[#allocation16 + $0x228] sm:$0xff] }
 0x5ee   : > { %7327 = vmatprep.subr.bf16.mxu1 %v8996_v11  ;;  %7368 = vmatprep.subr.bf16.mxu0 %v8998_v16  ;;  %v4062_v11 = vld [vmem:[#allocation16 + $0x2a8] sm:$0xff]  ;;  %v8807_v16 = vcombine.low %v4077_v13, %v4093_v58  ;;  %v8776_v20 = vcombine.high %v4045_v33, %v4061_v5 }
 0x5ef   : > { %v8778_v43 = vcombine.high %v4046_v10, %v4062_v11  ;;  %v8777_v50 = vcombine.low %v4046_v10, %v4062_v11  ;;  %v4333_v11 = vld [vmem:[#allocation16 + $0xb20] sm:$0xff] }
 0x5f1   : > { %7328 = vmatpush2.bf16.msra.mxu1 %v8995_v22  ;;  %7369 = vmatpush2.bf16.msra.mxu0 %v8997_v23  ;;  %v4029_v22 = vld [vmem:[#allocation16 + $0x1a0] sm:$0xff]  ;;  %v4014_v23 = vld [vmem:[#allocation16 + $0x128] sm:$0xff] }
 0x5f2   : > { %7329 = vmatprep.subr.bf16.mxu1 %v8964_v24  ;;  %7370 = vmatprep.subr.bf16.mxu0 %v8966_v25  ;;  %v4030_v24 = vld [vmem:[#allocation16 + $0x1a8] sm:$0xff]  ;;  %v8775_v25 = vcombine.low %v4045_v33, %v4061_v5  ;;  %v8744_v26 = vcombine.high %v4013_v21, %v4029_v22 }
 0x5f3   : > { %v8746_v27 = vcombine.high %v4014_v23, %v4030_v24  ;;  %v8745_v59 = vcombine.low %v4014_v23, %v4030_v24  ;;  %v4301_v24 = vld [vmem:[#allocation16 + $0xa20] sm:$0xff] }
 0x5f5   : > { %7330 = vmatpush2.bf16.msra.mxu1 %v8963_v29  ;;  %7371 = vmatpush2.bf16.msra.mxu0 %v8965_v30  ;;  %v3997_v29 = vld [vmem:[#allocation16 + $0xa0] sm:$0xff]  ;;  %v3982_v30 = vld [vmem:[#allocation16 + $0x28] sm:$0xff] }
 0x5f6   : > { %7381 = vmatprep.subr.bf16.mxu1 %v8936_v31  ;;  %7422 = vmatprep.subr.bf16.mxu0 %v8938_v32  ;;  %v3998_v31 = vld [vmem:[#allocation16 + $0xa8] sm:$0xff]  ;;  %v8743_v32 = vcombine.low %v4013_v21, %v4029_v22  ;;  %v8712_v61 = vcombine.high %v3981_v28, %v3997_v29 }
 0x5f7   : > { %v8714_v63 = vcombine.high %v3982_v30, %v3998_v31  ;;  %v8713_v42 = vcombine.low %v3982_v30, %v3998_v31  ;;  %v4269_v31 = vld [vmem:[#allocation16 + $0x920] sm:$0xff] }
 0x5f8   : > { %7332 = vmatmul.mubr.bf16.vlgmr.msra.gmra.mxu1 %v11386_v44  ;;  %7373 = vmatmul.mubr.bf16.vlgmr.msra.gmra.mxu0 %v11386_v44 }
 0x5f9   : > { %7382 = vmatpush1.bf16.msra.mxu1 %v8935_v37  ;;  %7413 = vmatprep.mubr.bf16.mxu1 %v11384_v17  ;;  %v4477_v37 = vld [vmem:[#allocation16 + $0xfa0] sm:$0xff] }
 0x5fa   : > { %7423 = vmatpush1.bf16.msra.mxu0 %v8937_v60  ;;  %7454 = vmatprep.mubr.bf16.mxu0 %v11384_v17  ;;  %v4462_v60 = vld [vmem:[#allocation16 + $0xf28] sm:$0xff]  ;;  %v9192_v9 = vcombine.high %v4461_v36, %v4477_v37 }
 0x5fb   : > { %7383 = vmatprep.subr.bf16.mxu1 %v8904_v38  ;;  %7424 = vmatprep.subr.bf16.mxu0 %v8906_v39  ;;  %v4478_v38 = vld [vmem:[#allocation16 + $0xfa8] sm:$0xff]  ;;  %v8711_v39 = vcombine.low %v3981_v28, %v3997_v29 }
 0x5fc   : > { %v9194_v0 = vcombine.high %v4462_v60, %v4478_v38  ;;  %v9193_v53 = vcombine.low %v4462_v60, %v4478_v38  ;;  %v4237_v38 = vld [vmem:[#allocation16 + $0x820] sm:$0xff] }
 0x5fd   : > { %7384 = vmatpush1.bf16.msra.mxu1 %v8903_v4  ;;  %v4445_v4 = vld [vmem:[#allocation16 + $0xea0] sm:$0xff] }
 0x5fe   : > { %7425 = vmatpush1.bf16.msra.mxu0 %v8905_v41  ;;  %7385 = vmatprep.subr.bf16.mxu1 %v8872_v51  ;;  %v4430_v41 = vld [vmem:[#allocation16 + $0xe28] sm:$0xff]  ;;  %v9160_v54 = vcombine.high %v4429_v40, %v4445_v4 }
 0x5ff   : > { %7426 = vmatprep.subr.bf16.mxu0 %v8874_v52  ;;  %v4446_v51 = vld [vmem:[#allocation16 + $0xea8] sm:$0xff]  ;;  %v9191_v52 = vcombine.low %v4461_v36, %v4477_v37 }
 0x600   : > { %v9162_v49 = vcombine.high %v4430_v41, %v4446_v51  ;;  %v9161_v13 = vcombine.low %v4430_v41, %v4446_v51  ;;  %v4207_v51 = vld [vmem:[#allocation16 + $0x730] sm:$0xff] }
 0x601   : > { %7386 = vmatpush1.bf16.msra.mxu1 %v8871_v56  ;;  %v4413_v56 = vld [vmem:[#allocation16 + $0xda0] sm:$0xff] }
 0x602   : > { %7427 = vmatpush1.bf16.msra.mxu0 %v8873_v8  ;;  %7387 = vmatprep.subr.bf16.mxu1 %v8840_v12  ;;  %v4398_v8 = vld [vmem:[#allocation16 + $0xd28] sm:$0xff]  ;;  %v9128_v58 = vcombine.high %v4397_v55, %v4413_v56 }
 0x603   : > { %7428 = vmatprep.subr.bf16.mxu0 %v8842_v57  ;;  %v4414_v12 = vld [vmem:[#allocation16 + $0xda8] sm:$0xff]  ;;  %v9159_v57 = vcombine.low %v4429_v40, %v4445_v4 }
 0x604   : > { %v9130_v62 = vcombine.high %v4398_v8, %v4414_v12  ;;  %v9129_v33 = vcombine.low %v4398_v8, %v4414_v12  ;;  %v4175_v12 = vld [vmem:[#allocation16 + $0x630] sm:$0xff] }
 0x605   : > { %7388 = vmatpush1.bf16.msra.mxu1 %v8839_v2  ;;  %v4381_v2 = vld [vmem:[#allocation16 + $0xca0] sm:$0xff] }
 0x606   : > { %7429 = vmatpush1.bf16.msra.mxu0 %v8841_v3  ;;  %7389 = vmatprep.subr.bf16.mxu1 %v8808_v6  ;;  %v4366_v3 = vld [vmem:[#allocation16 + $0xc28] sm:$0xff]  ;;  %v9096_v5 = vcombine.high %v4365_v1, %v4381_v2 }
 0x607   : > { %7430 = vmatprep.subr.bf16.mxu0 %v8810_v7  ;;  %v4382_v6 = vld [vmem:[#allocation16 + $0xca8] sm:$0xff]  ;;  %v9127_v7 = vcombine.low %v4397_v55, %v4413_v56 }
 0x608   : > { %v9098_v10 = vcombine.high %v4366_v3, %v4382_v6  ;;  %v9097_v21 = vcombine.low %v4366_v3, %v4382_v6  ;;  %v4143_v3 = vld [vmem:[#allocation16 + $0x530] sm:$0xff] }
 0x609   : > { %7390 = vmatpush1.bf16.msra.mxu1 %v8807_v16  ;;  %v4349_v16 = vld [vmem:[#allocation16 + $0xba0] sm:$0xff]  ;;  %v4159_v6 = vld [vmem:[#allocation16 + $0x5b0] sm:$0xff] }
 0x60a   : > { %7431 = vmatpush1.bf16.msra.mxu0 %v8809_v35  ;;  %7391 = vmatprep.subr.bf16.mxu1 %v8776_v20  ;;  %v4334_v35 = vld [vmem:[#allocation16 + $0xb28] sm:$0xff]  ;;  %v9064_v22 = vcombine.high %v4333_v11, %v4349_v16 }
 0x60b   : > { %7432 = vmatprep.subr.bf16.mxu0 %v8778_v43  ;;  %v4350_v20 = vld [vmem:[#allocation16 + $0xba8] sm:$0xff]  ;;  %v9095_v43 = vcombine.low %v4365_v1, %v4381_v2 }
 0x60c   : > { %v9066_v23 = vcombine.high %v4334_v35, %v4350_v20  ;;  %v9065_v28 = vcombine.low %v4334_v35, %v4350_v20  ;;  %v4111_v20 = vld [vmem:[#allocation16 + $0x430] sm:$0xff] }
 0x60d   : > { %7392 = vmatpush1.bf16.msra.mxu1 %v8775_v25  ;;  %v4317_v25 = vld [vmem:[#allocation16 + $0xaa0] sm:$0xff] }
 0x60e   : > { %7433 = vmatpush1.bf16.msra.mxu0 %v8777_v50  ;;  %7393 = vmatprep.subr.bf16.mxu1 %v8744_v26  ;;  %v4302_v50 = vld [vmem:[#allocation16 + $0xa28] sm:$0xff]  ;;  %v9032_v29 = vcombine.high %v4301_v24, %v4317_v25 }
 0x60f   : > { %7434 = vmatprep.subr.bf16.mxu0 %v8746_v27  ;;  %v4318_v26 = vld [vmem:[#allocation16 + $0xaa8] sm:$0xff]  ;;  %v9063_v27 = vcombine.low %v4333_v11, %v4349_v16  ;;  %v8876_v16 = vcombine.high %v4143_v3, %v4159_v6 }
 0x610   : > { %v9034_v30 = vcombine.high %v4302_v50, %v4318_v26  ;;  %v9033_v36 = vcombine.low %v4302_v50, %v4318_v26  ;;  %v4079_v26 = vld [vmem:[#allocation16 + $0x330] sm:$0xff] }
 0x611   : > { %7394 = vmatpush1.bf16.msra.mxu1 %v8743_v32  ;;  %v4285_v32 = vld [vmem:[#allocation16 + $0x9a0] sm:$0xff] }
 0x612   : > { %7435 = vmatpush1.bf16.msra.mxu0 %v8745_v59  ;;  %7395 = vmatprep.subr.bf16.mxu1 %v8712_v61  ;;  %v4270_v59 = vld [vmem:[#allocation16 + $0x928] sm:$0xff]  ;;  %v9000_v37 = vcombine.high %v4269_v31, %v4285_v32 }
 0x613   : > { %7436 = vmatprep.subr.bf16.mxu0 %v8714_v63  ;;  %v4286_v61 = vld [vmem:[#allocation16 + $0x9a8] sm:$0xff]  ;;  %v9031_v63 = vcombine.low %v4301_v24, %v4317_v25 }
 0x614   : > { %v9002_v60 = vcombine.high %v4270_v59, %v4286_v61  ;;  %v9001_v40 = vcombine.low %v4270_v59, %v4286_v61  ;;  %v4047_v61 = vld [vmem:[#allocation16 + $0x230] sm:$0xff] }
 0x615   : > { %7396 = vmatpush1.bf16.msra.mxu1 %v8711_v39  ;;  %v4253_v39 = vld [vmem:[#allocation16 + $0x8a0] sm:$0xff] }
 0x616   : > { %7437 = vmatpush1.bf16.msra.mxu0 %v8713_v42  ;;  %7397 = vmatprep.subr.bf16.mxu1 %v9192_v9  ;;  %v4238_v42 = vld [vmem:[#allocation16 + $0x828] sm:$0xff]  ;;  %v8968_v4 = vcombine.high %v4237_v38, %v4253_v39 }
 0x617   : > { %7438 = vmatprep.subr.bf16.mxu0 %v9194_v0  ;;  %v4254_v9 = vld [vmem:[#allocation16 + $0x8a8] sm:$0xff]  ;;  %v8999_v0 = vcombine.low %v4269_v31, %v4285_v32 }
 0x618   : > { %v8970_v41 = vcombine.high %v4238_v42, %v4254_v9  ;;  %v8969_v55 = vcombine.low %v4238_v42, %v4254_v9  ;;  %v4015_v9 = vld [vmem:[#allocation16 + $0x130] sm:$0xff] }
 0x619   : > { %7398 = vmatpush2.bf16.msra.mxu1 %v9191_v52  ;;  %v4223_v52 = vld [vmem:[#allocation16 + $0x7b0] sm:$0xff] }
 0x61a   : > { %7439 = vmatpush2.bf16.msra.mxu0 %v9193_v53  ;;  %7399 = vmatprep.subr.bf16.mxu1 %v9160_v54  ;;  %v4208_v53 = vld [vmem:[#allocation16 + $0x738] sm:$0xff]  ;;  %v8940_v56 = vcombine.high %v4207_v51, %v4223_v52 }
 0x61b   : > { %7440 = vmatprep.subr.bf16.mxu0 %v9162_v49  ;;  %v4224_v54 = vld [vmem:[#allocation16 + $0x7b8] sm:$0xff]  ;;  %v8967_v49 = vcombine.low %v4237_v38, %v4253_v39 }
 0x61c   : > { %v8942_v8 = vcombine.high %v4208_v53, %v4224_v54  ;;  %v8941_v1 = vcombine.low %v4208_v53, %v4224_v54  ;;  %v3983_v54 = vld [vmem:[#allocation16 + $0x30] sm:$0xff] }
 0x61d   : > { %7400 = vmatpush2.bf16.msra.mxu1 %v9159_v57  ;;  %v4191_v57 = vld [vmem:[#allocation16 + $0x6b0] sm:$0xff] }
 0x61e   : > { %7441 = vmatpush2.bf16.msra.mxu0 %v9161_v13  ;;  %7401 = vmatprep.subr.bf16.mxu1 %v9128_v58  ;;  %v8939_v13 = vcombine.low %v4207_v51, %v4223_v52  ;;  %v4176_v58 = vld [vmem:[#allocation16 + $0x638] sm:$0xff]  ;;  %v8908_v2 = vcombine.high %v4175_v12, %v4191_v57 }
 0x61f   : > { %7442 = vmatprep.subr.bf16.mxu0 %v9130_v62  ;;  %v4192_v62 = vld [vmem:[#allocation16 + $0x6b8] sm:$0xff] }
 0x620   : > { %v8909_v11 = vcombine.low %v4176_v58, %v4192_v62 }
 0x621   : > { %7402 = vmatpush2.bf16.msra.mxu1 %v9127_v7  ;;  %v8910_v7 = vcombine.high %v4176_v58, %v4192_v62  ;;  %v4463_v58 = vld [vmem:[#allocation16 + $0xf30] sm:$0xff] }
 0x622   : > { %7443 = vmatpush2.bf16.msra.mxu0 %v9129_v33  ;;  %7403 = vmatprep.subr.bf16.mxu1 %v9096_v5  ;;  %v4144_v33 = vld [vmem:[#allocation16 + $0x538] sm:$0xff]  ;;  %v4479_v62 = vld [vmem:[#allocation16 + $0xfb0] sm:$0xff] }
 0x623   : > { %7444 = vmatprep.subr.bf16.mxu0 %v9098_v10  ;;  %v4160_v5 = vld [vmem:[#allocation16 + $0x5b8] sm:$0xff]  ;;  %v8907_v10 = vcombine.low %v4175_v12, %v4191_v57 }
 0x624   : > { %v8878_v35 = vcombine.high %v4144_v33, %v4160_v5  ;;  %v8877_v24 = vcombine.low %v4144_v33, %v4160_v5  ;;  %v4431_v5 = vld [vmem:[#allocation16 + $0xe30] sm:$0xff] }
 0x625   : > { %7404 = vmatpush2.bf16.msra.mxu1 %v9095_v43  ;;  %v4127_v43 = vld [vmem:[#allocation16 + $0x4b0] sm:$0xff] }
 0x626   : > { %7445 = vmatpush2.bf16.msra.mxu0 %v9097_v21  ;;  %7405 = vmatprep.subr.bf16.mxu1 %v9064_v22  ;;  %v4112_v21 = vld [vmem:[#allocation16 + $0x438] sm:$0xff]  ;;  %v8844_v25 = vcombine.high %v4111_v20, %v4127_v43 }
 0x627   : > { %7446 = vmatprep.subr.bf16.mxu0 %v9066_v23  ;;  %v4128_v22 = vld [vmem:[#allocation16 + $0x4b8] sm:$0xff]  ;;  %v8875_v23 = vcombine.low %v4143_v3, %v4159_v6 }
 0x628   : > { %v8846_v50 = vcombine.high %v4112_v21, %v4128_v22  ;;  %v8845_v31 = vcombine.low %v4112_v21, %v4128_v22  ;;  %v4399_v22 = vld [vmem:[#allocation16 + $0xd30] sm:$0xff] }
 0x629   : > { %7406 = vmatpush2.bf16.msra.mxu1 %v9063_v27  ;;  %v4095_v27 = vld [vmem:[#allocation16 + $0x3b0] sm:$0xff] }
 0x62a   : > { %7447 = vmatpush2.bf16.msra.mxu0 %v9065_v28  ;;  %7407 = vmatprep.subr.bf16.mxu1 %v9032_v29  ;;  %v4080_v28 = vld [vmem:[#allocation16 + $0x338] sm:$0xff]  ;;  %v8812_v32 = vcombine.high %v4079_v26, %v4095_v27 }
 0x62b   : > { %7448 = vmatprep.subr.bf16.mxu0 %v9034_v30  ;;  %v4096_v29 = vld [vmem:[#allocation16 + $0x3b8] sm:$0xff]  ;;  %v8843_v30 = vcombine.low %v4111_v20, %v4127_v43 }
 0x62c   : > { %v8814_v59 = vcombine.high %v4080_v28, %v4096_v29  ;;  %v8813_v38 = vcombine.low %v4080_v28, %v4096_v29  ;;  %v4367_v29 = vld [vmem:[#allocation16 + $0xc30] sm:$0xff] }
 0x62d   : > { %7408 = vmatpush2.bf16.msra.mxu1 %v9031_v63  ;;  %v4063_v63 = vld [vmem:[#allocation16 + $0x2b0] sm:$0xff] }
 0x62e   : > { %7449 = vmatpush2.bf16.msra.mxu0 %v9033_v36  ;;  %7409 = vmatprep.subr.bf16.mxu1 %v9000_v37  ;;  %v4048_v36 = vld [vmem:[#allocation16 + $0x238] sm:$0xff]  ;;  %v8780_v39 = vcombine.high %v4047_v61, %v4063_v63 }
 0x62f   : > { %7450 = vmatprep.subr.bf16.mxu0 %v9002_v60  ;;  %v4064_v37 = vld [vmem:[#allocation16 + $0x2b8] sm:$0xff]  ;;  %v8811_v60 = vcombine.low %v4079_v26, %v4095_v27 }
 0x630   : > { %v8782_v42 = vcombine.high %v4048_v36, %v4064_v37  ;;  %v8781_v51 = vcombine.low %v4048_v36, %v4064_v37  ;;  %v4335_v37 = vld [vmem:[#allocation16 + $0xb30] sm:$0xff] }
 0x631   : > { %7410 = vmatpush2.bf16.msra.mxu1 %v8999_v0  ;;  %v4031_v0 = vld [vmem:[#allocation16 + $0x1b0] sm:$0xff] }
 0x632   : > { %7451 = vmatpush2.bf16.msra.mxu0 %v9001_v40  ;;  %7411 = vmatprep.subr.bf16.mxu1 %v8968_v4  ;;  %v4016_v40 = vld [vmem:[#allocation16 + $0x138] sm:$0xff]  ;;  %v8748_v52 = vcombine.high %v4015_v9, %v4031_v0 }
 0x633   : > { %7452 = vmatprep.subr.bf16.mxu0 %v8970_v41  ;;  %v4032_v4 = vld [vmem:[#allocation16 + $0x1b8] sm:$0xff]  ;;  %v8779_v41 = vcombine.low %v4047_v61, %v4063_v63 }
 0x634   : > { %v8750_v53 = vcombine.high %v4016_v40, %v4032_v4  ;;  %v8749_v12 = vcombine.low %v4016_v40, %v4032_v4  ;;  %v4303_v4 = vld [vmem:[#allocation16 + $0xa30] sm:$0xff] }
 0x635   : > { %7412 = vmatpush2.bf16.msra.mxu1 %v8967_v49  ;;  %v3999_v49 = vld [vmem:[#allocation16 + $0xb0] sm:$0xff] }
 0x636   : > { %7453 = vmatpush2.bf16.msra.mxu0 %v8969_v55  ;;  %7463 = vmatprep.subr.bf16.mxu1 %v8940_v56  ;;  %v3984_v55 = vld [vmem:[#allocation16 + $0x38] sm:$0xff]  ;;  %v8716_v57 = vcombine.high %v3983_v54, %v3999_v49  ;;  %v8715_v3 = vcombine.low %v3983_v54, %v3999_v49 }
 0x637   : > { %7504 = vmatprep.subr.bf16.mxu0 %v8942_v8  ;;  %v4000_v56 = vld [vmem:[#allocation16 + $0xb8] sm:$0xff]  ;;  %v8747_v8 = vcombine.low %v4015_v9, %v4031_v0 }
 0x638   : > { %7414 = vmatmul.mubr.bf16.vlgmr.msra.gmra.mxu1 %v11386_v44  ;;  %v8717_v6 = vcombine.low %v3984_v55, %v4000_v56 }
 0x639   : > { %7455 = vmatmul.mubr.bf16.vlgmr.msra.gmra.mxu0 %v11386_v44  ;;  %7464 = vmatpush1.bf16.msra.mxu1 %v8939_v13  ;;  %v8718_v13 = vcombine.high %v3984_v55, %v4000_v56  ;;  %v4271_v56 = vld [vmem:[#allocation16 + $0x930] sm:$0xff] }
 0x63a   : > { %7495 = vmatprep.mubr.bf16.mxu1 %v11384_v17  ;;  %7505 = vmatpush1.bf16.msra.mxu0 %v8941_v1  ;;  %v4464_v1 = vld [vmem:[#allocation16 + $0xf38] sm:$0xff] }
 0x63b   : > { %7536 = vmatprep.mubr.bf16.mxu0 %v11384_v17  ;;  %7465 = vmatprep.subr.bf16.mxu1 %v8908_v2  ;;  %v4480_v2 = vld [vmem:[#allocation16 + $0xfb8] sm:$0xff] }
 0x63c   : > { %7506 = vmatprep.subr.bf16.mxu0 %v8910_v7  ;;  %v9196_v7 = vcombine.high %v4463_v58, %v4479_v62  ;;  %v9198_v33 = vcombine.high %v4464_v1, %v4480_v2  ;;  %v9197_v20 = vcombine.low %v4464_v1, %v4480_v2  ;;  %v4239_v2 = vld [vmem:[#allocation16 + $0x830] sm:$0xff] }
 0x63d   : > { %7466 = vmatpush1.bf16.msra.mxu1 %v8907_v10  ;;  %v4447_v10 = vld [vmem:[#allocation16 + $0xeb0] sm:$0xff] }
 0x63e   : > { %7507 = vmatpush1.bf16.msra.mxu0 %v8909_v11  ;;  %7467 = vmatprep.subr.bf16.mxu1 %v8876_v16  ;;  %v4432_v11 = vld [vmem:[#allocation16 + $0xe38] sm:$0xff]  ;;  %v9164_v43 = vcombine.high %v4431_v5, %v4447_v10 }
 0x63f   : > { %7508 = vmatprep.subr.bf16.mxu0 %v8878_v35  ;;  %v4448_v16 = vld [vmem:[#allocation16 + $0xeb8] sm:$0xff]  ;;  %v9195_v35 = vcombine.low %v4463_v58, %v4479_v62 }
 0x640   : > { %v9166_v21 = vcombine.high %v4432_v11, %v4448_v16  ;;  %v9165_v26 = vcombine.low %v4432_v11, %v4448_v16  ;;  %v4209_v16 = vld [vmem:[#allocation16 + $0x740] sm:$0xff] }
 0x641   : > { %7468 = vmatpush1.bf16.msra.mxu1 %v8875_v23  ;;  %v4415_v23 = vld [vmem:[#allocation16 + $0xdb0] sm:$0xff] }
 0x642   : > { %7509 = vmatpush1.bf16.msra.mxu0 %v8877_v24  ;;  %7469 = vmatprep.subr.bf16.mxu1 %v8844_v25  ;;  %v4400_v24 = vld [vmem:[#allocation16 + $0xd38] sm:$0xff]  ;;  %v9132_v27 = vcombine.high %v4399_v22, %v4415_v23 }
 0x643   : > { %7510 = vmatprep.subr.bf16.mxu0 %v8846_v50  ;;  %v4416_v25 = vld [vmem:[#allocation16 + $0xdb8] sm:$0xff]  ;;  %v9163_v50 = vcombine.low %v4431_v5, %v4447_v10 }
 0x644   : > { %v9134_v28 = vcombine.high %v4400_v24, %v4416_v25  ;;  %v9133_v61 = vcombine.low %v4400_v24, %v4416_v25  ;;  %v11402_v25 = vld [vmem:[#allocation17] sm:$0xff] }
 0x645   : > { %7470 = vmatpush1.bf16.msra.mxu1 %v8843_v30  ;;  %v4383_v30 = vld [vmem:[#allocation16 + $0xcb0] sm:$0xff] }
 0x646   : > { %7511 = vmatpush1.bf16.msra.mxu0 %v8845_v31  ;;  %7471 = vmatprep.subr.bf16.mxu1 %v8812_v32  ;;  %v4368_v31 = vld [vmem:[#allocation16 + $0xc38] sm:$0xff]  ;;  %v9100_v63 = vcombine.high %v4367_v29, %v4383_v30 }
 0x647   : > { %7512 = vmatprep.subr.bf16.mxu0 %v8814_v59  ;;  %v4384_v32 = vld [vmem:[#allocation16 + $0xcb8] sm:$0xff]  ;;  %v9131_v59 = vcombine.low %v4399_v22, %v4415_v23 }
 0x648   : > { %v9102_v36 = vcombine.high %v4368_v31, %v4384_v32  ;;  %v9101_v9 = vcombine.low %v4368_v31, %v4384_v32  ;;  %v7060_v31 = vrot.slane %v11402_v25, %v10686_v47  ;;  %v4145_v32 = vld [vmem:[#allocation16 + $0x540] sm:$0xff] }
 0x649   : > { %7472 = vmatpush1.bf16.msra.mxu1 %v8811_v60  ;;  %v4351_v60 = vld [vmem:[#allocation16 + $0xbb0] sm:$0xff] }
 0x64a   : > { %7513 = vmatpush1.bf16.msra.mxu0 %v8813_v38  ;;  %7473 = vmatprep.subr.bf16.mxu1 %v8780_v39  ;;  %v4336_v38 = vld [vmem:[#allocation16 + $0xb38] sm:$0xff]  ;;  %v9068_v0 = vcombine.high %v4335_v37, %v4351_v60 }
 0x64b   : > { %7514 = vmatprep.subr.bf16.mxu0 %v8782_v42  ;;  %v4352_v39 = vld [vmem:[#allocation16 + $0xbb8] sm:$0xff]  ;;  %v9099_v42 = vcombine.low %v4367_v29, %v4383_v30  ;;  %v4194_v29 = vld [vmem:[#allocation16 + $0x6c8] sm:$0xff] }
 0x64c   : > { %v9070_v40 = vcombine.high %v4336_v38, %v4352_v39  ;;  %v9069_v54 = vcombine.low %v4336_v38, %v4352_v39  ;;  %v4162_v38 = vld [vmem:[#allocation16 + $0x5c8] sm:$0xff] }
 0x64d   : > { %7474 = vmatpush1.bf16.msra.mxu1 %v8779_v41  ;;  %v4319_v41 = vld [vmem:[#allocation16 + $0xab0] sm:$0xff] }
 0x64e   : > { %7515 = vmatpush1.bf16.msra.mxu0 %v8781_v51  ;;  %7475 = vmatprep.subr.bf16.mxu1 %v8748_v52  ;;  %v4304_v51 = vld [vmem:[#allocation16 + $0xa38] sm:$0xff]  ;;  %v9036_v49 = vcombine.high %v4303_v4, %v4319_v41 }
 0x64f   : > { %7516 = vmatprep.subr.bf16.mxu0 %v8750_v53  ;;  %v4320_v52 = vld [vmem:[#allocation16 + $0xab8] sm:$0xff]  ;;  %v9067_v53 = vcombine.low %v4335_v37, %v4351_v60  ;;  %v4161_v37 = vld [vmem:[#allocation16 + $0x5c0] sm:$0xff]  ;;  %v4146_v60 = vld [vmem:[#allocation16 + $0x548] sm:$0xff] }
 0x650   : > { %v9038_v55 = vcombine.high %v4304_v51, %v4320_v52  ;;  %v9037_v58 = vcombine.low %v4304_v51, %v4320_v52  ;;  %v8880_v52 = vcombine.high %v4145_v32, %v4161_v37 }
 0x651   : > { %7476 = vmatpush1.bf16.msra.mxu1 %v8747_v8  ;;  %v4287_v8 = vld [vmem:[#allocation16 + $0x9b0] sm:$0xff] }
 0x652   : > { %7517 = vmatpush1.bf16.msra.mxu0 %v8749_v12  ;;  %7477 = vmatprep.subr.bf16.mxu1 %v8716_v57  ;;  %v4272_v12 = vld [vmem:[#allocation16 + $0x938] sm:$0xff]  ;;  %v9004_v62 = vcombine.high %v4271_v56, %v4287_v8 }
 0x653   : > { %7518 = vmatprep.subr.bf16.mxu0 %v8718_v13  ;;  %v4288_v57 = vld [vmem:[#allocation16 + $0x9b8] sm:$0xff]  ;;  %v9035_v13 = vcombine.low %v4303_v4, %v4319_v41 }
 0x654   : > { %v9006_v1 = vcombine.high %v4272_v12, %v4288_v57  ;;  %v9005_v5 = vcombine.low %v4272_v12, %v4288_v57 }
 0x655   : > { %7478 = vmatpush1.bf16.msra.mxu1 %v8715_v3  ;;  %v4255_v3 = vld [vmem:[#allocation16 + $0x8b0] sm:$0xff] }
 0x656   : > { %7519 = vmatpush1.bf16.msra.mxu0 %v8717_v6  ;;  %7479 = vmatprep.subr.bf16.mxu1 %v9196_v7  ;;  %v4240_v6 = vld [vmem:[#allocation16 + $0x838] sm:$0xff]  ;;  %v8972_v10 = vcombine.high %v4239_v2, %v4255_v3 }
 0x657   : > { %7520 = vmatprep.subr.bf16.mxu0 %v9198_v33  ;;  %v4256_v7 = vld [vmem:[#allocation16 + $0x8b8] sm:$0xff]  ;;  %v9003_v33 = vcombine.low %v4271_v56, %v4287_v8  ;;  %v4113_v56 = vld [vmem:[#allocation16 + $0x440] sm:$0xff] }
 0x658   : > { %v8974_v11 = vcombine.high %v4240_v6, %v4256_v7  ;;  %v8973_v22 = vcombine.low %v4240_v6, %v4256_v7  ;;  %v4129_v8 = vld [vmem:[#allocation16 + $0x4c0] sm:$0xff]  ;;  %v8881_v7 = vcombine.low %v4146_v60, %v4162_v38 }
 0x659   : > { %7480 = vmatpush2.bf16.msra.mxu1 %v9195_v35  ;;  %v4225_v35 = vld [vmem:[#allocation16 + $0x7c0] sm:$0xff] }
 0x65a   : > { %7521 = vmatpush2.bf16.msra.mxu0 %v9197_v20  ;;  %7481 = vmatprep.subr.bf16.mxu1 %v9164_v43  ;;  %v4210_v20 = vld [vmem:[#allocation16 + $0x748] sm:$0xff]  ;;  %v8944_v23 = vcombine.high %v4209_v16, %v4225_v35 }
 0x65b   : > { %7522 = vmatprep.subr.bf16.mxu0 %v9166_v21  ;;  %v4226_v43 = vld [vmem:[#allocation16 + $0x7c8] sm:$0xff]  ;;  %v8971_v21 = vcombine.low %v4239_v2, %v4255_v3  ;;  %v8879_v2 = vcombine.low %v4145_v32, %v4161_v37 }
 0x65c   : > { %v8946_v24 = vcombine.high %v4210_v20, %v4226_v43  ;;  %v8945_v30 = vcombine.low %v4210_v20, %v4226_v43  ;;  %v4082_v20 = vld [vmem:[#allocation16 + $0x348] sm:$0xff] }
 0x65d   : > { %7482 = vmatpush2.bf16.msra.mxu1 %v9163_v50  ;;  %v4177_v50 = vld [vmem:[#allocation16 + $0x640] sm:$0xff]  ;;  %v4098_v43 = vld [vmem:[#allocation16 + $0x3c8] sm:$0xff] }
 0x65e   : > { %7523 = vmatpush2.bf16.msra.mxu0 %v9165_v26  ;;  %7483 = vmatprep.subr.bf16.mxu1 %v9132_v27  ;;  %v4193_v26 = vld [vmem:[#allocation16 + $0x6c0] sm:$0xff]  ;;  %v8943_v27 = vcombine.low %v4209_v16, %v4225_v35  ;;  %v4034_v37 = vld [vmem:[#allocation16 + $0x1c8] sm:$0xff] }
 0x65f   : > { %7524 = vmatprep.subr.bf16.mxu0 %v9134_v28  ;;  %v4178_v28 = vld [vmem:[#allocation16 + $0x648] sm:$0xff]  ;;  %v4081_v16 = vld [vmem:[#allocation16 + $0x340] sm:$0xff] }
 0x660   : > { %v4097_v35 = vld [vmem:[#allocation16 + $0x3c0] sm:$0xff] }
 0x661   : > { %7484 = vmatpush2.bf16.msra.mxu1 %v9131_v59  ;;  %v7068_v59 = vrot.slane %v11402_v25, %v10689_v48 }
 0x662   : > { %7525 = vmatpush2.bf16.msra.mxu0 %v9133_v61  ;;  %7485 = vmatprep.subr.bf16.mxu1 %v9100_v63  ;;  %v7064_v61 = vrot.slane %v11402_v25, %v10680_v45  ;;  %v7072_v63 = vrot.slane %v11402_v25, %v10683_v46 }
 0x663   : > { %7526 = vmatprep.subr.bf16.mxu0 %v9102_v36  ;;  %v8912_v36 = vcombine.high %v4177_v50, %v4193_v26 }
 0x665   : > { %7486 = vmatpush2.bf16.msra.mxu1 %v9099_v42 }
 0x666   : > { %7527 = vmatpush2.bf16.msra.mxu0 %v9101_v9  ;;  %7487 = vmatprep.subr.bf16.mxu1 %v9068_v0  ;;  %v8914_v9 = vcombine.high %v4178_v28, %v4194_v29  ;;  %v8911_v0 = vcombine.low %v4177_v50, %v4193_v26  ;;  %v8818_v50 = vcombine.high %v4082_v20, %v4098_v43  ;;  %v4049_v26 = vld [vmem:[#allocation16 + $0x240] sm:$0xff] }
 0x667   : > { %7528 = vmatprep.subr.bf16.mxu0 %v9070_v40  ;;  %v8913_v40 = vcombine.low %v4178_v28, %v4194_v29  ;;  %v4050_v28 = vld [vmem:[#allocation16 + $0x248] sm:$0xff] }
 0x668   : > { %v4066_v29 = vld [vmem:[#allocation16 + $0x2c8] sm:$0xff] }
 0x669   : > { %7488 = vmatpush2.bf16.msra.mxu1 %v9067_v53  ;;  %v8882_v53 = vcombine.high %v4146_v60, %v4162_v38  ;;  %v8785_v38 = vcombine.low %v4050_v28, %v4066_v29 }
 0x66a   : > { %7529 = vmatpush2.bf16.msra.mxu0 %v9069_v54  ;;  %7489 = vmatprep.subr.bf16.mxu1 %v9036_v49 }
 0x66b   : > { %7530 = vmatprep.subr.bf16.mxu0 %v9038_v55 }
 0x66d   : > { %7490 = vmatpush2.bf16.msra.mxu1 %v9035_v13  ;;  %v4114_v13 = vld [vmem:[#allocation16 + $0x448] sm:$0xff] }
 0x66e   : > { %7531 = vmatpush2.bf16.msra.mxu0 %v9037_v58  ;;  %7491 = vmatprep.subr.bf16.mxu1 %v9004_v62  ;;  %v4130_v58 = vld [vmem:[#allocation16 + $0x4c8] sm:$0xff] }
 0x66f   : > { %7532 = vmatprep.subr.bf16.mxu0 %v9006_v1 }
 0x671   : > { %7492 = vmatpush2.bf16.msra.mxu1 %v9003_v33  ;;  %v8848_v33 = vcombine.high %v4113_v56, %v4129_v8 }
 0x672   : > { %7533 = vmatpush2.bf16.msra.mxu0 %v9005_v5  ;;  %7493 = vmatprep.subr.bf16.mxu1 %v8972_v10 }
 0x673   : > { %7534 = vmatprep.subr.bf16.mxu0 %v8974_v11  ;;  %v8850_v11 = vcombine.high %v4114_v13, %v4130_v58 }
 0x675   : > { %7494 = vmatpush2.bf16.msra.mxu1 %v8971_v21 }
 0x676   : > { %7535 = vmatpush2.bf16.msra.mxu0 %v8973_v22  ;;  %7545 = vmatprep.subr.bf16.mxu1 %v8944_v23  ;;  %v8847_v22 = vcombine.low %v4113_v56, %v4129_v8  ;;  %v8849_v23 = vcombine.low %v4114_v13, %v4130_v58  ;;  %v4482_v56 = vld [vmem:[#allocation16 + $0xfc8] sm:$0xff]  ;;  %v4433_v58 = vld [vmem:[#allocation16 + $0xe40] sm:$0xff] }
 0x677   : > { %7586 = vmatprep.subr.bf16.mxu0 %v8946_v24  ;;  %v8816_v24 = vcombine.high %v4081_v16, %v4097_v35 }
 0x678   : > { %7496 = vmatmul.mubr.bf16.vlgmr.msra.gmra.mxu1 %v11386_v44  ;;  %v7251_v39 = vpop.f32.mrf.mxu1  ;;  %v7292_v42 = vpop.f32.mrf.mxu0 }
 0x679   : > { %7537 = vmatmul.mubr.bf16.vlgmr.msra.gmra.mxu0 %v11386_v44  ;;  %7546 = vmatpush1.bf16.msra.mxu1 %v8943_v27  ;;  %v7252_v4 = vadd.f32 %v7251_v39, %v7060_v31  ;;  %v7293_v54 = vadd.f32 %v7292_v42, %v7068_v59  ;;  %v4065_v27 = vld [vmem:[#allocation16 + $0x2c0] sm:$0xff]  ;;  %v8817_v31 = vcombine.low %v4082_v20, %v4098_v43  ;;  %v4418_v20 = vld [vmem:[#allocation16 + $0xdc8] sm:$0xff] }
 0x67a   : > { %7577 = vmatprep.mubr.bf16.mxu1 %v11384_v17  ;;  %7587 = vmatpush1.bf16.msra.mxu0 %v8945_v30  ;;  %v7253_v41 = vpop.f32.mrf.mxu1  ;;  %v7294_v51 = vpop.f32.mrf.mxu0  ;;  %v8815_v30 = vcombine.low %v4081_v16, %v4097_v35  ;;  %v8784_v32 = vcombine.high %v4049_v26, %v4065_v27  ;;  %v8786_v59 = vcombine.high %v4050_v28, %v4066_v29  ;;  %v4417_v16 = vld [vmem:[#allocation16 + $0xdc0] sm:$0xff]  ;;  %v4402_v35 = vld [vmem:[#allocation16 + $0xd48] sm:$0xff] }
 0x67b   : > { %7618 = vmatprep.mubr.bf16.mxu0 %v11384_v17  ;;  %v7254_v49 = vadd.f32 %v7253_v41, %v7064_v61  ;;  %v7295_v55 = vadd.f32 %v7294_v51, %v7072_v63  ;;  %7547 = vmatprep.subr.bf16.mxu1 %v8912_v36  ;;  %v4017_v61 = vld [vmem:[#allocation16 + $0x140] sm:$0xff]  ;;  %v4018_v36 = vld [vmem:[#allocation16 + $0x148] sm:$0xff]  ;;  %v8783_v60 = vcombine.low %v4049_v26, %v4065_v27 }
 0x67c   : > { %7588 = vmatprep.subr.bf16.mxu0 %v8914_v9  ;;  %v7255_v12 = vpop.f32.mrf.mxu1  ;;  %v7296_v57 = vpop.f32.mrf.mxu0  ;;  %v4033_v63 = vld [vmem:[#allocation16 + $0x1c0] sm:$0xff]  ;;  %v8754_v42 = vcombine.high %v4018_v36, %v4034_v37  ;;  %v8753_v51 = vcombine.low %v4018_v36, %v4034_v37  ;;  %v4370_v27 = vld [vmem:[#allocation16 + $0xc48] sm:$0xff] }
 0x67d   : > { %v7905_v62 = vcombine.low %v7252_v4, %v7254_v49  ;;  %v7906_v1 = vcombine.low %v7293_v54, %v7295_v55  ;;  %7548 = vmatpush1.bf16.msra.mxu1 %v8911_v0  ;;  %v8752_v39 = vcombine.high %v4017_v61, %v4033_v63  ;;  %v3985_v9 = vld [vmem:[#allocation16 + $0x40] sm:$0xff]  ;;  %v4002_v4 = vld [vmem:[#allocation16 + $0xc8] sm:$0xff]  ;;  %v8751_v41 = vcombine.low %v4017_v61, %v4033_v63 }
 0x67e   : > { %7589 = vmatpush1.bf16.msra.mxu0 %v8913_v40  ;;  %v7256_v3 = vpop.f32.mrf.mxu1  ;;  %v7297_v6 = vpop.f32.mrf.mxu0  ;;  %7549 = vmatprep.subr.bf16.mxu1 %v8880_v52  ;;  %v4001_v0 = vld [vmem:[#allocation16 + $0xc0] sm:$0xff]  ;;  %v3986_v40 = vld [vmem:[#allocation16 + $0x48] sm:$0xff] }
 0x67f   : > { %v11417_v5 = vrot.slane %v7905_v62, %v10712_v34  ;;  %v11420_v10 = vrot.slane %v7906_v1, %v10712_v34  ;;  %7590 = vmatprep.subr.bf16.mxu0 %v8882_v53  ;;  %v8720_v52 = vcombine.high %v3985_v9, %v4001_v0  ;;  %v8722_v53 = vcombine.high %v3986_v40, %v4002_v4  ;;  %v4465_v54 = vld [vmem:[#allocation16 + $0xf40] sm:$0xff]  ;;  %v4466_v55 = vld [vmem:[#allocation16 + $0xf48] sm:$0xff] }
 0x680   : > { %v4481_v49 = vld [vmem:[#allocation16 + $0xfc0] sm:$0xff]  ;;  %v8719_v8 = vcombine.low %v3985_v9, %v4001_v0  ;;  %v8721_v12 = vcombine.low %v3986_v40, %v4002_v4  ;;  %v9202_v13 = vcombine.high %v4466_v55, %v4482_v56  ;;  %v4434_v1 = vld [vmem:[#allocation16 + $0xe48] sm:$0xff]  ;;  %v9201_v6 = vcombine.low %v4466_v55, %v4482_v56 }
 0x681   : > { %v7937_v21 = vcombine.low %v11417_v5, %v11420_v10  ;;  %7550 = vmatpush1.bf16.msra.mxu1 %v8879_v2  ;;  %v9200_v57 = vcombine.high %v4465_v54, %v4481_v49  ;;  %v4449_v62 = vld [vmem:[#allocation16 + $0xec0] sm:$0xff]  ;;  %v4450_v2 = vld [vmem:[#allocation16 + $0xec8] sm:$0xff]  ;;  %v9199_v3 = vcombine.low %v4465_v54, %v4481_v49 }
 0x682   : > { %7591 = vmatpush1.bf16.msra.mxu0 %v8881_v7  ;;  %7551 = vmatprep.subr.bf16.mxu1 %v8848_v33  ;;  %v9168_v7 = vcombine.high %v4433_v58, %v4449_v62  ;;  %v9170_v33 = vcombine.high %v4434_v1, %v4450_v2  ;;  %v9167_v43 = vcombine.low %v4433_v58, %v4449_v62  ;;  %v4385_v26 = vld [vmem:[#allocation16 + $0xcc0] sm:$0xff]  ;;  %v4386_v28 = vld [vmem:[#allocation16 + $0xcc8] sm:$0xff] }
 0x683   : > { %7592 = vmatprep.subr.bf16.mxu0 %v8850_v11  ;;  %v4401_v11 = vld [vmem:[#allocation16 + $0xd40] sm:$0xff]  ;;  %v4338_v63 = vld [vmem:[#allocation16 + $0xb48] sm:$0xff] }
 0x684   : > { %v9135_v29 = vcombine.low %v4401_v11, %v4417_v16  ;;  %v4353_v61 = vld [vmem:[#allocation16 + $0xbc0] sm:$0xff]  ;;  %v4354_v36 = vld [vmem:[#allocation16 + $0xbc8] sm:$0xff] }
 0x685   : > { %7552 = vmatpush1.bf16.msra.mxu1 %v8847_v22  ;;  %v9169_v22 = vcombine.low %v4434_v1, %v4450_v2  ;;  %v4321_v9 = vld [vmem:[#allocation16 + $0xac0] sm:$0xff]  ;;  %v4306_v0 = vld [vmem:[#allocation16 + $0xa48] sm:$0xff] }
 0x686   : > { %7593 = vmatpush1.bf16.msra.mxu0 %v8849_v23  ;;  %7553 = vmatprep.subr.bf16.mxu1 %v8816_v24  ;;  %v9136_v23 = vcombine.high %v4401_v11, %v4417_v16  ;;  %v9138_v24 = vcombine.high %v4402_v35, %v4418_v20  ;;  %v4322_v40 = vld [vmem:[#allocation16 + $0xac8] sm:$0xff]  ;;  %v4289_v54 = vld [vmem:[#allocation16 + $0x9c0] sm:$0xff]  ;;  %v4227_v11 = vld [vmem:[#allocation16 + $0x7d0] sm:$0xff] }
 0x687   : > { %7594 = vmatprep.subr.bf16.mxu0 %v8818_v50  ;;  %v4369_v50 = vld [vmem:[#allocation16 + $0xc40] sm:$0xff]  ;;  %v4274_v49 = vld [vmem:[#allocation16 + $0x948] sm:$0xff]  ;;  %v4212_v16 = vld [vmem:[#allocation16 + $0x758] sm:$0xff] }
 0x688   : > { %v9103_v37 = vcombine.low %v4369_v50, %v4385_v26  ;;  %v4290_v55 = vld [vmem:[#allocation16 + $0x9c8] sm:$0xff]  ;;  %v4257_v58 = vld [vmem:[#allocation16 + $0x8c0] sm:$0xff] }
 0x689   : > { %7554 = vmatpush1.bf16.msra.mxu1 %v8815_v30  ;;  %v9137_v30 = vcombine.low %v4402_v35, %v4418_v20  ;;  %v4242_v62 = vld [vmem:[#allocation16 + $0x848] sm:$0xff]  ;;  %v4228_v35 = vld [vmem:[#allocation16 + $0x7d8] sm:$0xff] }
 0x68a   : > { %7595 = vmatpush1.bf16.msra.mxu0 %v8817_v31  ;;  %7555 = vmatprep.subr.bf16.mxu1 %v8784_v32  ;;  %v9104_v31 = vcombine.high %v4369_v50, %v4385_v26  ;;  %v9106_v32 = vcombine.high %v4370_v27, %v4386_v28  ;;  %v4258_v1 = vld [vmem:[#allocation16 + $0x8c8] sm:$0xff]  ;;  %v4195_v50 = vld [vmem:[#allocation16 + $0x6d0] sm:$0xff] }
 0x68b   : > { %7596 = vmatprep.subr.bf16.mxu0 %v8786_v59  ;;  %v4337_v59 = vld [vmem:[#allocation16 + $0xb40] sm:$0xff] }
 0x68c   : > { %v9071_v4 = vcombine.low %v4337_v59, %v4353_v61 }
 0x68d   : > { %7556 = vmatpush1.bf16.msra.mxu1 %v8783_v60  ;;  %v9105_v60 = vcombine.low %v4370_v27, %v4386_v28  ;;  %v4180_v27 = vld [vmem:[#allocation16 + $0x658] sm:$0xff] }
 0x68e   : > { %7597 = vmatpush1.bf16.msra.mxu0 %v8785_v38  ;;  %7557 = vmatprep.subr.bf16.mxu1 %v8752_v39  ;;  %v9072_v38 = vcombine.high %v4337_v59, %v4353_v61  ;;  %v9074_v39 = vcombine.high %v4338_v63, %v4354_v36  ;;  %v4196_v28 = vld [vmem:[#allocation16 + $0x6d8] sm:$0xff]  ;;  %v7080_v59 = vrot.slane %v11402_v25, %v10702_v18 }
 0x68f   : > { %7598 = vmatprep.subr.bf16.mxu0 %v8754_v42  ;;  %v4305_v42 = vld [vmem:[#allocation16 + $0xa40] sm:$0xff]  ;;  %v7088_v61 = vrot.slane %v11402_v25, %v10705_v19 }
 0x690   : > { %v9039_v56 = vcombine.low %v4305_v42, %v4321_v9 }
 0x691   : > { %7558 = vmatpush1.bf16.msra.mxu1 %v8751_v41  ;;  %v9073_v41 = vcombine.low %v4338_v63, %v4354_v36  ;;  %v4163_v36 = vld [vmem:[#allocation16 + $0x5d0] sm:$0xff] }
 0x692   : > { %7599 = vmatpush1.bf16.msra.mxu0 %v8753_v51  ;;  %7559 = vmatprep.subr.bf16.mxu1 %v8720_v52  ;;  %v9040_v51 = vcombine.high %v4305_v42, %v4321_v9  ;;  %v9042_v52 = vcombine.high %v4306_v0, %v4322_v40  ;;  %v8918_v42 = vcombine.high %v4180_v27, %v4196_v28 }
 0x693   : > { %7600 = vmatprep.subr.bf16.mxu0 %v8722_v53  ;;  %v4273_v53 = vld [vmem:[#allocation16 + $0x940] sm:$0xff] }
 0x694   : > { %v9007_v2 = vcombine.low %v4273_v53, %v4289_v54 }
 0x695   : > { %7560 = vmatpush1.bf16.msra.mxu1 %v8719_v8  ;;  %v9041_v8 = vcombine.low %v4306_v0, %v4322_v40  ;;  %v8917_v0 = vcombine.low %v4180_v27, %v4196_v28 }
 0x696   : > { %7601 = vmatpush1.bf16.msra.mxu0 %v8721_v12  ;;  %7561 = vmatprep.subr.bf16.mxu1 %v9200_v57  ;;  %v9008_v12 = vcombine.high %v4273_v53, %v4289_v54  ;;  %v9010_v57 = vcombine.high %v4274_v49, %v4290_v55 }
 0x697   : > { %7602 = vmatprep.subr.bf16.mxu0 %v9202_v13  ;;  %v4241_v13 = vld [vmem:[#allocation16 + $0x840] sm:$0xff] }
 0x698   : > { %v8975_v20 = vcombine.low %v4241_v13, %v4257_v58 }
 0x699   : > { %7562 = vmatpush2.bf16.msra.mxu1 %v9199_v3  ;;  %v9009_v3 = vcombine.low %v4274_v49, %v4290_v55  ;;  %v4115_v49 = vld [vmem:[#allocation16 + $0x450] sm:$0xff] }
 0x69a   : > { %7603 = vmatpush2.bf16.msra.mxu0 %v9201_v6  ;;  %7563 = vmatprep.subr.bf16.mxu1 %v9168_v7  ;;  %v8976_v6 = vcombine.high %v4241_v13, %v4257_v58  ;;  %v8978_v7 = vcombine.high %v4242_v62, %v4258_v1  ;;  %v4131_v55 = vld [vmem:[#allocation16 + $0x4d0] sm:$0xff] }
 0x69b   : > { %7604 = vmatprep.subr.bf16.mxu0 %v9170_v33  ;;  %v4211_v33 = vld [vmem:[#allocation16 + $0x750] sm:$0xff] }
 0x69c   : > { %v8947_v26 = vcombine.low %v4211_v33, %v4227_v11 }
 0x69d   : > { %7564 = vmatpush2.bf16.msra.mxu1 %v9167_v43  ;;  %v8977_v43 = vcombine.low %v4242_v62, %v4258_v1 }
 0x69e   : > { %7605 = vmatpush2.bf16.msra.mxu0 %v9169_v22  ;;  %7565 = vmatprep.subr.bf16.mxu1 %v9136_v23  ;;  %v8948_v22 = vcombine.high %v4211_v33, %v4227_v11  ;;  %v8950_v23 = vcombine.high %v4212_v16, %v4228_v35 }
 0x69f   : > { %7606 = vmatprep.subr.bf16.mxu0 %v9138_v24  ;;  %v4179_v24 = vld [vmem:[#allocation16 + $0x650] sm:$0xff] }
 0x6a0   : > { %v8916_v63 = vcombine.high %v4179_v24, %v4195_v50  ;;  %v8915_v9 = vcombine.low %v4179_v24, %v4195_v50 }
 0x6a1   : > { %7566 = vmatpush2.bf16.msra.mxu1 %v9135_v29  ;;  %v7076_v29 = vrot.slane %v11402_v25, %v10696_v14 }
 0x6a2   : > { %7607 = vmatpush2.bf16.msra.mxu0 %v9137_v30  ;;  %7567 = vmatprep.subr.bf16.mxu1 %v9104_v31  ;;  %v8949_v30 = vcombine.low %v4212_v16, %v4228_v35  ;;  %v4147_v31 = vld [vmem:[#allocation16 + $0x550] sm:$0xff] }
 0x6a3   : > { %7608 = vmatprep.subr.bf16.mxu0 %v9106_v32  ;;  %v7084_v32 = vrot.slane %v11402_v25, %v10699_v15  ;;  %v8883_v62 = vcombine.low %v4147_v31, %v4163_v36  ;;  %v4083_v16 = vld [vmem:[#allocation16 + $0x350] sm:$0xff] }
 0x6a4   : > { %v4099_v35 = vld [vmem:[#allocation16 + $0x3d0] sm:$0xff] }
 0x6a5   : > { %7568 = vmatpush2.bf16.msra.mxu1 %v9103_v37  ;;  %v4148_v37 = vld [vmem:[#allocation16 + $0x558] sm:$0xff]  ;;  %v8820_v50 = vcombine.high %v4083_v16, %v4099_v35 }
 0x6a6   : > { %7609 = vmatpush2.bf16.msra.mxu0 %v9105_v60  ;;  %7569 = vmatprep.subr.bf16.mxu1 %v9072_v38  ;;  %v4164_v60 = vld [vmem:[#allocation16 + $0x5d8] sm:$0xff] }
 0x6a7   : > { %7610 = vmatprep.subr.bf16.mxu0 %v9074_v39 }
 0x6a9   : > { %7570 = vmatpush2.bf16.msra.mxu1 %v9071_v4 }
 0x6aa   : > { %7611 = vmatpush2.bf16.msra.mxu0 %v9073_v41  ;;  %7571 = vmatprep.subr.bf16.mxu1 %v9040_v51  ;;  %v8884_v41 = vcombine.high %v4147_v31, %v4163_v36  ;;  %v8886_v51 = vcombine.high %v4148_v37, %v4164_v60  ;;  %v4052_v31 = vld [vmem:[#allocation16 + $0x258] sm:$0xff]  ;;  %v4035_v36 = vld [vmem:[#allocation16 + $0x1d0] sm:$0xff] }
 0x6ab   : > { %7612 = vmatprep.subr.bf16.mxu0 %v9042_v52 }
 0x6ad   : > { %7572 = vmatpush2.bf16.msra.mxu1 %v9039_v56 }
 0x6ae   : > { %7613 = vmatpush2.bf16.msra.mxu0 %v9041_v8  ;;  %7573 = vmatprep.subr.bf16.mxu1 %v9008_v12  ;;  %v4116_v12 = vld [vmem:[#allocation16 + $0x458] sm:$0xff] }
 0x6af   : > { %7614 = vmatprep.subr.bf16.mxu0 %v9010_v57  ;;  %v4132_v57 = vld [vmem:[#allocation16 + $0x4d8] sm:$0xff] }
 0x6b0   : > { %v8854_v11 = vcombine.high %v4116_v12, %v4132_v57  ;;  %v8853_v24 = vcombine.low %v4116_v12, %v4132_v57 }
 0x6b1   : > { %7574 = vmatpush2.bf16.msra.mxu1 %v9007_v2 }
 0x6b2   : > { %7615 = vmatpush2.bf16.msra.mxu0 %v9009_v3  ;;  %7575 = vmatprep.subr.bf16.mxu1 %v8976_v6  ;;  %v8885_v3 = vcombine.low %v4148_v37, %v4164_v60  ;;  %v8852_v6 = vcombine.high %v4115_v49, %v4131_v55  ;;  %v4020_v37 = vld [vmem:[#allocation16 + $0x158] sm:$0xff] }
 0x6b3   : > { %7616 = vmatprep.subr.bf16.mxu0 %v8978_v7  ;;  %v4036_v60 = vld [vmem:[#allocation16 + $0x1d8] sm:$0xff] }
 0x6b5   : > { %7576 = vmatpush2.bf16.msra.mxu1 %v8975_v20  ;;  %v4084_v20 = vld [vmem:[#allocation16 + $0x358] sm:$0xff] }
 0x6b6   : > { %7617 = vmatpush2.bf16.msra.mxu0 %v8977_v43  ;;  %7627 = vmatprep.subr.bf16.mxu1 %v8948_v22  ;;  %v4100_v43 = vld [vmem:[#allocation16 + $0x3d8] sm:$0xff] }
 0x6b7   : > { %7668 = vmatprep.subr.bf16.mxu0 %v8950_v23  ;;  %v8851_v23 = vcombine.low %v4115_v49, %v4131_v55  ;;  %v8822_v28 = vcombine.high %v4084_v20, %v4100_v43  ;;  %v8821_v5 = vcombine.low %v4084_v20, %v4100_v43  ;;  %v4483_v49 = vld [vmem:[#allocation16 + $0xfd0] sm:$0xff]  ;;  %v4468_v55 = vld [vmem:[#allocation16 + $0xf58] sm:$0xff] }
 0x6b8   : > { %v7333_v38 = vpop.f32.mrf.mxu1  ;;  %v7374_v39 = vpop.f32.mrf.mxu0  ;;  %7578 = vmatmul.mubr.bf16.vlgmr.msra.gmra.mxu1 %v11386_v44  ;;  %v4420_v20 = vld [vmem:[#allocation16 + $0xdd8] sm:$0xff] }
 0x6b9   : > { %7619 = vmatmul.mubr.bf16.vlgmr.msra.gmra.mxu0 %v11386_v44  ;;  %7628 = vmatpush1.bf16.msra.mxu1 %v8947_v26  ;;  %v7334_v40 = vadd.f32 %v7333_v38, %v7076_v29  ;;  %v7375_v52 = vadd.f32 %v7374_v39, %v7084_v32  ;;  %v7945_v26 = vrot.slane %v7937_v21, %v10712_v34  ;;  %v4051_v29 = vld [vmem:[#allocation16 + $0x250] sm:$0xff]  ;;  %v4068_v32 = vld [vmem:[#allocation16 + $0x2d8] sm:$0xff] }
 0x6ba   : > { %7659 = vmatprep.mubr.bf16.mxu1 %v11384_v17  ;;  %7669 = vmatpush1.bf16.msra.mxu0 %v8949_v30  ;;  %v7335_v4 = vpop.f32.mrf.mxu1  ;;  %v7376_v25 = vpop.f32.mrf.mxu0  ;;  %v4067_v30 = vld [vmem:[#allocation16 + $0x2d0] sm:$0xff]  ;;  %v8790_v21 = vcombine.high %v4052_v31, %v4068_v32  ;;  %v8789_v39 = vcombine.low %v4052_v31, %v4068_v32 }
 0x6bb   : > { %7700 = vmatprep.mubr.bf16.mxu0 %v11384_v17  ;;  %v7336_v53 = vadd.f32 %v7335_v4, %v7080_v59  ;;  %v7377_v54 = vadd.f32 %v7376_v25, %v7088_v61  ;;  %7629 = vmatprep.subr.bf16.mxu1 %v8916_v63  ;;  %v8819_v61 = vcombine.low %v4083_v16, %v4099_v35  ;;  %v4019_v63 = vld [vmem:[#allocation16 + $0x150] sm:$0xff]  ;;  %v3988_v4 = vld [vmem:[#allocation16 + $0x58] sm:$0xff] }
 0x6bc   : > { %v7337_v56 = vpop.f32.mrf.mxu1  ;;  %v7378_v8 = vpop.f32.mrf.mxu0  ;;  %7670 = vmatprep.subr.bf16.mxu0 %v8918_v42  ;;  %v8788_v10 = vcombine.high %v4051_v29, %v4067_v30  ;;  %v8787_v38 = vcombine.low %v4051_v29, %v4067_v30  ;;  %v8756_v42 = vcombine.high %v4019_v63, %v4035_v36  ;;  %v4004_v25 = vld [vmem:[#allocation16 + $0xd8] sm:$0xff]  ;;  %v4419_v16 = vld [vmem:[#allocation16 + $0xdd0] sm:$0xff] }
 0x6bd   : > { %v7907_v13 = vcombine.low %v7334_v40, %v7336_v53  ;;  %v7908_v58 = vcombine.low %v7375_v52, %v7377_v54  ;;  %7630 = vmatpush1.bf16.msra.mxu1 %v8915_v9  ;;  %v8758_v9 = vcombine.high %v4020_v37, %v4036_v60  ;;  %v4003_v40 = vld [vmem:[#allocation16 + $0xd0] sm:$0xff]  ;;  %v8726_v53 = vcombine.high %v3988_v4, %v4004_v25  ;;  %v4484_v56 = vld [vmem:[#allocation16 + $0xfd8] sm:$0xff] }
 0x6be   : > { %7671 = vmatpush1.bf16.msra.mxu0 %v8917_v0  ;;  %v7338_v1 = vpop.f32.mrf.mxu1  ;;  %v7379_v2 = vpop.f32.mrf.mxu0  ;;  %7631 = vmatprep.subr.bf16.mxu1 %v8884_v41  ;;  %v3987_v0 = vld [vmem:[#allocation16 + $0x50] sm:$0xff]  ;;  %v8755_v41 = vcombine.low %v4019_v63, %v4035_v36  ;;  %v8725_v12 = vcombine.low %v3988_v4, %v4004_v25  ;;  %v4404_v35 = vld [vmem:[#allocation16 + $0xd58] sm:$0xff] }
 0x6bf   : > { %v7929_v7 = vrot.slane %v7907_v13, %v10712_v34  ;;  %v7936_v33 = vrot.slane %v7908_v58, %v10712_v34  ;;  %7672 = vmatprep.subr.bf16.mxu0 %v8886_v51  ;;  %v8757_v51 = vcombine.low %v4020_v37, %v4036_v60  ;;  %v8724_v52 = vcombine.high %v3987_v0, %v4003_v40  ;;  %v4467_v54 = vld [vmem:[#allocation16 + $0xf50] sm:$0xff]  ;;  %v4436_v1 = vld [vmem:[#allocation16 + $0xe58] sm:$0xff] }
 0x6c0   : > { %v8723_v8 = vcombine.low %v3987_v0, %v4003_v40  ;;  %v9204_v57 = vcombine.high %v4467_v54, %v4483_v49  ;;  %v9206_v13 = vcombine.high %v4468_v55, %v4484_v56  ;;  %v4435_v58 = vld [vmem:[#allocation16 + $0xe50] sm:$0xff]  ;;  %v4452_v2 = vld [vmem:[#allocation16 + $0xed8] sm:$0xff]  ;;  %v9141_v30 = vcombine.low %v4404_v35, %v4420_v20 }
 0x6c1   : > { %v7938_v22 = vcombine.low %v7929_v7, %v7936_v33  ;;  %7632 = vmatpush1.bf16.msra.mxu1 %v8883_v62  ;;  %v4451_v62 = vld [vmem:[#allocation16 + $0xed0] sm:$0xff]  ;;  %v9174_v33 = vcombine.high %v4436_v1, %v4452_v2 }
 0x6c2   : > { %7673 = vmatpush1.bf16.msra.mxu0 %v8885_v3  ;;  %7633 = vmatprep.subr.bf16.mxu1 %v8852_v6  ;;  %v9203_v3 = vcombine.low %v4467_v54, %v4483_v49  ;;  %v9205_v6 = vcombine.low %v4468_v55, %v4484_v56  ;;  %v9172_v7 = vcombine.high %v4435_v58, %v4451_v62  ;;  %v4307_v60 = vld [vmem:[#allocation16 + $0xa50] sm:$0xff] }
 0x6c3   : > { %v7952_v27 = vrot.slane %v7938_v22, %v10712_v34  ;;  %7674 = vmatprep.subr.bf16.mxu0 %v8854_v11  ;;  %v4403_v11 = vld [vmem:[#allocation16 + $0xd50] sm:$0xff]  ;;  %v9171_v43 = vcombine.low %v4435_v58, %v4451_v62  ;;  %v9173_v22 = vcombine.low %v4436_v1, %v4452_v2  ;;  %v4213_v2 = vld [vmem:[#allocation16 + $0x760] sm:$0xff] }
 0x6c4   : > { %v9139_v29 = vcombine.low %v4403_v11, %v4419_v16  ;;  %v4275_v25 = vld [vmem:[#allocation16 + $0x950] sm:$0xff] }
 0x6c5   : > { %v7953_v59 = vcombine.low %v7945_v26, %v7952_v27  ;;  %7634 = vmatpush1.bf16.msra.mxu1 %v8851_v23  ;;  %v9140_v23 = vcombine.high %v4403_v11, %v4419_v16  ;;  %v4387_v26 = vld [vmem:[#allocation16 + $0xcd0] sm:$0xff]  ;;  %v4372_v27 = vld [vmem:[#allocation16 + $0xc58] sm:$0xff] }
 0x6c6   : > { %7675 = vmatpush1.bf16.msra.mxu0 %v8853_v24  ;;  %7635 = vmatprep.subr.bf16.mxu1 %v8820_v50  ;;  %v9142_v24 = vcombine.high %v4404_v35, %v4420_v20  ;;  %v4371_v50 = vld [vmem:[#allocation16 + $0xc50] sm:$0xff]  ;;  %v11450_v20 = vld [vmem:[#allocation17 + $0x8] sm:$0xff] }
 0x6c7   : > { %8105 = vst [vmem:[%s11447_s17] sm:$0xff] %v7953_v59  ;;  %7676 = vmatprep.subr.bf16.mxu0 %v8822_v28  ;;  %v4388_v28 = vld [vmem:[#allocation16 + $0xcd8] sm:$0xff]  ;;  %v9108_v31 = vcombine.high %v4371_v50, %v4387_v26  ;;  %v4339_v59 = vld [vmem:[#allocation16 + $0xb50] sm:$0xff] }
 0x6c8   : > { %v9110_v32 = vcombine.high %v4372_v27, %v4388_v28  ;;  %v9109_v63 = vcombine.low %v4372_v27, %v4388_v28  ;;  %v4243_v56 = vld [vmem:[#allocation16 + $0x850] sm:$0xff]  ;;  %v7092_v27 = vrot.slane %v11450_v20, %v10686_v47  ;;  %v7096_v28 = vrot.slane %v11450_v20, %v10680_v45 }
 0x6c9   : > { %7636 = vmatpush1.bf16.msra.mxu1 %v8819_v61  ;;  %v4355_v61 = vld [vmem:[#allocation16 + $0xbd0] sm:$0xff] }
 0x6ca   : > { %7677 = vmatpush1.bf16.msra.mxu0 %v8821_v5  ;;  %7637 = vmatprep.subr.bf16.mxu1 %v8788_v10  ;;  %v4340_v5 = vld [vmem:[#allocation16 + $0xb58] sm:$0xff]  ;;  %v9076_v36 = vcombine.high %v4339_v59, %v4355_v61 }
 0x6cb   : > { %7678 = vmatprep.subr.bf16.mxu0 %v8790_v21  ;;  %v4356_v10 = vld [vmem:[#allocation16 + $0xbd8] sm:$0xff]  ;;  %v9107_v21 = vcombine.low %v4371_v50, %v4387_v26  ;;  %v4198_v50 = vld [vmem:[#allocation16 + $0x6e8] sm:$0xff] }
 0x6cc   : > { %v9078_v37 = vcombine.high %v4340_v5, %v4356_v10  ;;  %v9077_v0 = vcombine.low %v4340_v5, %v4356_v10  ;;  %v4150_v10 = vld [vmem:[#allocation16 + $0x568] sm:$0xff] }
 0x6cd   : > { %7638 = vmatpush1.bf16.msra.mxu1 %v8787_v38  ;;  %v4323_v38 = vld [vmem:[#allocation16 + $0xad0] sm:$0xff] }
 0x6ce   : > { %7679 = vmatpush1.bf16.msra.mxu0 %v8789_v39  ;;  %7639 = vmatprep.subr.bf16.mxu1 %v8756_v42  ;;  %v4308_v39 = vld [vmem:[#allocation16 + $0xa58] sm:$0xff]  ;;  %v9044_v40 = vcombine.high %v4307_v60, %v4323_v38 }
 0x6cf   : > { %7680 = vmatprep.subr.bf16.mxu0 %v8758_v9  ;;  %v4324_v42 = vld [vmem:[#allocation16 + $0xad8] sm:$0xff]  ;;  %v9075_v9 = vcombine.low %v4339_v59, %v4355_v61  ;;  %v7100_v59 = vrot.slane %v11450_v20, %v10689_v48  ;;  %v7104_v61 = vrot.slane %v11450_v20, %v10683_v46 }
 0x6d0   : > { %v9046_v4 = vcombine.high %v4308_v39, %v4324_v42  ;;  %v9045_v54 = vcombine.low %v4308_v39, %v4324_v42 }
 0x6d1   : > { %7640 = vmatpush1.bf16.msra.mxu1 %v8755_v41  ;;  %v4291_v41 = vld [vmem:[#allocation16 + $0x9d0] sm:$0xff] }
 0x6d2   : > { %7681 = vmatpush1.bf16.msra.mxu0 %v8757_v51  ;;  %7641 = vmatprep.subr.bf16.mxu1 %v8724_v52  ;;  %v4276_v51 = vld [vmem:[#allocation16 + $0x958] sm:$0xff]  ;;  %v9012_v49 = vcombine.high %v4275_v25, %v4291_v41 }
 0x6d3   : > { %7682 = vmatprep.subr.bf16.mxu0 %v8726_v53  ;;  %v4292_v52 = vld [vmem:[#allocation16 + $0x9d8] sm:$0xff]  ;;  %v9043_v53 = vcombine.low %v4307_v60, %v4323_v38 }
 0x6d4   : > { %v9014_v55 = vcombine.high %v4276_v51, %v4292_v52  ;;  %v9013_v58 = vcombine.low %v4276_v51, %v4292_v52  ;;  %v4118_v52 = vld [vmem:[#allocation16 + $0x468] sm:$0xff] }
 0x6d5   : > { %7642 = vmatpush1.bf16.msra.mxu1 %v8723_v8  ;;  %v4259_v8 = vld [vmem:[#allocation16 + $0x8d0] sm:$0xff] }
 0x6d6   : > { %7683 = vmatpush1.bf16.msra.mxu0 %v8725_v12  ;;  %7643 = vmatprep.subr.bf16.mxu1 %v9204_v57  ;;  %v4244_v12 = vld [vmem:[#allocation16 + $0x858] sm:$0xff]  ;;  %v8980_v62 = vcombine.high %v4243_v56, %v4259_v8 }
 0x6d7   : > { %7684 = vmatprep.subr.bf16.mxu0 %v9206_v13  ;;  %v4260_v57 = vld [vmem:[#allocation16 + $0x8d8] sm:$0xff]  ;;  %v9011_v13 = vcombine.low %v4275_v25, %v4291_v41 }
 0x6d8   : > { %v8982_v1 = vcombine.high %v4244_v12, %v4260_v57  ;;  %v8981_v11 = vcombine.low %v4244_v12, %v4260_v57 }
 0x6d9   : > { %7644 = vmatpush2.bf16.msra.mxu1 %v9203_v3  ;;  %v4229_v3 = vld [vmem:[#allocation16 + $0x7e0] sm:$0xff] }
 0x6da   : > { %7685 = vmatpush2.bf16.msra.mxu0 %v9205_v6  ;;  %7645 = vmatprep.subr.bf16.mxu1 %v9172_v7  ;;  %v4214_v6 = vld [vmem:[#allocation16 + $0x768] sm:$0xff]  ;;  %v8952_v16 = vcombine.high %v4213_v2, %v4229_v3 }
 0x6db   : > { %7686 = vmatprep.subr.bf16.mxu0 %v9174_v33  ;;  %v4230_v7 = vld [vmem:[#allocation16 + $0x7e8] sm:$0xff]  ;;  %v8979_v33 = vcombine.low %v4243_v56, %v4259_v8 }
 0x6dc   : > { %v8954_v35 = vcombine.high %v4214_v6, %v4230_v7  ;;  %v8953_v26 = vcombine.low %v4214_v6, %v4230_v7  ;;  %v4086_v6 = vld [vmem:[#allocation16 + $0x368] sm:$0xff] }
 0x6dd   : > { %7646 = vmatpush2.bf16.msra.mxu1 %v9171_v43  ;;  %v4181_v43 = vld [vmem:[#allocation16 + $0x660] sm:$0xff]  ;;  %v4102_v7 = vld [vmem:[#allocation16 + $0x3e8] sm:$0xff] }
 0x6de   : > { %7687 = vmatpush2.bf16.msra.mxu0 %v9173_v22  ;;  %7647 = vmatprep.subr.bf16.mxu1 %v9140_v23  ;;  %v4197_v22 = vld [vmem:[#allocation16 + $0x6e0] sm:$0xff]  ;;  %v8951_v23 = vcombine.low %v4213_v2, %v4229_v3 }
 0x6df   : > { %7688 = vmatprep.subr.bf16.mxu0 %v9142_v24  ;;  %v4182_v24 = vld [vmem:[#allocation16 + $0x668] sm:$0xff]  ;;  %v4101_v2 = vld [vmem:[#allocation16 + $0x3e0] sm:$0xff] }
 0x6e0   : > { %v8922_v5 = vcombine.high %v4182_v24, %v4198_v50  ;;  %v8921_v60 = vcombine.low %v4182_v24, %v4198_v50  ;;  %v4054_v24 = vld [vmem:[#allocation16 + $0x268] sm:$0xff] }
 0x6e1   : > { %7648 = vmatpush2.bf16.msra.mxu1 %v9139_v29  ;;  %v8920_v29 = vcombine.high %v4181_v43, %v4197_v22  ;;  %v4070_v50 = vld [vmem:[#allocation16 + $0x2e8] sm:$0xff] }
 0x6e2   : > { %7689 = vmatpush2.bf16.msra.mxu0 %v9141_v30  ;;  %7649 = vmatprep.subr.bf16.mxu1 %v9108_v31  ;;  %v4149_v30 = vld [vmem:[#allocation16 + $0x560] sm:$0xff] }
 0x6e3   : > { %7690 = vmatprep.subr.bf16.mxu0 %v9110_v32  ;;  %v4165_v31 = vld [vmem:[#allocation16 + $0x5e0] sm:$0xff] }
 0x6e4   : > { %v8888_v38 = vcombine.high %v4149_v30, %v4165_v31 }
 0x6e5   : > { %7650 = vmatpush2.bf16.msra.mxu1 %v9107_v21  ;;  %v4166_v21 = vld [vmem:[#allocation16 + $0x5e8] sm:$0xff] }
 0x6e6   : > { %7691 = vmatpush2.bf16.msra.mxu0 %v9109_v63  ;;  %7651 = vmatprep.subr.bf16.mxu1 %v9076_v36  ;;  %v8919_v36 = vcombine.low %v4181_v43, %v4197_v22  ;;  %v8889_v12 = vcombine.low %v4150_v10, %v4166_v21  ;;  %v8826_v43 = vcombine.high %v4086_v6, %v4102_v7  ;;  %v4053_v22 = vld [vmem:[#allocation16 + $0x260] sm:$0xff] }
 0x6e7   : > { %7692 = vmatprep.subr.bf16.mxu0 %v9078_v37 }
 0x6e9   : > { %7652 = vmatpush2.bf16.msra.mxu1 %v9075_v9 }
 0x6ea   : > { %7693 = vmatpush2.bf16.msra.mxu0 %v9077_v0  ;;  %7653 = vmatprep.subr.bf16.mxu1 %v9044_v40  ;;  %v8890_v0 = vcombine.high %v4150_v10, %v4166_v21  ;;  %v4117_v40 = vld [vmem:[#allocation16 + $0x460] sm:$0xff] }
 0x6eb   : > { %7694 = vmatprep.subr.bf16.mxu0 %v9046_v4  ;;  %v4133_v4 = vld [vmem:[#allocation16 + $0x4e0] sm:$0xff] }
 0x6ec   : > { %v8856_v57 = vcombine.high %v4117_v40, %v4133_v4 }
 0x6ed   : > { %7654 = vmatpush2.bf16.msra.mxu1 %v9043_v53  ;;  %v4134_v53 = vld [vmem:[#allocation16 + $0x4e8] sm:$0xff] }
 0x6ee   : > { %7695 = vmatpush2.bf16.msra.mxu0 %v9045_v54  ;;  %7655 = vmatprep.subr.bf16.mxu1 %v9012_v49 }
 0x6ef   : > { %7696 = vmatprep.subr.bf16.mxu0 %v9014_v55  ;;  %v8887_v55 = vcombine.low %v4149_v30, %v4165_v31  ;;  %v4021_v30 = vld [vmem:[#allocation16 + $0x160] sm:$0xff] }
 0x6f0   : > { %v4037_v31 = vld [vmem:[#allocation16 + $0x1e0] sm:$0xff] }
 0x6f1   : > { %7656 = vmatpush2.bf16.msra.mxu1 %v9011_v13  ;;  %v8760_v10 = vcombine.high %v4021_v30, %v4037_v31 }
 0x6f2   : > { %7697 = vmatpush2.bf16.msra.mxu0 %v9013_v58  ;;  %7657 = vmatprep.subr.bf16.mxu1 %v8980_v62  ;;  %v8858_v62 = vcombine.high %v4118_v52, %v4134_v53 }
 0x6f3   : > { %7698 = vmatprep.subr.bf16.mxu0 %v8982_v1  ;;  %v4085_v1 = vld [vmem:[#allocation16 + $0x360] sm:$0xff] }
 0x6f5   : > { %7658 = vmatpush2.bf16.msra.mxu1 %v8979_v33  ;;  %v8855_v33 = vcombine.low %v4117_v40, %v4133_v4  ;;  %v4485_v40 = vld [vmem:[#allocation16 + $0xfe0] sm:$0xff]  ;;  %v4470_v4 = vld [vmem:[#allocation16 + $0xf68] sm:$0xff] }
 0x6f6   : > { %7699 = vmatpush2.bf16.msra.mxu0 %v8981_v11  ;;  %7709 = vmatprep.subr.bf16.mxu1 %v8952_v16  ;;  %v8857_v16 = vcombine.low %v4118_v52, %v4134_v53 }
 0x6f7   : > { %7750 = vmatprep.subr.bf16.mxu0 %v8954_v35  ;;  %v8824_v35 = vcombine.high %v4085_v1, %v4101_v2 }
 0x6f8   : > { %v7415_v32 = vpop.f32.mrf.mxu1  ;;  %7660 = vmatmul.mubr.bf16.vlgmr.msra.gmra.mxu1 %v11386_v44 }
 0x6f9   : > { %v7456_v63 = vpop.f32.mrf.mxu0  ;;  %7701 = vmatmul.mubr.bf16.vlgmr.msra.gmra.mxu0 %v11386_v44  ;;  %7710 = vmatpush1.bf16.msra.mxu1 %v8951_v23  ;;  %v7416_v39 = vadd.f32 %v7415_v32, %v7092_v27  ;;  %v4069_v23 = vld [vmem:[#allocation16 + $0x2e0] sm:$0xff]  ;;  %v8825_v27 = vcombine.low %v4086_v6, %v4102_v7  ;;  %v4022_v32 = vld [vmem:[#allocation16 + $0x168] sm:$0xff] }
 0x6fa   : > { %7741 = vmatprep.mubr.bf16.mxu1 %v11384_v17  ;;  %7751 = vmatpush1.bf16.msra.mxu0 %v8953_v26  ;;  %v7417_v37 = vpop.f32.mrf.mxu1  ;;  %v7457_v25 = vadd.f32 %v7456_v63, %v7100_v59  ;;  %v8823_v26 = vcombine.low %v4085_v1, %v4101_v2  ;;  %v4038_v59 = vld [vmem:[#allocation16 + $0x1e8] sm:$0xff]  ;;  %v3989_v63 = vld [vmem:[#allocation16 + $0x60] sm:$0xff] }
 0x6fb   : > { %7782 = vmatprep.mubr.bf16.mxu0 %v11384_v17  ;;  %v7418_v42 = vadd.f32 %v7417_v37, %v7096_v28  ;;  %v7458_v9 = vpop.f32.mrf.mxu0  ;;  %7711 = vmatprep.subr.bf16.mxu1 %v8920_v29  ;;  %v8792_v28 = vcombine.high %v4053_v22, %v4069_v23  ;;  %v8794_v29 = vcombine.high %v4054_v24, %v4070_v50  ;;  %v3990_v37 = vld [vmem:[#allocation16 + $0x68] sm:$0xff]  ;;  %v4421_v1 = vld [vmem:[#allocation16 + $0xde0] sm:$0xff] }
 0x6fc   : > { %v7459_v41 = vadd.f32 %v7458_v9, %v7104_v61  ;;  %v7419_v51 = vpop.f32.mrf.mxu1  ;;  %7752 = vmatprep.subr.bf16.mxu0 %v8922_v5  ;;  %v8791_v61 = vcombine.low %v4053_v22, %v4069_v23  ;;  %v8793_v5 = vcombine.low %v4054_v24, %v4070_v50  ;;  %v8762_v21 = vcombine.high %v4022_v32, %v4038_v59  ;;  %v4406_v2 = vld [vmem:[#allocation16 + $0xd68] sm:$0xff]  ;;  %v4389_v22 = vld [vmem:[#allocation16 + $0xce0] sm:$0xff] }
 0x6fd   : > { %v7954_v54 = vcombine.low %v7416_v39, %v7418_v42  ;;  %v7460_v49 = vpop.f32.mrf.mxu0  ;;  %7712 = vmatpush1.bf16.msra.mxu1 %v8919_v36  ;;  %v4005_v36 = vld [vmem:[#allocation16 + $0xe0] sm:$0xff]  ;;  %v8761_v39 = vcombine.low %v4022_v32, %v4038_v59  ;;  %v4422_v6 = vld [vmem:[#allocation16 + $0xde8] sm:$0xff] }
 0x6fe   : > { %v7955_v56 = vcombine.low %v7457_v25, %v7459_v41  ;;  %7753 = vmatpush1.bf16.msra.mxu0 %v8921_v60  ;;  %v7420_v8 = vpop.f32.mrf.mxu1  ;;  %7713 = vmatprep.subr.bf16.mxu1 %v8888_v38  ;;  %v4006_v60 = vld [vmem:[#allocation16 + $0xe8] sm:$0xff]  ;;  %v8759_v38 = vcombine.low %v4021_v30, %v4037_v31  ;;  %v8728_v42 = vcombine.high %v3989_v63, %v4005_v36  ;;  %v4453_v49 = vld [vmem:[#allocation16 + $0xee0] sm:$0xff] }
 0x6ff   : > { %v11465_v13 = vrot.slane %v7954_v54, %v10712_v34  ;;  %v7461_v58 = vpop.f32.mrf.mxu0  ;;  %7754 = vmatprep.subr.bf16.mxu0 %v8890_v0  ;;  %v8730_v9 = vcombine.high %v3990_v37, %v4006_v60  ;;  %v4469_v0 = vld [vmem:[#allocation16 + $0xf60] sm:$0xff]  ;;  %v4486_v25 = vld [vmem:[#allocation16 + $0xfe8] sm:$0xff]  ;;  %v8727_v41 = vcombine.low %v3989_v63, %v4005_v36  ;;  %v8729_v51 = vcombine.low %v3990_v37, %v4006_v60 }
 0x700   : > { %v11468_v3 = vrot.slane %v7955_v56, %v10712_v34  ;;  %v9208_v52 = vcombine.high %v4469_v0, %v4485_v40  ;;  %v9210_v53 = vcombine.high %v4470_v4, %v4486_v25  ;;  %v4437_v54 = vld [vmem:[#allocation16 + $0xe60] sm:$0xff]  ;;  %v4454_v56 = vld [vmem:[#allocation16 + $0xee8] sm:$0xff]  ;;  %v9207_v8 = vcombine.low %v4469_v0, %v4485_v40 }
 0x701   : > { %7714 = vmatpush1.bf16.msra.mxu1 %v8887_v55  ;;  %v4438_v55 = vld [vmem:[#allocation16 + $0xe68] sm:$0xff]  ;;  %v9175_v7 = vcombine.low %v4437_v54, %v4453_v49  ;;  %v4357_v30 = vld [vmem:[#allocation16 + $0xbe0] sm:$0xff] }
 0x702   : > { %v7986_v11 = vcombine.low %v11465_v13, %v11468_v3  ;;  %7755 = vmatpush1.bf16.msra.mxu0 %v8889_v12  ;;  %7715 = vmatprep.subr.bf16.mxu1 %v8856_v57  ;;  %v9209_v12 = vcombine.low %v4470_v4, %v4486_v25  ;;  %v9176_v57 = vcombine.high %v4437_v54, %v4453_v49  ;;  %v4374_v23 = vld [vmem:[#allocation16 + $0xc68] sm:$0xff]  ;;  %v4325_v63 = vld [vmem:[#allocation16 + $0xae0] sm:$0xff]  ;;  %v4040_v13 = vld [vmem:[#allocation16 + $0x1f8] sm:$0xff] }
 0x703   : > { %7756 = vmatprep.subr.bf16.mxu0 %v8858_v62  ;;  %v9178_v58 = vcombine.high %v4438_v55, %v4454_v56  ;;  %v4405_v62 = vld [vmem:[#allocation16 + $0xd60] sm:$0xff]  ;;  %v4390_v24 = vld [vmem:[#allocation16 + $0xce8] sm:$0xff] }
 0x704   : > { %v9143_v50 = vcombine.low %v4405_v62, %v4421_v1  ;;  %v4342_v31 = vld [vmem:[#allocation16 + $0xb68] sm:$0xff]  ;;  %v4293_v0 = vld [vmem:[#allocation16 + $0x9e0] sm:$0xff] }
 0x705   : > { %7716 = vmatpush1.bf16.msra.mxu1 %v8855_v33  ;;  %v9177_v33 = vcombine.low %v4438_v55, %v4454_v56  ;;  %v4358_v32 = vld [vmem:[#allocation16 + $0xbe8] sm:$0xff]  ;;  %v4261_v54 = vld [vmem:[#allocation16 + $0x8e0] sm:$0xff] }
 0x706   : > { %7757 = vmatpush1.bf16.msra.mxu0 %v8857_v16  ;;  %7717 = vmatprep.subr.bf16.mxu1 %v8824_v35  ;;  %v9144_v16 = vcombine.high %v4405_v62, %v4421_v1  ;;  %v9146_v35 = vcombine.high %v4406_v2, %v4422_v6  ;;  %v4310_v36 = vld [vmem:[#allocation16 + $0xa68] sm:$0xff]  ;;  %v4231_v62 = vld [vmem:[#allocation16 + $0x7f0] sm:$0xff]  ;;  %v4216_v1 = vld [vmem:[#allocation16 + $0x778] sm:$0xff] }
 0x707   : > { %7758 = vmatprep.subr.bf16.mxu0 %v8826_v43  ;;  %v4373_v43 = vld [vmem:[#allocation16 + $0xc60] sm:$0xff]  ;;  %v4326_v37 = vld [vmem:[#allocation16 + $0xae8] sm:$0xff] }
 0x708   : > { %v9111_v59 = vcombine.low %v4373_v43, %v4389_v22  ;;  %v4278_v40 = vld [vmem:[#allocation16 + $0x968] sm:$0xff] }
 0x709   : > { %7718 = vmatpush1.bf16.msra.mxu1 %v8823_v26  ;;  %v9145_v26 = vcombine.low %v4406_v2, %v4422_v6  ;;  %v4294_v4 = vld [vmem:[#allocation16 + $0x9e8] sm:$0xff]  ;;  %v4232_v2 = vld [vmem:[#allocation16 + $0x7f8] sm:$0xff] }
 0x70a   : > { %7759 = vmatpush1.bf16.msra.mxu0 %v8825_v27  ;;  %7719 = vmatprep.subr.bf16.mxu1 %v8792_v28  ;;  %v9112_v27 = vcombine.high %v4373_v43, %v4389_v22  ;;  %v9114_v28 = vcombine.high %v4374_v23, %v4390_v24  ;;  %v4246_v49 = vld [vmem:[#allocation16 + $0x868] sm:$0xff]  ;;  %v4199_v43 = vld [vmem:[#allocation16 + $0x6f0] sm:$0xff] }
 0x70b   : > { %7760 = vmatprep.subr.bf16.mxu0 %v8794_v29  ;;  %v4341_v29 = vld [vmem:[#allocation16 + $0xb60] sm:$0xff]  ;;  %v4262_v55 = vld [vmem:[#allocation16 + $0x8e8] sm:$0xff] }
 0x70c   : > { %v9079_v60 = vcombine.low %v4341_v29, %v4357_v30 }
 0x70d   : > { %7720 = vmatpush1.bf16.msra.mxu1 %v8791_v61  ;;  %v9113_v61 = vcombine.low %v4374_v23, %v4390_v24  ;;  %v4184_v23 = vld [vmem:[#allocation16 + $0x678] sm:$0xff] }
 0x70e   : > { %7761 = vmatpush1.bf16.msra.mxu0 %v8793_v5  ;;  %7721 = vmatprep.subr.bf16.mxu1 %v8760_v10  ;;  %v9080_v5 = vcombine.high %v4341_v29, %v4357_v30  ;;  %v9082_v10 = vcombine.high %v4342_v31, %v4358_v32  ;;  %v4200_v24 = vld [vmem:[#allocation16 + $0x6f8] sm:$0xff]  ;;  %v4151_v29 = vld [vmem:[#allocation16 + $0x570] sm:$0xff] }
 0x70f   : > { %7762 = vmatprep.subr.bf16.mxu0 %v8762_v21  ;;  %v4309_v21 = vld [vmem:[#allocation16 + $0xa60] sm:$0xff]  ;;  %v4167_v30 = vld [vmem:[#allocation16 + $0x5f0] sm:$0xff] }
 0x710   : > { %v9047_v25 = vcombine.low %v4309_v21, %v4325_v63 }
 0x711   : > { %7722 = vmatpush1.bf16.msra.mxu1 %v8759_v38  ;;  %v9081_v38 = vcombine.low %v4342_v31, %v4358_v32  ;;  %v7116_v32 = vrot.slane %v11450_v20, %v10699_v15 }
 0x712   : > { %7763 = vmatpush1.bf16.msra.mxu0 %v8761_v39  ;;  %7723 = vmatprep.subr.bf16.mxu1 %v8728_v42  ;;  %v9048_v39 = vcombine.high %v4309_v21, %v4325_v63  ;;  %v9050_v42 = vcombine.high %v4310_v36, %v4326_v37 }
 0x713   : > { %7764 = vmatprep.subr.bf16.mxu0 %v8730_v9  ;;  %v4277_v9 = vld [vmem:[#allocation16 + $0x960] sm:$0xff] }
 0x714   : > { %v9015_v56 = vcombine.low %v4277_v9, %v4293_v0 }
 0x715   : > { %7724 = vmatpush1.bf16.msra.mxu1 %v8727_v41  ;;  %v9049_v41 = vcombine.low %v4310_v36, %v4326_v37  ;;  %v8925_v37 = vcombine.low %v4184_v23, %v4200_v24 }
 0x716   : > { %7765 = vmatpush1.bf16.msra.mxu0 %v8729_v51  ;;  %7725 = vmatprep.subr.bf16.mxu1 %v9208_v52  ;;  %v9016_v51 = vcombine.high %v4277_v9, %v4293_v0  ;;  %v9018_v52 = vcombine.high %v4278_v40, %v4294_v4  ;;  %v4119_v9 = vld [vmem:[#allocation16 + $0x470] sm:$0xff] }
 0x717   : > { %7766 = vmatprep.subr.bf16.mxu0 %v9210_v53  ;;  %v4245_v53 = vld [vmem:[#allocation16 + $0x860] sm:$0xff]  ;;  %v4135_v0 = vld [vmem:[#allocation16 + $0x4f0] sm:$0xff] }
 0x718   : > { %v8983_v6 = vcombine.low %v4245_v53, %v4261_v54 }
 0x719   : > { %7726 = vmatpush2.bf16.msra.mxu1 %v9207_v8  ;;  %v9017_v8 = vcombine.low %v4278_v40, %v4294_v4 }
 0x71a   : > { %7767 = vmatpush2.bf16.msra.mxu0 %v9209_v12  ;;  %7727 = vmatprep.subr.bf16.mxu1 %v9176_v57  ;;  %v8984_v12 = vcombine.high %v4245_v53, %v4261_v54  ;;  %v8986_v57 = vcombine.high %v4246_v49, %v4262_v55  ;;  %v8891_v54 = vcombine.low %v4151_v29, %v4167_v30 }
 0x71b   : > { %7768 = vmatprep.subr.bf16.mxu0 %v9178_v58  ;;  %v4215_v58 = vld [vmem:[#allocation16 + $0x770] sm:$0xff] }
 0x71c   : > { %v8955_v22 = vcombine.low %v4215_v58, %v4231_v62 }
 0x71d   : > { %7728 = vmatpush2.bf16.msra.mxu1 %v9175_v7  ;;  %v8985_v7 = vcombine.low %v4246_v49, %v4262_v55 }
 0x71e   : > { %7769 = vmatpush2.bf16.msra.mxu0 %v9177_v33  ;;  %7729 = vmatprep.subr.bf16.mxu1 %v9144_v16  ;;  %v8956_v33 = vcombine.high %v4215_v58, %v4231_v62  ;;  %v8958_v16 = vcombine.high %v4216_v1, %v4232_v2  ;;  %v4087_v58 = vld [vmem:[#allocation16 + $0x370] sm:$0xff] }
 0x71f   : > { %7770 = vmatprep.subr.bf16.mxu0 %v9146_v35  ;;  %v4183_v35 = vld [vmem:[#allocation16 + $0x670] sm:$0xff] }
 0x720   : > { %v8923_v63 = vcombine.low %v4183_v35, %v4199_v43  ;;  %v4103_v62 = vld [vmem:[#allocation16 + $0x3f0] sm:$0xff] }
 0x721   : > { %7730 = vmatpush2.bf16.msra.mxu1 %v9143_v50  ;;  %v8957_v50 = vcombine.low %v4216_v1, %v4232_v2  ;;  %v4088_v2 = vld [vmem:[#allocation16 + $0x378] sm:$0xff] }
 0x722   : > { %7771 = vmatpush2.bf16.msra.mxu0 %v9145_v26  ;;  %7731 = vmatprep.subr.bf16.mxu1 %v9112_v27  ;;  %v7108_v26 = vrot.slane %v11450_v20, %v10696_v14  ;;  %v7112_v27 = vrot.slane %v11450_v20, %v10702_v18 }
 0x723   : > { %7772 = vmatprep.subr.bf16.mxu0 %v9114_v28  ;;  %v8924_v28 = vcombine.high %v4183_v35, %v4199_v43  ;;  %v8828_v35 = vcombine.high %v4087_v58, %v4103_v62 }
 0x725   : > { %7732 = vmatpush2.bf16.msra.mxu1 %v9111_v59  ;;  %v7120_v59 = vrot.slane %v11450_v20, %v10705_v19 }
 0x726   : > { %7773 = vmatpush2.bf16.msra.mxu0 %v9113_v61  ;;  %7733 = vmatprep.subr.bf16.mxu1 %v9080_v5  ;;  %v8926_v61 = vcombine.high %v4184_v23, %v4200_v24  ;;  %v4152_v5 = vld [vmem:[#allocation16 + $0x578] sm:$0xff]  ;;  %v4071_v23 = vld [vmem:[#allocation16 + $0x2f0] sm:$0xff]  ;;  %v7994_v24 = vrot.slane %v7986_v11, %v10712_v34 }
 0x727   : > { %7774 = vmatprep.subr.bf16.mxu0 %v9082_v10  ;;  %v4168_v10 = vld [vmem:[#allocation16 + $0x5f8] sm:$0xff] }
 0x728   : > { %v8894_v20 = vcombine.high %v4152_v5, %v4168_v10 }
 0x729   : > { %7734 = vmatpush2.bf16.msra.mxu1 %v9079_v60  ;;  %v8892_v60 = vcombine.high %v4151_v29, %v4167_v30 }
 0x72a   : > { %7775 = vmatpush2.bf16.msra.mxu0 %v9081_v38  ;;  %7735 = vmatprep.subr.bf16.mxu1 %v9048_v39 }
 0x72b   : > { %7776 = vmatprep.subr.bf16.mxu0 %v9050_v42 }
 0x72d   : > { %7736 = vmatpush2.bf16.msra.mxu1 %v9047_v25 }
 0x72e   : > { %7777 = vmatpush2.bf16.msra.mxu0 %v9049_v41  ;;  %7737 = vmatprep.subr.bf16.mxu1 %v9016_v51  ;;  %v4120_v41 = vld [vmem:[#allocation16 + $0x478] sm:$0xff] }
 0x72f   : > { %7778 = vmatprep.subr.bf16.mxu0 %v9018_v52  ;;  %v4136_v51 = vld [vmem:[#allocation16 + $0x4f8] sm:$0xff] }
 0x731   : > { %7738 = vmatpush2.bf16.msra.mxu1 %v9015_v56  ;;  %v8860_v56 = vcombine.high %v4119_v9, %v4135_v0 }
 0x732   : > { %7779 = vmatpush2.bf16.msra.mxu0 %v9017_v8  ;;  %7739 = vmatprep.subr.bf16.mxu1 %v8984_v12 }
 0x733   : > { %7780 = vmatprep.subr.bf16.mxu0 %v8986_v57  ;;  %v8862_v57 = vcombine.high %v4120_v41, %v4136_v51 }
 0x735   : > { %7740 = vmatpush2.bf16.msra.mxu1 %v8983_v6  ;;  %v4104_v6 = vld [vmem:[#allocation16 + $0x3f8] sm:$0xff] }
 0x736   : > { %7781 = vmatpush2.bf16.msra.mxu0 %v8985_v7  ;;  %7791 = vmatprep.subr.bf16.mxu1 %v8956_v33  ;;  %v8859_v7 = vcombine.low %v4119_v9, %v4135_v0  ;;  %v8830_v43 = vcombine.high %v4088_v2, %v4104_v6  ;;  %v8829_v30 = vcombine.low %v4088_v2, %v4104_v6  ;;  %v4471_v9 = vld [vmem:[#allocation16 + $0xf70] sm:$0xff] }
 0x737   : > { %7832 = vmatprep.subr.bf16.mxu0 %v8958_v16  ;;  %v8861_v16 = vcombine.low %v4120_v41, %v4136_v51  ;;  %v4487_v0 = vld [vmem:[#allocation16 + $0xff0] sm:$0xff] }
 0x738   : > { %v7497_v31 = vpop.f32.mrf.mxu1  ;;  %7742 = vmatmul.mubr.bf16.vlgmr.msra.gmra.mxu1 %v11386_v44  ;;  %v9212_v51 = vcombine.high %v4471_v9, %v4487_v0 }
 0x739   : > { %v7538_v21 = vpop.f32.mrf.mxu0  ;;  %7783 = vmatmul.mubr.bf16.vlgmr.msra.gmra.mxu0 %v11386_v44  ;;  %7792 = vmatpush1.bf16.msra.mxu1 %v8955_v22  ;;  %v7498_v38 = vadd.f32 %v7497_v31, %v7108_v26  ;;  %v4055_v22 = vld [vmem:[#allocation16 + $0x270] sm:$0xff]  ;;  %v4056_v26 = vld [vmem:[#allocation16 + $0x278] sm:$0xff] }
 0x73a   : > { %7823 = vmatprep.mubr.bf16.mxu1 %v11384_v17  ;;  %7833 = vmatpush1.bf16.msra.mxu0 %v8957_v50  ;;  %v7499_v36 = vpop.f32.mrf.mxu1  ;;  %v7539_v40 = vadd.f32 %v7538_v21, %v7116_v32  ;;  %v8796_v31 = vcombine.high %v4055_v22, %v4071_v23  ;;  %v8795_v3 = vcombine.low %v4055_v22, %v4071_v23  ;;  %v4392_v22 = vld [vmem:[#allocation16 + $0xcf8] sm:$0xff] }
 0x73b   : > { %7864 = vmatprep.mubr.bf16.mxu0 %v11384_v17  ;;  %v7500_v39 = vadd.f32 %v7499_v36, %v7112_v27  ;;  %v7540_v42 = vpop.f32.mrf.mxu0  ;;  %7793 = vmatprep.subr.bf16.mxu1 %v8924_v28  ;;  %v8893_v17 = vcombine.low %v4152_v5, %v4168_v10  ;;  %v4072_v27 = vld [vmem:[#allocation16 + $0x2f8] sm:$0xff]  ;;  %v8827_v28 = vcombine.low %v4087_v58, %v4103_v62  ;;  %v4007_v36 = vld [vmem:[#allocation16 + $0xf0] sm:$0xff] }
 0x73c   : > { %v7541_v4 = vadd.f32 %v7540_v42, %v7120_v59  ;;  %v7501_v25 = vpop.f32.mrf.mxu1  ;;  %7834 = vmatprep.subr.bf16.mxu0 %v8926_v61  ;;  %v8798_v32 = vcombine.high %v4056_v26, %v4072_v27  ;;  %v4023_v59 = vld [vmem:[#allocation16 + $0x170] sm:$0xff]  ;;  %v4024_v5 = vld [vmem:[#allocation16 + $0x178] sm:$0xff]  ;;  %v8797_v11 = vcombine.low %v4056_v26, %v4072_v27 }
 0x73d   : > { %v7956_v52 = vcombine.low %v7498_v38, %v7500_v39  ;;  %v7542_v53 = vpop.f32.mrf.mxu0  ;;  %7794 = vmatpush1.bf16.msra.mxu1 %v8923_v63  ;;  %v4039_v61 = vld [vmem:[#allocation16 + $0x1f0] sm:$0xff]  ;;  %v8766_v21 = vcombine.high %v4024_v5, %v4040_v13  ;;  %v8765_v39 = vcombine.low %v4024_v5, %v4040_v13  ;;  %v4408_v62 = vld [vmem:[#allocation16 + $0xd78] sm:$0xff] }
 0x73e   : > { %v7957_v49 = vcombine.low %v7539_v40, %v7541_v4  ;;  %7835 = vmatpush1.bf16.msra.mxu0 %v8925_v37  ;;  %v7502_v55 = vpop.f32.mrf.mxu1  ;;  %7795 = vmatprep.subr.bf16.mxu1 %v8892_v60  ;;  %v8764_v10 = vcombine.high %v4023_v59, %v4039_v61  ;;  %v3991_v63 = vld [vmem:[#allocation16 + $0x70] sm:$0xff]  ;;  %v3992_v37 = vld [vmem:[#allocation16 + $0x78] sm:$0xff]  ;;  %v8763_v38 = vcombine.low %v4023_v59, %v4039_v61 }
 0x73f   : > { %v7978_v8 = vrot.slane %v7956_v52, %v10712_v34  ;;  %v7543_v12 = vpop.f32.mrf.mxu0  ;;  %7836 = vmatprep.subr.bf16.mxu0 %v8894_v20  ;;  %v4008_v60 = vld [vmem:[#allocation16 + $0xf8] sm:$0xff]  ;;  %v8732_v42 = vcombine.high %v3991_v63, %v4007_v36  ;;  %v8731_v25 = vcombine.low %v3991_v63, %v4007_v36  ;;  %v4439_v53 = vld [vmem:[#allocation16 + $0xe70] sm:$0xff] }
 0x740   : > { %v7985_v1 = vrot.slane %v7957_v49, %v10712_v34  ;;  %v8734_v20 = vcombine.high %v3992_v37, %v4008_v60  ;;  %v4472_v40 = vld [vmem:[#allocation16 + $0xf78] sm:$0xff]  ;;  %v8733_v41 = vcombine.low %v3992_v37, %v4008_v60  ;;  %v4423_v58 = vld [vmem:[#allocation16 + $0xdf0] sm:$0xff] }
 0x741   : > { %7796 = vmatpush1.bf16.msra.mxu1 %v8891_v54  ;;  %v4488_v4 = vld [vmem:[#allocation16 + $0xff8] sm:$0xff]  ;;  %v4455_v54 = vld [vmem:[#allocation16 + $0xef0] sm:$0xff] }
 0x742   : > { %v7987_v33 = vcombine.low %v7978_v8, %v7985_v1  ;;  %7837 = vmatpush1.bf16.msra.mxu0 %v8893_v17  ;;  %7797 = vmatprep.subr.bf16.mxu1 %v8860_v56  ;;  %v9214_v52 = vcombine.high %v4472_v40, %v4488_v4  ;;  %v4440_v49 = vld [vmem:[#allocation16 + $0xe78] sm:$0xff]  ;;  %v9211_v17 = vcombine.low %v4471_v9, %v4487_v0  ;;  %v4343_v27 = vld [vmem:[#allocation16 + $0xb70] sm:$0xff] }
 0x743   : > { %7838 = vmatprep.subr.bf16.mxu0 %v8862_v57  ;;  %v4456_v55 = vld [vmem:[#allocation16 + $0xef8] sm:$0xff]  ;;  %v9213_v56 = vcombine.low %v4472_v40, %v4488_v4  ;;  %v9180_v8 = vcombine.high %v4439_v53, %v4455_v54  ;;  %v4407_v57 = vld [vmem:[#allocation16 + $0xd70] sm:$0xff]  ;;  %v9179_v2 = vcombine.low %v4439_v53, %v4455_v54 }
 0x744   : > { %v8001_v50 = vrot.slane %v7987_v33, %v10712_v34  ;;  %v9182_v12 = vcombine.high %v4440_v49, %v4456_v55  ;;  %v4424_v1 = vld [vmem:[#allocation16 + $0xdf8] sm:$0xff]  ;;  %v9181_v6 = vcombine.low %v4440_v49, %v4456_v55  ;;  %v9147_v23 = vcombine.low %v4407_v57, %v4423_v58  ;;  %v4311_v5 = vld [vmem:[#allocation16 + $0xa70] sm:$0xff] }
 0x745   : > { %7798 = vmatpush1.bf16.msra.mxu1 %v8859_v7  ;;  %v9148_v7 = vcombine.high %v4407_v57, %v4423_v58  ;;  %v9150_v33 = vcombine.high %v4408_v62, %v4424_v1  ;;  %v4327_v13 = vld [vmem:[#allocation16 + $0xaf0] sm:$0xff] }
 0x746   : > { %v8002_v29 = vcombine.low %v7994_v24, %v8001_v50  ;;  %7839 = vmatpush1.bf16.msra.mxu0 %v8861_v16  ;;  %7799 = vmatprep.subr.bf16.mxu1 %v8828_v35  ;;  %v4375_v16 = vld [vmem:[#allocation16 + $0xc70] sm:$0xff]  ;;  %v9149_v24 = vcombine.low %v4408_v62, %v4424_v1  ;;  %v9052_v63 = vcombine.high %v4311_v5, %v4327_v13 }
 0x747   : > { %7840 = vmatprep.subr.bf16.mxu0 %v8830_v43  ;;  %v4391_v35 = vld [vmem:[#allocation16 + $0xcf0] sm:$0xff]  ;;  %v4376_v43 = vld [vmem:[#allocation16 + $0xc78] sm:$0xff] }
 0x748   : > { %8106 = vst [vmem:[%s11447_s17 + $0x8] sm:$0xff] %v8002_v29  ;;  %v9116_v50 = vcombine.high %v4375_v16, %v4391_v35  ;;  %v9118_v26 = vcombine.high %v4376_v43, %v4392_v22  ;;  %v4344_v29 = vld [vmem:[#allocation16 + $0xb78] sm:$0xff]  ;;  %v4279_v37 = vld [vmem:[#allocation16 + $0x970] sm:$0xff] }
 0x749   : > { %7800 = vmatpush1.bf16.msra.mxu1 %v8827_v28  ;;  %v4359_v28 = vld [vmem:[#allocation16 + $0xbf0] sm:$0xff] }
 0x74a   : > { %7841 = vmatpush1.bf16.msra.mxu0 %v8829_v30  ;;  %7801 = vmatprep.subr.bf16.mxu1 %v8796_v31  ;;  %v4360_v30 = vld [vmem:[#allocation16 + $0xbf8] sm:$0xff]  ;;  %v9115_v31 = vcombine.low %v4375_v16, %v4391_v35  ;;  %v9084_v59 = vcombine.high %v4343_v27, %v4359_v28  ;;  %v4295_v60 = vld [vmem:[#allocation16 + $0x9f0] sm:$0xff] }
 0x74b   : > { %7842 = vmatprep.subr.bf16.mxu0 %v8798_v32  ;;  %v9117_v32 = vcombine.low %v4376_v43, %v4392_v22  ;;  %v9086_v61 = vcombine.high %v4344_v29, %v4360_v30  ;;  %v9020_v9 = vcombine.high %v4279_v37, %v4295_v60  ;;  %v4247_v40 = vld [vmem:[#allocation16 + $0x870] sm:$0xff] }
 0x74c   : > { %v4263_v4 = vld [vmem:[#allocation16 + $0x8f0] sm:$0xff] }
 0x74d   : > { %7802 = vmatpush1.bf16.msra.mxu1 %v8795_v3  ;;  %v4312_v3 = vld [vmem:[#allocation16 + $0xa78] sm:$0xff]  ;;  %v8988_v53 = vcombine.high %v4247_v40, %v4263_v4  ;;  %v8987_v49 = vcombine.low %v4247_v40, %v4263_v4 }
 0x74e   : > { %7843 = vmatpush1.bf16.msra.mxu0 %v8797_v11  ;;  %7803 = vmatprep.subr.bf16.mxu1 %v8764_v10  ;;  %v4328_v11 = vld [vmem:[#allocation16 + $0xaf8] sm:$0xff]  ;;  %v9083_v10 = vcombine.low %v4343_v27, %v4359_v28 }
 0x74f   : > { %7844 = vmatprep.subr.bf16.mxu0 %v8766_v21  ;;  %v9085_v21 = vcombine.low %v4344_v29, %v4360_v30  ;;  %v9054_v36 = vcombine.high %v4312_v3, %v4328_v11  ;;  %v4492_v4 = vld [vmem:[#allocation17 + $0x18] sm:$0xff] }
 0x751   : > { %7804 = vmatpush1.bf16.msra.mxu1 %v8763_v38  ;;  %v4280_v38 = vld [vmem:[#allocation16 + $0x978] sm:$0xff] }
 0x752   : > { %7845 = vmatpush1.bf16.msra.mxu0 %v8765_v39  ;;  %7805 = vmatprep.subr.bf16.mxu1 %v8732_v42  ;;  %v4296_v39 = vld [vmem:[#allocation16 + $0x9f8] sm:$0xff]  ;;  %v9051_v42 = vcombine.low %v4311_v5, %v4327_v13 }
 0x753   : > { %7846 = vmatprep.subr.bf16.mxu0 %v8734_v20  ;;  %v9053_v20 = vcombine.low %v4312_v3, %v4328_v11  ;;  %v9022_v0 = vcombine.high %v4280_v38, %v4296_v39 }
 0x755   : > { %7806 = vmatpush1.bf16.msra.mxu1 %v8731_v25  ;;  %v4248_v25 = vld [vmem:[#allocation16 + $0x878] sm:$0xff] }
 0x756   : > { %7847 = vmatpush1.bf16.msra.mxu0 %v8733_v41  ;;  %7807 = vmatprep.subr.bf16.mxu1 %v9212_v51  ;;  %v4264_v41 = vld [vmem:[#allocation16 + $0x8f8] sm:$0xff]  ;;  %v9019_v51 = vcombine.low %v4279_v37, %v4295_v60 }
 0x757   : > { %7848 = vmatprep.subr.bf16.mxu0 %v9214_v52  ;;  %v9021_v52 = vcombine.low %v4280_v38, %v4296_v39  ;;  %v8990_v54 = vcombine.high %v4248_v25, %v4264_v41  ;;  %v8989_v55 = vcombine.low %v4248_v25, %v4264_v41  ;;  %v7156_v25 = vrot.slane %v4492_v4, %v10686_v47 }
 0x758   : > { %v7160_v41 = vrot.slane %v4492_v4, %v10680_v45 }
 0x759   : > { %7808 = vmatpush2.bf16.msra.mxu1 %v9211_v17  ;;  %v4491_v17 = vld [vmem:[#allocation17 + $0x10] sm:$0xff] }
 0x75a   : > { %7849 = vmatpush2.bf16.msra.mxu0 %v9213_v56  ;;  %7809 = vmatprep.subr.bf16.mxu1 %v9180_v8  ;;  %v7124_v56 = vrot.slane %v4491_v17, %v10686_v47  ;;  %v7128_v8 = vrot.slane %v4491_v17, %v10680_v45  ;;  %v7132_v57 = vrot.slane %v4491_v17, %v10689_v48 }
 0x75b   : > { %7850 = vmatprep.subr.bf16.mxu0 %v9182_v12  ;;  %v7136_v58 = vrot.slane %v4491_v17, %v10683_v46  ;;  %v7140_v29 = vrot.slane %v4491_v17, %v10696_v14 }
 0x75d   : > { %7810 = vmatpush2.bf16.msra.mxu1 %v9179_v2 }
 0x75e   : > { %7851 = vmatpush2.bf16.msra.mxu0 %v9181_v6  ;;  %7811 = vmatprep.subr.bf16.mxu1 %v9148_v7 }
 0x75f   : > { %7852 = vmatprep.subr.bf16.mxu0 %v9150_v33 }
 0x761   : > { %7812 = vmatpush2.bf16.msra.mxu1 %v9147_v23 }
 0x762   : > { %7853 = vmatpush2.bf16.msra.mxu0 %v9149_v24  ;;  %7813 = vmatprep.subr.bf16.mxu1 %v9116_v50 }
 0x763   : > { %7854 = vmatprep.subr.bf16.mxu0 %v9118_v26 }
 0x765   : > { %7814 = vmatpush2.bf16.msra.mxu1 %v9115_v31  ;;  %v7148_v31 = vrot.slane %v4491_v17, %v10699_v15 }
 0x766   : > { %7855 = vmatpush2.bf16.msra.mxu0 %v9117_v32  ;;  %7815 = vmatprep.subr.bf16.mxu1 %v9084_v59  ;;  %v7152_v32 = vrot.slane %v4491_v17, %v10705_v19 }
 0x767   : > { %7856 = vmatprep.subr.bf16.mxu0 %v9086_v61 }
 0x769   : > { %7816 = vmatpush2.bf16.msra.mxu1 %v9083_v10 }
 0x76a   : > { %7857 = vmatpush2.bf16.msra.mxu0 %v9085_v21  ;;  %7817 = vmatprep.subr.bf16.mxu1 %v9052_v63 }
 0x76b   : > { %7858 = vmatprep.subr.bf16.mxu0 %v9054_v36 }
 0x76d   : > { %7818 = vmatpush2.bf16.msra.mxu1 %v9051_v42 }
 0x76e   : > { %7859 = vmatpush2.bf16.msra.mxu0 %v9053_v20  ;;  %7819 = vmatprep.subr.bf16.mxu1 %v9020_v9 }
 0x76f   : > { %7860 = vmatprep.subr.bf16.mxu0 %v9022_v0 }
 0x771   : > { %7820 = vmatpush2.bf16.msra.mxu1 %v9019_v51 }
 0x772   : > { %7861 = vmatpush2.bf16.msra.mxu0 %v9021_v52  ;;  %7821 = vmatprep.subr.bf16.mxu1 %v8988_v53  ;;  %v7164_v52 = vrot.slane %v4492_v4, %v10689_v48  ;;  %v7168_v53 = vrot.slane %v4492_v4, %v10683_v46  ;;  %v7172_v46 = vrot.slane %v4492_v4, %v10696_v14 }
 0x773   : > { %7862 = vmatprep.subr.bf16.mxu0 %v8990_v54 }
 0x775   : > { %7822 = vmatpush2.bf16.msra.mxu1 %v8987_v49 }
 0x776   : > { %7863 = vmatpush2.bf16.msra.mxu0 %v8989_v55 }
 0x778   : > { %v7579_v12 = vpop.f32.mrf.mxu1  ;;  %7824 = vmatmul.mubr.bf16.vlgmr.msra.gmra.mxu1 %v11386_v44 }
 0x779   : > { %v7620_v62 = vpop.f32.mrf.mxu0  ;;  %7865 = vmatmul.mubr.bf16.vlgmr.msra.gmra.mxu0 %v11386_v44  ;;  %v7580_v2 = vadd.f32 %v7579_v12, %v7124_v56  ;;  %v7144_v44 = vrot.slane %v4491_v17, %v10702_v18 }
 0x77a   : > { %v7581_v1 = vpop.f32.mrf.mxu1  ;;  %v7621_v33 = vadd.f32 %v7620_v62, %v7132_v57 }
 0x77b   : > { %v7582_v6 = vadd.f32 %v7581_v1, %v7128_v8  ;;  %v7622_v7 = vpop.f32.mrf.mxu0 }
 0x77c   : > { %v7623_v16 = vadd.f32 %v7622_v7, %v7136_v58  ;;  %v7583_v35 = vpop.f32.mrf.mxu1  ;;  %v7176_v7 = vrot.slane %v4492_v4, %v10702_v18 }
 0x77d   : > { %v8003_v43 = vcombine.low %v7580_v2, %v7582_v6  ;;  %v7624_v22 = vpop.f32.mrf.mxu0  ;;  %v7184_v35 = vrot.slane %v4492_v4, %v10705_v19 }
 0x77e   : > { %v8004_v23 = vcombine.low %v7621_v33, %v7623_v16  ;;  %v7584_v24 = vpop.f32.mrf.mxu1  ;;  %v7180_v16 = vrot.slane %v4492_v4, %v10699_v15 }
 0x77f   : > { %v8013_v50 = vrot.slane %v8003_v43, %v10712_v34  ;;  %v7625_v26 = vpop.f32.mrf.mxu0 }
 0x780   : > { %v8020_v27 = vrot.slane %v8004_v23, %v10712_v34 }
 0x782   : > { %v8035_v28 = vcombine.low %v8013_v50, %v8020_v27 }
 0x784   : > { %v8043_v9 = vrot.slane %v8035_v28, %v10712_v34 }
 0x7b8   : > { %v7661_v30 = vpop.f32.mrf.mxu1 }
 0x7b9   : > { %v7702_v59 = vpop.f32.mrf.mxu0  ;;  %v7662_v5 = vadd.f32 %v7661_v30, %v7140_v29 }
 0x7ba   : > { %v7663_v61 = vpop.f32.mrf.mxu1  ;;  %v7703_v11 = vadd.f32 %v7702_v59, %v7148_v31 }
 0x7bb   : > { %v7664_v13 = vadd.f32 %v7663_v61, %v7144_v44  ;;  %v7704_v3 = vpop.f32.mrf.mxu0 }
 0x7bc   : > { %v7705_v10 = vadd.f32 %v7704_v3, %v7152_v32  ;;  %v7665_v21 = vpop.f32.mrf.mxu1 }
 0x7bd   : > { %v8005_v63 = vcombine.low %v7662_v5, %v7664_v13  ;;  %v7706_v36 = vpop.f32.mrf.mxu0 }
 0x7be   : > { %v8006_v37 = vcombine.low %v7703_v11, %v7705_v10  ;;  %v7666_v60 = vpop.f32.mrf.mxu1 }
 0x7bf   : > { %v8027_v38 = vrot.slane %v8005_v63, %v10712_v34  ;;  %v7707_v39 = vpop.f32.mrf.mxu0 }
 0x7c0   : > { %v8034_v42 = vrot.slane %v8006_v37, %v10712_v34 }
 0x7c2   : > { %v8036_v20 = vcombine.low %v8027_v38, %v8034_v42 }
 0x7c4   : > { %v8050_v0 = vrot.slane %v8036_v20, %v10712_v34 }
 0x7c6   : > { %v8051_v40 = vcombine.low %v8043_v9, %v8050_v0 }
 0x7c8   : > { %8107 = vst [vmem:[%s11447_s17 + $0x10] sm:$0xff] %v8051_v40 }
 0x7f8   : > { %v7743_v51 = vpop.f32.mrf.mxu1 }
 0x7f9   : > { %v7784_v54 = vpop.f32.mrf.mxu0  ;;  %v7744_v55 = vadd.f32 %v7743_v51, %v7156_v25 }
 0x7fa   : > { %v7745_v49 = vpop.f32.mrf.mxu1  ;;  %v7785_v8 = vadd.f32 %v7784_v54, %v7164_v52 }
 0x7fb   : > { %v7746_v17 = vadd.f32 %v7745_v49, %v7160_v41  ;;  %v7786_v56 = vpop.f32.mrf.mxu0 }
 0x7fc   : > { %v7787_v12 = vadd.f32 %v7786_v56, %v7168_v53  ;;  %v7747_v57 = vpop.f32.mrf.mxu1 }
 0x7fd   : > { %v8052_v58 = vcombine.low %v7744_v55, %v7746_v17  ;;  %v7788_v62 = vpop.f32.mrf.mxu0 }
 0x7fe   : > { %v8053_v1 = vcombine.low %v7785_v8, %v7787_v12  ;;  %v7748_v2 = vpop.f32.mrf.mxu1 }
 0x7ff   : > { %v8062_v47 = vrot.slane %v8052_v58, %v10712_v34  ;;  %v7789_v45 = vpop.f32.mrf.mxu0 }
 0x800   : > { %v8069_v6 = vrot.slane %v8053_v1, %v10712_v34 }
 0x802   : > { %v8084_v48 = vcombine.low %v8062_v47, %v8069_v6 }
 0x804   : > { %v8092_v19 = vrot.slane %v8084_v48, %v10712_v34 }
 0x838   : > { %v7825_v33 = vpop.f32.mrf.mxu1 }
 0x839   : > { %v7866_v43 = vpop.f32.mrf.mxu0  ;;  %v7826_v23 = vadd.f32 %v7825_v33, %v7172_v46 }
 0x83a   : > { %v7827_v22 = vpop.f32.mrf.mxu1  ;;  %v7867_v26 = vadd.f32 %v7866_v43, %v7180_v16 }
 0x83b   : > { %v7828_v24 = vadd.f32 %v7827_v22, %v7176_v7  ;;  %v7868_v50 = vpop.f32.mrf.mxu0 }
 0x83c   : > { %v7869_v27 = vadd.f32 %v7868_v50, %v7184_v35  ;;  %v7829_v28 = vpop.f32.mrf.mxu1 }
 0x83d   : > { %v8054_v29 = vcombine.low %v7826_v23, %v7828_v24  ;;  %v7870_v44 = vpop.f32.mrf.mxu0 }
 0x83e   : > { %v8055_v30 = vcombine.low %v7867_v26, %v7869_v27  ;;  %v7830_v14 = vpop.f32.mrf.mxu1 }
 0x83f   : > { %v8076_v18 = vrot.slane %v8054_v29, %v10712_v34  ;;  %v7871_v31 = vpop.f32.mrf.mxu0 }
 0x840   : > { %v8083_v15 = vrot.slane %v8055_v30, %v10712_v34 }
 0x842   : > { %v8085_v32 = vcombine.low %v8076_v18, %v8083_v15 }
 0x844   : > { %v8099_v59 = vrot.slane %v8085_v32, %v10712_v34 }
 0x846   : > { %v8100_v61 = vcombine.low %v8092_v19, %v8099_v59 }
 0x848   : > { %8108 = vst [vmem:[%s11447_s17 + $0x18] sm:$0xff] %v8100_v61 }
 0x849 PF: > { %s29_s27 = sadd.s32 1, %s10199_s27   ;;  %s11560_s25 = smov %s10195_s26 }
 0x84a   : > { %p26_p6 = scmp.ge.s32.totalorder %s29_s27, 4   ;;  %s11561_s26 = smov %s11563_s3 }
 0x84c   :  { %28 = sbr.rel (!%p26_p6) target bundleno = 10 (0xa), region = 151 }
 0x851   :  { %8128 = vsyncpa [#allocation4], 1 }
 0x852   :  { %8130 = vsyncpa [#allocation4 + $0x1], 1 }
 0x853   :  { %8131 = vsyncpa [#allocation6], 1 }
 0x854   :  { %8132 = vsyncpa [#allocation9], 1 }
 0x855   :  { %8133 = vsyncpa [#allocation12], 1 }
 0x856   :  { %8134 = vsyncpa [#allocation15], 1 }
 0x857   :  { %8135 = vsyncpa [#allocation18], 1 }

</bundles_post_ra>
